<compile_context>
chip_gen: v6e
topology: v6e:2x2x1
jax: 0.10.0
libtpu: 0.0.40
codegen_flags: <defaults>
</compile_context>

<pallas_src>
import jax
import jax.numpy as jnp
from jax import lax
from jax.experimental import pallas as pl
from jax.experimental.pallas import tpu as pltpu


# ---------------------------------------------------------------------------
# Small helpers
# ---------------------------------------------------------------------------
def _round_up(x, m):
    return ((x + m - 1) // m) * m


def _choose_batch_tile(B):
    """Sublane-aligned batch tile; prefer >=2 grid tiles (v7x megacore)."""
    Bp = _round_up(B, 8)
    if Bp >= 16:
        TB = min(128, _round_up(pl.cdiv(Bp, 2), 8))
    else:
        TB = Bp
    Bp = _round_up(Bp, TB)
    return TB, Bp


def _time_chunk(T, max_chunk=32):
    tc = min(T, max_chunk)
    while T % tc:
        tc -= 1
    return tc


def _reorder_gates(w, H):
    # PyTorch gate packing is [i, f, g, o]; kernel wants [i, f, o, g] so one
    # sigmoid covers a contiguous 3H slab and one tanh covers the last H.
    return jnp.concatenate(
        [w[..., :2 * H], w[..., 3 * H:4 * H], w[..., 2 * H:3 * H]], axis=-1)


def _vmem_limit(nbytes, headroom=8 << 20):
    return int(min(128 << 20, max(nbytes + headroom, 16 << 20)))


# ---------------------------------------------------------------------------
# Bidirectional LSTM layer kernel (one layer, both directions, full sequence)
# ---------------------------------------------------------------------------
def bilstm_layer_kernel(x_ref, wif_ref, whf_ref, bf_ref,
                        wib_ref, whb_ref, bb_ref,
                        y_ref, xpf_ref, xpb_ref):
    # x_ref: (T, TB, D) time-major   y_ref: (T, TB, 2H)
    T, TB, D = x_ref.shape
    H = whf_ref.shape[0]
    Tc = xpf_ref.shape[0]
    n_chunks = T // Tc

    # Hoist weight loads / bf16 casts out of all loops (MXU is bf16-native,
    # f32 accumulation via preferred_element_type).
    wif = wif_ref[...].astype(jnp.bfloat16)
    wib = wib_ref[...].astype(jnp.bfloat16)
    whf = whf_ref[...].astype(jnp.bfloat16)
    whb = whb_ref[...].astype(jnp.bfloat16)
    bf = bf_ref[...]
    bb = bb_ref[...]

    def gate_step(pre, h, c, whh):
        gates = pre + jnp.dot(h.astype(jnp.bfloat16), whh,
                              preferred_element_type=jnp.float32)
        # gate layout (reordered in wrapper): [i | f | o | g]
        sg = jax.nn.sigmoid(gates[:, 0:3 * H])       # single EUP slab
        i = sg[:, 0:H]
        f = sg[:, H:2 * H]
        o = sg[:, 2 * H:3 * H]
        g = jnp.tanh(gates[:, 3 * H:4 * H])
        c_new = f * c + i * g
        h_new = o * jnp.tanh(c_new)
        return h_new, c_new

    zeros = jnp.zeros((TB, H), jnp.float32)

    def chunk_body(ci, carry):
        hf, cf, hb, cb = carry
        f0 = pl.multiple_of(ci * Tc, Tc)                    # fwd chunk start
        b0 = pl.multiple_of((n_chunks - 1 - ci) * Tc, Tc)   # bwd chunk start

        # Just-in-time input projection for this chunk (both directions):
        # one big MXU matmul each; scratch stays O(Tc * TB * 4H).
        xf = x_ref[pl.ds(f0, Tc), :, :].reshape(Tc * TB, D).astype(jnp.bfloat16)
        xb = x_ref[pl.ds(b0, Tc), :, :].reshape(Tc * TB, D).astype(jnp.bfloat16)
        xpf_ref[...] = (jnp.dot(xf, wif, preferred_element_type=jnp.float32)
                        + bf).reshape(Tc, TB, 4 * H)
        xpb_ref[...] = (jnp.dot(xb, wib, preferred_element_type=jnp.float32)
                        + bb).reshape(Tc, TB, 4 * H)

        def step(tl, c2):
            hf, cf, hb, cb = c2
            # forward direction
            hf, cf = gate_step(xpf_ref[tl], hf, cf, whf)
            y_ref[f0 + tl, :, pl.ds(0, H)] = hf
            # backward direction (independent -> interleaves on MXU/EUP)
            tbl = Tc - 1 - tl
            hb, cb = gate_step(xpb_ref[tbl], hb, cb, whb)
            y_ref[b0 + tbl, :, pl.ds(H, H)] = hb
            return hf, cf, hb, cb

        return lax.fori_loop(0, Tc, step, (hf, cf, hb, cb),
                             unroll=min(Tc, 8))

    lax.fori_loop(0, n_chunks, chunk_body, (zeros, zeros, zeros, zeros))


def bilstm_layer(x_tm, p, TB, max_time_chunk=32):
    """x_tm: (T, Bp, D_in) time-major -> (T, Bp, 2*H) time-major."""
    T, Bp, D = x_tm.shape
    H = p["whf"].shape[0]
    Tc = _time_chunk(T, max_time_chunk)
    assert Bp % TB == 0, (Bp, TB)
    grid = (Bp // TB,)

    # Re-pack gate columns once per call (cheap, weight-sized).
    wif = _reorder_gates(p["wif"], H)
    whf = _reorder_gates(p["whf"], H)
    bf = _reorder_gates(p["bf"], H)
    wib = _reorder_gates(p["wib"], H)
    whb = _reorder_gates(p["whb"], H)
    bb = _reorder_gates(p["bb"], H)

    weight_bytes = 4 * 2 * (D * 4 * H + H * 4 * H + 4 * H)
    block_bytes = 4 * (T * TB * D + T * TB * 2 * H)
    scratch_bytes = 4 * 2 * Tc * TB * 4 * H
    vmem = _vmem_limit(2 * block_bytes + 2 * weight_bytes + scratch_bytes)

    cost = pl.CostEstimate(
        flops=int(4 * T * Bp * 4 * H * (D + H)),
        transcendentals=int(2 * 5 * T * Bp * H),
        bytes_accessed=int(4 * (T * Bp * D + T * Bp * 2 * H) + weight_bytes),
    )

    return pl.pallas_call(
        bilstm_layer_kernel,
        out_shape=jax.ShapeDtypeStruct((T, Bp, 2 * H), jnp.float32),
        grid=grid,
        in_specs=[
            pl.BlockSpec((T, TB, D), lambda b: (0, b, 0)),          # x tile
            pl.BlockSpec((D, 4 * H), lambda b: (0, 0)),             # wif
            pl.BlockSpec((H, 4 * H), lambda b: (0, 0)),             # whf
            pl.BlockSpec((1, 4 * H), lambda b: (0, 0)),             # bf
            pl.BlockSpec((D, 4 * H), lambda b: (0, 0)),             # wib
            pl.BlockSpec((H, 4 * H), lambda b: (0, 0)),             # whb
            pl.BlockSpec((1, 4 * H), lambda b: (0, 0)),             # bb
        ],
        out_specs=pl.BlockSpec((T, TB, 2 * H), lambda b: (0, b, 0)),
        scratch_shapes=[pltpu.VMEM((Tc, TB, 4 * H), jnp.float32),   # fwd chunk proj
                        pltpu.VMEM((Tc, TB, 4 * H), jnp.float32)],  # bwd chunk proj
        compiler_params=pltpu.CompilerParams(
            dimension_semantics=("parallel",), vmem_limit_bytes=vmem),
        cost_estimate=cost,
    )(x_tm, wif, whf, bf, wib, whb, bb)


# ---------------------------------------------------------------------------
# Attention + attended pooling + classifier kernel (time-major input)
# ---------------------------------------------------------------------------
def head_kernel(x_ref, wa1_ref, ba1_ref, wa2_ref, ba2_ref,
                wc1_ref, bc1_ref, g1_ref, be1_ref,
                wc2_ref, bc2_ref, g2_ref, be2_ref,
                wc3_ref, bc3_ref, out_ref):
    T, TB, Hd = x_ref.shape
    x = x_ref[...]                                   # (T, TB, Hd) f32
    x_bf = x.astype(jnp.bfloat16).reshape(T * TB, Hd)

    # attention: Linear -> Tanh -> Linear(->1) -> Softmax over the sequence axis.
    a1 = jnp.tanh(jnp.dot(x_bf, wa1_ref[...].astype(jnp.bfloat16),
                          preferred_element_type=jnp.float32) + ba1_ref[...])
    scores = (jnp.dot(a1.astype(jnp.bfloat16), wa2_ref[...].astype(jnp.bfloat16),
                      preferred_element_type=jnp.float32)
              + ba2_ref[...]).reshape(T, TB, 1)
    m = jnp.max(scores, axis=0, keepdims=True)
    e = jnp.exp(scores - m)
    attn = e / jnp.sum(e, axis=0, keepdims=True)     # softmax over seq dim

    attended = jnp.sum(x * attn, axis=0)             # (TB, Hd) f32

    def layernorm(h, g, b):
        mu = jnp.mean(h, axis=-1, keepdims=True)
        var = jnp.mean((h - mu) ** 2, axis=-1, keepdims=True)
        return (h - mu) * lax.rsqrt(var + 1e-5) * g + b

    h1 = (jnp.dot(attended.astype(jnp.bfloat16), wc1_ref[...].astype(jnp.bfloat16),
                  preferred_element_type=jnp.float32) + bc1_ref[...])
    h1 = jnp.maximum(layernorm(h1, g1_ref[...], be1_ref[...]), 0.0)
    h2 = (jnp.dot(h1.astype(jnp.bfloat16), wc2_ref[...].astype(jnp.bfloat16),
                  preferred_element_type=jnp.float32) + bc2_ref[...])
    h2 = jnp.maximum(layernorm(h2, g2_ref[...], be2_ref[...]), 0.0)
    out_ref[...] = (jnp.dot(h2.astype(jnp.bfloat16), wc3_ref[...].astype(jnp.bfloat16),
                            preferred_element_type=jnp.float32) + bc3_ref[...])


def head(lstm_out_tm, p, TB):
    T, Bp, Hd = lstm_out_tm.shape
    P = p["wc3"].shape[1]
    Pp = _round_up(P, 128)                           # lane-dense output stores
    wc3 = jnp.pad(p["wc3"], ((0, 0), (0, Pp - P)))
    bc3 = jnp.pad(p["bc3"], ((0, 0), (0, Pp - P)))
    assert Bp % TB == 0
    grid = (Bp // TB,)

    weights = (p["wa1"], p["ba1"], p["wa2"], p["ba2"],
               p["wc1"], p["bc1"], p["g1"], p["be1"],
               p["wc2"], p["bc2"], p["g2"], p["be2"],
               wc3, bc3)
    in_specs = ([pl.BlockSpec((T, TB, Hd), lambda b: (0, b, 0))]
                + [pl.BlockSpec(w.shape, lambda b: (0, 0)) for w in weights])

    weight_bytes = 4 * sum(int(w.size) for w in weights)
    block_bytes = 4 * (T * TB * Hd + TB * Pp)
    vmem = _vmem_limit(2 * block_bytes + 2 * weight_bytes)

    out = pl.pallas_call(
        head_kernel,
        out_shape=jax.ShapeDtypeStruct((Bp, Pp), jnp.float32),
        grid=grid,
        in_specs=in_specs,
        out_specs=pl.BlockSpec((TB, Pp), lambda b: (b, 0)),
        compiler_params=pltpu.CompilerParams(
            dimension_semantics=("parallel",), vmem_limit_bytes=vmem),
    )(lstm_out_tm, *weights)
    return out[:, :P]


# ---------------------------------------------------------------------------
# Full forward
# ---------------------------------------------------------------------------
def lstm_attention_forward(input_ids, params):
    B, T = input_ids.shape
    TB, Bp = _choose_batch_tile(B)
    # Embedding gather emitting the TIME-MAJOR tensor directly (only the tiny
    # int32 id tensor is transposed, never the (B,T,E) activation).
    # TODO(synk): fuse this gather into the first BiLSTM kernel via
    # PrefetchScalarGridSpec row-gather to skip one HBM round-trip of (T,B,E).
    x = jnp.take(params["embedding"], input_ids.T, axis=0)   # (T, B, E)
    if Bp != B:
        x = jnp.pad(x, ((0, 0), (0, Bp - B), (0, 0)))        # zero batch padding
    # dropout_emb / inter-layer LSTM dropout: identity in eval mode
    x = bilstm_layer(x, params["lstm0"], TB)                  # (T, Bp, hidden)
    x = bilstm_layer(x, params["lstm1"], TB)                  # (T, Bp, hidden)
    # TODO(synk): lstm0+lstm1 could be fused into one kernel (VMEM-resident
    # inter-layer activation) on v5e/v6e where the chunked footprint allows it.
    logits = head(x, params, TB)                              # (Bp, num_parts)
    return logits[:B]


# ---------------------------------------------------------------------------
# Pure-JAX f32 reference (for correctness check)
# ---------------------------------------------------------------------------
def reference_forward(input_ids, params):
    emb = jnp.take(params["embedding"], input_ids, axis=0)

    def lstm_dir(x, wih, whh, b, reverse):
        B, T, D = x.shape
        H = whh.shape[0]
        xs = jnp.transpose(x, (1, 0, 2))
        if reverse:
            xs = xs[::-1]

        def step(carry, xt):
            h, c = carry
            gates = xt @ wih + h @ whh + b
            i = jax.nn.sigmoid(gates[:, :H])
            f = jax.nn.sigmoid(gates[:, H:2 * H])
            g = jnp.tanh(gates[:, 2 * H:3 * H])
            o = jax.nn.sigmoid(gates[:, 3 * H:])
            c = f * c + i * g
            h = o * jnp.tanh(c)
            return (h, c), h

        init = (jnp.zeros((B, H), jnp.float32), jnp.zeros((B, H), jnp.float32))
        _, ys = lax.scan(step, init, xs)
        if reverse:
            ys = ys[::-1]
        return jnp.transpose(ys, (1, 0, 2))

    def bilstm(x, p):
        yf = lstm_dir(x, p["wif"], p["whf"], p["bf"], False)
        yb = lstm_dir(x, p["wib"], p["whb"], p["bb"], True)
        return jnp.concatenate([yf, yb], axis=-1)

    h = bilstm(emb, params["lstm0"])
    h = bilstm(h, params["lstm1"])

    a1 = jnp.tanh(jnp.einsum('btd,dk->btk', h, params["wa1"]) + params["ba1"])
    scores = jnp.einsum('btk,ko->bto', a1, params["wa2"]) + params["ba2"]
    attn = jax.nn.softmax(scores, axis=1)
    attended = jnp.sum(h * attn, axis=1)

    def ln(v, g, b):
        mu = jnp.mean(v, axis=-1, keepdims=True)
        var = jnp.mean((v - mu) ** 2, axis=-1, keepdims=True)
        return (v - mu) * lax.rsqrt(var + 1e-5) * g + b

    h1 = jnp.maximum(ln(attended @ params["wc1"] + params["bc1"],
                        params["g1"], params["be1"]), 0.0)
    h2 = jnp.maximum(ln(h1 @ params["wc2"] + params["bc2"],
                        params["g2"], params["be2"]), 0.0)
    return h2 @ params["wc3"] + params["bc3"]


# ---------------------------------------------------------------------------
# Deterministic parameter init (synthetic weights, shapes from __init__)
# ---------------------------------------------------------------------------
def init_params(key, vocab_size, num_parts, embed_dim, hidden_dim):
    H2 = hidden_dim // 2
    ks = iter(jax.random.split(key, 64))

    def w(shape, scale=0.1):
        return (scale * jax.random.normal(next(ks), shape)).astype(jnp.float32)

    emb = w((vocab_size, embed_dim))
    emb = emb.at[0].set(0.0)  # padding_idx=0

    def lstm_layer_params(d_in):
        # weights stored transposed (d_in, 4H) in PyTorch gate order [i,f,g,o];
        # bias = b_ih + b_hh merged.
        return {
            "wif": w((d_in, 4 * H2)), "whf": w((H2, 4 * H2)), "bf": w((1, 4 * H2)),
            "wib": w((d_in, 4 * H2)), "whb": w((H2, 4 * H2)), "bb": w((1, 4 * H2)),
        }

    return {
        "embedding": emb,
        "lstm0": lstm_layer_params(embed_dim),
        "lstm1": lstm_layer_params(hidden_dim),
        # attention MLP (second Linear stored as (H2, 1) column so the kernel
        # can put the score reduction on the MXU)
        "wa1": w((hidden_dim, H2)), "ba1": w((1, H2)),
        "wa2": w((H2, 1)), "ba2": w((1, 1)),
        # classifier
        "wc1": w((hidden_dim, hidden_dim)), "bc1": w((1, hidden_dim)),
        "g1": jnp.ones((1, hidden_dim), jnp.float32),
        "be1": jnp.zeros((1, hidden_dim), jnp.float32),
        "wc2": w((hidden_dim, H2)), "bc2": w((1, H2)),
        "g2": jnp.ones((1, H2), jnp.float32),
        "be2": jnp.zeros((1, H2), jnp.float32),
        "wc3": w((H2, num_parts)), "bc3": w((1, num_parts)),
        # TODO(synk): uncertainty head / MC-dropout branch is not exercised by
        # forward(), so it is intentionally not implemented.
    }


if __name__ == "__main__":
    key = jax.random.PRNGKey(0)
    k_params, k_ids = jax.random.split(key)

    # Small shapes consistent with the module defaults (embed 128, hidden 256).
    vocab_size, num_parts = 64, 16
    embed_dim, hidden_dim = 128, 256
    B, T = 2, 8

    params = init_params(k_params, vocab_size, num_parts, embed_dim, hidden_dim)
    input_ids = jax.random.randint(k_ids, (B, T), 0, vocab_size, dtype=jnp.int32)

    logits = jax.jit(lambda ids: lstm_attention_forward(ids, params))(input_ids)
    jax.block_until_ready(logits)

    assert logits.shape == (B, num_parts), logits.shape
    assert logits.dtype == jnp.float32

    ref = jax.jit(lambda ids: reference_forward(ids, params))(input_ids)
    jax.block_until_ready(ref)
    # Kernel feeds the MXU bf16 operands (f32 accumulation); reference is all
    # f32, so allow a correspondingly loose tolerance.
    max_diff = float(jnp.max(jnp.abs(logits - ref)))
    assert jnp.allclose(logits, ref, atol=5e-2, rtol=5e-2), max_diff

    print("KERNEL_OK")
</pallas_src>

<mosaic_0001>
module attributes {stable_mosaic.version = 11 : i64} {
  func.func @head_kernel(%arg0: i32, %arg1: memref<8x8x256xf32, #tpu.memory_space<vmem>>, %arg2: memref<256x128xf32, #tpu.memory_space<vmem>>, %arg3: memref<1x128xf32, #tpu.memory_space<vmem>>, %arg4: memref<128x1xf32, #tpu.memory_space<vmem>>, %arg5: memref<1x1xf32, #tpu.memory_space<vmem>>, %arg6: memref<256x256xf32, #tpu.memory_space<vmem>>, %arg7: memref<1x256xf32, #tpu.memory_space<vmem>>, %arg8: memref<1x256xf32, #tpu.memory_space<vmem>>, %arg9: memref<1x256xf32, #tpu.memory_space<vmem>>, %arg10: memref<256x128xf32, #tpu.memory_space<vmem>>, %arg11: memref<1x128xf32, #tpu.memory_space<vmem>>, %arg12: memref<1x128xf32, #tpu.memory_space<vmem>>, %arg13: memref<1x128xf32, #tpu.memory_space<vmem>>, %arg14: memref<128x128xf32, #tpu.memory_space<vmem>>, %arg15: memref<1x128xf32, #tpu.memory_space<vmem>>, %arg16: memref<8x128xf32, #tpu.memory_space<vmem>>) attributes {dimension_semantics = [#tpu.dimension_semantics<parallel>], iteration_bounds = array<i64: 1>, scalar_prefetch = 0 : i64, scratch_operands = 0 : i64, tpu.core_type = #tpu.core_type<tc>, window_params = [{transform_indices = @transform_0, window_bounds = array<i64: 8, 8, 256>}, {pipeline_mode = #tpu.pipeline_mode<synchronous>, transform_indices = @transform_1, window_bounds = array<i64: 256, 128>}, {pipeline_mode = #tpu.pipeline_mode<synchronous>, transform_indices = @transform_2, window_bounds = array<i64: 1, 128>}, {pipeline_mode = #tpu.pipeline_mode<synchronous>, transform_indices = @transform_3, window_bounds = array<i64: 128, 1>}, {pipeline_mode = #tpu.pipeline_mode<synchronous>, transform_indices = @transform_4, window_bounds = array<i64: 1, 1>}, {pipeline_mode = #tpu.pipeline_mode<synchronous>, transform_indices = @transform_5, window_bounds = array<i64: 256, 256>}, {pipeline_mode = #tpu.pipeline_mode<synchronous>, transform_indices = @transform_6, window_bounds = array<i64: 1, 256>}, {pipeline_mode = #tpu.pipeline_mode<synchronous>, transform_indices = @transform_7, window_bounds = array<i64: 1, 256>}, {pipeline_mode = #tpu.pipeline_mode<synchronous>, transform_indices = @transform_8, window_bounds = array<i64: 1, 256>}, {pipeline_mode = #tpu.pipeline_mode<synchronous>, transform_indices = @transform_9, window_bounds = array<i64: 256, 128>}, {pipeline_mode = #tpu.pipeline_mode<synchronous>, transform_indices = @transform_10, window_bounds = array<i64: 1, 128>}, {pipeline_mode = #tpu.pipeline_mode<synchronous>, transform_indices = @transform_11, window_bounds = array<i64: 1, 128>}, {pipeline_mode = #tpu.pipeline_mode<synchronous>, transform_indices = @transform_12, window_bounds = array<i64: 1, 128>}, {pipeline_mode = #tpu.pipeline_mode<synchronous>, transform_indices = @transform_13, window_bounds = array<i64: 128, 128>}, {pipeline_mode = #tpu.pipeline_mode<synchronous>, transform_indices = @transform_14, window_bounds = array<i64: 1, 128>}, {transform_indices = @transform_15, window_bounds = array<i64: 8, 128>}]} {
    %c0 = arith.constant 0 : index
    %c0_0 = arith.constant 0 : index
    %c0_1 = arith.constant 0 : index
    %0 = vector.load %arg1[%c0, %c0_0, %c0_1] : memref<8x8x256xf32, #tpu.memory_space<vmem>>, vector<8x8x256xf32>
    %1 = arith.truncf %0 : vector<8x8x256xf32> to vector<8x8x256xbf16>
    %2 = vector.shape_cast %1 : vector<8x8x256xbf16> to vector<64x256xbf16>
    %c0_2 = arith.constant 0 : index
    %c0_3 = arith.constant 0 : index
    %3 = vector.load %arg2[%c0_2, %c0_3] : memref<256x128xf32, #tpu.memory_space<vmem>>, vector<256x128xf32>
    %4 = arith.truncf %3 : vector<256x128xf32> to vector<256x128xbf16>
    %cst = arith.constant dense<0.000000e+00> : vector<64x128xf32>
    %5 = tpu.matmul %2, %4, %cst {dimension_numbers = #tpu.dot_dimension_numbers<[1], [0], [0], [1], [0, 0, 1, 1], [], []>} : vector<64x256xbf16>, vector<256x128xbf16>, vector<64x128xf32> -> vector<64x128xf32>
    %c0_4 = arith.constant 0 : index
    %c0_5 = arith.constant 0 : index
    %6 = vector.load %arg3[%c0_4, %c0_5] : memref<1x128xf32, #tpu.memory_space<vmem>>, vector<1x128xf32>
    %7 = vector.broadcast %6 : vector<1x128xf32> to vector<64x128xf32>
    %8 = arith.addf %5, %7 : vector<64x128xf32>
    %9 = math.tanh %8 : vector<64x128xf32>
    %10 = arith.truncf %9 : vector<64x128xf32> to vector<64x128xbf16>
    %c0_6 = arith.constant 0 : index
    %c0_7 = arith.constant 0 : index
    %11 = vector.load %arg4[%c0_6, %c0_7] : memref<128x1xf32, #tpu.memory_space<vmem>>, vector<128x1xf32>
    %12 = arith.truncf %11 : vector<128x1xf32> to vector<128x1xbf16>
    %cst_8 = arith.constant dense<0.000000e+00> : vector<64x1xf32>
    %13 = tpu.matmul %10, %12, %cst_8 {dimension_numbers = #tpu.dot_dimension_numbers<[1], [0], [0], [1], [0, 0, 1, 1], [], []>} : vector<64x128xbf16>, vector<128x1xbf16>, vector<64x1xf32> -> vector<64x1xf32>
    %c0_9 = arith.constant 0 : index
    %c0_10 = arith.constant 0 : index
    %14 = vector.load %arg5[%c0_9, %c0_10] : memref<1x1xf32, #tpu.memory_space<vmem>>, vector<1x1xf32>
    %15 = vector.broadcast %14 : vector<1x1xf32> to vector<64x1xf32>
    %16 = arith.addf %13, %15 : vector<64x1xf32>
    %17 = vector.shape_cast %16 : vector<64x1xf32> to vector<8x8x1xf32>
    %cst_11 = arith.constant dense<0xFF800000> : vector<8x1xf32>
    %18 = vector.multi_reduction <maximumf>, %17, %cst_11 [0] : vector<8x8x1xf32> to vector<8x1xf32>
    %19 = vector.shape_cast %18 : vector<8x1xf32> to vector<1x8x1xf32>
    %20 = vector.broadcast %19 : vector<1x8x1xf32> to vector<8x8x1xf32>
    %21 = arith.subf %17, %20 : vector<8x8x1xf32>
    %22 = math.exp %21 : vector<8x8x1xf32>
    %cst_12 = arith.constant dense<0.000000e+00> : vector<8x1xf32>
    %23 = vector.multi_reduction <add>, %22, %cst_12 [0] : vector<8x8x1xf32> to vector<8x1xf32>
    %24 = vector.shape_cast %23 : vector<8x1xf32> to vector<1x8x1xf32>
    %25 = vector.broadcast %24 : vector<1x8x1xf32> to vector<8x8x1xf32>
    %26 = arith.divf %22, %25 : vector<8x8x1xf32>
    %27 = vector.broadcast %26 : vector<8x8x1xf32> to vector<8x8x256xf32>
    %28 = arith.mulf %0, %27 : vector<8x8x256xf32>
    %cst_13 = arith.constant dense<0.000000e+00> : vector<8x256xf32>
    %29 = vector.multi_reduction <add>, %28, %cst_13 [0] : vector<8x8x256xf32> to vector<8x256xf32>
    %30 = arith.truncf %29 : vector<8x256xf32> to vector<8x256xbf16>
    %c0_14 = arith.constant 0 : index
    %c0_15 = arith.constant 0 : index
    %31 = vector.load %arg6[%c0_14, %c0_15] : memref<256x256xf32, #tpu.memory_space<vmem>>, vector<256x256xf32>
    %32 = arith.truncf %31 : vector<256x256xf32> to vector<256x256xbf16>
    %cst_16 = arith.constant dense<0.000000e+00> : vector<8x256xf32>
    %33 = tpu.matmul %30, %32, %cst_16 {dimension_numbers = #tpu.dot_dimension_numbers<[1], [0], [0], [1], [0, 0, 1, 1], [], []>} : vector<8x256xbf16>, vector<256x256xbf16>, vector<8x256xf32> -> vector<8x256xf32>
    %c0_17 = arith.constant 0 : index
    %c0_18 = arith.constant 0 : index
    %34 = vector.load %arg7[%c0_17, %c0_18] : memref<1x256xf32, #tpu.memory_space<vmem>>, vector<1x256xf32>
    %35 = vector.broadcast %34 : vector<1x256xf32> to vector<8x256xf32>
    %36 = arith.addf %33, %35 : vector<8x256xf32>
    %c0_19 = arith.constant 0 : index
    %c0_20 = arith.constant 0 : index
    %37 = vector.load %arg8[%c0_19, %c0_20] : memref<1x256xf32, #tpu.memory_space<vmem>>, vector<1x256xf32>
    %c0_21 = arith.constant 0 : index
    %c0_22 = arith.constant 0 : index
    %38 = vector.load %arg9[%c0_21, %c0_22] : memref<1x256xf32, #tpu.memory_space<vmem>>, vector<1x256xf32>
    %cst_23 = arith.constant dense<0.000000e+00> : vector<8xf32>
    %39 = vector.multi_reduction <add>, %36, %cst_23 [1] : vector<8x256xf32> to vector<8xf32>
    %40 = vector.shape_cast %39 : vector<8xf32> to vector<8x1xf32>
    %cst_24 = arith.constant 2.560000e+02 : f32
    %41 = vector.broadcast %cst_24 : f32 to vector<8x1xf32>
    %42 = arith.divf %40, %41 : vector<8x1xf32>
    %43 = vector.broadcast %42 : vector<8x1xf32> to vector<8x256xf32>
    %44 = arith.subf %36, %43 : vector<8x256xf32>
    %45 = arith.mulf %44, %44 : vector<8x256xf32>
    %cst_25 = arith.constant dense<0.000000e+00> : vector<8xf32>
    %46 = vector.multi_reduction <add>, %45, %cst_25 [1] : vector<8x256xf32> to vector<8xf32>
    %47 = vector.shape_cast %46 : vector<8xf32> to vector<8x1xf32>
    %cst_26 = arith.constant 2.560000e+02 : f32
    %48 = vector.broadcast %cst_26 : f32 to vector<8x1xf32>
    %49 = arith.divf %47, %48 : vector<8x1xf32>
    %50 = vector.broadcast %42 : vector<8x1xf32> to vector<8x256xf32>
    %51 = arith.subf %36, %50 : vector<8x256xf32>
    %cst_27 = arith.constant 9.99999974E-6 : f32
    %52 = vector.broadcast %cst_27 : f32 to vector<8x1xf32>
    %53 = arith.addf %49, %52 : vector<8x1xf32>
    %54 = math.rsqrt %53 : vector<8x1xf32>
    %55 = vector.broadcast %54 : vector<8x1xf32> to vector<8x256xf32>
    %56 = arith.mulf %51, %55 : vector<8x256xf32>
    %57 = vector.broadcast %37 : vector<1x256xf32> to vector<8x256xf32>
    %58 = arith.mulf %56, %57 : vector<8x256xf32>
    %59 = vector.broadcast %38 : vector<1x256xf32> to vector<8x256xf32>
    %60 = arith.addf %58, %59 : vector<8x256xf32>
    %cst_28 = arith.constant 0.000000e+00 : f32
    %61 = vector.broadcast %cst_28 : f32 to vector<8x256xf32>
    %62 = arith.maximumf %60, %61 : vector<8x256xf32>
    %63 = arith.truncf %62 : vector<8x256xf32> to vector<8x256xbf16>
    %c0_29 = arith.constant 0 : index
    %c0_30 = arith.constant 0 : index
    %64 = vector.load %arg10[%c0_29, %c0_30] : memref<256x128xf32, #tpu.memory_space<vmem>>, vector<256x128xf32>
    %65 = arith.truncf %64 : vector<256x128xf32> to vector<256x128xbf16>
    %cst_31 = arith.constant dense<0.000000e+00> : vector<8x128xf32>
    %66 = tpu.matmul %63, %65, %cst_31 {dimension_numbers = #tpu.dot_dimension_numbers<[1], [0], [0], [1], [0, 0, 1, 1], [], []>} : vector<8x256xbf16>, vector<256x128xbf16>, vector<8x128xf32> -> vector<8x128xf32>
    %c0_32 = arith.constant 0 : index
    %c0_33 = arith.constant 0 : index
    %67 = vector.load %arg11[%c0_32, %c0_33] : memref<1x128xf32, #tpu.memory_space<vmem>>, vector<1x128xf32>
    %68 = vector.broadcast %67 : vector<1x128xf32> to vector<8x128xf32>
    %69 = arith.addf %66, %68 : vector<8x128xf32>
    %c0_34 = arith.constant 0 : index
    %c0_35 = arith.constant 0 : index
    %70 = vector.load %arg12[%c0_34, %c0_35] : memref<1x128xf32, #tpu.memory_space<vmem>>, vector<1x128xf32>
    %c0_36 = arith.constant 0 : index
    %c0_37 = arith.constant 0 : index
    %71 = vector.load %arg13[%c0_36, %c0_37] : memref<1x128xf32, #tpu.memory_space<vmem>>, vector<1x128xf32>
    %cst_38 = arith.constant dense<0.000000e+00> : vector<8xf32>
    %72 = vector.multi_reduction <add>, %69, %cst_38 [1] : vector<8x128xf32> to vector<8xf32>
    %73 = vector.shape_cast %72 : vector<8xf32> to vector<8x1xf32>
    %cst_39 = arith.constant 1.280000e+02 : f32
    %74 = vector.broadcast %cst_39 : f32 to vector<8x1xf32>
    %75 = arith.divf %73, %74 : vector<8x1xf32>
    %76 = vector.broadcast %75 : vector<8x1xf32> to vector<8x128xf32>
    %77 = arith.subf %69, %76 : vector<8x128xf32>
    %78 = arith.mulf %77, %77 : vector<8x128xf32>
    %cst_40 = arith.constant dense<0.000000e+00> : vector<8xf32>
    %79 = vector.multi_reduction <add>, %78, %cst_40 [1] : vector<8x128xf32> to vector<8xf32>
    %80 = vector.shape_cast %79 : vector<8xf32> to vector<8x1xf32>
    %cst_41 = arith.constant 1.280000e+02 : f32
    %81 = vector.broadcast %cst_41 : f32 to vector<8x1xf32>
    %82 = arith.divf %80, %81 : vector<8x1xf32>
    %83 = vector.broadcast %75 : vector<8x1xf32> to vector<8x128xf32>
    %84 = arith.subf %69, %83 : vector<8x128xf32>
    %cst_42 = arith.constant 9.99999974E-6 : f32
    %85 = vector.broadcast %cst_42 : f32 to vector<8x1xf32>
    %86 = arith.addf %82, %85 : vector<8x1xf32>
    %87 = math.rsqrt %86 : vector<8x1xf32>
    %88 = vector.broadcast %87 : vector<8x1xf32> to vector<8x128xf32>
    %89 = arith.mulf %84, %88 : vector<8x128xf32>
    %90 = vector.broadcast %70 : vector<1x128xf32> to vector<8x128xf32>
    %91 = arith.mulf %89, %90 : vector<8x128xf32>
    %92 = vector.broadcast %71 : vector<1x128xf32> to vector<8x128xf32>
    %93 = arith.addf %91, %92 : vector<8x128xf32>
    %cst_43 = arith.constant 0.000000e+00 : f32
    %94 = vector.broadcast %cst_43 : f32 to vector<8x128xf32>
    %95 = arith.maximumf %93, %94 : vector<8x128xf32>
    %96 = arith.truncf %95 : vector<8x128xf32> to vector<8x128xbf16>
    %c0_44 = arith.constant 0 : index
    %c0_45 = arith.constant 0 : index
    %97 = vector.load %arg14[%c0_44, %c0_45] : memref<128x128xf32, #tpu.memory_space<vmem>>, vector<128x128xf32>
    %98 = arith.truncf %97 : vector<128x128xf32> to vector<128x128xbf16>
    %cst_46 = arith.constant dense<0.000000e+00> : vector<8x128xf32>
    %99 = tpu.matmul %96, %98, %cst_46 {dimension_numbers = #tpu.dot_dimension_numbers<[1], [0], [0], [1], [0, 0, 1, 1], [], []>} : vector<8x128xbf16>, vector<128x128xbf16>, vector<8x128xf32> -> vector<8x128xf32>
    %c0_47 = arith.constant 0 : index
    %c0_48 = arith.constant 0 : index
    %100 = vector.load %arg15[%c0_47, %c0_48] : memref<1x128xf32, #tpu.memory_space<vmem>>, vector<1x128xf32>
    %101 = vector.broadcast %100 : vector<1x128xf32> to vector<8x128xf32>
    %102 = arith.addf %99, %101 : vector<8x128xf32>
    %c0_49 = arith.constant 0 : index
    %c0_50 = arith.constant 0 : index
    %103 = vector.load %arg16[%c0_49, %c0_50] : memref<8x128xf32, #tpu.memory_space<vmem>>, vector<8x128xf32>
    tpu.vector_store %arg16[%c0_49, %c0_50], %102 {strides = array<i32>} : memref<8x128xf32, #tpu.memory_space<vmem>>, vector<8x128xf32>,
    return
  }
  func.func @transform_0(%arg0: i32) -> (i32, i32, i32) {
    %c0_i32 = arith.constant 0 : i32
    %c0_i32_0 = arith.constant 0 : i32
    %c0_i32_1 = arith.constant 0 : i32
    return %c0_i32, %arg0, %c0_i32_0 : i32, i32, i32
  }
  func.func @transform_1(%arg0: i32) -> (i32, i32) {
    %c0_i32 = arith.constant 0 : i32
    %c0_i32_0 = arith.constant 0 : i32
    %c0_i32_1 = arith.constant 0 : i32
    return %c0_i32, %c0_i32_0 : i32, i32
  }
  func.func @transform_2(%arg0: i32) -> (i32, i32) {
    %c0_i32 = arith.constant 0 : i32
    %c0_i32_0 = arith.constant 0 : i32
    %c0_i32_1 = arith.constant 0 : i32
    return %c0_i32, %c0_i32_0 : i32, i32
  }
  func.func @transform_3(%arg0: i32) -> (i32, i32) {
    %c0_i32 = arith.constant 0 : i32
    %c0_i32_0 = arith.constant 0 : i32
    %c0_i32_1 = arith.constant 0 : i32
    return %c0_i32, %c0_i32_0 : i32, i32
  }
  func.func @transform_4(%arg0: i32) -> (i32, i32) {
    %c0_i32 = arith.constant 0 : i32
    %c0_i32_0 = arith.constant 0 : i32
    %c0_i32_1 = arith.constant 0 : i32
    return %c0_i32, %c0_i32_0 : i32, i32
  }
  func.func @transform_5(%arg0: i32) -> (i32, i32) {
    %c0_i32 = arith.constant 0 : i32
    %c0_i32_0 = arith.constant 0 : i32
    %c0_i32_1 = arith.constant 0 : i32
    return %c0_i32, %c0_i32_0 : i32, i32
  }
  func.func @transform_6(%arg0: i32) -> (i32, i32) {
    %c0_i32 = arith.constant 0 : i32
    %c0_i32_0 = arith.constant 0 : i32
    %c0_i32_1 = arith.constant 0 : i32
    return %c0_i32, %c0_i32_0 : i32, i32
  }
  func.func @transform_7(%arg0: i32) -> (i32, i32) {
    %c0_i32 = arith.constant 0 : i32
    %c0_i32_0 = arith.constant 0 : i32
    %c0_i32_1 = arith.constant 0 : i32
    return %c0_i32, %c0_i32_0 : i32, i32
  }
  func.func @transform_8(%arg0: i32) -> (i32, i32) {
    %c0_i32 = arith.constant 0 : i32
    %c0_i32_0 = arith.constant 0 : i32
    %c0_i32_1 = arith.constant 0 : i32
    return %c0_i32, %c0_i32_0 : i32, i32
  }
  func.func @transform_9(%arg0: i32) -> (i32, i32) {
    %c0_i32 = arith.constant 0 : i32
    %c0_i32_0 = arith.constant 0 : i32
    %c0_i32_1 = arith.constant 0 : i32
    return %c0_i32, %c0_i32_0 : i32, i32
  }
  func.func @transform_10(%arg0: i32) -> (i32, i32) {
    %c0_i32 = arith.constant 0 : i32
    %c0_i32_0 = arith.constant 0 : i32
    %c0_i32_1 = arith.constant 0 : i32
    return %c0_i32, %c0_i32_0 : i32, i32
  }
  func.func @transform_11(%arg0: i32) -> (i32, i32) {
    %c0_i32 = arith.constant 0 : i32
    %c0_i32_0 = arith.constant 0 : i32
    %c0_i32_1 = arith.constant 0 : i32
    return %c0_i32, %c0_i32_0 : i32, i32
  }
  func.func @transform_12(%arg0: i32) -> (i32, i32) {
    %c0_i32 = arith.constant 0 : i32
    %c0_i32_0 = arith.constant 0 : i32
    %c0_i32_1 = arith.constant 0 : i32
    return %c0_i32, %c0_i32_0 : i32, i32
  }
  func.func @transform_13(%arg0: i32) -> (i32, i32) {
    %c0_i32 = arith.constant 0 : i32
    %c0_i32_0 = arith.constant 0 : i32
    %c0_i32_1 = arith.constant 0 : i32
    return %c0_i32, %c0_i32_0 : i32, i32
  }
  func.func @transform_14(%arg0: i32) -> (i32, i32) {
    %c0_i32 = arith.constant 0 : i32
    %c0_i32_0 = arith.constant 0 : i32
    %c0_i32_1 = arith.constant 0 : i32
    return %c0_i32, %c0_i32_0 : i32, i32
  }
  func.func @transform_15(%arg0: i32) -> (i32, i32) {
    %c0_i32 = arith.constant 0 : i32
    %c0_i32_0 = arith.constant 0 : i32
    return %arg0, %c0_i32 : i32, i32
  }
}

module attributes {stable_mosaic.version = 11 : i64} {
  func.func @bilstm_layer_kernel(%arg0: i32, %arg1: memref<8x8x128xf32, #tpu.memory_space<vmem>>, %arg2: memref<128x512xf32, #tpu.memory_space<vmem>>, %arg3: memref<128x512xf32, #tpu.memory_space<vmem>>, %arg4: memref<1x512xf32, #tpu.memory_space<vmem>>, %arg5: memref<128x512xf32, #tpu.memory_space<vmem>>, %arg6: memref<128x512xf32, #tpu.memory_space<vmem>>, %arg7: memref<1x512xf32, #tpu.memory_space<vmem>>, %arg8: memref<8x8x256xf32, #tpu.memory_space<vmem>>, %arg9: memref<8x8x512xf32, #tpu.memory_space<vmem>>, %arg10: memref<8x8x512xf32, #tpu.memory_space<vmem>>) attributes {dimension_semantics = [#tpu.dimension_semantics<parallel>], iteration_bounds = array<i64: 1>, scalar_prefetch = 0 : i64, scratch_operands = 2 : i64, tpu.core_type = #tpu.core_type<tc>, window_params = [{transform_indices = @transform_0, window_bounds = array<i64: 8, 8, 128>}, {pipeline_mode = #tpu.pipeline_mode<synchronous>, transform_indices = @transform_1, window_bounds = array<i64: 128, 512>}, {pipeline_mode = #tpu.pipeline_mode<synchronous>, transform_indices = @transform_2, window_bounds = array<i64: 128, 512>}, {pipeline_mode = #tpu.pipeline_mode<synchronous>, transform_indices = @transform_3, window_bounds = array<i64: 1, 512>}, {pipeline_mode = #tpu.pipeline_mode<synchronous>, transform_indices = @transform_4, window_bounds = array<i64: 128, 512>}, {pipeline_mode = #tpu.pipeline_mode<synchronous>, transform_indices = @transform_5, window_bounds = array<i64: 128, 512>}, {pipeline_mode = #tpu.pipeline_mode<synchronous>, transform_indices = @transform_6, window_bounds = array<i64: 1, 512>}, {transform_indices = @transform_7, window_bounds = array<i64: 8, 8, 256>}]} {
    %c0 = arith.constant 0 : index
    %c0_0 = arith.constant 0 : index
    %0 = vector.load %arg2[%c0, %c0_0] : memref<128x512xf32, #tpu.memory_space<vmem>>, vector<128x512xf32>
    %1 = arith.truncf %0 : vector<128x512xf32> to vector<128x512xbf16>
    %c0_1 = arith.constant 0 : index
    %c0_2 = arith.constant 0 : index
    %2 = vector.load %arg5[%c0_1, %c0_2] : memref<128x512xf32, #tpu.memory_space<vmem>>, vector<128x512xf32>
    %3 = arith.truncf %2 : vector<128x512xf32> to vector<128x512xbf16>
    %c0_3 = arith.constant 0 : index
    %c0_4 = arith.constant 0 : index
    %4 = vector.load %arg3[%c0_3, %c0_4] : memref<128x512xf32, #tpu.memory_space<vmem>>, vector<128x512xf32>
    %5 = arith.truncf %4 : vector<128x512xf32> to vector<128x512xbf16>
    %c0_5 = arith.constant 0 : index
    %c0_6 = arith.constant 0 : index
    %6 = vector.load %arg6[%c0_5, %c0_6] : memref<128x512xf32, #tpu.memory_space<vmem>>, vector<128x512xf32>
    %7 = arith.truncf %6 : vector<128x512xf32> to vector<128x512xbf16>
    %c0_7 = arith.constant 0 : index
    %c0_8 = arith.constant 0 : index
    %8 = vector.load %arg4[%c0_7, %c0_8] : memref<1x512xf32, #tpu.memory_space<vmem>>, vector<1x512xf32>
    %c0_9 = arith.constant 0 : index
    %c0_10 = arith.constant 0 : index
    %9 = vector.load %arg7[%c0_9, %c0_10] : memref<1x512xf32, #tpu.memory_space<vmem>>, vector<1x512xf32>
    %cst = arith.constant 0.000000e+00 : f32
    %10 = vector.broadcast %cst : f32 to vector<8x128xf32>
    %c0_i32 = arith.constant 0 : i32
    %c8_i32 = arith.constant 8 : i32
    %11 = arith.muli %c0_i32, %c8_i32 : i32
    %12 = tpu.assume_multiple %11, 8 : i32
    %c0_i32_11 = arith.constant 0 : i32
    %13 = arith.subi %c0_i32_11, %c0_i32 : i32
    %c8_i32_12 = arith.constant 8 : i32
    %14 = arith.muli %13, %c8_i32_12 : i32
    %15 = tpu.assume_multiple %14, 8 : i32
    %16 = arith.index_cast %12 : i32 to index
    %c0_13 = arith.constant 0 : index
    %c0_14 = arith.constant 0 : index
    %17 = vector.load %arg1[%16, %c0_13, %c0_14] : memref<8x8x128xf32, #tpu.memory_space<vmem>>, vector<8x8x128xf32>
    %18 = vector.shape_cast %17 : vector<8x8x128xf32> to vector<64x128xf32>
    %19 = arith.truncf %18 : vector<64x128xf32> to vector<64x128xbf16>
    %20 = arith.index_cast %15 : i32 to index
    %c0_15 = arith.constant 0 : index
    %c0_16 = arith.constant 0 : index
    %21 = vector.load %arg1[%20, %c0_15, %c0_16] : memref<8x8x128xf32, #tpu.memory_space<vmem>>, vector<8x8x128xf32>
    %22 = vector.shape_cast %21 : vector<8x8x128xf32> to vector<64x128xf32>
    %23 = arith.truncf %22 : vector<64x128xf32> to vector<64x128xbf16>
    %cst_17 = arith.constant dense<0.000000e+00> : vector<64x512xf32>
    %24 = tpu.matmul %19, %1, %cst_17 {dimension_numbers = #tpu.dot_dimension_numbers<[1], [0], [0], [1], [0, 0, 1, 1], [], []>} : vector<64x128xbf16>, vector<128x512xbf16>, vector<64x512xf32> -> vector<64x512xf32>
    %25 = vector.broadcast %8 : vector<1x512xf32> to vector<64x512xf32>
    %26 = arith.addf %24, %25 : vector<64x512xf32>
    %27 = vector.shape_cast %26 : vector<64x512xf32> to vector<8x8x512xf32>
    %c0_18 = arith.constant 0 : index
    %c0_19 = arith.constant 0 : index
    %c0_20 = arith.constant 0 : index
    %28 = vector.load %arg9[%c0_18, %c0_19, %c0_20] : memref<8x8x512xf32, #tpu.memory_space<vmem>>, vector<8x8x512xf32>
    tpu.vector_store %arg9[%c0_18, %c0_19, %c0_20], %27 {strides = array<i32>} : memref<8x8x512xf32, #tpu.memory_space<vmem>>, vector<8x8x512xf32>,
    %cst_21 = arith.constant dense<0.000000e+00> : vector<64x512xf32>
    %29 = tpu.matmul %23, %3, %cst_21 {dimension_numbers = #tpu.dot_dimension_numbers<[1], [0], [0], [1], [0, 0, 1, 1], [], []>} : vector<64x128xbf16>, vector<128x512xbf16>, vector<64x512xf32> -> vector<64x512xf32>
    %30 = vector.broadcast %9 : vector<1x512xf32> to vector<64x512xf32>
    %31 = arith.addf %29, %30 : vector<64x512xf32>
    %32 = vector.shape_cast %31 : vector<64x512xf32> to vector<8x8x512xf32>
    %c0_22 = arith.constant 0 : index
    %c0_23 = arith.constant 0 : index
    %c0_24 = arith.constant 0 : index
    %33 = vector.load %arg10[%c0_22, %c0_23, %c0_24] : memref<8x8x512xf32, #tpu.memory_space<vmem>>, vector<8x8x512xf32>
    tpu.vector_store %arg10[%c0_22, %c0_23, %c0_24], %32 {strides = array<i32>} : memref<8x8x512xf32, #tpu.memory_space<vmem>>, vector<8x8x512xf32>,
    %c0_i32_25 = arith.constant 0 : i32
    %34 = arith.index_cast %c0_i32_25 : i32 to index
    %c0_26 = arith.constant 0 : index
    %c0_27 = arith.constant 0 : index
    %35 = vector.load %arg9[%34, %c0_26, %c0_27] : memref<8x8x512xf32, #tpu.memory_space<vmem>>, vector<1x8x512xf32>
    %36 = vector.shape_cast %35 : vector<1x8x512xf32> to vector<8x512xf32>
    %37 = arith.truncf %10 : vector<8x128xf32> to vector<8x128xbf16>
    %cst_28 = arith.constant dense<0.000000e+00> : vector<8x512xf32>
    %38 = tpu.matmul %37, %5, %cst_28 {dimension_numbers = #tpu.dot_dimension_numbers<[1], [0], [0], [1], [0, 0, 1, 1], [], []>} : vector<8x128xbf16>, vector<128x512xbf16>, vector<8x512xf32> -> vector<8x512xf32>
    %39 = arith.addf %36, %38 : vector<8x512xf32>
    %40 = vector.extract_strided_slice %39 {offsets = [0, 0], sizes = [8, 384], strides = [1, 1]} : vector<8x512xf32> to vector<8x384xf32>
    %41 = arith.negf %40 : vector<8x384xf32>
    %42 = math.exp %41 : vector<8x384xf32>
    %cst_29 = arith.constant 1.000000e+00 : f32
    %43 = vector.broadcast %cst_29 : f32 to vector<8x384xf32>
    %44 = arith.addf %43, %42 : vector<8x384xf32>
    %45 = arith.divf %43, %44 : vector<8x384xf32>
    %46 = vector.extract_strided_slice %45 {offsets = [0, 0], sizes = [8, 128], strides = [1, 1]} : vector<8x384xf32> to vector<8x128xf32>
    %47 = vector.extract_strided_slice %45 {offsets = [0, 128], sizes = [8, 128], strides = [1, 1]} : vector<8x384xf32> to vector<8x128xf32>
    %48 = vector.extract_strided_slice %45 {offsets = [0, 256], sizes = [8, 128], strides = [1, 1]} : vector<8x384xf32> to vector<8x128xf32>
    %49 = vector.extract_strided_slice %39 {offsets = [0, 384], sizes = [8, 128], strides = [1, 1]} : vector<8x512xf32> to vector<8x128xf32>
    %50 = math.tanh %49 : vector<8x128xf32>
    %51 = arith.mulf %47, %10 : vector<8x128xf32>
    %52 = arith.mulf %46, %50 : vector<8x128xf32>
    %53 = arith.addf %51, %52 : vector<8x128xf32>
    %54 = math.tanh %53 : vector<8x128xf32>
    %55 = arith.mulf %48, %54 : vector<8x128xf32>
    %56 = arith.addi %12, %c0_i32_25 : i32
    %57 = arith.index_cast %56 : i32 to index
    %c0_30 = arith.constant 0 : index
    %c0_31 = arith.constant 0 : index
    %58 = vector.load %arg8[%57, %c0_30, %c0_31] : memref<8x8x256xf32, #tpu.memory_space<vmem>>, vector<1x8x128xf32>
    %59 = vector.shape_cast %58 : vector<1x8x128xf32> to vector<8x128xf32>
    %60 = vector.shape_cast %55 : vector<8x128xf32> to vector<1x8x128xf32>
    tpu.vector_store %arg8[%57, %c0_30, %c0_31], %60 {strides = array<i32>} : memref<8x8x256xf32, #tpu.memory_space<vmem>>, vector<1x8x128xf32>,
    %c7_i32 = arith.constant 7 : i32
    %61 = arith.subi %c7_i32, %c0_i32_25 : i32
    %62 = arith.index_cast %61 : i32 to index
    %c0_32 = arith.constant 0 : index
    %c0_33 = arith.constant 0 : index
    %63 = vector.load %arg10[%62, %c0_32, %c0_33] : memref<8x8x512xf32, #tpu.memory_space<vmem>>, vector<1x8x512xf32>
    %64 = vector.shape_cast %63 : vector<1x8x512xf32> to vector<8x512xf32>
    %65 = arith.truncf %10 : vector<8x128xf32> to vector<8x128xbf16>
    %cst_34 = arith.constant dense<0.000000e+00> : vector<8x512xf32>
    %66 = tpu.matmul %65, %7, %cst_34 {dimension_numbers = #tpu.dot_dimension_numbers<[1], [0], [0], [1], [0, 0, 1, 1], [], []>} : vector<8x128xbf16>, vector<128x512xbf16>, vector<8x512xf32> -> vector<8x512xf32>
    %67 = arith.addf %64, %66 : vector<8x512xf32>
    %68 = vector.extract_strided_slice %67 {offsets = [0, 0], sizes = [8, 384], strides = [1, 1]} : vector<8x512xf32> to vector<8x384xf32>
    %69 = arith.negf %68 : vector<8x384xf32>
    %70 = math.exp %69 : vector<8x384xf32>
    %cst_35 = arith.constant 1.000000e+00 : f32
    %71 = vector.broadcast %cst_35 : f32 to vector<8x384xf32>
    %72 = arith.addf %71, %70 : vector<8x384xf32>
    %73 = arith.divf %71, %72 : vector<8x384xf32>
    %74 = vector.extract_strided_slice %73 {offsets = [0, 0], sizes = [8, 128], strides = [1, 1]} : vector<8x384xf32> to vector<8x128xf32>
    %75 = vector.extract_strided_slice %73 {offsets = [0, 128], sizes = [8, 128], strides = [1, 1]} : vector<8x384xf32> to vector<8x128xf32>
    %76 = vector.extract_strided_slice %73 {offsets = [0, 256], sizes = [8, 128], strides = [1, 1]} : vector<8x384xf32> to vector<8x128xf32>
    %77 = vector.extract_strided_slice %67 {offsets = [0, 384], sizes = [8, 128], strides = [1, 1]} : vector<8x512xf32> to vector<8x128xf32>
    %78 = math.tanh %77 : vector<8x128xf32>
    %79 = arith.mulf %75, %10 : vector<8x128xf32>
    %80 = arith.mulf %74, %78 : vector<8x128xf32>
    %81 = arith.addf %79, %80 : vector<8x128xf32>
    %82 = math.tanh %81 : vector<8x128xf32>
    %83 = arith.mulf %76, %82 : vector<8x128xf32>
    %84 = arith.addi %15, %61 : i32
    %85 = arith.index_cast %84 : i32 to index
    %c0_36 = arith.constant 0 : index
    %c128 = arith.constant 128 : index
    %86 = vector.load %arg8[%85, %c0_36, %c128] : memref<8x8x256xf32, #tpu.memory_space<vmem>>, vector<1x8x128xf32>
    %87 = vector.shape_cast %86 : vector<1x8x128xf32> to vector<8x128xf32>
    %88 = vector.shape_cast %83 : vector<8x128xf32> to vector<1x8x128xf32>
    tpu.vector_store %arg8[%85, %c0_36, %c128], %88 {strides = array<i32>} : memref<8x8x256xf32, #tpu.memory_space<vmem>>, vector<1x8x128xf32>,
    %c1_i32 = arith.constant 1 : i32
    %89 = arith.index_cast %c1_i32 : i32 to index
    %c0_37 = arith.constant 0 : index
    %c0_38 = arith.constant 0 : index
    %90 = vector.load %arg9[%89, %c0_37, %c0_38] : memref<8x8x512xf32, #tpu.memory_space<vmem>>, vector<1x8x512xf32>
    %91 = vector.shape_cast %90 : vector<1x8x512xf32> to vector<8x512xf32>
    %92 = arith.truncf %55 : vector<8x128xf32> to vector<8x128xbf16>
    %cst_39 = arith.constant dense<0.000000e+00> : vector<8x512xf32>
    %93 = tpu.matmul %92, %5, %cst_39 {dimension_numbers = #tpu.dot_dimension_numbers<[1], [0], [0], [1], [0, 0, 1, 1], [], []>} : vector<8x128xbf16>, vector<128x512xbf16>, vector<8x512xf32> -> vector<8x512xf32>
    %94 = arith.addf %91, %93 : vector<8x512xf32>
    %95 = vector.extract_strided_slice %94 {offsets = [0, 0], sizes = [8, 384], strides = [1, 1]} : vector<8x512xf32> to vector<8x384xf32>
    %96 = arith.negf %95 : vector<8x384xf32>
    %97 = math.exp %96 : vector<8x384xf32>
    %cst_40 = arith.constant 1.000000e+00 : f32
    %98 = vector.broadcast %cst_40 : f32 to vector<8x384xf32>
    %99 = arith.addf %98, %97 : vector<8x384xf32>
    %100 = arith.divf %98, %99 : vector<8x384xf32>
    %101 = vector.extract_strided_slice %100 {offsets = [0, 0], sizes = [8, 128], strides = [1, 1]} : vector<8x384xf32> to vector<8x128xf32>
    %102 = vector.extract_strided_slice %100 {offsets = [0, 128], sizes = [8, 128], strides = [1, 1]} : vector<8x384xf32> to vector<8x128xf32>
    %103 = vector.extract_strided_slice %100 {offsets = [0, 256], sizes = [8, 128], strides = [1, 1]} : vector<8x384xf32> to vector<8x128xf32>
    %104 = vector.extract_strided_slice %94 {offsets = [0, 384], sizes = [8, 128], strides = [1, 1]} : vector<8x512xf32> to vector<8x128xf32>
    %105 = math.tanh %104 : vector<8x128xf32>
    %106 = arith.mulf %102, %53 : vector<8x128xf32>
    %107 = arith.mulf %101, %105 : vector<8x128xf32>
    %108 = arith.addf %106, %107 : vector<8x128xf32>
    %109 = math.tanh %108 : vector<8x128xf32>
    %110 = arith.mulf %103, %109 : vector<8x128xf32>
    %111 = arith.addi %12, %c1_i32 : i32
    %112 = arith.index_cast %111 : i32 to index
    %c0_41 = arith.constant 0 : index
    %c0_42 = arith.constant 0 : index
    %113 = vector.load %arg8[%112, %c0_41, %c0_42] : memref<8x8x256xf32, #tpu.memory_space<vmem>>, vector<1x8x128xf32>
    %114 = vector.shape_cast %113 : vector<1x8x128xf32> to vector<8x128xf32>
    %115 = vector.shape_cast %110 : vector<8x128xf32> to vector<1x8x128xf32>
    tpu.vector_store %arg8[%112, %c0_41, %c0_42], %115 {strides = array<i32>} : memref<8x8x256xf32, #tpu.memory_space<vmem>>, vector<1x8x128xf32>,
    %c7_i32_43 = arith.constant 7 : i32
    %116 = arith.subi %c7_i32_43, %c1_i32 : i32
    %117 = arith.index_cast %116 : i32 to index
    %c0_44 = arith.constant 0 : index
    %c0_45 = arith.constant 0 : index
    %118 = vector.load %arg10[%117, %c0_44, %c0_45] : memref<8x8x512xf32, #tpu.memory_space<vmem>>, vector<1x8x512xf32>
    %119 = vector.shape_cast %118 : vector<1x8x512xf32> to vector<8x512xf32>
    %120 = arith.truncf %83 : vector<8x128xf32> to vector<8x128xbf16>
    %cst_46 = arith.constant dense<0.000000e+00> : vector<8x512xf32>
    %121 = tpu.matmul %120, %7, %cst_46 {dimension_numbers = #tpu.dot_dimension_numbers<[1], [0], [0], [1], [0, 0, 1, 1], [], []>} : vector<8x128xbf16>, vector<128x512xbf16>, vector<8x512xf32> -> vector<8x512xf32>
    %122 = arith.addf %119, %121 : vector<8x512xf32>
    %123 = vector.extract_strided_slice %122 {offsets = [0, 0], sizes = [8, 384], strides = [1, 1]} : vector<8x512xf32> to vector<8x384xf32>
    %124 = arith.negf %123 : vector<8x384xf32>
    %125 = math.exp %124 : vector<8x384xf32>
    %cst_47 = arith.constant 1.000000e+00 : f32
    %126 = vector.broadcast %cst_47 : f32 to vector<8x384xf32>
    %127 = arith.addf %126, %125 : vector<8x384xf32>
    %128 = arith.divf %126, %127 : vector<8x384xf32>
    %129 = vector.extract_strided_slice %128 {offsets = [0, 0], sizes = [8, 128], strides = [1, 1]} : vector<8x384xf32> to vector<8x128xf32>
    %130 = vector.extract_strided_slice %128 {offsets = [0, 128], sizes = [8, 128], strides = [1, 1]} : vector<8x384xf32> to vector<8x128xf32>
    %131 = vector.extract_strided_slice %128 {offsets = [0, 256], sizes = [8, 128], strides = [1, 1]} : vector<8x384xf32> to vector<8x128xf32>
    %132 = vector.extract_strided_slice %122 {offsets = [0, 384], sizes = [8, 128], strides = [1, 1]} : vector<8x512xf32> to vector<8x128xf32>
    %133 = math.tanh %132 : vector<8x128xf32>
    %134 = arith.mulf %130, %81 : vector<8x128xf32>
    %135 = arith.mulf %129, %133 : vector<8x128xf32>
    %136 = arith.addf %134, %135 : vector<8x128xf32>
    %137 = math.tanh %136 : vector<8x128xf32>
    %138 = arith.mulf %131, %137 : vector<8x128xf32>
    %139 = arith.addi %15, %116 : i32
    %140 = arith.index_cast %139 : i32 to index
    %c0_48 = arith.constant 0 : index
    %c128_49 = arith.constant 128 : index
    %141 = vector.load %arg8[%140, %c0_48, %c128_49] : memref<8x8x256xf32, #tpu.memory_space<vmem>>, vector<1x8x128xf32>
    %142 = vector.shape_cast %141 : vector<1x8x128xf32> to vector<8x128xf32>
    %143 = vector.shape_cast %138 : vector<8x128xf32> to vector<1x8x128xf32>
    tpu.vector_store %arg8[%140, %c0_48, %c128_49], %143 {strides = array<i32>} : memref<8x8x256xf32, #tpu.memory_space<vmem>>, vector<1x8x128xf32>,
    %c2_i32 = arith.constant 2 : i32
    %144 = arith.index_cast %c2_i32 : i32 to index
    %c0_50 = arith.constant 0 : index
    %c0_51 = arith.constant 0 : index
    %145 = vector.load %arg9[%144, %c0_50, %c0_51] : memref<8x8x512xf32, #tpu.memory_space<vmem>>, vector<1x8x512xf32>
    %146 = vector.shape_cast %145 : vector<1x8x512xf32> to vector<8x512xf32>
    %147 = arith.truncf %110 : vector<8x128xf32> to vector<8x128xbf16>
    %cst_52 = arith.constant dense<0.000000e+00> : vector<8x512xf32>
    %148 = tpu.matmul %147, %5, %cst_52 {dimension_numbers = #tpu.dot_dimension_numbers<[1], [0], [0], [1], [0, 0, 1, 1], [], []>} : vector<8x128xbf16>, vector<128x512xbf16>, vector<8x512xf32> -> vector<8x512xf32>
    %149 = arith.addf %146, %148 : vector<8x512xf32>
    %150 = vector.extract_strided_slice %149 {offsets = [0, 0], sizes = [8, 384], strides = [1, 1]} : vector<8x512xf32> to vector<8x384xf32>
    %151 = arith.negf %150 : vector<8x384xf32>
    %152 = math.exp %151 : vector<8x384xf32>
    %cst_53 = arith.constant 1.000000e+00 : f32
    %153 = vector.broadcast %cst_53 : f32 to vector<8x384xf32>
    %154 = arith.addf %153, %152 : vector<8x384xf32>
    %155 = arith.divf %153, %154 : vector<8x384xf32>
    %156 = vector.extract_strided_slice %155 {offsets = [0, 0], sizes = [8, 128], strides = [1, 1]} : vector<8x384xf32> to vector<8x128xf32>
    %157 = vector.extract_strided_slice %155 {offsets = [0, 128], sizes = [8, 128], strides = [1, 1]} : vector<8x384xf32> to vector<8x128xf32>
    %158 = vector.extract_strided_slice %155 {offsets = [0, 256], sizes = [8, 128], strides = [1, 1]} : vector<8x384xf32> to vector<8x128xf32>
    %159 = vector.extract_strided_slice %149 {offsets = [0, 384], sizes = [8, 128], strides = [1, 1]} : vector<8x512xf32> to vector<8x128xf32>
    %160 = math.tanh %159 : vector<8x128xf32>
    %161 = arith.mulf %157, %108 : vector<8x128xf32>
    %162 = arith.mulf %156, %160 : vector<8x128xf32>
    %163 = arith.addf %161, %162 : vector<8x128xf32>
    %164 = math.tanh %163 : vector<8x128xf32>
    %165 = arith.mulf %158, %164 : vector<8x128xf32>
    %166 = arith.addi %12, %c2_i32 : i32
    %167 = arith.index_cast %166 : i32 to index
    %c0_54 = arith.constant 0 : index
    %c0_55 = arith.constant 0 : index
    %168 = vector.load %arg8[%167, %c0_54, %c0_55] : memref<8x8x256xf32, #tpu.memory_space<vmem>>, vector<1x8x128xf32>
    %169 = vector.shape_cast %168 : vector<1x8x128xf32> to vector<8x128xf32>
    %170 = vector.shape_cast %165 : vector<8x128xf32> to vector<1x8x128xf32>
    tpu.vector_store %arg8[%167, %c0_54, %c0_55], %170 {strides = array<i32>} : memref<8x8x256xf32, #tpu.memory_space<vmem>>, vector<1x8x128xf32>,
    %c7_i32_56 = arith.constant 7 : i32
    %171 = arith.subi %c7_i32_56, %c2_i32 : i32
    %172 = arith.index_cast %171 : i32 to index
    %c0_57 = arith.constant 0 : index
    %c0_58 = arith.constant 0 : index
    %173 = vector.load %arg10[%172, %c0_57, %c0_58] : memref<8x8x512xf32, #tpu.memory_space<vmem>>, vector<1x8x512xf32>
    %174 = vector.shape_cast %173 : vector<1x8x512xf32> to vector<8x512xf32>
    %175 = arith.truncf %138 : vector<8x128xf32> to vector<8x128xbf16>
    %cst_59 = arith.constant dense<0.000000e+00> : vector<8x512xf32>
    %176 = tpu.matmul %175, %7, %cst_59 {dimension_numbers = #tpu.dot_dimension_numbers<[1], [0], [0], [1], [0, 0, 1, 1], [], []>} : vector<8x128xbf16>, vector<128x512xbf16>, vector<8x512xf32> -> vector<8x512xf32>
    %177 = arith.addf %174, %176 : vector<8x512xf32>
    %178 = vector.extract_strided_slice %177 {offsets = [0, 0], sizes = [8, 384], strides = [1, 1]} : vector<8x512xf32> to vector<8x384xf32>
    %179 = arith.negf %178 : vector<8x384xf32>
    %180 = math.exp %179 : vector<8x384xf32>
    %cst_60 = arith.constant 1.000000e+00 : f32
    %181 = vector.broadcast %cst_60 : f32 to vector<8x384xf32>
    %182 = arith.addf %181, %180 : vector<8x384xf32>
    %183 = arith.divf %181, %182 : vector<8x384xf32>
    %184 = vector.extract_strided_slice %183 {offsets = [0, 0], sizes = [8, 128], strides = [1, 1]} : vector<8x384xf32> to vector<8x128xf32>
    %185 = vector.extract_strided_slice %183 {offsets = [0, 128], sizes = [8, 128], strides = [1, 1]} : vector<8x384xf32> to vector<8x128xf32>
    %186 = vector.extract_strided_slice %183 {offsets = [0, 256], sizes = [8, 128], strides = [1, 1]} : vector<8x384xf32> to vector<8x128xf32>
    %187 = vector.extract_strided_slice %177 {offsets = [0, 384], sizes = [8, 128], strides = [1, 1]} : vector<8x512xf32> to vector<8x128xf32>
    %188 = math.tanh %187 : vector<8x128xf32>
    %189 = arith.mulf %185, %136 : vector<8x128xf32>
    %190 = arith.mulf %184, %188 : vector<8x128xf32>
    %191 = arith.addf %189, %190 : vector<8x128xf32>
    %192 = math.tanh %191 : vector<8x128xf32>
    %193 = arith.mulf %186, %192 : vector<8x128xf32>
    %194 = arith.addi %15, %171 : i32
    %195 = arith.index_cast %194 : i32 to index
    %c0_61 = arith.constant 0 : index
    %c128_62 = arith.constant 128 : index
    %196 = vector.load %arg8[%195, %c0_61, %c128_62] : memref<8x8x256xf32, #tpu.memory_space<vmem>>, vector<1x8x128xf32>
    %197 = vector.shape_cast %196 : vector<1x8x128xf32> to vector<8x128xf32>
    %198 = vector.shape_cast %193 : vector<8x128xf32> to vector<1x8x128xf32>
    tpu.vector_store %arg8[%195, %c0_61, %c128_62], %198 {strides = array<i32>} : memref<8x8x256xf32, #tpu.memory_space<vmem>>, vector<1x8x128xf32>,
    %c3_i32 = arith.constant 3 : i32
    %199 = arith.index_cast %c3_i32 : i32 to index
    %c0_63 = arith.constant 0 : index
    %c0_64 = arith.constant 0 : index
    %200 = vector.load %arg9[%199, %c0_63, %c0_64] : memref<8x8x512xf32, #tpu.memory_space<vmem>>, vector<1x8x512xf32>
    %201 = vector.shape_cast %200 : vector<1x8x512xf32> to vector<8x512xf32>
    %202 = arith.truncf %165 : vector<8x128xf32> to vector<8x128xbf16>
    %cst_65 = arith.constant dense<0.000000e+00> : vector<8x512xf32>
    %203 = tpu.matmul %202, %5, %cst_65 {dimension_numbers = #tpu.dot_dimension_numbers<[1], [0], [0], [1], [0, 0, 1, 1], [], []>} : vector<8x128xbf16>, vector<128x512xbf16>, vector<8x512xf32> -> vector<8x512xf32>
    %204 = arith.addf %201, %203 : vector<8x512xf32>
    %205 = vector.extract_strided_slice %204 {offsets = [0, 0], sizes = [8, 384], strides = [1, 1]} : vector<8x512xf32> to vector<8x384xf32>
    %206 = arith.negf %205 : vector<8x384xf32>
    %207 = math.exp %206 : vector<8x384xf32>
    %cst_66 = arith.constant 1.000000e+00 : f32
    %208 = vector.broadcast %cst_66 : f32 to vector<8x384xf32>
    %209 = arith.addf %208, %207 : vector<8x384xf32>
    %210 = arith.divf %208, %209 : vector<8x384xf32>
    %211 = vector.extract_strided_slice %210 {offsets = [0, 0], sizes = [8, 128], strides = [1, 1]} : vector<8x384xf32> to vector<8x128xf32>
    %212 = vector.extract_strided_slice %210 {offsets = [0, 128], sizes = [8, 128], strides = [1, 1]} : vector<8x384xf32> to vector<8x128xf32>
    %213 = vector.extract_strided_slice %210 {offsets = [0, 256], sizes = [8, 128], strides = [1, 1]} : vector<8x384xf32> to vector<8x128xf32>
    %214 = vector.extract_strided_slice %204 {offsets = [0, 384], sizes = [8, 128], strides = [1, 1]} : vector<8x512xf32> to vector<8x128xf32>
    %215 = math.tanh %214 : vector<8x128xf32>
    %216 = arith.mulf %212, %163 : vector<8x128xf32>
    %217 = arith.mulf %211, %215 : vector<8x128xf32>
    %218 = arith.addf %216, %217 : vector<8x128xf32>
    %219 = math.tanh %218 : vector<8x128xf32>
    %220 = arith.mulf %213, %219 : vector<8x128xf32>
    %221 = arith.addi %12, %c3_i32 : i32
    %222 = arith.index_cast %221 : i32 to index
    %c0_67 = arith.constant 0 : index
    %c0_68 = arith.constant 0 : index
    %223 = vector.load %arg8[%222, %c0_67, %c0_68] : memref<8x8x256xf32, #tpu.memory_space<vmem>>, vector<1x8x128xf32>
    %224 = vector.shape_cast %223 : vector<1x8x128xf32> to vector<8x128xf32>
    %225 = vector.shape_cast %220 : vector<8x128xf32> to vector<1x8x128xf32>
    tpu.vector_store %arg8[%222, %c0_67, %c0_68], %225 {strides = array<i32>} : memref<8x8x256xf32, #tpu.memory_space<vmem>>, vector<1x8x128xf32>,
    %c7_i32_69 = arith.constant 7 : i32
    %226 = arith.subi %c7_i32_69, %c3_i32 : i32
    %227 = arith.index_cast %226 : i32 to index
    %c0_70 = arith.constant 0 : index
    %c0_71 = arith.constant 0 : index
    %228 = vector.load %arg10[%227, %c0_70, %c0_71] : memref<8x8x512xf32, #tpu.memory_space<vmem>>, vector<1x8x512xf32>
    %229 = vector.shape_cast %228 : vector<1x8x512xf32> to vector<8x512xf32>
    %230 = arith.truncf %193 : vector<8x128xf32> to vector<8x128xbf16>
    %cst_72 = arith.constant dense<0.000000e+00> : vector<8x512xf32>
    %231 = tpu.matmul %230, %7, %cst_72 {dimension_numbers = #tpu.dot_dimension_numbers<[1], [0], [0], [1], [0, 0, 1, 1], [], []>} : vector<8x128xbf16>, vector<128x512xbf16>, vector<8x512xf32> -> vector<8x512xf32>
    %232 = arith.addf %229, %231 : vector<8x512xf32>
    %233 = vector.extract_strided_slice %232 {offsets = [0, 0], sizes = [8, 384], strides = [1, 1]} : vector<8x512xf32> to vector<8x384xf32>
    %234 = arith.negf %233 : vector<8x384xf32>
    %235 = math.exp %234 : vector<8x384xf32>
    %cst_73 = arith.constant 1.000000e+00 : f32
    %236 = vector.broadcast %cst_73 : f32 to vector<8x384xf32>
    %237 = arith.addf %236, %235 : vector<8x384xf32>
    %238 = arith.divf %236, %237 : vector<8x384xf32>
    %239 = vector.extract_strided_slice %238 {offsets = [0, 0], sizes = [8, 128], strides = [1, 1]} : vector<8x384xf32> to vector<8x128xf32>
    %240 = vector.extract_strided_slice %238 {offsets = [0, 128], sizes = [8, 128], strides = [1, 1]} : vector<8x384xf32> to vector<8x128xf32>
    %241 = vector.extract_strided_slice %238 {offsets = [0, 256], sizes = [8, 128], strides = [1, 1]} : vector<8x384xf32> to vector<8x128xf32>
    %242 = vector.extract_strided_slice %232 {offsets = [0, 384], sizes = [8, 128], strides = [1, 1]} : vector<8x512xf32> to vector<8x128xf32>
    %243 = math.tanh %242 : vector<8x128xf32>
    %244 = arith.mulf %240, %191 : vector<8x128xf32>
    %245 = arith.mulf %239, %243 : vector<8x128xf32>
    %246 = arith.addf %244, %245 : vector<8x128xf32>
    %247 = math.tanh %246 : vector<8x128xf32>
    %248 = arith.mulf %241, %247 : vector<8x128xf32>
    %249 = arith.addi %15, %226 : i32
    %250 = arith.index_cast %249 : i32 to index
    %c0_74 = arith.constant 0 : index
    %c128_75 = arith.constant 128 : index
    %251 = vector.load %arg8[%250, %c0_74, %c128_75] : memref<8x8x256xf32, #tpu.memory_space<vmem>>, vector<1x8x128xf32>
    %252 = vector.shape_cast %251 : vector<1x8x128xf32> to vector<8x128xf32>
    %253 = vector.shape_cast %248 : vector<8x128xf32> to vector<1x8x128xf32>
    tpu.vector_store %arg8[%250, %c0_74, %c128_75], %253 {strides = array<i32>} : memref<8x8x256xf32, #tpu.memory_space<vmem>>, vector<1x8x128xf32>,
    %c4_i32 = arith.constant 4 : i32
    %254 = arith.index_cast %c4_i32 : i32 to index
    %c0_76 = arith.constant 0 : index
    %c0_77 = arith.constant 0 : index
    %255 = vector.load %arg9[%254, %c0_76, %c0_77] : memref<8x8x512xf32, #tpu.memory_space<vmem>>, vector<1x8x512xf32>
    %256 = vector.shape_cast %255 : vector<1x8x512xf32> to vector<8x512xf32>
    %257 = arith.truncf %220 : vector<8x128xf32> to vector<8x128xbf16>
    %cst_78 = arith.constant dense<0.000000e+00> : vector<8x512xf32>
    %258 = tpu.matmul %257, %5, %cst_78 {dimension_numbers = #tpu.dot_dimension_numbers<[1], [0], [0], [1], [0, 0, 1, 1], [], []>} : vector<8x128xbf16>, vector<128x512xbf16>, vector<8x512xf32> -> vector<8x512xf32>
    %259 = arith.addf %256, %258 : vector<8x512xf32>
    %260 = vector.extract_strided_slice %259 {offsets = [0, 0], sizes = [8, 384], strides = [1, 1]} : vector<8x512xf32> to vector<8x384xf32>
    %261 = arith.negf %260 : vector<8x384xf32>
    %262 = math.exp %261 : vector<8x384xf32>
    %cst_79 = arith.constant 1.000000e+00 : f32
    %263 = vector.broadcast %cst_79 : f32 to vector<8x384xf32>
    %264 = arith.addf %263, %262 : vector<8x384xf32>
    %265 = arith.divf %263, %264 : vector<8x384xf32>
    %266 = vector.extract_strided_slice %265 {offsets = [0, 0], sizes = [8, 128], strides = [1, 1]} : vector<8x384xf32> to vector<8x128xf32>
    %267 = vector.extract_strided_slice %265 {offsets = [0, 128], sizes = [8, 128], strides = [1, 1]} : vector<8x384xf32> to vector<8x128xf32>
    %268 = vector.extract_strided_slice %265 {offsets = [0, 256], sizes = [8, 128], strides = [1, 1]} : vector<8x384xf32> to vector<8x128xf32>
    %269 = vector.extract_strided_slice %259 {offsets = [0, 384], sizes = [8, 128], strides = [1, 1]} : vector<8x512xf32> to vector<8x128xf32>
    %270 = math.tanh %269 : vector<8x128xf32>
    %271 = arith.mulf %267, %218 : vector<8x128xf32>
    %272 = arith.mulf %266, %270 : vector<8x128xf32>
    %273 = arith.addf %271, %272 : vector<8x128xf32>
    %274 = math.tanh %273 : vector<8x128xf32>
    %275 = arith.mulf %268, %274 : vector<8x128xf32>
    %276 = arith.addi %12, %c4_i32 : i32
    %277 = arith.index_cast %276 : i32 to index
    %c0_80 = arith.constant 0 : index
    %c0_81 = arith.constant 0 : index
    %278 = vector.load %arg8[%277, %c0_80, %c0_81] : memref<8x8x256xf32, #tpu.memory_space<vmem>>, vector<1x8x128xf32>
    %279 = vector.shape_cast %278 : vector<1x8x128xf32> to vector<8x128xf32>
    %280 = vector.shape_cast %275 : vector<8x128xf32> to vector<1x8x128xf32>
    tpu.vector_store %arg8[%277, %c0_80, %c0_81], %280 {strides = array<i32>} : memref<8x8x256xf32, #tpu.memory_space<vmem>>, vector<1x8x128xf32>,
    %c7_i32_82 = arith.constant 7 : i32
    %281 = arith.subi %c7_i32_82, %c4_i32 : i32
    %282 = arith.index_cast %281 : i32 to index
    %c0_83 = arith.constant 0 : index
    %c0_84 = arith.constant 0 : index
    %283 = vector.load %arg10[%282, %c0_83, %c0_84] : memref<8x8x512xf32, #tpu.memory_space<vmem>>, vector<1x8x512xf32>
    %284 = vector.shape_cast %283 : vector<1x8x512xf32> to vector<8x512xf32>
    %285 = arith.truncf %248 : vector<8x128xf32> to vector<8x128xbf16>
    %cst_85 = arith.constant dense<0.000000e+00> : vector<8x512xf32>
    %286 = tpu.matmul %285, %7, %cst_85 {dimension_numbers = #tpu.dot_dimension_numbers<[1], [0], [0], [1], [0, 0, 1, 1], [], []>} : vector<8x128xbf16>, vector<128x512xbf16>, vector<8x512xf32> -> vector<8x512xf32>
    %287 = arith.addf %284, %286 : vector<8x512xf32>
    %288 = vector.extract_strided_slice %287 {offsets = [0, 0], sizes = [8, 384], strides = [1, 1]} : vector<8x512xf32> to vector<8x384xf32>
    %289 = arith.negf %288 : vector<8x384xf32>
    %290 = math.exp %289 : vector<8x384xf32>
    %cst_86 = arith.constant 1.000000e+00 : f32
    %291 = vector.broadcast %cst_86 : f32 to vector<8x384xf32>
    %292 = arith.addf %291, %290 : vector<8x384xf32>
    %293 = arith.divf %291, %292 : vector<8x384xf32>
    %294 = vector.extract_strided_slice %293 {offsets = [0, 0], sizes = [8, 128], strides = [1, 1]} : vector<8x384xf32> to vector<8x128xf32>
    %295 = vector.extract_strided_slice %293 {offsets = [0, 128], sizes = [8, 128], strides = [1, 1]} : vector<8x384xf32> to vector<8x128xf32>
    %296 = vector.extract_strided_slice %293 {offsets = [0, 256], sizes = [8, 128], strides = [1, 1]} : vector<8x384xf32> to vector<8x128xf32>
    %297 = vector.extract_strided_slice %287 {offsets = [0, 384], sizes = [8, 128], strides = [1, 1]} : vector<8x512xf32> to vector<8x128xf32>
    %298 = math.tanh %297 : vector<8x128xf32>
    %299 = arith.mulf %295, %246 : vector<8x128xf32>
    %300 = arith.mulf %294, %298 : vector<8x128xf32>
    %301 = arith.addf %299, %300 : vector<8x128xf32>
    %302 = math.tanh %301 : vector<8x128xf32>
    %303 = arith.mulf %296, %302 : vector<8x128xf32>
    %304 = arith.addi %15, %281 : i32
    %305 = arith.index_cast %304 : i32 to index
    %c0_87 = arith.constant 0 : index
    %c128_88 = arith.constant 128 : index
    %306 = vector.load %arg8[%305, %c0_87, %c128_88] : memref<8x8x256xf32, #tpu.memory_space<vmem>>, vector<1x8x128xf32>
    %307 = vector.shape_cast %306 : vector<1x8x128xf32> to vector<8x128xf32>
    %308 = vector.shape_cast %303 : vector<8x128xf32> to vector<1x8x128xf32>
    tpu.vector_store %arg8[%305, %c0_87, %c128_88], %308 {strides = array<i32>} : memref<8x8x256xf32, #tpu.memory_space<vmem>>, vector<1x8x128xf32>,
    %c5_i32 = arith.constant 5 : i32
    %309 = arith.index_cast %c5_i32 : i32 to index
    %c0_89 = arith.constant 0 : index
    %c0_90 = arith.constant 0 : index
    %310 = vector.load %arg9[%309, %c0_89, %c0_90] : memref<8x8x512xf32, #tpu.memory_space<vmem>>, vector<1x8x512xf32>
    %311 = vector.shape_cast %310 : vector<1x8x512xf32> to vector<8x512xf32>
    %312 = arith.truncf %275 : vector<8x128xf32> to vector<8x128xbf16>
    %cst_91 = arith.constant dense<0.000000e+00> : vector<8x512xf32>
    %313 = tpu.matmul %312, %5, %cst_91 {dimension_numbers = #tpu.dot_dimension_numbers<[1], [0], [0], [1], [0, 0, 1, 1], [], []>} : vector<8x128xbf16>, vector<128x512xbf16>, vector<8x512xf32> -> vector<8x512xf32>
    %314 = arith.addf %311, %313 : vector<8x512xf32>
    %315 = vector.extract_strided_slice %314 {offsets = [0, 0], sizes = [8, 384], strides = [1, 1]} : vector<8x512xf32> to vector<8x384xf32>
    %316 = arith.negf %315 : vector<8x384xf32>
    %317 = math.exp %316 : vector<8x384xf32>
    %cst_92 = arith.constant 1.000000e+00 : f32
    %318 = vector.broadcast %cst_92 : f32 to vector<8x384xf32>
    %319 = arith.addf %318, %317 : vector<8x384xf32>
    %320 = arith.divf %318, %319 : vector<8x384xf32>
    %321 = vector.extract_strided_slice %320 {offsets = [0, 0], sizes = [8, 128], strides = [1, 1]} : vector<8x384xf32> to vector<8x128xf32>
    %322 = vector.extract_strided_slice %320 {offsets = [0, 128], sizes = [8, 128], strides = [1, 1]} : vector<8x384xf32> to vector<8x128xf32>
    %323 = vector.extract_strided_slice %320 {offsets = [0, 256], sizes = [8, 128], strides = [1, 1]} : vector<8x384xf32> to vector<8x128xf32>
    %324 = vector.extract_strided_slice %314 {offsets = [0, 384], sizes = [8, 128], strides = [1, 1]} : vector<8x512xf32> to vector<8x128xf32>
    %325 = math.tanh %324 : vector<8x128xf32>
    %326 = arith.mulf %322, %273 : vector<8x128xf32>
    %327 = arith.mulf %321, %325 : vector<8x128xf32>
    %328 = arith.addf %326, %327 : vector<8x128xf32>
    %329 = math.tanh %328 : vector<8x128xf32>
    %330 = arith.mulf %323, %329 : vector<8x128xf32>
    %331 = arith.addi %12, %c5_i32 : i32
    %332 = arith.index_cast %331 : i32 to index
    %c0_93 = arith.constant 0 : index
    %c0_94 = arith.constant 0 : index
    %333 = vector.load %arg8[%332, %c0_93, %c0_94] : memref<8x8x256xf32, #tpu.memory_space<vmem>>, vector<1x8x128xf32>
    %334 = vector.shape_cast %333 : vector<1x8x128xf32> to vector<8x128xf32>
    %335 = vector.shape_cast %330 : vector<8x128xf32> to vector<1x8x128xf32>
    tpu.vector_store %arg8[%332, %c0_93, %c0_94], %335 {strides = array<i32>} : memref<8x8x256xf32, #tpu.memory_space<vmem>>, vector<1x8x128xf32>,
    %c7_i32_95 = arith.constant 7 : i32
    %336 = arith.subi %c7_i32_95, %c5_i32 : i32
    %337 = arith.index_cast %336 : i32 to index
    %c0_96 = arith.constant 0 : index
    %c0_97 = arith.constant 0 : index
    %338 = vector.load %arg10[%337, %c0_96, %c0_97] : memref<8x8x512xf32, #tpu.memory_space<vmem>>, vector<1x8x512xf32>
    %339 = vector.shape_cast %338 : vector<1x8x512xf32> to vector<8x512xf32>
    %340 = arith.truncf %303 : vector<8x128xf32> to vector<8x128xbf16>
    %cst_98 = arith.constant dense<0.000000e+00> : vector<8x512xf32>
    %341 = tpu.matmul %340, %7, %cst_98 {dimension_numbers = #tpu.dot_dimension_numbers<[1], [0], [0], [1], [0, 0, 1, 1], [], []>} : vector<8x128xbf16>, vector<128x512xbf16>, vector<8x512xf32> -> vector<8x512xf32>
    %342 = arith.addf %339, %341 : vector<8x512xf32>
    %343 = vector.extract_strided_slice %342 {offsets = [0, 0], sizes = [8, 384], strides = [1, 1]} : vector<8x512xf32> to vector<8x384xf32>
    %344 = arith.negf %343 : vector<8x384xf32>
    %345 = math.exp %344 : vector<8x384xf32>
    %cst_99 = arith.constant 1.000000e+00 : f32
    %346 = vector.broadcast %cst_99 : f32 to vector<8x384xf32>
    %347 = arith.addf %346, %345 : vector<8x384xf32>
    %348 = arith.divf %346, %347 : vector<8x384xf32>
    %349 = vector.extract_strided_slice %348 {offsets = [0, 0], sizes = [8, 128], strides = [1, 1]} : vector<8x384xf32> to vector<8x128xf32>
    %350 = vector.extract_strided_slice %348 {offsets = [0, 128], sizes = [8, 128], strides = [1, 1]} : vector<8x384xf32> to vector<8x128xf32>
    %351 = vector.extract_strided_slice %348 {offsets = [0, 256], sizes = [8, 128], strides = [1, 1]} : vector<8x384xf32> to vector<8x128xf32>
    %352 = vector.extract_strided_slice %342 {offsets = [0, 384], sizes = [8, 128], strides = [1, 1]} : vector<8x512xf32> to vector<8x128xf32>
    %353 = math.tanh %352 : vector<8x128xf32>
    %354 = arith.mulf %350, %301 : vector<8x128xf32>
    %355 = arith.mulf %349, %353 : vector<8x128xf32>
    %356 = arith.addf %354, %355 : vector<8x128xf32>
    %357 = math.tanh %356 : vector<8x128xf32>
    %358 = arith.mulf %351, %357 : vector<8x128xf32>
    %359 = arith.addi %15, %336 : i32
    %360 = arith.index_cast %359 : i32 to index
    %c0_100 = arith.constant 0 : index
    %c128_101 = arith.constant 128 : index
    %361 = vector.load %arg8[%360, %c0_100, %c128_101] : memref<8x8x256xf32, #tpu.memory_space<vmem>>, vector<1x8x128xf32>
    %362 = vector.shape_cast %361 : vector<1x8x128xf32> to vector<8x128xf32>
    %363 = vector.shape_cast %358 : vector<8x128xf32> to vector<1x8x128xf32>
    tpu.vector_store %arg8[%360, %c0_100, %c128_101], %363 {strides = array<i32>} : memref<8x8x256xf32, #tpu.memory_space<vmem>>, vector<1x8x128xf32>,
    %c6_i32 = arith.constant 6 : i32
    %364 = arith.index_cast %c6_i32 : i32 to index
    %c0_102 = arith.constant 0 : index
    %c0_103 = arith.constant 0 : index
    %365 = vector.load %arg9[%364, %c0_102, %c0_103] : memref<8x8x512xf32, #tpu.memory_space<vmem>>, vector<1x8x512xf32>
    %366 = vector.shape_cast %365 : vector<1x8x512xf32> to vector<8x512xf32>
    %367 = arith.truncf %330 : vector<8x128xf32> to vector<8x128xbf16>
    %cst_104 = arith.constant dense<0.000000e+00> : vector<8x512xf32>
    %368 = tpu.matmul %367, %5, %cst_104 {dimension_numbers = #tpu.dot_dimension_numbers<[1], [0], [0], [1], [0, 0, 1, 1], [], []>} : vector<8x128xbf16>, vector<128x512xbf16>, vector<8x512xf32> -> vector<8x512xf32>
    %369 = arith.addf %366, %368 : vector<8x512xf32>
    %370 = vector.extract_strided_slice %369 {offsets = [0, 0], sizes = [8, 384], strides = [1, 1]} : vector<8x512xf32> to vector<8x384xf32>
    %371 = arith.negf %370 : vector<8x384xf32>
    %372 = math.exp %371 : vector<8x384xf32>
    %cst_105 = arith.constant 1.000000e+00 : f32
    %373 = vector.broadcast %cst_105 : f32 to vector<8x384xf32>
    %374 = arith.addf %373, %372 : vector<8x384xf32>
    %375 = arith.divf %373, %374 : vector<8x384xf32>
    %376 = vector.extract_strided_slice %375 {offsets = [0, 0], sizes = [8, 128], strides = [1, 1]} : vector<8x384xf32> to vector<8x128xf32>
    %377 = vector.extract_strided_slice %375 {offsets = [0, 128], sizes = [8, 128], strides = [1, 1]} : vector<8x384xf32> to vector<8x128xf32>
    %378 = vector.extract_strided_slice %375 {offsets = [0, 256], sizes = [8, 128], strides = [1, 1]} : vector<8x384xf32> to vector<8x128xf32>
    %379 = vector.extract_strided_slice %369 {offsets = [0, 384], sizes = [8, 128], strides = [1, 1]} : vector<8x512xf32> to vector<8x128xf32>
    %380 = math.tanh %379 : vector<8x128xf32>
    %381 = arith.mulf %377, %328 : vector<8x128xf32>
    %382 = arith.mulf %376, %380 : vector<8x128xf32>
    %383 = arith.addf %381, %382 : vector<8x128xf32>
    %384 = math.tanh %383 : vector<8x128xf32>
    %385 = arith.mulf %378, %384 : vector<8x128xf32>
    %386 = arith.addi %12, %c6_i32 : i32
    %387 = arith.index_cast %386 : i32 to index
    %c0_106 = arith.constant 0 : index
    %c0_107 = arith.constant 0 : index
    %388 = vector.load %arg8[%387, %c0_106, %c0_107] : memref<8x8x256xf32, #tpu.memory_space<vmem>>, vector<1x8x128xf32>
    %389 = vector.shape_cast %388 : vector<1x8x128xf32> to vector<8x128xf32>
    %390 = vector.shape_cast %385 : vector<8x128xf32> to vector<1x8x128xf32>
    tpu.vector_store %arg8[%387, %c0_106, %c0_107], %390 {strides = array<i32>} : memref<8x8x256xf32, #tpu.memory_space<vmem>>, vector<1x8x128xf32>,
    %c7_i32_108 = arith.constant 7 : i32
    %391 = arith.subi %c7_i32_108, %c6_i32 : i32
    %392 = arith.index_cast %391 : i32 to index
    %c0_109 = arith.constant 0 : index
    %c0_110 = arith.constant 0 : index
    %393 = vector.load %arg10[%392, %c0_109, %c0_110] : memref<8x8x512xf32, #tpu.memory_space<vmem>>, vector<1x8x512xf32>
    %394 = vector.shape_cast %393 : vector<1x8x512xf32> to vector<8x512xf32>
    %395 = arith.truncf %358 : vector<8x128xf32> to vector<8x128xbf16>
    %cst_111 = arith.constant dense<0.000000e+00> : vector<8x512xf32>
    %396 = tpu.matmul %395, %7, %cst_111 {dimension_numbers = #tpu.dot_dimension_numbers<[1], [0], [0], [1], [0, 0, 1, 1], [], []>} : vector<8x128xbf16>, vector<128x512xbf16>, vector<8x512xf32> -> vector<8x512xf32>
    %397 = arith.addf %394, %396 : vector<8x512xf32>
    %398 = vector.extract_strided_slice %397 {offsets = [0, 0], sizes = [8, 384], strides = [1, 1]} : vector<8x512xf32> to vector<8x384xf32>
    %399 = arith.negf %398 : vector<8x384xf32>
    %400 = math.exp %399 : vector<8x384xf32>
    %cst_112 = arith.constant 1.000000e+00 : f32
    %401 = vector.broadcast %cst_112 : f32 to vector<8x384xf32>
    %402 = arith.addf %401, %400 : vector<8x384xf32>
    %403 = arith.divf %401, %402 : vector<8x384xf32>
    %404 = vector.extract_strided_slice %403 {offsets = [0, 0], sizes = [8, 128], strides = [1, 1]} : vector<8x384xf32> to vector<8x128xf32>
    %405 = vector.extract_strided_slice %403 {offsets = [0, 128], sizes = [8, 128], strides = [1, 1]} : vector<8x384xf32> to vector<8x128xf32>
    %406 = vector.extract_strided_slice %403 {offsets = [0, 256], sizes = [8, 128], strides = [1, 1]} : vector<8x384xf32> to vector<8x128xf32>
    %407 = vector.extract_strided_slice %397 {offsets = [0, 384], sizes = [8, 128], strides = [1, 1]} : vector<8x512xf32> to vector<8x128xf32>
    %408 = math.tanh %407 : vector<8x128xf32>
    %409 = arith.mulf %405, %356 : vector<8x128xf32>
    %410 = arith.mulf %404, %408 : vector<8x128xf32>
    %411 = arith.addf %409, %410 : vector<8x128xf32>
    %412 = math.tanh %411 : vector<8x128xf32>
    %413 = arith.mulf %406, %412 : vector<8x128xf32>
    %414 = arith.addi %15, %391 : i32
    %415 = arith.index_cast %414 : i32 to index
    %c0_113 = arith.constant 0 : index
    %c128_114 = arith.constant 128 : index
    %416 = vector.load %arg8[%415, %c0_113, %c128_114] : memref<8x8x256xf32, #tpu.memory_space<vmem>>, vector<1x8x128xf32>
    %417 = vector.shape_cast %416 : vector<1x8x128xf32> to vector<8x128xf32>
    %418 = vector.shape_cast %413 : vector<8x128xf32> to vector<1x8x128xf32>
    tpu.vector_store %arg8[%415, %c0_113, %c128_114], %418 {strides = array<i32>} : memref<8x8x256xf32, #tpu.memory_space<vmem>>, vector<1x8x128xf32>,
    %c7_i32_115 = arith.constant 7 : i32
    %419 = arith.index_cast %c7_i32_115 : i32 to index
    %c0_116 = arith.constant 0 : index
    %c0_117 = arith.constant 0 : index
    %420 = vector.load %arg9[%419, %c0_116, %c0_117] : memref<8x8x512xf32, #tpu.memory_space<vmem>>, vector<1x8x512xf32>
    %421 = vector.shape_cast %420 : vector<1x8x512xf32> to vector<8x512xf32>
    %422 = arith.truncf %385 : vector<8x128xf32> to vector<8x128xbf16>
    %cst_118 = arith.constant dense<0.000000e+00> : vector<8x512xf32>
    %423 = tpu.matmul %422, %5, %cst_118 {dimension_numbers = #tpu.dot_dimension_numbers<[1], [0], [0], [1], [0, 0, 1, 1], [], []>} : vector<8x128xbf16>, vector<128x512xbf16>, vector<8x512xf32> -> vector<8x512xf32>
    %424 = arith.addf %421, %423 : vector<8x512xf32>
    %425 = vector.extract_strided_slice %424 {offsets = [0, 0], sizes = [8, 384], strides = [1, 1]} : vector<8x512xf32> to vector<8x384xf32>
    %426 = arith.negf %425 : vector<8x384xf32>
    %427 = math.exp %426 : vector<8x384xf32>
    %cst_119 = arith.constant 1.000000e+00 : f32
    %428 = vector.broadcast %cst_119 : f32 to vector<8x384xf32>
    %429 = arith.addf %428, %427 : vector<8x384xf32>
    %430 = arith.divf %428, %429 : vector<8x384xf32>
    %431 = vector.extract_strided_slice %430 {offsets = [0, 0], sizes = [8, 128], strides = [1, 1]} : vector<8x384xf32> to vector<8x128xf32>
    %432 = vector.extract_strided_slice %430 {offsets = [0, 128], sizes = [8, 128], strides = [1, 1]} : vector<8x384xf32> to vector<8x128xf32>
    %433 = vector.extract_strided_slice %430 {offsets = [0, 256], sizes = [8, 128], strides = [1, 1]} : vector<8x384xf32> to vector<8x128xf32>
    %434 = vector.extract_strided_slice %424 {offsets = [0, 384], sizes = [8, 128], strides = [1, 1]} : vector<8x512xf32> to vector<8x128xf32>
    %435 = math.tanh %434 : vector<8x128xf32>
    %436 = arith.mulf %432, %383 : vector<8x128xf32>
    %437 = arith.mulf %431, %435 : vector<8x128xf32>
    %438 = arith.addf %436, %437 : vector<8x128xf32>
    %439 = math.tanh %438 : vector<8x128xf32>
    %440 = arith.mulf %433, %439 : vector<8x128xf32>
    %441 = arith.addi %12, %c7_i32_115 : i32
    %442 = arith.index_cast %441 : i32 to index
    %c0_120 = arith.constant 0 : index
    %c0_121 = arith.constant 0 : index
    %443 = vector.load %arg8[%442, %c0_120, %c0_121] : memref<8x8x256xf32, #tpu.memory_space<vmem>>, vector<1x8x128xf32>
    %444 = vector.shape_cast %443 : vector<1x8x128xf32> to vector<8x128xf32>
    %445 = vector.shape_cast %440 : vector<8x128xf32> to vector<1x8x128xf32>
    tpu.vector_store %arg8[%442, %c0_120, %c0_121], %445 {strides = array<i32>} : memref<8x8x256xf32, #tpu.memory_space<vmem>>, vector<1x8x128xf32>,
    %c7_i32_122 = arith.constant 7 : i32
    %446 = arith.subi %c7_i32_122, %c7_i32_115 : i32
    %447 = arith.index_cast %446 : i32 to index
    %c0_123 = arith.constant 0 : index
    %c0_124 = arith.constant 0 : index
    %448 = vector.load %arg10[%447, %c0_123, %c0_124] : memref<8x8x512xf32, #tpu.memory_space<vmem>>, vector<1x8x512xf32>
    %449 = vector.shape_cast %448 : vector<1x8x512xf32> to vector<8x512xf32>
    %450 = arith.truncf %413 : vector<8x128xf32> to vector<8x128xbf16>
    %cst_125 = arith.constant dense<0.000000e+00> : vector<8x512xf32>
    %451 = tpu.matmul %450, %7, %cst_125 {dimension_numbers = #tpu.dot_dimension_numbers<[1], [0], [0], [1], [0, 0, 1, 1], [], []>} : vector<8x128xbf16>, vector<128x512xbf16>, vector<8x512xf32> -> vector<8x512xf32>
    %452 = arith.addf %449, %451 : vector<8x512xf32>
    %453 = vector.extract_strided_slice %452 {offsets = [0, 0], sizes = [8, 384], strides = [1, 1]} : vector<8x512xf32> to vector<8x384xf32>
    %454 = arith.negf %453 : vector<8x384xf32>
    %455 = math.exp %454 : vector<8x384xf32>
    %cst_126 = arith.constant 1.000000e+00 : f32
    %456 = vector.broadcast %cst_126 : f32 to vector<8x384xf32>
    %457 = arith.addf %456, %455 : vector<8x384xf32>
    %458 = arith.divf %456, %457 : vector<8x384xf32>
    %459 = vector.extract_strided_slice %458 {offsets = [0, 0], sizes = [8, 128], strides = [1, 1]} : vector<8x384xf32> to vector<8x128xf32>
    %460 = vector.extract_strided_slice %458 {offsets = [0, 128], sizes = [8, 128], strides = [1, 1]} : vector<8x384xf32> to vector<8x128xf32>
    %461 = vector.extract_strided_slice %458 {offsets = [0, 256], sizes = [8, 128], strides = [1, 1]} : vector<8x384xf32> to vector<8x128xf32>
    %462 = vector.extract_strided_slice %452 {offsets = [0, 384], sizes = [8, 128], strides = [1, 1]} : vector<8x512xf32> to vector<8x128xf32>
    %463 = math.tanh %462 : vector<8x128xf32>
    %464 = arith.mulf %460, %411 : vector<8x128xf32>
    %465 = arith.mulf %459, %463 : vector<8x128xf32>
    %466 = arith.addf %464, %465 : vector<8x128xf32>
    %467 = math.tanh %466 : vector<8x128xf32>
    %468 = arith.mulf %461, %467 : vector<8x128xf32>
    %469 = arith.addi %15, %446 : i32
    %470 = arith.index_cast %469 : i32 to index
    %c0_127 = arith.constant 0 : index
    %c128_128 = arith.constant 128 : index
    %471 = vector.load %arg8[%470, %c0_127, %c128_128] : memref<8x8x256xf32, #tpu.memory_space<vmem>>, vector<1x8x128xf32>
    %472 = vector.shape_cast %471 : vector<1x8x128xf32> to vector<8x128xf32>
    %473 = vector.shape_cast %468 : vector<8x128xf32> to vector<1x8x128xf32>
    tpu.vector_store %arg8[%470, %c0_127, %c128_128], %473 {strides = array<i32>} : memref<8x8x256xf32, #tpu.memory_space<vmem>>, vector<1x8x128xf32>,
    %c8_i32_129 = arith.constant 8 : i32
    %c1_i32_130 = arith.constant 1 : i32
    return
  }
  func.func @transform_0(%arg0: i32) -> (i32, i32, i32) {
    %c0_i32 = arith.constant 0 : i32
    %c0_i32_0 = arith.constant 0 : i32
    %c0_i32_1 = arith.constant 0 : i32
    return %c0_i32, %arg0, %c0_i32_0 : i32, i32, i32
  }
  func.func @transform_1(%arg0: i32) -> (i32, i32) {
    %c0_i32 = arith.constant 0 : i32
    %c0_i32_0 = arith.constant 0 : i32
    %c0_i32_1 = arith.constant 0 : i32
    return %c0_i32, %c0_i32_0 : i32, i32
  }
  func.func @transform_2(%arg0: i32) -> (i32, i32) {
    %c0_i32 = arith.constant 0 : i32
    %c0_i32_0 = arith.constant 0 : i32
    %c0_i32_1 = arith.constant 0 : i32
    return %c0_i32, %c0_i32_0 : i32, i32
  }
  func.func @transform_3(%arg0: i32) -> (i32, i32) {
    %c0_i32 = arith.constant 0 : i32
    %c0_i32_0 = arith.constant 0 : i32
    %c0_i32_1 = arith.constant 0 : i32
    return %c0_i32, %c0_i32_0 : i32, i32
  }
  func.func @transform_4(%arg0: i32) -> (i32, i32) {
    %c0_i32 = arith.constant 0 : i32
    %c0_i32_0 = arith.constant 0 : i32
    %c0_i32_1 = arith.constant 0 : i32
    return %c0_i32, %c0_i32_0 : i32, i32
  }
  func.func @transform_5(%arg0: i32) -> (i32, i32) {
    %c0_i32 = arith.constant 0 : i32
    %c0_i32_0 = arith.constant 0 : i32
    %c0_i32_1 = arith.constant 0 : i32
    return %c0_i32, %c0_i32_0 : i32, i32
  }
  func.func @transform_6(%arg0: i32) -> (i32, i32) {
    %c0_i32 = arith.constant 0 : i32
    %c0_i32_0 = arith.constant 0 : i32
    %c0_i32_1 = arith.constant 0 : i32
    return %c0_i32, %c0_i32_0 : i32, i32
  }
  func.func @transform_7(%arg0: i32) -> (i32, i32, i32) {
    %c0_i32 = arith.constant 0 : i32
    %c0_i32_0 = arith.constant 0 : i32
    %c0_i32_1 = arith.constant 0 : i32
    return %c0_i32, %arg0, %c0_i32_0 : i32, i32, i32
  }
}

module attributes {stable_mosaic.version = 11 : i64} {
  func.func @bilstm_layer_kernel(%arg0: i32, %arg1: memref<8x8x256xf32, #tpu.memory_space<vmem>>, %arg2: memref<256x512xf32, #tpu.memory_space<vmem>>, %arg3: memref<128x512xf32, #tpu.memory_space<vmem>>, %arg4: memref<1x512xf32, #tpu.memory_space<vmem>>, %arg5: memref<256x512xf32, #tpu.memory_space<vmem>>, %arg6: memref<128x512xf32, #tpu.memory_space<vmem>>, %arg7: memref<1x512xf32, #tpu.memory_space<vmem>>, %arg8: memref<8x8x256xf32, #tpu.memory_space<vmem>>, %arg9: memref<8x8x512xf32, #tpu.memory_space<vmem>>, %arg10: memref<8x8x512xf32, #tpu.memory_space<vmem>>) attributes {dimension_semantics = [#tpu.dimension_semantics<parallel>], iteration_bounds = array<i64: 1>, scalar_prefetch = 0 : i64, scratch_operands = 2 : i64, tpu.core_type = #tpu.core_type<tc>, window_params = [{transform_indices = @transform_0, window_bounds = array<i64: 8, 8, 256>}, {pipeline_mode = #tpu.pipeline_mode<synchronous>, transform_indices = @transform_1, window_bounds = array<i64: 256, 512>}, {pipeline_mode = #tpu.pipeline_mode<synchronous>, transform_indices = @transform_2, window_bounds = array<i64: 128, 512>}, {pipeline_mode = #tpu.pipeline_mode<synchronous>, transform_indices = @transform_3, window_bounds = array<i64: 1, 512>}, {pipeline_mode = #tpu.pipeline_mode<synchronous>, transform_indices = @transform_4, window_bounds = array<i64: 256, 512>}, {pipeline_mode = #tpu.pipeline_mode<synchronous>, transform_indices = @transform_5, window_bounds = array<i64: 128, 512>}, {pipeline_mode = #tpu.pipeline_mode<synchronous>, transform_indices = @transform_6, window_bounds = array<i64: 1, 512>}, {transform_indices = @transform_7, window_bounds = array<i64: 8, 8, 256>}]} {
    %c0 = arith.constant 0 : index
    %c0_0 = arith.constant 0 : index
    %0 = vector.load %arg2[%c0, %c0_0] : memref<256x512xf32, #tpu.memory_space<vmem>>, vector<256x512xf32>
    %1 = arith.truncf %0 : vector<256x512xf32> to vector<256x512xbf16>
    %c0_1 = arith.constant 0 : index
    %c0_2 = arith.constant 0 : index
    %2 = vector.load %arg5[%c0_1, %c0_2] : memref<256x512xf32, #tpu.memory_space<vmem>>, vector<256x512xf32>
    %3 = arith.truncf %2 : vector<256x512xf32> to vector<256x512xbf16>
    %c0_3 = arith.constant 0 : index
    %c0_4 = arith.constant 0 : index
    %4 = vector.load %arg3[%c0_3, %c0_4] : memref<128x512xf32, #tpu.memory_space<vmem>>, vector<128x512xf32>
    %5 = arith.truncf %4 : vector<128x512xf32> to vector<128x512xbf16>
    %c0_5 = arith.constant 0 : index
    %c0_6 = arith.constant 0 : index
    %6 = vector.load %arg6[%c0_5, %c0_6] : memref<128x512xf32, #tpu.memory_space<vmem>>, vector<128x512xf32>
    %7 = arith.truncf %6 : vector<128x512xf32> to vector<128x512xbf16>
    %c0_7 = arith.constant 0 : index
    %c0_8 = arith.constant 0 : index
    %8 = vector.load %arg4[%c0_7, %c0_8] : memref<1x512xf32, #tpu.memory_space<vmem>>, vector<1x512xf32>
    %c0_9 = arith.constant 0 : index
    %c0_10 = arith.constant 0 : index
    %9 = vector.load %arg7[%c0_9, %c0_10] : memref<1x512xf32, #tpu.memory_space<vmem>>, vector<1x512xf32>
    %cst = arith.constant 0.000000e+00 : f32
    %10 = vector.broadcast %cst : f32 to vector<8x128xf32>
    %c0_i32 = arith.constant 0 : i32
    %c8_i32 = arith.constant 8 : i32
    %11 = arith.muli %c0_i32, %c8_i32 : i32
    %12 = tpu.assume_multiple %11, 8 : i32
    %c0_i32_11 = arith.constant 0 : i32
    %13 = arith.subi %c0_i32_11, %c0_i32 : i32
    %c8_i32_12 = arith.constant 8 : i32
    %14 = arith.muli %13, %c8_i32_12 : i32
    %15 = tpu.assume_multiple %14, 8 : i32
    %16 = arith.index_cast %12 : i32 to index
    %c0_13 = arith.constant 0 : index
    %c0_14 = arith.constant 0 : index
    %17 = vector.load %arg1[%16, %c0_13, %c0_14] : memref<8x8x256xf32, #tpu.memory_space<vmem>>, vector<8x8x256xf32>
    %18 = vector.shape_cast %17 : vector<8x8x256xf32> to vector<64x256xf32>
    %19 = arith.truncf %18 : vector<64x256xf32> to vector<64x256xbf16>
    %20 = arith.index_cast %15 : i32 to index
    %c0_15 = arith.constant 0 : index
    %c0_16 = arith.constant 0 : index
    %21 = vector.load %arg1[%20, %c0_15, %c0_16] : memref<8x8x256xf32, #tpu.memory_space<vmem>>, vector<8x8x256xf32>
    %22 = vector.shape_cast %21 : vector<8x8x256xf32> to vector<64x256xf32>
    %23 = arith.truncf %22 : vector<64x256xf32> to vector<64x256xbf16>
    %cst_17 = arith.constant dense<0.000000e+00> : vector<64x512xf32>
    %24 = tpu.matmul %19, %1, %cst_17 {dimension_numbers = #tpu.dot_dimension_numbers<[1], [0], [0], [1], [0, 0, 1, 1], [], []>} : vector<64x256xbf16>, vector<256x512xbf16>, vector<64x512xf32> -> vector<64x512xf32>
    %25 = vector.broadcast %8 : vector<1x512xf32> to vector<64x512xf32>
    %26 = arith.addf %24, %25 : vector<64x512xf32>
    %27 = vector.shape_cast %26 : vector<64x512xf32> to vector<8x8x512xf32>
    %c0_18 = arith.constant 0 : index
    %c0_19 = arith.constant 0 : index
    %c0_20 = arith.constant 0 : index
    %28 = vector.load %arg9[%c0_18, %c0_19, %c0_20] : memref<8x8x512xf32, #tpu.memory_space<vmem>>, vector<8x8x512xf32>
    tpu.vector_store %arg9[%c0_18, %c0_19, %c0_20], %27 {strides = array<i32>} : memref<8x8x512xf32, #tpu.memory_space<vmem>>, vector<8x8x512xf32>,
    %cst_21 = arith.constant dense<0.000000e+00> : vector<64x512xf32>
    %29 = tpu.matmul %23, %3, %cst_21 {dimension_numbers = #tpu.dot_dimension_numbers<[1], [0], [0], [1], [0, 0, 1, 1], [], []>} : vector<64x256xbf16>, vector<256x512xbf16>, vector<64x512xf32> -> vector<64x512xf32>
    %30 = vector.broadcast %9 : vector<1x512xf32> to vector<64x512xf32>
    %31 = arith.addf %29, %30 : vector<64x512xf32>
    %32 = vector.shape_cast %31 : vector<64x512xf32> to vector<8x8x512xf32>
    %c0_22 = arith.constant 0 : index
    %c0_23 = arith.constant 0 : index
    %c0_24 = arith.constant 0 : index
    %33 = vector.load %arg10[%c0_22, %c0_23, %c0_24] : memref<8x8x512xf32, #tpu.memory_space<vmem>>, vector<8x8x512xf32>
    tpu.vector_store %arg10[%c0_22, %c0_23, %c0_24], %32 {strides = array<i32>} : memref<8x8x512xf32, #tpu.memory_space<vmem>>, vector<8x8x512xf32>,
    %c0_i32_25 = arith.constant 0 : i32
    %34 = arith.index_cast %c0_i32_25 : i32 to index
    %c0_26 = arith.constant 0 : index
    %c0_27 = arith.constant 0 : index
    %35 = vector.load %arg9[%34, %c0_26, %c0_27] : memref<8x8x512xf32, #tpu.memory_space<vmem>>, vector<1x8x512xf32>
    %36 = vector.shape_cast %35 : vector<1x8x512xf32> to vector<8x512xf32>
    %37 = arith.truncf %10 : vector<8x128xf32> to vector<8x128xbf16>
    %cst_28 = arith.constant dense<0.000000e+00> : vector<8x512xf32>
    %38 = tpu.matmul %37, %5, %cst_28 {dimension_numbers = #tpu.dot_dimension_numbers<[1], [0], [0], [1], [0, 0, 1, 1], [], []>} : vector<8x128xbf16>, vector<128x512xbf16>, vector<8x512xf32> -> vector<8x512xf32>
    %39 = arith.addf %36, %38 : vector<8x512xf32>
    %40 = vector.extract_strided_slice %39 {offsets = [0, 0], sizes = [8, 384], strides = [1, 1]} : vector<8x512xf32> to vector<8x384xf32>
    %41 = arith.negf %40 : vector<8x384xf32>
    %42 = math.exp %41 : vector<8x384xf32>
    %cst_29 = arith.constant 1.000000e+00 : f32
    %43 = vector.broadcast %cst_29 : f32 to vector<8x384xf32>
    %44 = arith.addf %43, %42 : vector<8x384xf32>
    %45 = arith.divf %43, %44 : vector<8x384xf32>
    %46 = vector.extract_strided_slice %45 {offsets = [0, 0], sizes = [8, 128], strides = [1, 1]} : vector<8x384xf32> to vector<8x128xf32>
    %47 = vector.extract_strided_slice %45 {offsets = [0, 128], sizes = [8, 128], strides = [1, 1]} : vector<8x384xf32> to vector<8x128xf32>
    %48 = vector.extract_strided_slice %45 {offsets = [0, 256], sizes = [8, 128], strides = [1, 1]} : vector<8x384xf32> to vector<8x128xf32>
    %49 = vector.extract_strided_slice %39 {offsets = [0, 384], sizes = [8, 128], strides = [1, 1]} : vector<8x512xf32> to vector<8x128xf32>
    %50 = math.tanh %49 : vector<8x128xf32>
    %51 = arith.mulf %47, %10 : vector<8x128xf32>
    %52 = arith.mulf %46, %50 : vector<8x128xf32>
    %53 = arith.addf %51, %52 : vector<8x128xf32>
    %54 = math.tanh %53 : vector<8x128xf32>
    %55 = arith.mulf %48, %54 : vector<8x128xf32>
    %56 = arith.addi %12, %c0_i32_25 : i32
    %57 = arith.index_cast %56 : i32 to index
    %c0_30 = arith.constant 0 : index
    %c0_31 = arith.constant 0 : index
    %58 = vector.load %arg8[%57, %c0_30, %c0_31] : memref<8x8x256xf32, #tpu.memory_space<vmem>>, vector<1x8x128xf32>
    %59 = vector.shape_cast %58 : vector<1x8x128xf32> to vector<8x128xf32>
    %60 = vector.shape_cast %55 : vector<8x128xf32> to vector<1x8x128xf32>
    tpu.vector_store %arg8[%57, %c0_30, %c0_31], %60 {strides = array<i32>} : memref<8x8x256xf32, #tpu.memory_space<vmem>>, vector<1x8x128xf32>,
    %c7_i32 = arith.constant 7 : i32
    %61 = arith.subi %c7_i32, %c0_i32_25 : i32
    %62 = arith.index_cast %61 : i32 to index
    %c0_32 = arith.constant 0 : index
    %c0_33 = arith.constant 0 : index
    %63 = vector.load %arg10[%62, %c0_32, %c0_33] : memref<8x8x512xf32, #tpu.memory_space<vmem>>, vector<1x8x512xf32>
    %64 = vector.shape_cast %63 : vector<1x8x512xf32> to vector<8x512xf32>
    %65 = arith.truncf %10 : vector<8x128xf32> to vector<8x128xbf16>
    %cst_34 = arith.constant dense<0.000000e+00> : vector<8x512xf32>
    %66 = tpu.matmul %65, %7, %cst_34 {dimension_numbers = #tpu.dot_dimension_numbers<[1], [0], [0], [1], [0, 0, 1, 1], [], []>} : vector<8x128xbf16>, vector<128x512xbf16>, vector<8x512xf32> -> vector<8x512xf32>
    %67 = arith.addf %64, %66 : vector<8x512xf32>
    %68 = vector.extract_strided_slice %67 {offsets = [0, 0], sizes = [8, 384], strides = [1, 1]} : vector<8x512xf32> to vector<8x384xf32>
    %69 = arith.negf %68 : vector<8x384xf32>
    %70 = math.exp %69 : vector<8x384xf32>
    %cst_35 = arith.constant 1.000000e+00 : f32
    %71 = vector.broadcast %cst_35 : f32 to vector<8x384xf32>
    %72 = arith.addf %71, %70 : vector<8x384xf32>
    %73 = arith.divf %71, %72 : vector<8x384xf32>
    %74 = vector.extract_strided_slice %73 {offsets = [0, 0], sizes = [8, 128], strides = [1, 1]} : vector<8x384xf32> to vector<8x128xf32>
    %75 = vector.extract_strided_slice %73 {offsets = [0, 128], sizes = [8, 128], strides = [1, 1]} : vector<8x384xf32> to vector<8x128xf32>
    %76 = vector.extract_strided_slice %73 {offsets = [0, 256], sizes = [8, 128], strides = [1, 1]} : vector<8x384xf32> to vector<8x128xf32>
    %77 = vector.extract_strided_slice %67 {offsets = [0, 384], sizes = [8, 128], strides = [1, 1]} : vector<8x512xf32> to vector<8x128xf32>
    %78 = math.tanh %77 : vector<8x128xf32>
    %79 = arith.mulf %75, %10 : vector<8x128xf32>
    %80 = arith.mulf %74, %78 : vector<8x128xf32>
    %81 = arith.addf %79, %80 : vector<8x128xf32>
    %82 = math.tanh %81 : vector<8x128xf32>
    %83 = arith.mulf %76, %82 : vector<8x128xf32>
    %84 = arith.addi %15, %61 : i32
    %85 = arith.index_cast %84 : i32 to index
    %c0_36 = arith.constant 0 : index
    %c128 = arith.constant 128 : index
    %86 = vector.load %arg8[%85, %c0_36, %c128] : memref<8x8x256xf32, #tpu.memory_space<vmem>>, vector<1x8x128xf32>
    %87 = vector.shape_cast %86 : vector<1x8x128xf32> to vector<8x128xf32>
    %88 = vector.shape_cast %83 : vector<8x128xf32> to vector<1x8x128xf32>
    tpu.vector_store %arg8[%85, %c0_36, %c128], %88 {strides = array<i32>} : memref<8x8x256xf32, #tpu.memory_space<vmem>>, vector<1x8x128xf32>,
    %c1_i32 = arith.constant 1 : i32
    %89 = arith.index_cast %c1_i32 : i32 to index
    %c0_37 = arith.constant 0 : index
    %c0_38 = arith.constant 0 : index
    %90 = vector.load %arg9[%89, %c0_37, %c0_38] : memref<8x8x512xf32, #tpu.memory_space<vmem>>, vector<1x8x512xf32>
    %91 = vector.shape_cast %90 : vector<1x8x512xf32> to vector<8x512xf32>
    %92 = arith.truncf %55 : vector<8x128xf32> to vector<8x128xbf16>
    %cst_39 = arith.constant dense<0.000000e+00> : vector<8x512xf32>
    %93 = tpu.matmul %92, %5, %cst_39 {dimension_numbers = #tpu.dot_dimension_numbers<[1], [0], [0], [1], [0, 0, 1, 1], [], []>} : vector<8x128xbf16>, vector<128x512xbf16>, vector<8x512xf32> -> vector<8x512xf32>
    %94 = arith.addf %91, %93 : vector<8x512xf32>
    %95 = vector.extract_strided_slice %94 {offsets = [0, 0], sizes = [8, 384], strides = [1, 1]} : vector<8x512xf32> to vector<8x384xf32>
    %96 = arith.negf %95 : vector<8x384xf32>
    %97 = math.exp %96 : vector<8x384xf32>
    %cst_40 = arith.constant 1.000000e+00 : f32
    %98 = vector.broadcast %cst_40 : f32 to vector<8x384xf32>
    %99 = arith.addf %98, %97 : vector<8x384xf32>
    %100 = arith.divf %98, %99 : vector<8x384xf32>
    %101 = vector.extract_strided_slice %100 {offsets = [0, 0], sizes = [8, 128], strides = [1, 1]} : vector<8x384xf32> to vector<8x128xf32>
    %102 = vector.extract_strided_slice %100 {offsets = [0, 128], sizes = [8, 128], strides = [1, 1]} : vector<8x384xf32> to vector<8x128xf32>
    %103 = vector.extract_strided_slice %100 {offsets = [0, 256], sizes = [8, 128], strides = [1, 1]} : vector<8x384xf32> to vector<8x128xf32>
    %104 = vector.extract_strided_slice %94 {offsets = [0, 384], sizes = [8, 128], strides = [1, 1]} : vector<8x512xf32> to vector<8x128xf32>
    %105 = math.tanh %104 : vector<8x128xf32>
    %106 = arith.mulf %102, %53 : vector<8x128xf32>
    %107 = arith.mulf %101, %105 : vector<8x128xf32>
    %108 = arith.addf %106, %107 : vector<8x128xf32>
    %109 = math.tanh %108 : vector<8x128xf32>
    %110 = arith.mulf %103, %109 : vector<8x128xf32>
    %111 = arith.addi %12, %c1_i32 : i32
    %112 = arith.index_cast %111 : i32 to index
    %c0_41 = arith.constant 0 : index
    %c0_42 = arith.constant 0 : index
    %113 = vector.load %arg8[%112, %c0_41, %c0_42] : memref<8x8x256xf32, #tpu.memory_space<vmem>>, vector<1x8x128xf32>
    %114 = vector.shape_cast %113 : vector<1x8x128xf32> to vector<8x128xf32>
    %115 = vector.shape_cast %110 : vector<8x128xf32> to vector<1x8x128xf32>
    tpu.vector_store %arg8[%112, %c0_41, %c0_42], %115 {strides = array<i32>} : memref<8x8x256xf32, #tpu.memory_space<vmem>>, vector<1x8x128xf32>,
    %c7_i32_43 = arith.constant 7 : i32
    %116 = arith.subi %c7_i32_43, %c1_i32 : i32
    %117 = arith.index_cast %116 : i32 to index
    %c0_44 = arith.constant 0 : index
    %c0_45 = arith.constant 0 : index
    %118 = vector.load %arg10[%117, %c0_44, %c0_45] : memref<8x8x512xf32, #tpu.memory_space<vmem>>, vector<1x8x512xf32>
    %119 = vector.shape_cast %118 : vector<1x8x512xf32> to vector<8x512xf32>
    %120 = arith.truncf %83 : vector<8x128xf32> to vector<8x128xbf16>
    %cst_46 = arith.constant dense<0.000000e+00> : vector<8x512xf32>
    %121 = tpu.matmul %120, %7, %cst_46 {dimension_numbers = #tpu.dot_dimension_numbers<[1], [0], [0], [1], [0, 0, 1, 1], [], []>} : vector<8x128xbf16>, vector<128x512xbf16>, vector<8x512xf32> -> vector<8x512xf32>
    %122 = arith.addf %119, %121 : vector<8x512xf32>
    %123 = vector.extract_strided_slice %122 {offsets = [0, 0], sizes = [8, 384], strides = [1, 1]} : vector<8x512xf32> to vector<8x384xf32>
    %124 = arith.negf %123 : vector<8x384xf32>
    %125 = math.exp %124 : vector<8x384xf32>
    %cst_47 = arith.constant 1.000000e+00 : f32
    %126 = vector.broadcast %cst_47 : f32 to vector<8x384xf32>
    %127 = arith.addf %126, %125 : vector<8x384xf32>
    %128 = arith.divf %126, %127 : vector<8x384xf32>
    %129 = vector.extract_strided_slice %128 {offsets = [0, 0], sizes = [8, 128], strides = [1, 1]} : vector<8x384xf32> to vector<8x128xf32>
    %130 = vector.extract_strided_slice %128 {offsets = [0, 128], sizes = [8, 128], strides = [1, 1]} : vector<8x384xf32> to vector<8x128xf32>
    %131 = vector.extract_strided_slice %128 {offsets = [0, 256], sizes = [8, 128], strides = [1, 1]} : vector<8x384xf32> to vector<8x128xf32>
    %132 = vector.extract_strided_slice %122 {offsets = [0, 384], sizes = [8, 128], strides = [1, 1]} : vector<8x512xf32> to vector<8x128xf32>
    %133 = math.tanh %132 : vector<8x128xf32>
    %134 = arith.mulf %130, %81 : vector<8x128xf32>
    %135 = arith.mulf %129, %133 : vector<8x128xf32>
    %136 = arith.addf %134, %135 : vector<8x128xf32>
    %137 = math.tanh %136 : vector<8x128xf32>
    %138 = arith.mulf %131, %137 : vector<8x128xf32>
    %139 = arith.addi %15, %116 : i32
    %140 = arith.index_cast %139 : i32 to index
    %c0_48 = arith.constant 0 : index
    %c128_49 = arith.constant 128 : index
    %141 = vector.load %arg8[%140, %c0_48, %c128_49] : memref<8x8x256xf32, #tpu.memory_space<vmem>>, vector<1x8x128xf32>
    %142 = vector.shape_cast %141 : vector<1x8x128xf32> to vector<8x128xf32>
    %143 = vector.shape_cast %138 : vector<8x128xf32> to vector<1x8x128xf32>
    tpu.vector_store %arg8[%140, %c0_48, %c128_49], %143 {strides = array<i32>} : memref<8x8x256xf32, #tpu.memory_space<vmem>>, vector<1x8x128xf32>,
    %c2_i32 = arith.constant 2 : i32
    %144 = arith.index_cast %c2_i32 : i32 to index
    %c0_50 = arith.constant 0 : index
    %c0_51 = arith.constant 0 : index
    %145 = vector.load %arg9[%144, %c0_50, %c0_51] : memref<8x8x512xf32, #tpu.memory_space<vmem>>, vector<1x8x512xf32>
    %146 = vector.shape_cast %145 : vector<1x8x512xf32> to vector<8x512xf32>
    %147 = arith.truncf %110 : vector<8x128xf32> to vector<8x128xbf16>
    %cst_52 = arith.constant dense<0.000000e+00> : vector<8x512xf32>
    %148 = tpu.matmul %147, %5, %cst_52 {dimension_numbers = #tpu.dot_dimension_numbers<[1], [0], [0], [1], [0, 0, 1, 1], [], []>} : vector<8x128xbf16>, vector<128x512xbf16>, vector<8x512xf32> -> vector<8x512xf32>
    %149 = arith.addf %146, %148 : vector<8x512xf32>
    %150 = vector.extract_strided_slice %149 {offsets = [0, 0], sizes = [8, 384], strides = [1, 1]} : vector<8x512xf32> to vector<8x384xf32>
    %151 = arith.negf %150 : vector<8x384xf32>
    %152 = math.exp %151 : vector<8x384xf32>
    %cst_53 = arith.constant 1.000000e+00 : f32
    %153 = vector.broadcast %cst_53 : f32 to vector<8x384xf32>
    %154 = arith.addf %153, %152 : vector<8x384xf32>
    %155 = arith.divf %153, %154 : vector<8x384xf32>
    %156 = vector.extract_strided_slice %155 {offsets = [0, 0], sizes = [8, 128], strides = [1, 1]} : vector<8x384xf32> to vector<8x128xf32>
    %157 = vector.extract_strided_slice %155 {offsets = [0, 128], sizes = [8, 128], strides = [1, 1]} : vector<8x384xf32> to vector<8x128xf32>
    %158 = vector.extract_strided_slice %155 {offsets = [0, 256], sizes = [8, 128], strides = [1, 1]} : vector<8x384xf32> to vector<8x128xf32>
    %159 = vector.extract_strided_slice %149 {offsets = [0, 384], sizes = [8, 128], strides = [1, 1]} : vector<8x512xf32> to vector<8x128xf32>
    %160 = math.tanh %159 : vector<8x128xf32>
    %161 = arith.mulf %157, %108 : vector<8x128xf32>
    %162 = arith.mulf %156, %160 : vector<8x128xf32>
    %163 = arith.addf %161, %162 : vector<8x128xf32>
    %164 = math.tanh %163 : vector<8x128xf32>
    %165 = arith.mulf %158, %164 : vector<8x128xf32>
    %166 = arith.addi %12, %c2_i32 : i32
    %167 = arith.index_cast %166 : i32 to index
    %c0_54 = arith.constant 0 : index
    %c0_55 = arith.constant 0 : index
    %168 = vector.load %arg8[%167, %c0_54, %c0_55] : memref<8x8x256xf32, #tpu.memory_space<vmem>>, vector<1x8x128xf32>
    %169 = vector.shape_cast %168 : vector<1x8x128xf32> to vector<8x128xf32>
    %170 = vector.shape_cast %165 : vector<8x128xf32> to vector<1x8x128xf32>
    tpu.vector_store %arg8[%167, %c0_54, %c0_55], %170 {strides = array<i32>} : memref<8x8x256xf32, #tpu.memory_space<vmem>>, vector<1x8x128xf32>,
    %c7_i32_56 = arith.constant 7 : i32
    %171 = arith.subi %c7_i32_56, %c2_i32 : i32
    %172 = arith.index_cast %171 : i32 to index
    %c0_57 = arith.constant 0 : index
    %c0_58 = arith.constant 0 : index
    %173 = vector.load %arg10[%172, %c0_57, %c0_58] : memref<8x8x512xf32, #tpu.memory_space<vmem>>, vector<1x8x512xf32>
    %174 = vector.shape_cast %173 : vector<1x8x512xf32> to vector<8x512xf32>
    %175 = arith.truncf %138 : vector<8x128xf32> to vector<8x128xbf16>
    %cst_59 = arith.constant dense<0.000000e+00> : vector<8x512xf32>
    %176 = tpu.matmul %175, %7, %cst_59 {dimension_numbers = #tpu.dot_dimension_numbers<[1], [0], [0], [1], [0, 0, 1, 1], [], []>} : vector<8x128xbf16>, vector<128x512xbf16>, vector<8x512xf32> -> vector<8x512xf32>
    %177 = arith.addf %174, %176 : vector<8x512xf32>
    %178 = vector.extract_strided_slice %177 {offsets = [0, 0], sizes = [8, 384], strides = [1, 1]} : vector<8x512xf32> to vector<8x384xf32>
    %179 = arith.negf %178 : vector<8x384xf32>
    %180 = math.exp %179 : vector<8x384xf32>
    %cst_60 = arith.constant 1.000000e+00 : f32
    %181 = vector.broadcast %cst_60 : f32 to vector<8x384xf32>
    %182 = arith.addf %181, %180 : vector<8x384xf32>
    %183 = arith.divf %181, %182 : vector<8x384xf32>
    %184 = vector.extract_strided_slice %183 {offsets = [0, 0], sizes = [8, 128], strides = [1, 1]} : vector<8x384xf32> to vector<8x128xf32>
    %185 = vector.extract_strided_slice %183 {offsets = [0, 128], sizes = [8, 128], strides = [1, 1]} : vector<8x384xf32> to vector<8x128xf32>
    %186 = vector.extract_strided_slice %183 {offsets = [0, 256], sizes = [8, 128], strides = [1, 1]} : vector<8x384xf32> to vector<8x128xf32>
    %187 = vector.extract_strided_slice %177 {offsets = [0, 384], sizes = [8, 128], strides = [1, 1]} : vector<8x512xf32> to vector<8x128xf32>
    %188 = math.tanh %187 : vector<8x128xf32>
    %189 = arith.mulf %185, %136 : vector<8x128xf32>
    %190 = arith.mulf %184, %188 : vector<8x128xf32>
    %191 = arith.addf %189, %190 : vector<8x128xf32>
    %192 = math.tanh %191 : vector<8x128xf32>
    %193 = arith.mulf %186, %192 : vector<8x128xf32>
    %194 = arith.addi %15, %171 : i32
    %195 = arith.index_cast %194 : i32 to index
    %c0_61 = arith.constant 0 : index
    %c128_62 = arith.constant 128 : index
    %196 = vector.load %arg8[%195, %c0_61, %c128_62] : memref<8x8x256xf32, #tpu.memory_space<vmem>>, vector<1x8x128xf32>
    %197 = vector.shape_cast %196 : vector<1x8x128xf32> to vector<8x128xf32>
    %198 = vector.shape_cast %193 : vector<8x128xf32> to vector<1x8x128xf32>
    tpu.vector_store %arg8[%195, %c0_61, %c128_62], %198 {strides = array<i32>} : memref<8x8x256xf32, #tpu.memory_space<vmem>>, vector<1x8x128xf32>,
    %c3_i32 = arith.constant 3 : i32
    %199 = arith.index_cast %c3_i32 : i32 to index
    %c0_63 = arith.constant 0 : index
    %c0_64 = arith.constant 0 : index
    %200 = vector.load %arg9[%199, %c0_63, %c0_64] : memref<8x8x512xf32, #tpu.memory_space<vmem>>, vector<1x8x512xf32>
    %201 = vector.shape_cast %200 : vector<1x8x512xf32> to vector<8x512xf32>
    %202 = arith.truncf %165 : vector<8x128xf32> to vector<8x128xbf16>
    %cst_65 = arith.constant dense<0.000000e+00> : vector<8x512xf32>
    %203 = tpu.matmul %202, %5, %cst_65 {dimension_numbers = #tpu.dot_dimension_numbers<[1], [0], [0], [1], [0, 0, 1, 1], [], []>} : vector<8x128xbf16>, vector<128x512xbf16>, vector<8x512xf32> -> vector<8x512xf32>
    %204 = arith.addf %201, %203 : vector<8x512xf32>
    %205 = vector.extract_strided_slice %204 {offsets = [0, 0], sizes = [8, 384], strides = [1, 1]} : vector<8x512xf32> to vector<8x384xf32>
    %206 = arith.negf %205 : vector<8x384xf32>
    %207 = math.exp %206 : vector<8x384xf32>
    %cst_66 = arith.constant 1.000000e+00 : f32
    %208 = vector.broadcast %cst_66 : f32 to vector<8x384xf32>
    %209 = arith.addf %208, %207 : vector<8x384xf32>
    %210 = arith.divf %208, %209 : vector<8x384xf32>
    %211 = vector.extract_strided_slice %210 {offsets = [0, 0], sizes = [8, 128], strides = [1, 1]} : vector<8x384xf32> to vector<8x128xf32>
    %212 = vector.extract_strided_slice %210 {offsets = [0, 128], sizes = [8, 128], strides = [1, 1]} : vector<8x384xf32> to vector<8x128xf32>
    %213 = vector.extract_strided_slice %210 {offsets = [0, 256], sizes = [8, 128], strides = [1, 1]} : vector<8x384xf32> to vector<8x128xf32>
    %214 = vector.extract_strided_slice %204 {offsets = [0, 384], sizes = [8, 128], strides = [1, 1]} : vector<8x512xf32> to vector<8x128xf32>
    %215 = math.tanh %214 : vector<8x128xf32>
    %216 = arith.mulf %212, %163 : vector<8x128xf32>
    %217 = arith.mulf %211, %215 : vector<8x128xf32>
    %218 = arith.addf %216, %217 : vector<8x128xf32>
    %219 = math.tanh %218 : vector<8x128xf32>
    %220 = arith.mulf %213, %219 : vector<8x128xf32>
    %221 = arith.addi %12, %c3_i32 : i32
    %222 = arith.index_cast %221 : i32 to index
    %c0_67 = arith.constant 0 : index
    %c0_68 = arith.constant 0 : index
    %223 = vector.load %arg8[%222, %c0_67, %c0_68] : memref<8x8x256xf32, #tpu.memory_space<vmem>>, vector<1x8x128xf32>
    %224 = vector.shape_cast %223 : vector<1x8x128xf32> to vector<8x128xf32>
    %225 = vector.shape_cast %220 : vector<8x128xf32> to vector<1x8x128xf32>
    tpu.vector_store %arg8[%222, %c0_67, %c0_68], %225 {strides = array<i32>} : memref<8x8x256xf32, #tpu.memory_space<vmem>>, vector<1x8x128xf32>,
    %c7_i32_69 = arith.constant 7 : i32
    %226 = arith.subi %c7_i32_69, %c3_i32 : i32
    %227 = arith.index_cast %226 : i32 to index
    %c0_70 = arith.constant 0 : index
    %c0_71 = arith.constant 0 : index
    %228 = vector.load %arg10[%227, %c0_70, %c0_71] : memref<8x8x512xf32, #tpu.memory_space<vmem>>, vector<1x8x512xf32>
    %229 = vector.shape_cast %228 : vector<1x8x512xf32> to vector<8x512xf32>
    %230 = arith.truncf %193 : vector<8x128xf32> to vector<8x128xbf16>
    %cst_72 = arith.constant dense<0.000000e+00> : vector<8x512xf32>
    %231 = tpu.matmul %230, %7, %cst_72 {dimension_numbers = #tpu.dot_dimension_numbers<[1], [0], [0], [1], [0, 0, 1, 1], [], []>} : vector<8x128xbf16>, vector<128x512xbf16>, vector<8x512xf32> -> vector<8x512xf32>
    %232 = arith.addf %229, %231 : vector<8x512xf32>
    %233 = vector.extract_strided_slice %232 {offsets = [0, 0], sizes = [8, 384], strides = [1, 1]} : vector<8x512xf32> to vector<8x384xf32>
    %234 = arith.negf %233 : vector<8x384xf32>
    %235 = math.exp %234 : vector<8x384xf32>
    %cst_73 = arith.constant 1.000000e+00 : f32
    %236 = vector.broadcast %cst_73 : f32 to vector<8x384xf32>
    %237 = arith.addf %236, %235 : vector<8x384xf32>
    %238 = arith.divf %236, %237 : vector<8x384xf32>
    %239 = vector.extract_strided_slice %238 {offsets = [0, 0], sizes = [8, 128], strides = [1, 1]} : vector<8x384xf32> to vector<8x128xf32>
    %240 = vector.extract_strided_slice %238 {offsets = [0, 128], sizes = [8, 128], strides = [1, 1]} : vector<8x384xf32> to vector<8x128xf32>
    %241 = vector.extract_strided_slice %238 {offsets = [0, 256], sizes = [8, 128], strides = [1, 1]} : vector<8x384xf32> to vector<8x128xf32>
    %242 = vector.extract_strided_slice %232 {offsets = [0, 384], sizes = [8, 128], strides = [1, 1]} : vector<8x512xf32> to vector<8x128xf32>
    %243 = math.tanh %242 : vector<8x128xf32>
    %244 = arith.mulf %240, %191 : vector<8x128xf32>
    %245 = arith.mulf %239, %243 : vector<8x128xf32>
    %246 = arith.addf %244, %245 : vector<8x128xf32>
    %247 = math.tanh %246 : vector<8x128xf32>
    %248 = arith.mulf %241, %247 : vector<8x128xf32>
    %249 = arith.addi %15, %226 : i32
    %250 = arith.index_cast %249 : i32 to index
    %c0_74 = arith.constant 0 : index
    %c128_75 = arith.constant 128 : index
    %251 = vector.load %arg8[%250, %c0_74, %c128_75] : memref<8x8x256xf32, #tpu.memory_space<vmem>>, vector<1x8x128xf32>
    %252 = vector.shape_cast %251 : vector<1x8x128xf32> to vector<8x128xf32>
    %253 = vector.shape_cast %248 : vector<8x128xf32> to vector<1x8x128xf32>
    tpu.vector_store %arg8[%250, %c0_74, %c128_75], %253 {strides = array<i32>} : memref<8x8x256xf32, #tpu.memory_space<vmem>>, vector<1x8x128xf32>,
    %c4_i32 = arith.constant 4 : i32
    %254 = arith.index_cast %c4_i32 : i32 to index
    %c0_76 = arith.constant 0 : index
    %c0_77 = arith.constant 0 : index
    %255 = vector.load %arg9[%254, %c0_76, %c0_77] : memref<8x8x512xf32, #tpu.memory_space<vmem>>, vector<1x8x512xf32>
    %256 = vector.shape_cast %255 : vector<1x8x512xf32> to vector<8x512xf32>
    %257 = arith.truncf %220 : vector<8x128xf32> to vector<8x128xbf16>
    %cst_78 = arith.constant dense<0.000000e+00> : vector<8x512xf32>
    %258 = tpu.matmul %257, %5, %cst_78 {dimension_numbers = #tpu.dot_dimension_numbers<[1], [0], [0], [1], [0, 0, 1, 1], [], []>} : vector<8x128xbf16>, vector<128x512xbf16>, vector<8x512xf32> -> vector<8x512xf32>
    %259 = arith.addf %256, %258 : vector<8x512xf32>
    %260 = vector.extract_strided_slice %259 {offsets = [0, 0], sizes = [8, 384], strides = [1, 1]} : vector<8x512xf32> to vector<8x384xf32>
    %261 = arith.negf %260 : vector<8x384xf32>
    %262 = math.exp %261 : vector<8x384xf32>
    %cst_79 = arith.constant 1.000000e+00 : f32
    %263 = vector.broadcast %cst_79 : f32 to vector<8x384xf32>
    %264 = arith.addf %263, %262 : vector<8x384xf32>
    %265 = arith.divf %263, %264 : vector<8x384xf32>
    %266 = vector.extract_strided_slice %265 {offsets = [0, 0], sizes = [8, 128], strides = [1, 1]} : vector<8x384xf32> to vector<8x128xf32>
    %267 = vector.extract_strided_slice %265 {offsets = [0, 128], sizes = [8, 128], strides = [1, 1]} : vector<8x384xf32> to vector<8x128xf32>
    %268 = vector.extract_strided_slice %265 {offsets = [0, 256], sizes = [8, 128], strides = [1, 1]} : vector<8x384xf32> to vector<8x128xf32>
    %269 = vector.extract_strided_slice %259 {offsets = [0, 384], sizes = [8, 128], strides = [1, 1]} : vector<8x512xf32> to vector<8x128xf32>
    %270 = math.tanh %269 : vector<8x128xf32>
    %271 = arith.mulf %267, %218 : vector<8x128xf32>
    %272 = arith.mulf %266, %270 : vector<8x128xf32>
    %273 = arith.addf %271, %272 : vector<8x128xf32>
    %274 = math.tanh %273 : vector<8x128xf32>
    %275 = arith.mulf %268, %274 : vector<8x128xf32>
    %276 = arith.addi %12, %c4_i32 : i32
    %277 = arith.index_cast %276 : i32 to index
    %c0_80 = arith.constant 0 : index
    %c0_81 = arith.constant 0 : index
    %278 = vector.load %arg8[%277, %c0_80, %c0_81] : memref<8x8x256xf32, #tpu.memory_space<vmem>>, vector<1x8x128xf32>
    %279 = vector.shape_cast %278 : vector<1x8x128xf32> to vector<8x128xf32>
    %280 = vector.shape_cast %275 : vector<8x128xf32> to vector<1x8x128xf32>
    tpu.vector_store %arg8[%277, %c0_80, %c0_81], %280 {strides = array<i32>} : memref<8x8x256xf32, #tpu.memory_space<vmem>>, vector<1x8x128xf32>,
    %c7_i32_82 = arith.constant 7 : i32
    %281 = arith.subi %c7_i32_82, %c4_i32 : i32
    %282 = arith.index_cast %281 : i32 to index
    %c0_83 = arith.constant 0 : index
    %c0_84 = arith.constant 0 : index
    %283 = vector.load %arg10[%282, %c0_83, %c0_84] : memref<8x8x512xf32, #tpu.memory_space<vmem>>, vector<1x8x512xf32>
    %284 = vector.shape_cast %283 : vector<1x8x512xf32> to vector<8x512xf32>
    %285 = arith.truncf %248 : vector<8x128xf32> to vector<8x128xbf16>
    %cst_85 = arith.constant dense<0.000000e+00> : vector<8x512xf32>
    %286 = tpu.matmul %285, %7, %cst_85 {dimension_numbers = #tpu.dot_dimension_numbers<[1], [0], [0], [1], [0, 0, 1, 1], [], []>} : vector<8x128xbf16>, vector<128x512xbf16>, vector<8x512xf32> -> vector<8x512xf32>
    %287 = arith.addf %284, %286 : vector<8x512xf32>
    %288 = vector.extract_strided_slice %287 {offsets = [0, 0], sizes = [8, 384], strides = [1, 1]} : vector<8x512xf32> to vector<8x384xf32>
    %289 = arith.negf %288 : vector<8x384xf32>
    %290 = math.exp %289 : vector<8x384xf32>
    %cst_86 = arith.constant 1.000000e+00 : f32
    %291 = vector.broadcast %cst_86 : f32 to vector<8x384xf32>
    %292 = arith.addf %291, %290 : vector<8x384xf32>
    %293 = arith.divf %291, %292 : vector<8x384xf32>
    %294 = vector.extract_strided_slice %293 {offsets = [0, 0], sizes = [8, 128], strides = [1, 1]} : vector<8x384xf32> to vector<8x128xf32>
    %295 = vector.extract_strided_slice %293 {offsets = [0, 128], sizes = [8, 128], strides = [1, 1]} : vector<8x384xf32> to vector<8x128xf32>
    %296 = vector.extract_strided_slice %293 {offsets = [0, 256], sizes = [8, 128], strides = [1, 1]} : vector<8x384xf32> to vector<8x128xf32>
    %297 = vector.extract_strided_slice %287 {offsets = [0, 384], sizes = [8, 128], strides = [1, 1]} : vector<8x512xf32> to vector<8x128xf32>
    %298 = math.tanh %297 : vector<8x128xf32>
    %299 = arith.mulf %295, %246 : vector<8x128xf32>
    %300 = arith.mulf %294, %298 : vector<8x128xf32>
    %301 = arith.addf %299, %300 : vector<8x128xf32>
    %302 = math.tanh %301 : vector<8x128xf32>
    %303 = arith.mulf %296, %302 : vector<8x128xf32>
    %304 = arith.addi %15, %281 : i32
    %305 = arith.index_cast %304 : i32 to index
    %c0_87 = arith.constant 0 : index
    %c128_88 = arith.constant 128 : index
    %306 = vector.load %arg8[%305, %c0_87, %c128_88] : memref<8x8x256xf32, #tpu.memory_space<vmem>>, vector<1x8x128xf32>
    %307 = vector.shape_cast %306 : vector<1x8x128xf32> to vector<8x128xf32>
    %308 = vector.shape_cast %303 : vector<8x128xf32> to vector<1x8x128xf32>
    tpu.vector_store %arg8[%305, %c0_87, %c128_88], %308 {strides = array<i32>} : memref<8x8x256xf32, #tpu.memory_space<vmem>>, vector<1x8x128xf32>,
    %c5_i32 = arith.constant 5 : i32
    %309 = arith.index_cast %c5_i32 : i32 to index
    %c0_89 = arith.constant 0 : index
    %c0_90 = arith.constant 0 : index
    %310 = vector.load %arg9[%309, %c0_89, %c0_90] : memref<8x8x512xf32, #tpu.memory_space<vmem>>, vector<1x8x512xf32>
    %311 = vector.shape_cast %310 : vector<1x8x512xf32> to vector<8x512xf32>
    %312 = arith.truncf %275 : vector<8x128xf32> to vector<8x128xbf16>
    %cst_91 = arith.constant dense<0.000000e+00> : vector<8x512xf32>
    %313 = tpu.matmul %312, %5, %cst_91 {dimension_numbers = #tpu.dot_dimension_numbers<[1], [0], [0], [1], [0, 0, 1, 1], [], []>} : vector<8x128xbf16>, vector<128x512xbf16>, vector<8x512xf32> -> vector<8x512xf32>
    %314 = arith.addf %311, %313 : vector<8x512xf32>
    %315 = vector.extract_strided_slice %314 {offsets = [0, 0], sizes = [8, 384], strides = [1, 1]} : vector<8x512xf32> to vector<8x384xf32>
    %316 = arith.negf %315 : vector<8x384xf32>
    %317 = math.exp %316 : vector<8x384xf32>
    %cst_92 = arith.constant 1.000000e+00 : f32
    %318 = vector.broadcast %cst_92 : f32 to vector<8x384xf32>
    %319 = arith.addf %318, %317 : vector<8x384xf32>
    %320 = arith.divf %318, %319 : vector<8x384xf32>
    %321 = vector.extract_strided_slice %320 {offsets = [0, 0], sizes = [8, 128], strides = [1, 1]} : vector<8x384xf32> to vector<8x128xf32>
    %322 = vector.extract_strided_slice %320 {offsets = [0, 128], sizes = [8, 128], strides = [1, 1]} : vector<8x384xf32> to vector<8x128xf32>
    %323 = vector.extract_strided_slice %320 {offsets = [0, 256], sizes = [8, 128], strides = [1, 1]} : vector<8x384xf32> to vector<8x128xf32>
    %324 = vector.extract_strided_slice %314 {offsets = [0, 384], sizes = [8, 128], strides = [1, 1]} : vector<8x512xf32> to vector<8x128xf32>
    %325 = math.tanh %324 : vector<8x128xf32>
    %326 = arith.mulf %322, %273 : vector<8x128xf32>
    %327 = arith.mulf %321, %325 : vector<8x128xf32>
    %328 = arith.addf %326, %327 : vector<8x128xf32>
    %329 = math.tanh %328 : vector<8x128xf32>
    %330 = arith.mulf %323, %329 : vector<8x128xf32>
    %331 = arith.addi %12, %c5_i32 : i32
    %332 = arith.index_cast %331 : i32 to index
    %c0_93 = arith.constant 0 : index
    %c0_94 = arith.constant 0 : index
    %333 = vector.load %arg8[%332, %c0_93, %c0_94] : memref<8x8x256xf32, #tpu.memory_space<vmem>>, vector<1x8x128xf32>
    %334 = vector.shape_cast %333 : vector<1x8x128xf32> to vector<8x128xf32>
    %335 = vector.shape_cast %330 : vector<8x128xf32> to vector<1x8x128xf32>
    tpu.vector_store %arg8[%332, %c0_93, %c0_94], %335 {strides = array<i32>} : memref<8x8x256xf32, #tpu.memory_space<vmem>>, vector<1x8x128xf32>,
    %c7_i32_95 = arith.constant 7 : i32
    %336 = arith.subi %c7_i32_95, %c5_i32 : i32
    %337 = arith.index_cast %336 : i32 to index
    %c0_96 = arith.constant 0 : index
    %c0_97 = arith.constant 0 : index
    %338 = vector.load %arg10[%337, %c0_96, %c0_97] : memref<8x8x512xf32, #tpu.memory_space<vmem>>, vector<1x8x512xf32>
    %339 = vector.shape_cast %338 : vector<1x8x512xf32> to vector<8x512xf32>
    %340 = arith.truncf %303 : vector<8x128xf32> to vector<8x128xbf16>
    %cst_98 = arith.constant dense<0.000000e+00> : vector<8x512xf32>
    %341 = tpu.matmul %340, %7, %cst_98 {dimension_numbers = #tpu.dot_dimension_numbers<[1], [0], [0], [1], [0, 0, 1, 1], [], []>} : vector<8x128xbf16>, vector<128x512xbf16>, vector<8x512xf32> -> vector<8x512xf32>
    %342 = arith.addf %339, %341 : vector<8x512xf32>
    %343 = vector.extract_strided_slice %342 {offsets = [0, 0], sizes = [8, 384], strides = [1, 1]} : vector<8x512xf32> to vector<8x384xf32>
    %344 = arith.negf %343 : vector<8x384xf32>
    %345 = math.exp %344 : vector<8x384xf32>
    %cst_99 = arith.constant 1.000000e+00 : f32
    %346 = vector.broadcast %cst_99 : f32 to vector<8x384xf32>
    %347 = arith.addf %346, %345 : vector<8x384xf32>
    %348 = arith.divf %346, %347 : vector<8x384xf32>
    %349 = vector.extract_strided_slice %348 {offsets = [0, 0], sizes = [8, 128], strides = [1, 1]} : vector<8x384xf32> to vector<8x128xf32>
    %350 = vector.extract_strided_slice %348 {offsets = [0, 128], sizes = [8, 128], strides = [1, 1]} : vector<8x384xf32> to vector<8x128xf32>
    %351 = vector.extract_strided_slice %348 {offsets = [0, 256], sizes = [8, 128], strides = [1, 1]} : vector<8x384xf32> to vector<8x128xf32>
    %352 = vector.extract_strided_slice %342 {offsets = [0, 384], sizes = [8, 128], strides = [1, 1]} : vector<8x512xf32> to vector<8x128xf32>
    %353 = math.tanh %352 : vector<8x128xf32>
    %354 = arith.mulf %350, %301 : vector<8x128xf32>
    %355 = arith.mulf %349, %353 : vector<8x128xf32>
    %356 = arith.addf %354, %355 : vector<8x128xf32>
    %357 = math.tanh %356 : vector<8x128xf32>
    %358 = arith.mulf %351, %357 : vector<8x128xf32>
    %359 = arith.addi %15, %336 : i32
    %360 = arith.index_cast %359 : i32 to index
    %c0_100 = arith.constant 0 : index
    %c128_101 = arith.constant 128 : index
    %361 = vector.load %arg8[%360, %c0_100, %c128_101] : memref<8x8x256xf32, #tpu.memory_space<vmem>>, vector<1x8x128xf32>
    %362 = vector.shape_cast %361 : vector<1x8x128xf32> to vector<8x128xf32>
    %363 = vector.shape_cast %358 : vector<8x128xf32> to vector<1x8x128xf32>
    tpu.vector_store %arg8[%360, %c0_100, %c128_101], %363 {strides = array<i32>} : memref<8x8x256xf32, #tpu.memory_space<vmem>>, vector<1x8x128xf32>,
    %c6_i32 = arith.constant 6 : i32
    %364 = arith.index_cast %c6_i32 : i32 to index
    %c0_102 = arith.constant 0 : index
    %c0_103 = arith.constant 0 : index
    %365 = vector.load %arg9[%364, %c0_102, %c0_103] : memref<8x8x512xf32, #tpu.memory_space<vmem>>, vector<1x8x512xf32>
    %366 = vector.shape_cast %365 : vector<1x8x512xf32> to vector<8x512xf32>
    %367 = arith.truncf %330 : vector<8x128xf32> to vector<8x128xbf16>
    %cst_104 = arith.constant dense<0.000000e+00> : vector<8x512xf32>
    %368 = tpu.matmul %367, %5, %cst_104 {dimension_numbers = #tpu.dot_dimension_numbers<[1], [0], [0], [1], [0, 0, 1, 1], [], []>} : vector<8x128xbf16>, vector<128x512xbf16>, vector<8x512xf32> -> vector<8x512xf32>
    %369 = arith.addf %366, %368 : vector<8x512xf32>
    %370 = vector.extract_strided_slice %369 {offsets = [0, 0], sizes = [8, 384], strides = [1, 1]} : vector<8x512xf32> to vector<8x384xf32>
    %371 = arith.negf %370 : vector<8x384xf32>
    %372 = math.exp %371 : vector<8x384xf32>
    %cst_105 = arith.constant 1.000000e+00 : f32
    %373 = vector.broadcast %cst_105 : f32 to vector<8x384xf32>
    %374 = arith.addf %373, %372 : vector<8x384xf32>
    %375 = arith.divf %373, %374 : vector<8x384xf32>
    %376 = vector.extract_strided_slice %375 {offsets = [0, 0], sizes = [8, 128], strides = [1, 1]} : vector<8x384xf32> to vector<8x128xf32>
    %377 = vector.extract_strided_slice %375 {offsets = [0, 128], sizes = [8, 128], strides = [1, 1]} : vector<8x384xf32> to vector<8x128xf32>
    %378 = vector.extract_strided_slice %375 {offsets = [0, 256], sizes = [8, 128], strides = [1, 1]} : vector<8x384xf32> to vector<8x128xf32>
    %379 = vector.extract_strided_slice %369 {offsets = [0, 384], sizes = [8, 128], strides = [1, 1]} : vector<8x512xf32> to vector<8x128xf32>
    %380 = math.tanh %379 : vector<8x128xf32>
    %381 = arith.mulf %377, %328 : vector<8x128xf32>
    %382 = arith.mulf %376, %380 : vector<8x128xf32>
    %383 = arith.addf %381, %382 : vector<8x128xf32>
    %384 = math.tanh %383 : vector<8x128xf32>
    %385 = arith.mulf %378, %384 : vector<8x128xf32>
    %386 = arith.addi %12, %c6_i32 : i32
    %387 = arith.index_cast %386 : i32 to index
    %c0_106 = arith.constant 0 : index
    %c0_107 = arith.constant 0 : index
    %388 = vector.load %arg8[%387, %c0_106, %c0_107] : memref<8x8x256xf32, #tpu.memory_space<vmem>>, vector<1x8x128xf32>
    %389 = vector.shape_cast %388 : vector<1x8x128xf32> to vector<8x128xf32>
    %390 = vector.shape_cast %385 : vector<8x128xf32> to vector<1x8x128xf32>
    tpu.vector_store %arg8[%387, %c0_106, %c0_107], %390 {strides = array<i32>} : memref<8x8x256xf32, #tpu.memory_space<vmem>>, vector<1x8x128xf32>,
    %c7_i32_108 = arith.constant 7 : i32
    %391 = arith.subi %c7_i32_108, %c6_i32 : i32
    %392 = arith.index_cast %391 : i32 to index
    %c0_109 = arith.constant 0 : index
    %c0_110 = arith.constant 0 : index
    %393 = vector.load %arg10[%392, %c0_109, %c0_110] : memref<8x8x512xf32, #tpu.memory_space<vmem>>, vector<1x8x512xf32>
    %394 = vector.shape_cast %393 : vector<1x8x512xf32> to vector<8x512xf32>
    %395 = arith.truncf %358 : vector<8x128xf32> to vector<8x128xbf16>
    %cst_111 = arith.constant dense<0.000000e+00> : vector<8x512xf32>
    %396 = tpu.matmul %395, %7, %cst_111 {dimension_numbers = #tpu.dot_dimension_numbers<[1], [0], [0], [1], [0, 0, 1, 1], [], []>} : vector<8x128xbf16>, vector<128x512xbf16>, vector<8x512xf32> -> vector<8x512xf32>
    %397 = arith.addf %394, %396 : vector<8x512xf32>
    %398 = vector.extract_strided_slice %397 {offsets = [0, 0], sizes = [8, 384], strides = [1, 1]} : vector<8x512xf32> to vector<8x384xf32>
    %399 = arith.negf %398 : vector<8x384xf32>
    %400 = math.exp %399 : vector<8x384xf32>
    %cst_112 = arith.constant 1.000000e+00 : f32
    %401 = vector.broadcast %cst_112 : f32 to vector<8x384xf32>
    %402 = arith.addf %401, %400 : vector<8x384xf32>
    %403 = arith.divf %401, %402 : vector<8x384xf32>
    %404 = vector.extract_strided_slice %403 {offsets = [0, 0], sizes = [8, 128], strides = [1, 1]} : vector<8x384xf32> to vector<8x128xf32>
    %405 = vector.extract_strided_slice %403 {offsets = [0, 128], sizes = [8, 128], strides = [1, 1]} : vector<8x384xf32> to vector<8x128xf32>
    %406 = vector.extract_strided_slice %403 {offsets = [0, 256], sizes = [8, 128], strides = [1, 1]} : vector<8x384xf32> to vector<8x128xf32>
    %407 = vector.extract_strided_slice %397 {offsets = [0, 384], sizes = [8, 128], strides = [1, 1]} : vector<8x512xf32> to vector<8x128xf32>
    %408 = math.tanh %407 : vector<8x128xf32>
    %409 = arith.mulf %405, %356 : vector<8x128xf32>
    %410 = arith.mulf %404, %408 : vector<8x128xf32>
    %411 = arith.addf %409, %410 : vector<8x128xf32>
    %412 = math.tanh %411 : vector<8x128xf32>
    %413 = arith.mulf %406, %412 : vector<8x128xf32>
    %414 = arith.addi %15, %391 : i32
    %415 = arith.index_cast %414 : i32 to index
    %c0_113 = arith.constant 0 : index
    %c128_114 = arith.constant 128 : index
    %416 = vector.load %arg8[%415, %c0_113, %c128_114] : memref<8x8x256xf32, #tpu.memory_space<vmem>>, vector<1x8x128xf32>
    %417 = vector.shape_cast %416 : vector<1x8x128xf32> to vector<8x128xf32>
    %418 = vector.shape_cast %413 : vector<8x128xf32> to vector<1x8x128xf32>
    tpu.vector_store %arg8[%415, %c0_113, %c128_114], %418 {strides = array<i32>} : memref<8x8x256xf32, #tpu.memory_space<vmem>>, vector<1x8x128xf32>,
    %c7_i32_115 = arith.constant 7 : i32
    %419 = arith.index_cast %c7_i32_115 : i32 to index
    %c0_116 = arith.constant 0 : index
    %c0_117 = arith.constant 0 : index
    %420 = vector.load %arg9[%419, %c0_116, %c0_117] : memref<8x8x512xf32, #tpu.memory_space<vmem>>, vector<1x8x512xf32>
    %421 = vector.shape_cast %420 : vector<1x8x512xf32> to vector<8x512xf32>
    %422 = arith.truncf %385 : vector<8x128xf32> to vector<8x128xbf16>
    %cst_118 = arith.constant dense<0.000000e+00> : vector<8x512xf32>
    %423 = tpu.matmul %422, %5, %cst_118 {dimension_numbers = #tpu.dot_dimension_numbers<[1], [0], [0], [1], [0, 0, 1, 1], [], []>} : vector<8x128xbf16>, vector<128x512xbf16>, vector<8x512xf32> -> vector<8x512xf32>
    %424 = arith.addf %421, %423 : vector<8x512xf32>
    %425 = vector.extract_strided_slice %424 {offsets = [0, 0], sizes = [8, 384], strides = [1, 1]} : vector<8x512xf32> to vector<8x384xf32>
    %426 = arith.negf %425 : vector<8x384xf32>
    %427 = math.exp %426 : vector<8x384xf32>
    %cst_119 = arith.constant 1.000000e+00 : f32
    %428 = vector.broadcast %cst_119 : f32 to vector<8x384xf32>
    %429 = arith.addf %428, %427 : vector<8x384xf32>
    %430 = arith.divf %428, %429 : vector<8x384xf32>
    %431 = vector.extract_strided_slice %430 {offsets = [0, 0], sizes = [8, 128], strides = [1, 1]} : vector<8x384xf32> to vector<8x128xf32>
    %432 = vector.extract_strided_slice %430 {offsets = [0, 128], sizes = [8, 128], strides = [1, 1]} : vector<8x384xf32> to vector<8x128xf32>
    %433 = vector.extract_strided_slice %430 {offsets = [0, 256], sizes = [8, 128], strides = [1, 1]} : vector<8x384xf32> to vector<8x128xf32>
    %434 = vector.extract_strided_slice %424 {offsets = [0, 384], sizes = [8, 128], strides = [1, 1]} : vector<8x512xf32> to vector<8x128xf32>
    %435 = math.tanh %434 : vector<8x128xf32>
    %436 = arith.mulf %432, %383 : vector<8x128xf32>
    %437 = arith.mulf %431, %435 : vector<8x128xf32>
    %438 = arith.addf %436, %437 : vector<8x128xf32>
    %439 = math.tanh %438 : vector<8x128xf32>
    %440 = arith.mulf %433, %439 : vector<8x128xf32>
    %441 = arith.addi %12, %c7_i32_115 : i32
    %442 = arith.index_cast %441 : i32 to index
    %c0_120 = arith.constant 0 : index
    %c0_121 = arith.constant 0 : index
    %443 = vector.load %arg8[%442, %c0_120, %c0_121] : memref<8x8x256xf32, #tpu.memory_space<vmem>>, vector<1x8x128xf32>
    %444 = vector.shape_cast %443 : vector<1x8x128xf32> to vector<8x128xf32>
    %445 = vector.shape_cast %440 : vector<8x128xf32> to vector<1x8x128xf32>
    tpu.vector_store %arg8[%442, %c0_120, %c0_121], %445 {strides = array<i32>} : memref<8x8x256xf32, #tpu.memory_space<vmem>>, vector<1x8x128xf32>,
    %c7_i32_122 = arith.constant 7 : i32
    %446 = arith.subi %c7_i32_122, %c7_i32_115 : i32
    %447 = arith.index_cast %446 : i32 to index
    %c0_123 = arith.constant 0 : index
    %c0_124 = arith.constant 0 : index
    %448 = vector.load %arg10[%447, %c0_123, %c0_124] : memref<8x8x512xf32, #tpu.memory_space<vmem>>, vector<1x8x512xf32>
    %449 = vector.shape_cast %448 : vector<1x8x512xf32> to vector<8x512xf32>
    %450 = arith.truncf %413 : vector<8x128xf32> to vector<8x128xbf16>
    %cst_125 = arith.constant dense<0.000000e+00> : vector<8x512xf32>
    %451 = tpu.matmul %450, %7, %cst_125 {dimension_numbers = #tpu.dot_dimension_numbers<[1], [0], [0], [1], [0, 0, 1, 1], [], []>} : vector<8x128xbf16>, vector<128x512xbf16>, vector<8x512xf32> -> vector<8x512xf32>
    %452 = arith.addf %449, %451 : vector<8x512xf32>
    %453 = vector.extract_strided_slice %452 {offsets = [0, 0], sizes = [8, 384], strides = [1, 1]} : vector<8x512xf32> to vector<8x384xf32>
    %454 = arith.negf %453 : vector<8x384xf32>
    %455 = math.exp %454 : vector<8x384xf32>
    %cst_126 = arith.constant 1.000000e+00 : f32
    %456 = vector.broadcast %cst_126 : f32 to vector<8x384xf32>
    %457 = arith.addf %456, %455 : vector<8x384xf32>
    %458 = arith.divf %456, %457 : vector<8x384xf32>
    %459 = vector.extract_strided_slice %458 {offsets = [0, 0], sizes = [8, 128], strides = [1, 1]} : vector<8x384xf32> to vector<8x128xf32>
    %460 = vector.extract_strided_slice %458 {offsets = [0, 128], sizes = [8, 128], strides = [1, 1]} : vector<8x384xf32> to vector<8x128xf32>
    %461 = vector.extract_strided_slice %458 {offsets = [0, 256], sizes = [8, 128], strides = [1, 1]} : vector<8x384xf32> to vector<8x128xf32>
    %462 = vector.extract_strided_slice %452 {offsets = [0, 384], sizes = [8, 128], strides = [1, 1]} : vector<8x512xf32> to vector<8x128xf32>
    %463 = math.tanh %462 : vector<8x128xf32>
    %464 = arith.mulf %460, %411 : vector<8x128xf32>
    %465 = arith.mulf %459, %463 : vector<8x128xf32>
    %466 = arith.addf %464, %465 : vector<8x128xf32>
    %467 = math.tanh %466 : vector<8x128xf32>
    %468 = arith.mulf %461, %467 : vector<8x128xf32>
    %469 = arith.addi %15, %446 : i32
    %470 = arith.index_cast %469 : i32 to index
    %c0_127 = arith.constant 0 : index
    %c128_128 = arith.constant 128 : index
    %471 = vector.load %arg8[%470, %c0_127, %c128_128] : memref<8x8x256xf32, #tpu.memory_space<vmem>>, vector<1x8x128xf32>
    %472 = vector.shape_cast %471 : vector<1x8x128xf32> to vector<8x128xf32>
    %473 = vector.shape_cast %468 : vector<8x128xf32> to vector<1x8x128xf32>
    tpu.vector_store %arg8[%470, %c0_127, %c128_128], %473 {strides = array<i32>} : memref<8x8x256xf32, #tpu.memory_space<vmem>>, vector<1x8x128xf32>,
    %c8_i32_129 = arith.constant 8 : i32
    %c1_i32_130 = arith.constant 1 : i32
    return
  }
  func.func @transform_0(%arg0: i32) -> (i32, i32, i32) {
    %c0_i32 = arith.constant 0 : i32
    %c0_i32_0 = arith.constant 0 : i32
    %c0_i32_1 = arith.constant 0 : i32
    return %c0_i32, %arg0, %c0_i32_0 : i32, i32, i32
  }
  func.func @transform_1(%arg0: i32) -> (i32, i32) {
    %c0_i32 = arith.constant 0 : i32
    %c0_i32_0 = arith.constant 0 : i32
    %c0_i32_1 = arith.constant 0 : i32
    return %c0_i32, %c0_i32_0 : i32, i32
  }
  func.func @transform_2(%arg0: i32) -> (i32, i32) {
    %c0_i32 = arith.constant 0 : i32
    %c0_i32_0 = arith.constant 0 : i32
    %c0_i32_1 = arith.constant 0 : i32
    return %c0_i32, %c0_i32_0 : i32, i32
  }
  func.func @transform_3(%arg0: i32) -> (i32, i32) {
    %c0_i32 = arith.constant 0 : i32
    %c0_i32_0 = arith.constant 0 : i32
    %c0_i32_1 = arith.constant 0 : i32
    return %c0_i32, %c0_i32_0 : i32, i32
  }
  func.func @transform_4(%arg0: i32) -> (i32, i32) {
    %c0_i32 = arith.constant 0 : i32
    %c0_i32_0 = arith.constant 0 : i32
    %c0_i32_1 = arith.constant 0 : i32
    return %c0_i32, %c0_i32_0 : i32, i32
  }
  func.func @transform_5(%arg0: i32) -> (i32, i32) {
    %c0_i32 = arith.constant 0 : i32
    %c0_i32_0 = arith.constant 0 : i32
    %c0_i32_1 = arith.constant 0 : i32
    return %c0_i32, %c0_i32_0 : i32, i32
  }
  func.func @transform_6(%arg0: i32) -> (i32, i32) {
    %c0_i32 = arith.constant 0 : i32
    %c0_i32_0 = arith.constant 0 : i32
    %c0_i32_1 = arith.constant 0 : i32
    return %c0_i32, %c0_i32_0 : i32, i32
  }
  func.func @transform_7(%arg0: i32) -> (i32, i32, i32) {
    %c0_i32 = arith.constant 0 : i32
    %c0_i32_0 = arith.constant 0 : i32
    %c0_i32_1 = arith.constant 0 : i32
    return %c0_i32, %arg0, %c0_i32_0 : i32, i32, i32
  }
}

</mosaic_0001>

<bundles_post_ra>
// kernel: _lambda_.5
= control target key start
LH: loop header
LB: loop body
LE: loop exit
PB: predicated region body
PF: predicated region fallthrough
CT: control target
= control target key end

     0   :  { %vm361_vm0 = vcmask 7168   ;;  %vm1090_vm1 = vmmov 0   ;;  %s1829_s1 = inlined_call_operand.vmem [shape: f32[256,128], index: 1, kind: input, shape index: {}]   ;;  %s1830_s0 = inlined_call_operand.vmem [shape: f32[8,8,256], index: 0, kind: input, shape index: {}]   ;;  %s1831_s3 = inlined_call_operand.vmem [shape: f32[128,1], index: 3, kind: input, shape index: {}]   ;;  %s1832_s4 = inlined_call_operand.<no memory space> [shape: f32[1,1], index: 4, kind: input, shape index: {}]   ;;  %s1833_s2 = inlined_call_operand.vmem [shape: f32[1,128], index: 2, kind: input, shape index: {}]   ;;  %s1834_s5 = inlined_call_operand.vmem [shape: f32[256,256], index: 5, kind: input, shape index: {}]   ;;  %s1835_s6 = inlined_call_operand.vmem [shape: f32[1,256], index: 6, kind: input, shape index: {}]   ;;  %s1836_s9 = inlined_call_operand.vmem [shape: f32[256,128], index: 9, kind: input, shape index: {}]   ;;  %s1837_s7 = inlined_call_operand.vmem [shape: f32[1,256], index: 7, kind: input, shape index: {}]   ;;  %s1838_s8 = inlined_call_operand.vmem [shape: f32[1,256], index: 8, kind: input, shape index: {}]   ;;  %s1839_s10 = inlined_call_operand.vmem [shape: f32[1,128], index: 10, kind: input, shape index: {}]   ;;  %s1840_s13 = inlined_call_operand.vmem [shape: f32[128,128], index: 13, kind: input, shape index: {}]   ;;  %s1841_s11 = inlined_call_operand.vmem [shape: f32[1,128], index: 11, kind: input, shape index: {}]   ;;  %s1842_s12 = inlined_call_operand.vmem [shape: f32[1,128], index: 12, kind: input, shape index: {}]   ;;  %s1843_s14 = inlined_call_operand.vmem [shape: f32[1,128], index: 14, kind: input, shape index: {}]   ;;  %s1844_s15 = inlined_call_operand.vmem [shape: f32[8,128], index: 15, kind: output, shape index: {}]  }
   0x1   :  { %v147_v0 = vld [vmem:[%s1829_s1 + $0xf0] sm:$0xff]  ;;  %v148_v1 = vld [vmem:[%s1829_s1 + $0xf8] sm:$0xff]  ;;  %v145_v5 = vld [vmem:[%s1829_s1 + $0xe0] sm:$0xff] }
   0x2   :  { %v131_v2 = vld [vmem:[%s1829_s1 + $0x70] sm:$0xff]  ;;  %v164_v3 = vpack.c.bf16 %v148_v1, %v147_v0  ;;  %v132_v4 = vld [vmem:[%s1829_s1 + $0x78] sm:$0xff]  ;;  %v146_v6 = vld [vmem:[%s1829_s1 + $0xe8] sm:$0xff] }
   0x3   :  { %v156_v7 = vpack.c.bf16 %v132_v4, %v131_v2  ;;  %v163_v8 = vpack.c.bf16 %v146_v6, %v145_v5  ;;  %v129_v9 = vld [vmem:[%s1829_s1 + $0x60] sm:$0xff]  ;;  %v130_v10 = vld [vmem:[%s1829_s1 + $0x68] sm:$0xff]  ;;  %v143_v11 = vld [vmem:[%s1829_s1 + $0xd0] sm:$0xff] }
   0x4   :  { %918 = vmatprep.subr.bf16.mxu0 %v164_v3  ;;  %v144_v12 = vld [vmem:[%s1829_s1 + $0xd8] sm:$0xff]  ;;  %v155_v13 = vpack.c.bf16 %v130_v10, %v129_v9  ;;  %v127_v15 = vld [vmem:[%s1829_s1 + $0x50] sm:$0xff]  ;;  %v141_v17 = vld [vmem:[%s1829_s1 + $0xc0] sm:$0xff] }
   0x5   :  { %919 = vmatpush3.bf16.msra.mxu0 %v156_v7  ;;  %v162_v14 = vpack.c.bf16 %v144_v12, %v143_v11  ;;  %v128_v16 = vld [vmem:[%s1829_s1 + $0x58] sm:$0xff]  ;;  %v142_v18 = vld [vmem:[%s1829_s1 + $0xc8] sm:$0xff]  ;;  %v125_v21 = vld [vmem:[%s1829_s1 + $0x40] sm:$0xff] }
   0x6   :  { %920 = vmatprep.subr.bf16.mxu0 %v163_v8  ;;  %v154_v19 = vpack.c.bf16 %v128_v16, %v127_v15  ;;  %v161_v20 = vpack.c.bf16 %v142_v18, %v141_v17  ;;  %v126_v22 = vld [vmem:[%s1829_s1 + $0x48] sm:$0xff]  ;;  %v139_v23 = vld [vmem:[%s1829_s1 + $0xb0] sm:$0xff]  ;;  %v140_v24 = vld [vmem:[%s1829_s1 + $0xb8] sm:$0xff] }
   0x7   :  { %v1228_v25 = vld [vmem:[%s1830_s0 + $0x8] sm:$0xff]  ;;  %v1233_v26 = vld [vmem:[%s1830_s0 + $0x18] sm:$0xff]  ;;  %v153_v27 = vpack.c.bf16 %v126_v22, %v125_v21  ;;  %v160_v29 = vpack.c.bf16 %v140_v24, %v139_v23  ;;  %v123_v30 = vld [vmem:[%s1829_s1 + $0x30] sm:$0xff] }
   0x8   :  { %v911_v28 = vpack.c.bf16 %v1233_v26, %v1228_v25  ;;  %v124_v31 = vld [vmem:[%s1829_s1 + $0x38] sm:$0xff]  ;;  %v137_v32 = vld [vmem:[%s1829_s1 + $0xa0] sm:$0xff]  ;;  %v138_v33 = vld [vmem:[%s1829_s1 + $0xa8] sm:$0xff] }
   0x9   :  { %921 = vmatpush3.bf16.msra.mxu0 %v155_v13  ;;  %v152_v34 = vpack.c.bf16 %v124_v31, %v123_v30  ;;  %v159_v35 = vpack.c.bf16 %v138_v33, %v137_v32  ;;  %v121_v36 = vld [vmem:[%s1829_s1 + $0x20] sm:$0xff]  ;;  %v122_v37 = vld [vmem:[%s1829_s1 + $0x28] sm:$0xff]  ;;  %v135_v38 = vld [vmem:[%s1829_s1 + $0x90] sm:$0xff] }
   0xa   :  { %922 = vmatprep.subr.bf16.mxu0 %v162_v14  ;;  %220 = vmatprep.mubr.bf16.mxu0 %v911_v28  ;;  %v136_v39 = vld [vmem:[%s1829_s1 + $0x98] sm:$0xff]  ;;  %v151_v40 = vpack.c.bf16 %v122_v37, %v121_v36  ;;  %v119_v42 = vld [vmem:[%s1829_s1 + $0x10] sm:$0xff]  ;;  %v133_v44 = vld [vmem:[%s1829_s1 + $0x80] sm:$0xff] }
   0xb   :  { %v158_v41 = vpack.c.bf16 %v136_v39, %v135_v38  ;;  %v120_v43 = vld [vmem:[%s1829_s1 + $0x18] sm:$0xff]  ;;  %v134_v45 = vld [vmem:[%s1829_s1 + $0x88] sm:$0xff]  ;;  %v117_v48 = vld [vmem:[%s1829_s1] sm:$0xff] }
   0xc   :  { %v150_v46 = vpack.c.bf16 %v120_v43, %v119_v42  ;;  %v157_v47 = vpack.c.bf16 %v134_v45, %v133_v44  ;;  %v118_v49 = vld [vmem:[%s1829_s1 + $0x8] sm:$0xff]  ;;  %v1282_v51 = vld [vmem:[%s1830_s0] sm:$0xff]  ;;  %v1287_v52 = vld [vmem:[%s1830_s0 + $0x10] sm:$0xff] }
   0xd   :  { %923 = vmatpush3.bf16.msra.mxu0 %v154_v19  ;;  %v149_v50 = vpack.c.bf16 %v118_v49, %v117_v48  ;;  %v1292_v53 = vld [vmem:[%s1830_s0 + $0x28] sm:$0xff]  ;;  %v1297_v54 = vld [vmem:[%s1830_s0 + $0x38] sm:$0xff]  ;;  %v910_v55 = vpack.c.bf16 %v1287_v52, %v1282_v51  ;;  %v1306_v57 = vld [vmem:[%s1830_s0 + $0x20] sm:$0xff] }
   0xe   :  { %924 = vmatprep.subr.bf16.mxu0 %v161_v20  ;;  %v913_v56 = vpack.c.bf16 %v1297_v54, %v1292_v53  ;;  %v1311_v58 = vld [vmem:[%s1830_s0 + $0x30] sm:$0xff]  ;;  %v1316_v59 = vld [vmem:[%s1830_s0 + $0x48] sm:$0xff]  ;;  %v1321_v60 = vld [vmem:[%s1830_s0 + $0x58] sm:$0xff] }
   0xf   :  { %v912_v61 = vpack.c.bf16 %v1311_v58, %v1306_v57  ;;  %v915_v62 = vpack.c.bf16 %v1321_v60, %v1316_v59  ;;  %v1330_v63 = vld [vmem:[%s1830_s0 + $0x40] sm:$0xff]  ;;  %v1335_v0 = vld [vmem:[%s1830_s0 + $0x50] sm:$0xff]  ;;  %v1340_v1 = vld [vmem:[%s1830_s0 + $0x68] sm:$0xff] }
  0x10   :  { %v1345_v2 = vld [vmem:[%s1830_s0 + $0x78] sm:$0xff]  ;;  %v914_v3 = vpack.c.bf16 %v1335_v0, %v1330_v63  ;;  %v1354_v5 = vld [vmem:[%s1830_s0 + $0x60] sm:$0xff]  ;;  %v1359_v6 = vld [vmem:[%s1830_s0 + $0x70] sm:$0xff] }
  0x11   :  { %925 = vmatpush3.bf16.msra.mxu0 %v153_v27  ;;  %v917_v4 = vpack.c.bf16 %v1345_v2, %v1340_v1  ;;  %v916_v7 = vpack.c.bf16 %v1359_v6, %v1354_v5  ;;  %v279_v8 = vld [vmem:[%s1831_s3 + $0x70] sm:$0xff]  ;;  %v280_v9 = vld [vmem:[%s1831_s3 + $0x78] sm:$0xff]  ;;  %v277_v11 = vld [vmem:[%s1831_s3 + $0x60] sm:$0xff] }
  0x12   :  { %926 = vmatprep.subr.bf16.mxu0 %v160_v29  ;;  %v288_v10 = vpack.c.bf16 %v280_v9, %v279_v8  ;;  %v278_v12 = vld [vmem:[%s1831_s3 + $0x68] sm:$0xff]  ;;  %v275_v14 = vld [vmem:[%s1831_s3 + $0x50] sm:$0xff]  ;;  %v276_v15 = vld [vmem:[%s1831_s3 + $0x58] sm:$0xff] }
  0x13   :  { %v287_v13 = vpack.c.bf16 %v278_v12, %v277_v11  ;;  %v286_v16 = vpack.c.bf16 %v276_v15, %v275_v14  ;;  %v273_v17 = vld [vmem:[%s1831_s3 + $0x40] sm:$0xff]  ;;  %v274_v18 = vld [vmem:[%s1831_s3 + $0x48] sm:$0xff]  ;;  %v271_v20 = vld [vmem:[%s1831_s3 + $0x30] sm:$0xff] }
  0x14   :  { %1001 = vmatprep.subr.bf16.mxu1 %v288_v10  ;;  %v285_v19 = vpack.c.bf16 %v274_v18, %v273_v17  ;;  %v272_v21 = vld [vmem:[%s1831_s3 + $0x38] sm:$0xff]  ;;  %v269_v23 = vld [vmem:[%s1831_s3 + $0x20] sm:$0xff]  ;;  %v270_v24 = vld [vmem:[%s1831_s3 + $0x28] sm:$0xff] }
  0x15   :  { %927 = vmatpush3.bf16.msra.mxu0 %v152_v34  ;;  %1002 = vmatpush3.bf16.msra.mxu1 %v288_v10  ;;  %v284_v22 = vpack.c.bf16 %v272_v21, %v271_v20  ;;  %v283_v27 = vpack.c.bf16 %v270_v24, %v269_v23  ;;  %v267_v28 = vld [vmem:[%s1831_s3 + $0x10] sm:$0xff]  ;;  %v268_v29 = vld [vmem:[%s1831_s3 + $0x18] sm:$0xff]  ;;  %v265_v31 = vld [vmem:[%s1831_s3] sm:$0xff]  ;;  %v20_v34 = vstv %s1832_s4 }
  0x16   :  { %928 = vmatprep.subr.bf16.mxu0 %v159_v35  ;;  %1003 = vmatprep.subr.bf16.mxu1 %v287_v13  ;;  %v282_v30 = vpack.c.bf16 %v268_v29, %v267_v28  ;;  %v266_v32 = vld [vmem:[%s1831_s3 + $0x8] sm:$0xff]  ;;  %21 = vst [vmem:[#allocation2] sm:$0x1] %v20_v34  ;;  %v896_v37 = vld [vmem:[%s1833_s2] ss:$0 sm:$0xff]  ;;  %v528_v34 = vld [vmem:[%s1834_s5 + $0xf8] sm:$0xff] }
  0x17   :  { %v281_v33 = vpack.c.bf16 %v266_v32, %v265_v31  ;;  %v1088_v32 = vmov 0  }
  0x18   :  { %1049 = vset.pattern.permute.xlu1 %v1088_v32  ;;  %1048 = vset.pattern.permute.xlu0 %v1088_v32  ;;  %v558_v32 = vld [vmem:[%s1834_s5 + $0x1e8] sm:$0xff] }
  0x19   :  { %929 = vmatpush3.bf16.msra.mxu0 %v151_v40  ;;  %1004 = vmatpush3.bf16.msra.mxu1 %v287_v13 }
  0x1a   :  { %930 = vmatprep.subr.bf16.mxu0 %v158_v41  ;;  %1005 = vmatprep.subr.bf16.mxu1 %v286_v16 }
  0x1d   :  { %931 = vmatpush3.bf16.msra.mxu0 %v150_v46  ;;  %1006 = vmatpush3.bf16.msra.mxu1 %v286_v16 }
  0x1e   :  { %932 = vmatprep.subr.bf16.mxu0 %v157_v47  ;;  %1007 = vmatprep.subr.bf16.mxu1 %v285_v19 }
  0x21   :  { %933 = vmatpush3.bf16.msra.mxu0 %v149_v50  ;;  %1008 = vmatpush3.bf16.msra.mxu1 %v285_v19 }
  0x22   :  { %1009 = vmatprep.subr.bf16.mxu1 %v284_v22 }
  0x24   :  { %221 = vmatmul.mubr.bf16.vlgmr.msra.gmra.mxu0 %v910_v55 }
  0x25   :  { %228 = vmatprep.mubr.bf16.mxu0 %v913_v56  ;;  %1010 = vmatpush3.bf16.msra.mxu1 %v284_v22 }
  0x26   :  { %1011 = vmatprep.subr.bf16.mxu1 %v283_v27 }
  0x29   :  { %1012 = vmatpush3.bf16.msra.mxu1 %v283_v27 }
  0x2a   :  { %1013 = vmatprep.subr.bf16.mxu1 %v282_v30 }
  0x2c   :  { %229 = vmatmul.mubr.bf16.gmra.mxu0 %v912_v61 }
  0x2d   :  { %236 = vmatprep.mubr.bf16.mxu0 %v915_v62  ;;  %1014 = vmatpush3.bf16.msra.mxu1 %v282_v30 }
  0x2e   :  { %1015 = vmatprep.subr.bf16.mxu1 %v281_v33 }
  0x31   :  { %1016 = vmatpush3.bf16.msra.mxu1 %v281_v33  ;;  %v526_v33 = vld [vmem:[%s1834_s5 + $0xe8] sm:$0xff] }
  0x34   :  { %237 = vmatmul.mubr.bf16.gmra.mxu0 %v914_v3 }
  0x35   :  { %244 = vmatprep.mubr.bf16.mxu0 %v917_v4 }
  0x3c   :  { %245 = vmatmul.mubr.bf16.gmra.mxu0 %v916_v7 }
  0xe4   :  { %v934_v35 = vpop.f32.mrf.mxu0 }
  0xe6   :  { %v935_v36 = vpop.f32.mrf.mxu0 }
  0xe7   :  { %v936_v38 = vadd.f32 %v935_v36, %v934_v35  ;;  %v525_v35 = vld [vmem:[%s1834_s5 + $0xe0] sm:$0xff]  ;;  %v576_v36 = vpack.c.bf16 %v528_v34, %v526_v33  ;;  %v560_v33 = vld [vmem:[%s1834_s5 + $0x1f8] sm:$0xff] }
  0xe8   :  { %v937_v39 = vpop.f32.mrf.mxu0 }
  0xe9   :  { %v223_v40 = vadd.f32 %v936_v38, %v896_v37  ;;  %v522_v38 = vld [vmem:[%s1834_s5 + $0xc8] sm:$0xff]  ;;  %605 = vmatprep.subr.bf16.mxu0 %v576_v36  ;;  %v557_v36 = vld [vmem:[%s1834_s5 + $0x1e0] sm:$0xff] }
  0xea   :  { %v938_v41 = vpop.f32.mrf.mxu0 }
  0xeb   :  { %v939_v42 = vadd.f32 %v938_v41, %v937_v39  ;;  %1050 = vtanh.f32 %v223_v40  ;;  %v524_v39 = vld [vmem:[%s1834_s5 + $0xd8] sm:$0xff] }
  0xec   :  { %v940_v43 = vpop.f32.mrf.mxu0  ;;  %v574_v41 = vpack.c.bf16 %v524_v39, %v522_v38  ;;  %v554_v38 = vld [vmem:[%s1834_s5 + $0x1c8] sm:$0xff]  ;;  %v556_v39 = vld [vmem:[%s1834_s5 + $0x1d8] sm:$0xff] }
  0xed   :  { %v226_v44 = vadd.f32 %v939_v42, %v896_v37  ;;  %v521_v42 = vld [vmem:[%s1834_s5 + $0xc0] sm:$0xff] }
  0xee   :  { %v941_v45 = vpop.f32.mrf.mxu0 }
  0xef   :  { %1052 = vtanh.f32 %v226_v44  ;;  %v942_v46 = vadd.f32 %v941_v45, %v940_v43  ;;  %v523_v43 = vld [vmem:[%s1834_s5 + $0xd0] sm:$0xff]  ;;  %v518_v44 = vld [vmem:[%s1834_s5 + $0xa8] sm:$0xff]  ;;  %v520_v45 = vld [vmem:[%s1834_s5 + $0xb8] sm:$0xff] }
  0xf0   :  { %v943_v47 = vpop.f32.mrf.mxu0 }
  0xf1   :  { %v231_v48 = vadd.f32 %v942_v46, %v896_v37  ;;  %v573_v46 = vpack.c.bf16 %v523_v43, %v521_v42  ;;  %v590_v42 = vpack.c.bf16 %v556_v39, %v554_v38  ;;  %v553_v43 = vld [vmem:[%s1834_s5 + $0x1c0] sm:$0xff] }
  0xf2   :  { %v944_v49 = vpop.f32.mrf.mxu0 }
  0xf3   :  { %v945_v50 = vadd.f32 %v944_v49, %v943_v47  ;;  %1054 = vtanh.f32 %v231_v48  ;;  %v572_v47 = vpack.c.bf16 %v520_v45, %v518_v44  ;;  %v517_v48 = vld [vmem:[%s1834_s5 + $0xa0] sm:$0xff]  ;;  %v519_v49 = vld [vmem:[%s1834_s5 + $0xb0] sm:$0xff]  ;;  %v550_v45 = vld [vmem:[%s1834_s5 + $0x1a8] sm:$0xff] }
  0xf4   :  { %v946_v55 = vpop.f32.mrf.mxu0  ;;  %v555_v44 = vld [vmem:[%s1834_s5 + $0x1d0] sm:$0xff] }
  0xf5   :  { %v234_v56 = vadd.f32 %v945_v50, %v896_v37  ;;  %v514_v50 = vld [vmem:[%s1834_s5 + $0x88] sm:$0xff] }
  0xf6   :  { %v947_v61 = vpop.f32.mrf.mxu0 }
  0xf7   :  { %1056 = vtanh.f32 %v234_v56  ;;  %v948_v62 = vadd.f32 %v947_v61, %v946_v55  ;;  %v516_v55 = vld [vmem:[%s1834_s5 + $0x98] sm:$0xff]  ;;  %v571_v56 = vpack.c.bf16 %v519_v49, %v517_v48  ;;  %v589_v48 = vpack.c.bf16 %v555_v44, %v553_v43 }
  0xf8   :  { %v949_v3 = vpop.f32.mrf.mxu0  ;;  %v1051_v8 = vpop.eup %1050  ;;  %v570_v61 = vpack.c.bf16 %v516_v55, %v514_v50 }
  0xf9   :  { %v239_v4 = vadd.f32 %v948_v62, %v896_v37  ;;  %v513_v62 = vld [vmem:[%s1834_s5 + $0x80] sm:$0xff] }
  0xfa   :  { %v950_v7 = vpop.f32.mrf.mxu0 }
  0xfb   :  { %v951_v9 = vadd.f32 %v950_v7, %v949_v3  ;;  %1058 = vtanh.f32 %v239_v4  ;;  %v515_v3 = vld [vmem:[%s1834_s5 + $0x90] sm:$0xff]  ;;  %v510_v4 = vld [vmem:[%s1834_s5 + $0x68] sm:$0xff]  ;;  %v512_v7 = vld [vmem:[%s1834_s5 + $0x78] sm:$0xff] }
  0xfc   :  { %v1053_v10 = vpop.eup %1052  ;;  %v952_v11 = vpop.f32.mrf.mxu0 }
  0xfd   :  { %v242_v12 = vadd.f32 %v951_v9, %v896_v37  ;;  %v261_v13 = vpack.c.bf16 %v1053_v10, %v1051_v8  ;;  %v569_v8 = vpack.c.bf16 %v515_v3, %v513_v62  ;;  %v568_v9 = vpack.c.bf16 %v512_v7, %v510_v4  ;;  %v509_v10 = vld [vmem:[%s1834_s5 + $0x60] sm:$0xff] }
  0xfe   :  { %v953_v14 = vpop.f32.mrf.mxu0 }
  0xff   :  { %1060 = vtanh.f32 %v242_v12  ;;  %v954_v15 = vadd.f32 %v953_v14, %v952_v11  ;;  %1017 = vmatprep.mubr.bf16.mxu1 %v261_v13  ;;  %v511_v11 = vld [vmem:[%s1834_s5 + $0x70] sm:$0xff]  ;;  %v506_v12 = vld [vmem:[%s1834_s5 + $0x48] sm:$0xff]  ;;  %v508_v13 = vld [vmem:[%s1834_s5 + $0x58] sm:$0xff] }
 0x100   :  { %v955_v16 = vpop.f32.mrf.mxu0  ;;  %v1055_v19 = vpop.eup %1054  ;;  %v567_v14 = vpack.c.bf16 %v511_v11, %v509_v10 }
 0x101   :  { %v247_v17 = vadd.f32 %v954_v15, %v896_v37  ;;  %v566_v15 = vpack.c.bf16 %v508_v13, %v506_v12 }
 0x102   :  { %v956_v18 = vpop.f32.mrf.mxu0 }
 0x103   :  { %v957_v20 = vadd.f32 %v956_v18, %v955_v16  ;;  %1062 = vtanh.f32 %v247_v17  ;;  %v505_v16 = vld [vmem:[%s1834_s5 + $0x40] sm:$0xff]  ;;  %v507_v17 = vld [vmem:[%s1834_s5 + $0x50] sm:$0xff]  ;;  %v502_v18 = vld [vmem:[%s1834_s5 + $0x28] sm:$0xff] }
 0x104   :  { %v1057_v21 = vpop.eup %1056 }
 0x105   :  { %v250_v22 = vadd.f32 %v957_v20, %v896_v37  ;;  %v262_v23 = vpack.c.bf16 %v1057_v21, %v1055_v19  ;;  %v527_v37 = vld [vmem:[%s1834_s5 + $0xf0] sm:$0xff]  ;;  %v504_v19 = vld [vmem:[%s1834_s5 + $0x38] sm:$0xff]  ;;  %v565_v20 = vpack.c.bf16 %v507_v17, %v505_v16 }
 0x106   :  { %v575_v40 = vpack.c.bf16 %v527_v37, %v525_v35  ;;  %v564_v21 = vpack.c.bf16 %v504_v19, %v502_v18  ;;  %v592_v35 = vpack.c.bf16 %v560_v33, %v558_v32  ;;  %v559_v37 = vld [vmem:[%s1834_s5 + $0x1f0] sm:$0xff] }
 0x107   :  { %1064 = vtanh.f32 %v250_v22  ;;  %1018 = vmatmul.mubr.bf16.vlgmr.msra.gmra.mxu1 %v262_v23  ;;  %v501_v22 = vld [vmem:[%s1834_s5 + $0x20] sm:$0xff]  ;;  %v503_v23 = vld [vmem:[%s1834_s5 + $0x30] sm:$0xff] }
 0x108   :  { %v1059_v24 = vpop.eup %1058  ;;  %606 = vmatpush1.bf16.msra.mxu0 %v575_v40 }
 0x109   :  { %607 = vmatprep.subr.bf16.mxu0 %v574_v41  ;;  %v591_v41 = vpack.c.bf16 %v559_v37, %v557_v36 }
 0x10c   :  { %v1061_v27 = vpop.eup %1060  ;;  %608 = vmatpush1.bf16.msra.mxu0 %v573_v46  ;;  %v552_v46 = vld [vmem:[%s1834_s5 + $0x1b8] sm:$0xff] }
 0x10d   :  { %v263_v28 = vpack.c.bf16 %v1061_v27, %v1059_v24  ;;  %609 = vmatprep.subr.bf16.mxu0 %v572_v47  ;;  %v498_v24 = vld [vmem:[%s1834_s5 + $0x8] sm:$0xff]  ;;  %v500_v27 = vld [vmem:[%s1834_s5 + $0x18] sm:$0xff]  ;;  %v588_v49 = vpack.c.bf16 %v552_v46, %v550_v45 }
 0x10f   :  { %1021 = vmatprep.mubr.bf16.mxu1 %v263_v28  ;;  %v563_v28 = vpack.c.bf16 %v503_v23, %v501_v22 }
 0x110   :  { %v1063_v29 = vpop.eup %1062  ;;  %610 = vmatpush1.bf16.msra.mxu0 %v571_v56 }
 0x111   :  { %611 = vmatprep.subr.bf16.mxu0 %v570_v61  ;;  %v905_v61 = vld [vmem:[#allocation2] ss:$0 sm:$0xff] }
 0x114   :  { %v1065_v30 = vpop.eup %1064  ;;  %612 = vmatpush1.bf16.msra.mxu0 %v569_v8 }
 0x115   :  { %v264_v31 = vpack.c.bf16 %v1065_v30, %v1063_v29  ;;  %613 = vmatprep.subr.bf16.mxu0 %v568_v9  ;;  %v562_v29 = vpack.c.bf16 %v500_v27, %v498_v24  ;;  %v497_v30 = vld [vmem:[%s1834_s5] sm:$0xff] }
 0x117   :  { %1022 = vmatmul.mubr.bf16.gmra.mxu1 %v264_v31  ;;  %v499_v31 = vld [vmem:[%s1834_s5 + $0x10] sm:$0xff] }
 0x118   :  { %614 = vmatpush1.bf16.msra.mxu0 %v567_v14  ;;  %v561_v34 = vpack.c.bf16 %v499_v31, %v497_v30 }
 0x119   :  { %615 = vmatprep.subr.bf16.mxu0 %v566_v15 }
 0x11c   :  { %616 = vmatpush1.bf16.msra.mxu0 %v565_v20 }
 0x11d   :  { %617 = vmatprep.subr.bf16.mxu0 %v564_v21 }
 0x120   :  { %618 = vmatpush1.bf16.msra.mxu0 %v563_v28 }
 0x121   :  { %619 = vmatprep.subr.bf16.mxu0 %v562_v29 }
 0x124   :  { %620 = vmatpush1.bf16.msra.mxu0 %v561_v34 }
 0x125   :  { %621 = vmatprep.subr.bf16.mxu0 %v592_v35 }
 0x128   :  { %622 = vmatpush2.bf16.msra.mxu0 %v591_v41 }
 0x129   :  { %623 = vmatprep.subr.bf16.mxu0 %v590_v42 }
 0x12c   :  { %624 = vmatpush2.bf16.msra.mxu0 %v589_v48 }
 0x12d   :  { %625 = vmatprep.subr.bf16.mxu0 %v588_v49 }
 0x1c7   :  { %v1019_v40 = vpop.f32.mrf.mxu1 }
 0x1c8   :  { %v339_v9 = vadd.f32 %v1019_v40, %v905_v61 }
 0x1c9   :  { %v330_v47 = vpop.f32.mrf.mxu1 }
 0x1ca   :  { %v331_v10 = vadd.f32 %v905_v61, %v330_v47  ;;  %v364_v20 = vsel %vm361_vm0, %v339_v9, -inf }
 0x1cb   :  { %v1020_v50 = vpop.f32.mrf.mxu1 }
 0x1cc   :  { %v342_v62 = vadd.f32 %v1020_v50, %v905_v61  ;;  %v362_v21 = vsel %vm361_vm0, %v331_v10, -inf }
 0x1cd   :  { %v333_v55 = vpop.f32.mrf.mxu1 }
 0x1ce   :  { %v334_v11 = vadd.f32 %v905_v61, %v333_v55  ;;  %v365_v13 = vsel %vm361_vm0, %v342_v62, -inf }
 0x1d0   :  { %v363_v22 = vsel %vm361_vm0, %v334_v11, -inf }
 0x1d7   :  { %v1023_v56 = vpop.f32.mrf.mxu1 }
 0x1d8   :  { %v355_v4 = vadd.f32 %v1023_v56, %v905_v61 }
 0x1d9   :  { %v346_v3 = vpop.f32.mrf.mxu1 }
 0x1da   :  { %v347_v7 = vadd.f32 %v905_v61, %v346_v3  ;;  %v370_v15 = vsel %vm361_vm0, %v355_v4, -inf }
 0x1db   :  { %v1024_v8 = vpop.f32.mrf.mxu1  ;;  %v371_v24 = vmax.f32 %v364_v20, %v370_v15 }
 0x1dc   :  { %v358_v12 = vadd.f32 %v1024_v8, %v905_v61  ;;  %v366_v16 = vsel %vm361_vm0, %v347_v7, -inf }
 0x1dd   :  { %v349_v14 = vpop.f32.mrf.mxu1  ;;  %v367_v27 = vmax.f32 %v362_v21, %v366_v16  ;;  %v549_v21 = vld [vmem:[%s1834_s5 + $0x1a0] sm:$0xff] }
 0x1de   :  { %v372_v17 = vsel %vm361_vm0, %v358_v12, -inf  ;;  %v350_v18 = vadd.f32 %v905_v61, %v349_v14 }
 0x1df   :  { %v373_v19 = vmax.f32 %v365_v13, %v372_v17 }
 0x1e0   :  { %v368_v23 = vsel %vm361_vm0, %v350_v18, -inf }
 0x1e1   :  { %v369_v28 = vmax.f32 %v363_v22, %v368_v23  ;;  %v375_v29 = vmax.f32 %v371_v24, %v373_v19  ;;  %v551_v22 = vld [vmem:[%s1834_s5 + $0x1b0] sm:$0xff]  ;;  %v546_v24 = vld [vmem:[%s1834_s5 + $0x188] sm:$0xff] }
 0x1e2   :  { %v587_v23 = vpack.c.bf16 %v551_v22, %v549_v21 }
 0x1e3   :  { %v374_v30 = vmax.f32 %v367_v27, %v369_v28  ;;  %v548_v27 = vld [vmem:[%s1834_s5 + $0x198] sm:$0xff] }
 0x1e4   :  { %626 = vmatpush2.bf16.msra.mxu0 %v587_v23 }
 0x1e5   :  { %v376_v31 = vmax.f32 %v374_v30, %v375_v29  ;;  %v586_v29 = vpack.c.bf16 %v548_v27, %v546_v24 }
 0x1e7   :  { %v377_v32 = vsub.f32 %v331_v10, %v376_v31  ;;  %v378_v33 = vsub.f32 %v334_v11, %v376_v31  ;;  %v380_v34 = vsub.f32 %v342_v62, %v376_v31  ;;  %v379_v37 = vsub.f32 %v339_v9, %v376_v31  ;;  %627 = vmatprep.subr.bf16.mxu0 %v586_v29 }
 0x1e8   :  { %v381_v38 = vsub.f32 %v347_v7, %v376_v31  ;;  %v382_v40 = vsub.f32 %v350_v18, %v376_v31  ;;  %v383_v42 = vsub.f32 %v355_v4, %v376_v31  ;;  %v384_v44 = vsub.f32 %v358_v12, %v376_v31 }
 0x1e9   :  { %v385_v35 = vmul.f32 1.442695, %v377_v32  ;;  %v387_v36 = vmul.f32 1.442695, %v378_v33  ;;  %v391_v39 = vmul.f32 1.442695, %v380_v34 }
 0x1ea   :  { %v389_v41 = vmul.f32 1.442695, %v379_v37  ;;  %v393_v43 = vmul.f32 1.442695, %v381_v38  ;;  %v395_v45 = vmul.f32 1.442695, %v382_v40 }
 0x1eb   :  { %1066 = vpow2.f32 %v385_v35  ;;  %v397_v46 = vmul.f32 1.442695, %v383_v42  ;;  %v399_v47 = vmul.f32 1.442695, %v384_v44  ;;  %v545_v32 = vld [vmem:[%s1834_s5 + $0x180] sm:$0xff]  ;;  %v547_v33 = vld [vmem:[%s1834_s5 + $0x190] sm:$0xff] }
 0x1ec   :  { %1068 = vpow2.f32 %v387_v36  ;;  %v585_v34 = vpack.c.bf16 %v547_v33, %v545_v32  ;;  %v542_v37 = vld [vmem:[%s1834_s5 + $0x168] sm:$0xff]  ;;  %v544_v38 = vld [vmem:[%s1834_s5 + $0x178] sm:$0xff]  ;;  %v541_v40 = vld [vmem:[%s1834_s5 + $0x160] sm:$0xff] }
 0x1ed   :  { %1070 = vpow2.f32 %v391_v39  ;;  %v584_v39 = vpack.c.bf16 %v544_v38, %v542_v37 }
 0x1ee   :  { %1072 = vpow2.f32 %v389_v41  ;;  %628 = vmatpush2.bf16.msra.mxu0 %v585_v34  ;;  %v543_v41 = vld [vmem:[%s1834_s5 + $0x170] sm:$0xff] }
 0x1ef   :  { %1074 = vpow2.f32 %v393_v43  ;;  %v583_v42 = vpack.c.bf16 %v543_v41, %v541_v40  ;;  %629 = vmatprep.subr.bf16.mxu0 %v584_v39 }
 0x1f0   :  { %1076 = vpow2.f32 %v395_v45  ;;  %v538_v45 = vld [vmem:[%s1834_s5 + $0x148] sm:$0xff] }
 0x1f1   :  { %1078 = vpow2.f32 %v397_v46  ;;  %v540_v46 = vld [vmem:[%s1834_s5 + $0x158] sm:$0xff] }
 0x1f2   :  { %1080 = vpow2.f32 %v399_v47  ;;  %630 = vmatpush2.bf16.msra.mxu0 %v583_v42  ;;  %v582_v47 = vpack.c.bf16 %v540_v46, %v538_v45 }
 0x1f4   :  { %631 = vmatprep.subr.bf16.mxu0 %v582_v47 }
 0x1f8   :  { %v1067_v48 = vpop.eup %1066 }
 0x1f9   :  { %v1069_v49 = vpop.eup %1068  ;;  %v401_v50 = vsel %vm361_vm0, %v1067_v48, 0.0 }
 0x1fa   :  { %v402_v55 = vsel %vm361_vm0, %v1069_v49, 0.0  ;;  %v1071_v61 = vpop.eup %1070 }
 0x1fb   :  { %v403_v56 = vadd.f32 %v402_v55, %v401_v50  ;;  %v1073_v62 = vpop.eup %1072  ;;  %v406_v8 = vsel %vm361_vm0, %v1071_v61, 0.0 }
 0x1fc   :  { %v404_v3 = vsel %vm361_vm0, %v1073_v62, 0.0  ;;  %v1075_v4 = vpop.eup %1074 }
 0x1fd   :  { %v405_v7 = vadd.f32 %v404_v3, %v403_v56  ;;  %v1077_v9 = vpop.eup %1076  ;;  %v408_v11 = vsel %vm361_vm0, %v1075_v4, 0.0 }
 0x1fe   :  { %v1079_v12 = vpop.eup %1078  ;;  %v410_v14 = vsel %vm361_vm0, %v1077_v9, 0.0 }
 0x1ff   :  { %v407_v10 = vadd.f32 %v406_v8, %v405_v7  ;;  %v1081_v15 = vpop.eup %1080  ;;  %v412_v17 = vsel %vm361_vm0, %v1079_v12, 0.0  ;;  %v535_v7 = vld [vmem:[%s1834_s5 + $0x130] sm:$0xff] }
 0x200   :  { %v414_v19 = vsel %vm361_vm0, %v1081_v15, 0.0 }
 0x201   :  { %v409_v13 = vadd.f32 %v408_v11, %v407_v10  ;;  %v532_v10 = vld [vmem:[%s1834_s5 + $0x118] sm:$0xff] }
 0x203   :  { %v411_v16 = vadd.f32 %v410_v14, %v409_v13  ;;  %v531_v13 = vld [vmem:[%s1834_s5 + $0x110] sm:$0xff] }
 0x205   :  { %v413_v18 = vadd.f32 %v412_v17, %v411_v16 }
 0x207   :  { %v415_v20 = vadd.f32 %v414_v19, %v413_v18 }
 0x209   :  { %1082 = vrcp.f32 %v415_v20 }
 0x216   :  { %v1083_v28 = vpop.eup %1082 }
 0x217   :  { %v419_v30 = vmul.f32 %v1083_v28, %v1073_v62  ;;  %v417_v31 = vmul.f32 %v1083_v28, %v1067_v48  ;;  %v420_v35 = vmul.f32 %v1083_v28, %v1071_v61  ;;  %v418_v36 = vmul.f32 %v1083_v28, %v1069_v49  ;;  %v537_v48 = vld [vmem:[%s1834_s5 + $0x140] sm:$0xff]  ;;  %v539_v49 = vld [vmem:[%s1834_s5 + $0x150] sm:$0xff]  ;;  %v534_v61 = vld [vmem:[%s1834_s5 + $0x128] sm:$0xff] }
 0x218   :  { %v422_v43 = vmul.f32 %v1083_v28, %v1077_v9  ;;  %v421_v44 = vmul.f32 %v1083_v28, %v1075_v4  ;;  %v581_v50 = vpack.c.bf16 %v539_v49, %v537_v48  ;;  %v424_v55 = vmul.f32 %v1083_v28, %v1081_v15  ;;  %v536_v62 = vld [vmem:[%s1834_s5 + $0x138] sm:$0xff]  ;;  %v533_v4 = vld [vmem:[%s1834_s5 + $0x120] sm:$0xff]  ;;  %v530_v9 = vld [vmem:[%s1834_s5 + $0x108] sm:$0xff] }
 0x219   :  { %437 = vperm.xlu1 %1049, %v419_v30   ;;  %427 = vperm.xlu0 %1048, %v417_v31   ;;  %v423_v56 = vmul.f32 %v1083_v28, %v1079_v12  ;;  %v580_v3 = vpack.c.bf16 %v536_v62, %v534_v61  ;;  %v579_v8 = vpack.c.bf16 %v535_v7, %v533_v4  ;;  %v529_v12 = vld [vmem:[%s1834_s5 + $0x100] sm:$0xff]  ;;  %v726_v4 = vld [vmem:[%s1836_s9 + $0xf8] sm:$0xff]  ;;  %v709_v7 = vld [vmem:[%s1836_s9 + $0x70] sm:$0xff] }
 0x21a   :  { %632 = vmatpush2.bf16.msra.mxu0 %v581_v50  ;;  %v578_v11 = vpack.c.bf16 %v532_v10, %v530_v9  ;;  %v577_v14 = vpack.c.bf16 %v531_v13, %v529_v12  ;;  %v710_v9 = vld [vmem:[%s1836_s9 + $0x78] sm:$0xff] }
 0x21b   :  { %633 = vmatprep.subr.bf16.mxu0 %v580_v3  ;;  %v725_v3 = vld [vmem:[%s1836_s9 + $0xf0] sm:$0xff]  ;;  %v734_v10 = vpack.c.bf16 %v710_v9, %v709_v7 }
 0x21d   :  { %442 = vperm.xlu1 %1049, %v420_v35   ;;  %432 = vperm.xlu0 %1048, %v418_v36  }
 0x21e   :  { %634 = vmatpush2.bf16.msra.mxu0 %v579_v8  ;;  %v742_v8 = vpack.c.bf16 %v726_v4, %v725_v3 }
 0x21f   :  { %635 = vmatprep.subr.bf16.mxu0 %v578_v11 }
 0x220   :  { %970 = vmatprep.subr.bf16.mxu1 %v742_v8 }
 0x221   :  { %452 = vperm.xlu1 %1049, %v422_v43   ;;  %447 = vperm.xlu0 %1048, %v421_v44  }
 0x222   :  { %636 = vmatpush2.bf16.msra.mxu0 %v577_v14  ;;  %971 = vmatpush3.bf16.msra.mxu1 %v734_v10 }
 0x225   :  { %462 = vperm.xlu1 %1049, %v424_v55   ;;  %457 = vperm.xlu0 %1048, %v423_v56  }
 0x294   :  { %v438_v15 = vpop.permute.xlu1 %437  ;;  %v428_v16 = vpop.permute.xlu0 %427 }
 0x295   :  { %v465_v19 = vmul.f32 %v428_v16, %v1282_v51  ;;  %v466_v20 = vmul.f32 %v428_v16, %v1228_v25  ;;  %v469_v23 = vmul.f32 %v438_v15, %v1306_v57  ;;  %v470_v24 = vmul.f32 %v438_v15, %v1292_v53 }
 0x298   :  { %v443_v17 = vpop.permute.xlu1 %442  ;;  %v433_v18 = vpop.permute.xlu0 %432 }
 0x299   :  { %v467_v21 = vmul.f32 %v433_v18, %v1287_v52  ;;  %v468_v22 = vmul.f32 %v433_v18, %v1233_v26  ;;  %v471_v31 = vmul.f32 %v443_v17, %v1311_v58  ;;  %v472_v32 = vmul.f32 %v443_v17, %v1297_v54  ;;  %v723_v18 = vld [vmem:[%s1836_s9 + $0xe0] sm:$0xff] }
 0x29b   :  { %v481_v27 = vadd.f32 %v467_v21, %v465_v19  ;;  %v488_v28 = vadd.f32 %v468_v22, %v466_v20  ;;  %v724_v19 = vld [vmem:[%s1836_s9 + $0xe8] sm:$0xff]  ;;  %v707_v21 = vld [vmem:[%s1836_s9 + $0x60] sm:$0xff] }
 0x29c   :  { %v453_v29 = vpop.permute.xlu1 %452  ;;  %v448_v30 = vpop.permute.xlu0 %447  ;;  %v741_v20 = vpack.c.bf16 %v724_v19, %v723_v18  ;;  %v708_v22 = vld [vmem:[%s1836_s9 + $0x68] sm:$0xff] }
 0x29d   :  { %v482_v33 = vadd.f32 %v481_v27, %v469_v23  ;;  %v489_v51 = vadd.f32 %v488_v28, %v470_v24  ;;  %v473_v52 = vmul.f32 %v448_v30, %v1330_v63  ;;  %v474_v26 = vmul.f32 %v448_v30, %v1316_v59  ;;  %v721_v24 = vld [vmem:[%s1836_s9 + $0xd0] sm:$0xff]  ;;  %v722_v27 = vld [vmem:[%s1836_s9 + $0xd8] sm:$0xff] }
 0x29e   :  { %v475_v57 = vmul.f32 %v453_v29, %v1335_v0  ;;  %v476_v53 = vmul.f32 %v453_v29, %v1321_v60  ;;  %v595_v60 = vlaneseq  ;;  %v733_v23 = vpack.c.bf16 %v708_v22, %v707_v21  ;;  %972 = vmatprep.subr.bf16.mxu1 %v741_v20  ;;  %v705_v29 = vld [vmem:[%s1836_s9 + $0x50] sm:$0xff]  ;;  %v706_v30 = vld [vmem:[%s1836_s9 + $0x58] sm:$0xff] }
 0x29f   :  { %v483_v34 = vadd.f32 %v482_v33, %v471_v31  ;;  %v490_v25 = vadd.f32 %v489_v51, %v472_v32  ;;  %v740_v28 = vpack.c.bf16 %v722_v27, %v721_v24  ;;  %v732_v31 = vpack.c.bf16 %v706_v30, %v705_v29  ;;  %v719_v32 = vld [vmem:[%s1836_s9 + $0xc0] sm:$0xff]  ;;  %v720_v33 = vld [vmem:[%s1836_s9 + $0xc8] sm:$0xff]  ;;  %v834_v24 = vld [vmem:[%s1840_s13 + $0x70] sm:$0xff] }
 0x2a0   :  { %v458_v35 = vpop.permute.xlu0 %457  ;;  %v463_v38 = vpop.permute.xlu1 %462  ;;  %v596_v46 = vshrl.u32 %v595_v60, 7  ;;  %973 = vmatpush3.bf16.msra.mxu1 %v733_v23  ;;  %v739_v51 = vpack.c.bf16 %v720_v33, %v719_v32  ;;  %v1089_v23 = vmov 0.0   ;;  %v835_v27 = vld [vmem:[%s1840_s13 + $0x78] sm:$0xff]  ;;  %v832_v33 = vld [vmem:[%s1840_s13 + $0x60] sm:$0xff] }
 0x2a1   :  { %v484_v36 = vadd.f32 %v483_v34, %v473_v52  ;;  %v491_v37 = vadd.f32 %v490_v25, %v474_v26  ;;  %v477_v54 = vmul.f32 %v458_v35, %v1354_v5  ;;  %v478_v40 = vmul.f32 %v458_v35, %v1340_v1  ;;  %v593_v1 = vld [vmem:[%s1835_s6] sm:$0x3]  ;;  %974 = vmatprep.subr.bf16.mxu1 %v740_v28  ;;  %v704_v25 = vld [vmem:[%s1836_s9 + $0x48] sm:$0xff]  ;;  %v717_v26 = vld [vmem:[%s1836_s9 + $0xb0] sm:$0xff] }
 0x2a2   :  { %v479_v41 = vmul.f32 %v463_v38, %v1359_v6  ;;  %v480_v63 = vmul.f32 %v463_v38, %v1345_v2  ;;  %v1641_v47 = vsub.s32 0, %v596_v46  ;;  %v1643_v48 = vsub.s32 1, %v596_v46  ;;  %v703_v34 = vld [vmem:[%s1836_s9 + $0x40] sm:$0xff]  ;;  %v718_v35 = vld [vmem:[%s1836_s9 + $0xb8] sm:$0xff] }
 0x2a3   :  { %v485_v39 = vadd.f32 %v484_v36, %v475_v57  ;;  %v492_v58 = vadd.f32 %v491_v37, %v476_v53  ;;  %v731_v52 = vpack.c.bf16 %v704_v25, %v703_v34  ;;  %v738_v57 = vpack.c.bf16 %v718_v35, %v717_v26  ;;  %v701_v53 = vld [vmem:[%s1836_s9 + $0x30] sm:$0xff]  ;;  %v702_v36 = vld [vmem:[%s1836_s9 + $0x38] sm:$0xff]  ;;  %v715_v38 = vld [vmem:[%s1836_s9 + $0xa0] sm:$0xff] }
 0x2a4   :  { %v598_v2 = vrot.slane %v593_v1, %v1641_v47  ;;  %v602_v5 = vrot.slane %v593_v1, %v1643_v48  ;;  %975 = vmatpush3.bf16.msra.mxu1 %v732_v31  ;;  %v730_v37 = vpack.c.bf16 %v702_v36, %v701_v53  ;;  %v695_v1 = vld [vmem:[%s1836_s9] sm:$0xff]  ;;  %v843_v28 = vpack.c.bf16 %v835_v27, %v834_v24  ;;  %v830_v25 = vld [vmem:[%s1840_s13 + $0x50] sm:$0xff] }
 0x2a5   :  { %v486_v42 = vadd.f32 %v485_v39, %v477_v54  ;;  %v493_v59 = vadd.f32 %v492_v58, %v478_v40  ;;  %976 = vmatprep.subr.bf16.mxu1 %v739_v51  ;;  %v716_v39 = vld [vmem:[%s1836_s9 + $0xa8] sm:$0xff]  ;;  %v699_v54 = vld [vmem:[%s1836_s9 + $0x20] sm:$0xff]  ;;  %v826_v36 = vld [vmem:[%s1840_s13 + $0x30] sm:$0xff] }
 0x2a6   :  { %v737_v58 = vpack.c.bf16 %v716_v39, %v715_v38  ;;  %v700_v40 = vld [vmem:[%s1836_s9 + $0x28] sm:$0xff]  ;;  %v828_v26 = vld [vmem:[%s1840_s13 + $0x40] sm:$0xff] }
 0x2a7   :  { %v487_v43 = vadd.f32 %v486_v42, %v479_v41  ;;  %v494_v44 = vadd.f32 %v493_v59, %v480_v63  ;;  %v729_v41 = vpack.c.bf16 %v700_v40, %v699_v54  ;;  %v713_v63 = vld [vmem:[%s1836_s9 + $0x90] sm:$0xff]  ;;  %v714_v42 = vld [vmem:[%s1836_s9 + $0x98] sm:$0xff]  ;;  %v833_v51 = vld [vmem:[%s1840_s13 + $0x68] sm:$0xff] }
 0x2a8   :  { %977 = vmatpush3.bf16.msra.mxu1 %v731_v52  ;;  %v697_v59 = vld [vmem:[%s1836_s9 + $0x10] sm:$0xff]  ;;  %v842_v34 = vpack.c.bf16 %v833_v51, %v832_v33  ;;  %v831_v52 = vld [vmem:[%s1840_s13 + $0x58] sm:$0xff]  ;;  %v824_v39 = vld [vmem:[%s1840_s13 + $0x20] sm:$0xff] }
 0x2a9   :  { %v495_v0 = vpack.c.bf16 %v487_v43, %v487_v43  ;;  %v496_v45 = vpack.c.bf16 %v494_v44, %v494_v44  ;;  %978 = vmatprep.subr.bf16.mxu1 %v738_v57  ;;  %v736_v43 = vpack.c.bf16 %v714_v42, %v713_v63  ;;  %v698_v44 = vld [vmem:[%s1836_s9 + $0x18] sm:$0xff]  ;;  %v841_v35 = vpack.c.bf16 %v831_v52, %v830_v25  ;;  %v829_v57 = vld [vmem:[%s1840_s13 + $0x48] sm:$0xff]  ;;  %v822_v40 = vld [vmem:[%s1840_s13 + $0x10] sm:$0xff] }
 0x2aa   :  { %v728_v60 = vpack.c.bf16 %v698_v44, %v697_v59  ;;  %v840_v53 = vpack.c.bf16 %v829_v57, %v828_v26  ;;  %v820_v42 = vld [vmem:[%s1840_s13] sm:$0xff]  ;;  %v821_v59 = vld [vmem:[%s1840_s13 + $0x8] sm:$0xff] }
 0x2ab   :  { %637 = vmatprep.mubr.bf16.mxu0 %v496_v45  ;;  %v712_v45 = vld [vmem:[%s1836_s9 + $0x88] sm:$0xff] }
 0x2ac   :  { %638 = vmatmul.mubr.bf16.vlgmr.msra.gmra.mxu0 %v495_v0  ;;  %979 = vmatpush3.bf16.msra.mxu1 %v730_v37  ;;  %v711_v0 = vld [vmem:[%s1836_s9 + $0x80] sm:$0xff]  ;;  %v827_v37 = vld [vmem:[%s1840_s13 + $0x38] sm:$0xff] }
 0x2ad   :  { %980 = vmatprep.subr.bf16.mxu1 %v737_v58  ;;  %v735_v46 = vpack.c.bf16 %v712_v45, %v711_v0  ;;  %v839_v38 = vpack.c.bf16 %v827_v37, %v826_v36  ;;  %v825_v58 = vld [vmem:[%s1840_s13 + $0x28] sm:$0xff] }
 0x2ae   :  { %v838_v54 = vpack.c.bf16 %v825_v58, %v824_v39 }
 0x2b0   :  { %981 = vmatpush3.bf16.msra.mxu1 %v729_v41  ;;  %v823_v41 = vld [vmem:[%s1840_s13 + $0x18] sm:$0xff] }
 0x2b1   :  { %982 = vmatprep.subr.bf16.mxu1 %v736_v43  ;;  %v837_v63 = vpack.c.bf16 %v823_v41, %v822_v40  ;;  %v836_v43 = vpack.c.bf16 %v821_v59, %v820_v42 }
 0x2b4   :  { %983 = vmatpush3.bf16.msra.mxu1 %v728_v60 }
 0x2b5   :  { %984 = vmatprep.subr.bf16.mxu1 %v735_v46  ;;  %v907_v46 = vld [vmem:[%s1841_s11] ss:$0 sm:$0xff] }
 0x36c   :  { %v639_v6 = vpop.f32.mrf.mxu0 }
 0x36d   :  { %v640_v50 = vadd.f32 %v639_v6, %v598_v2  ;;  %v696_v2 = vld [vmem:[%s1836_s9 + $0x8] sm:$0xff] }
 0x36e   :  { %v641_v49 = vpop.f32.mrf.mxu0 }
 0x36f   :  { %v642_v55 = vadd.f32 %v641_v49, %v602_v5  ;;  %v727_v5 = vpack.c.bf16 %v696_v2, %v695_v1  ;;  %v908_v2 = vld [vmem:[%s1842_s12] ss:$0 sm:$0xff] }
 0x370   :  { %v643_v56 = vpop.f32.mrf.mxu0 }
 0x371   :  { %v648_v61 = vadd.f32 %v642_v55, %v640_v50  ;;  %985 = vmatpush3.bf16.msra.mxu1 %v727_v5  ;;  %v647_v56 = vld [vmem:[%s1838_s8] sm:$0x3] }
 0x372   :  { %v644_v62 = vpop.f32.mrf.mxu0  ;;  %v682_v8 = vrot.slane %v647_v56, %v1641_v47  ;;  %v686_v9 = vrot.slane %v647_v56, %v1643_v48  ;;  %1025 = vmatprep.subr.bf16.mxu1 %v1089_v23 }
 0x373   :  { %649 = vadd.xlane.f32.xlu0 %v648_v61 }
 0x3fc   :  { %v650_v11 = vpop.xlane.xlu0 %649 }
 0x3fd   :  { %v652_v12 = vmul.f32 0.00390625, %v650_v11 }
 0x3ff   :  { %v1662_v13 = vsub.f32 %v640_v50, %v652_v12  ;;  %v1664_v14 = vsub.f32 %v642_v55, %v652_v12  ;;  %v646_v55 = vld [vmem:[%s1837_s7] sm:$0x3] }
 0x400   :  { %v669_v61 = vrot.slane %v646_v55, %v1641_v47  ;;  %v673_v62 = vrot.slane %v646_v55, %v1643_v48  ;;  %v909_v55 = vld [vmem:[%s1843_s14] ss:$0 sm:$0xff] }
 0x401   :  { %v655_v15 = vmul.f32 %v1662_v13, %v1662_v13  ;;  %v656_v16 = vmul.f32 %v1664_v14, %v1664_v14 }
 0x403   :  { %v657_v17 = vadd.f32 %v656_v16, %v655_v15 }
 0x405   :  { %658 = vadd.xlane.f32.xlu1 %v657_v17 }
 0x48e   :  { %v659_v6 = vpop.xlane.xlu1 %658 }
 0x48f   :  { %v660_v49 = vmul.f32 0.00390625, %v659_v6 }
 0x491   :  { %v661_v50 = vadd.f32 1e-05, %v660_v49 }
 0x493   :  { %1084 = vrsqrt.f32 %v661_v50 }
 0x4a0   :  { %v1085_v3 = vpop.eup %1084 }
 0x4a1   :  { %v663_v4 = vmul.f32 %v1085_v3, %v1662_v13  ;;  %v664_v7 = vmul.f32 %v1085_v3, %v1664_v14  ;;  %v906_v13 = vld [vmem:[%s1839_s10] ss:$0 sm:$0xff] }
 0x4a3   :  { %v676_v10 = vmul.f32 %v669_v61, %v663_v4  ;;  %v677_v11 = vmul.f32 %v673_v62, %v664_v7 }
 0x4a5   :  { %v689_v12 = vadd.f32 %v682_v8, %v676_v10  ;;  %v690_v15 = vadd.f32 %v686_v9, %v677_v11 }
 0x4a7   :  { %v691_v16 = vmax.f32 %v689_v12, 0.0  ;;  %v692_v17 = vmax.f32 %v690_v15, 0.0 }
 0x4a9   :  { %v694_v18 = vpack.c.bf16 %v692_v17, %v692_v17  ;;  %v693_v19 = vpack.c.bf16 %v691_v16, %v691_v16 }
 0x4ab   :  { %782 = vmatprep.mubr.bf16.mxu1 %v694_v18 }
 0x4ac   :  { %783 = vmatmul.mubr.bf16.vlgmr.msra.gmra.mxu1 %v693_v19 }
 0x4ad   :  { %1026 = vmatpush3.bf16.msra.mxu1 %v843_v28  ;;  %1041 = vmatprep.mubr.msk.bf16.mxu1 %vm1090_vm1, %v1089_v23 }
 0x4ae   :  { %1027 = vmatprep.subr.bf16.mxu1 %v1089_v23 }
 0x4b1   :  { %1028 = vmatpush3.bf16.msra.mxu1 %v842_v34 }
 0x4b2   :  { %1029 = vmatprep.subr.bf16.mxu1 %v1089_v23 }
 0x4b5   :  { %1030 = vmatpush3.bf16.msra.mxu1 %v841_v35 }
 0x4b6   :  { %1031 = vmatprep.subr.bf16.mxu1 %v1089_v23 }
 0x4b9   :  { %1032 = vmatpush3.bf16.msra.mxu1 %v840_v53 }
 0x4ba   :  { %1033 = vmatprep.subr.bf16.mxu1 %v1089_v23 }
 0x4bd   :  { %1034 = vmatpush3.bf16.msra.mxu1 %v839_v38 }
 0x4be   :  { %1035 = vmatprep.subr.bf16.mxu1 %v1089_v23 }
 0x4c1   :  { %1036 = vmatpush3.bf16.msra.mxu1 %v838_v54 }
 0x4c2   :  { %1037 = vmatprep.subr.bf16.mxu1 %v1089_v23 }
 0x4c5   :  { %1038 = vmatpush3.bf16.msra.mxu1 %v837_v63 }
 0x4c6   :  { %1039 = vmatprep.subr.bf16.mxu1 %v1089_v23 }
 0x4c9   :  { %1040 = vmatpush3.bf16.msra.mxu1 %v836_v43 }
 0x56c   :  { %v986_v20 = vpop.f32.mrf.mxu1 }
 0x56e   :  { %v987_v21 = vpop.f32.mrf.mxu1 }
 0x56f   :  { %v988_v14 = vadd.f32 %v987_v21, %v986_v20 }
 0x570   :  { %v989_v47 = vpop.f32.mrf.mxu1 }
 0x571   :  { %v785_v22 = vadd.f32 %v988_v14, %v906_v13 }
 0x572   :  { %v990_v48 = vpop.f32.mrf.mxu1 }
 0x573   :  { %792 = vadd.xlane.f32.xlu0 %v785_v22 }
 0x5fc   :  { %v793_v29 = vpop.xlane.xlu0 %792 }
 0x5fd   :  { %v795_v30 = vmul.f32 0.0078125, %v793_v29 }
 0x5ff   :  { %v796_v31 = vsub.f32 %v785_v22, %v795_v30 }
 0x601   :  { %v797_v32 = vmul.f32 %v796_v31, %v796_v31 }
 0x603   :  { %798 = vadd.xlane.f32.xlu0 %v797_v32 }
 0x68c   :  { %v799_v44 = vpop.xlane.xlu0 %798 }
 0x68d   :  { %v800_v0 = vmul.f32 0.0078125, %v799_v44 }
 0x68f   :  { %v801_v45 = vadd.f32 1e-05, %v800_v0 }
 0x691   :  { %1086 = vrsqrt.f32 %v801_v45 }
 0x69e   :  { %v1087_v60 = vpop.eup %1086 }
 0x69f   :  { %v803_v1 = vmul.f32 %v1087_v60, %v796_v31 }
 0x6a1   :  { %v810_v5 = vmul.f32 %v907_v46, %v803_v1 }
 0x6a3   :  { %v817_v6 = vadd.f32 %v908_v2, %v810_v5 }
 0x6a5   :  { %v818_v49 = vmax.f32 %v817_v6, 0.0 }
 0x6a7   :  { %v819_v50 = vpack.c.bf16 %v818_v49, %v818_v49 }
 0x6a9   :  { %1042 = vmatmul.mubr.bf16.vlgmr.msra.gmra.mxu1 %v819_v50 }
 0x769   :  { %v885_v56 = vpop.f32.mrf.mxu1 }
 0x76a   :  { %v886_v61 = vadd.f32 %v909_v55, %v885_v56 }
 0x76b   :  { %v1043_v62 = vpop.f32.mrf.mxu1 }
 0x76c   :  { %891 = vst [vmem:[%s1844_s15] sm:$0xff] %v886_v61 }
 0x76d   :  { %v888_v3 = vpop.f32.mrf.mxu1 }
 0x76f   :  { %v1044_v4 = vpop.f32.mrf.mxu1 }

// kernel: _lambda_.3
= control target key start
LH: loop header
LB: loop body
LE: loop exit
PB: predicated region body
PF: predicated region fallthrough
CT: control target
= control target key end

     0   :  { %12 = vsyncpa [#allocation5], 0  ;;  %s4407_s0 = inlined_call_operand.vmem [shape: f32[8,8,128], index: 0, kind: input, shape index: {}]   ;;  %s4408_s1 = inlined_call_operand.hbm [shape: f32[128,512], index: 1, kind: input, shape index: {}]   ;;  %s4409_s2 = inlined_call_operand.hbm [shape: f32[128,512], index: 2, kind: input, shape index: {}]   ;;  %s4410_s3 = inlined_call_operand.vmem [shape: f32[1,512], index: 3, kind: input, shape index: {}]   ;;  %s4411_s4 = inlined_call_operand.hbm [shape: f32[128,512], index: 4, kind: input, shape index: {}]   ;;  %s4412_s5 = inlined_call_operand.hbm [shape: f32[128,512], index: 5, kind: input, shape index: {}]   ;;  %s4413_s6 = inlined_call_operand.vmem [shape: f32[1,512], index: 6, kind: input, shape index: {}]   ;;  %s4414_s7 = inlined_call_operand.vmem [shape: f32[8,8,256], index: 7, kind: output, shape index: {}]  }
   0x1   :  { %13 = vsyncpa [#allocation7], 0 }
   0x2   :  { %14 = vsyncpa [#allocation10], 0  ;;  %s3204_s24 = smov [#allocation6]   ;;  %s3205_s26 = smov [#allocation4]  }
   0x3   :  { %s34_s25 = sshll.u32 %s3204_s24, 4  ;;  %s22_s27 = sshll.u32 %s3205_s26, 4  ;;  %s35_s25 = int_to_ptr.vmem [resolvable:$true] %s34_s25  ;;  %s23_s27 = int_to_ptr.vmem [resolvable:$true] %s22_s27 }
   0x4   :  { %s3126_s28 = scalar_lea.vmem %s35_s25, 8192  ;;  %p3131_p1 = scmp.lt.s32.totalorder %s35_s25, %s35_s25 }
   0x5   :  { %p3127_p0 = scmp.ne.s32.totalorder %s35_s25, %s3126_s28  ;;  %p3132_p2 = scmp.lt.s32.totalorder %s3126_s28, %s3126_s28 }
   0x7   :  { %p3133_p3 = por %p3132_p2, %p3131_p1 }
   0x9   :  { %p3134_p4 = pnand %p3133_p3, %p3127_p0 }
   0xb   :  { %3137 = shalt.err (!%p3134_p4)
}
   0xc   :  { %s3206_s29 = smov 512   ;;  %s3207_s30 = smov 32  }
   0xd   :  { %40 = dma.hbm_to_vmem [thread:$0]  %s4409_s2, 8192, %s35_s25, [#allocation7], %s3206_s29, %s3206_s29, %s3207_s30  }
   0xe   :  { %s3146_s10 = scalar_lea.vmem %s23_s27, 8192  ;;  %p3151_p6 = scmp.lt.s32.totalorder %s23_s27, %s23_s27 }
   0xf   :  { %p3147_p5 = scmp.ne.s32.totalorder %s23_s27, %s3146_s10  ;;  %p3152_p7 = scmp.lt.s32.totalorder %s3146_s10, %s3146_s10 }
  0x11   :  { %p3153_p8 = por %p3152_p7, %p3151_p6 }
  0x13   :  { %p3154_p9 = pnand %p3153_p8, %p3147_p5 }
  0x15   :  { %3157 = shalt.err (!%p3154_p9)
}
  0x16   :  { %28 = dma.hbm_to_vmem [thread:$0]  %s4408_s1, 8192, %s23_s27, [#allocation5], %s3206_s29, %s3206_s29, %s3207_s30  }
  0x17   :  { %s3208_s13 = smov [#allocation8]   ;;  %s3209_s15 = smov [#allocation9]  }
  0x18   :  { %s48_s14 = sshll.u32 %s3208_s13, 4  ;;  %s60_s16 = sshll.u32 %s3209_s15, 4  ;;  %s49_s14 = int_to_ptr.vmem [resolvable:$true] %s48_s14  ;;  %s61_s16 = int_to_ptr.vmem [resolvable:$true] %s60_s16 }
  0x19   :  { %s3166_s2 = scalar_lea.vmem %s49_s14, 8192  ;;  %p3171_p11 = scmp.lt.s32.totalorder %s49_s14, %s49_s14 }
  0x1a   :  { %p3167_p10 = scmp.ne.s32.totalorder %s49_s14, %s3166_s2  ;;  %p3172_p12 = scmp.lt.s32.totalorder %s3166_s2, %s3166_s2 }
  0x1c   :  { %p3173_p13 = por %p3172_p12, %p3171_p11 }
  0x1e   :  { %p3174_p0 = pnand %p3173_p13, %p3167_p10 }
  0x20   :  { %3177 = shalt.err (!%p3174_p0)
}
  0x21   :  { %54 = dma.hbm_to_vmem [thread:$0]  %s4411_s4, 8192, %s49_s14, [#allocation7], %s3206_s29, %s3206_s29, %s3207_s30  }
  0x22   :  { %s3186_s1 = scalar_lea.vmem %s61_s16, 8192  ;;  %p3191_p2 = scmp.lt.s32.totalorder %s61_s16, %s61_s16 }
  0x23   :  { %p3187_p1 = scmp.ne.s32.totalorder %s61_s16, %s3186_s1  ;;  %p3192_p3 = scmp.lt.s32.totalorder %s3186_s1, %s3186_s1 }
  0x25   :  { %p3193_p4 = por %p3192_p3, %p3191_p2 }
  0x27   :  { %p3194_p5 = pnand %p3193_p4, %p3187_p1 }
  0x29   :  { %3197 = shalt.err (!%p3194_p5)
}
  0x2a   :  { %66 = dma.hbm_to_vmem [thread:$0]  %s4412_s5, 8192, %s61_s16, [#allocation10], %s3206_s29, %s3206_s29, %s3207_s30  }
  0x2b   :  { %3198 = dma.done.wait [#allocation5], 8192  }
  0x2c   :  { %3199 = vsyncadd [#allocation5], 4294959104 }
  0x2d   :  { %3200 = dma.done.wait [#allocation7], 16384  }
  0x2e   :  { %3201 = vsyncadd [#allocation7], 4294950912 }
  0x2f   :  { %3202 = dma.done.wait [#allocation10], 8192  }
  0x30   :  { %3203 = vsyncadd [#allocation10], 4294959104  ;;  %v4415_v0 = vmov 0   ;;  %v139_v1 = vld [vmem:[#allocation4 + $0x1c8] sm:$0xff]  ;;  %v141_v3 = vld [vmem:[#allocation4 + $0x1d8] sm:$0xff] }
  0x31   :  { %535 = vmatprep.mubr.bf16.mxu0 %v4415_v0  ;;  %608 = vmatprep.mubr.bf16.mxu1 %v4415_v0  ;;  %v143_v2 = vld [vmem:[#allocation4 + $0x1e8] sm:$0xff]  ;;  %v145_v5 = vld [vmem:[#allocation4 + $0x1f8] sm:$0xff]  ;;  %v138_v6 = vld [vmem:[#allocation4 + $0x1c0] sm:$0xff] }
  0x32   :  { %v175_v4 = vpack.c.bf16 %v143_v2, %v139_v1  ;;  %v142_v7 = vld [vmem:[#allocation4 + $0x1e0] sm:$0xff]  ;;  %v177_v8 = vpack.c.bf16 %v145_v5, %v141_v3  ;;  %v140_v10 = vld [vmem:[#allocation4 + $0x1d0] sm:$0xff]  ;;  %v131_v12 = vld [vmem:[#allocation4 + $0x188] sm:$0xff] }
  0x33   :  { %v174_v9 = vpack.c.bf16 %v142_v7, %v138_v6  ;;  %v144_v11 = vld [vmem:[#allocation4 + $0x1f0] sm:$0xff]  ;;  %v135_v14 = vld [vmem:[#allocation4 + $0x1a8] sm:$0xff]  ;;  %v133_v15 = vld [vmem:[#allocation4 + $0x198] sm:$0xff] }
  0x34   :  { %503 = vmatprep.subr.bf16.mxu0 %v175_v4  ;;  %v176_v13 = vpack.c.bf16 %v144_v11, %v140_v10  ;;  %v137_v16 = vld [vmem:[#allocation4 + $0x1b8] sm:$0xff]  ;;  %576 = vmatprep.subr.bf16.mxu1 %v177_v8  ;;  %v171_v17 = vpack.c.bf16 %v135_v14, %v131_v12  ;;  %v130_v19 = vld [vmem:[#allocation4 + $0x180] sm:$0xff]  ;;  %v132_v21 = vld [vmem:[#allocation4 + $0x190] sm:$0xff] }
  0x35   :  { %504 = vmatpush1.bf16.msra.mxu0 %v174_v9  ;;  %v173_v18 = vpack.c.bf16 %v137_v16, %v133_v15  ;;  %v134_v20 = vld [vmem:[#allocation4 + $0x1a0] sm:$0xff]  ;;  %v136_v23 = vld [vmem:[#allocation4 + $0x1b0] sm:$0xff]  ;;  %v123_v24 = vld [vmem:[#allocation4 + $0x148] sm:$0xff] }
  0x36   :  { %577 = vmatpush1.bf16.msra.mxu1 %v176_v13  ;;  %v170_v22 = vpack.c.bf16 %v134_v20, %v130_v19  ;;  %v127_v25 = vld [vmem:[#allocation4 + $0x168] sm:$0xff]  ;;  %505 = vmatprep.subr.bf16.mxu0 %v171_v17  ;;  %v172_v26 = vpack.c.bf16 %v136_v23, %v132_v21  ;;  %v125_v28 = vld [vmem:[#allocation4 + $0x158] sm:$0xff]  ;;  %v122_v30 = vld [vmem:[#allocation4 + $0x140] sm:$0xff] }
  0x37   :  { %578 = vmatprep.subr.bf16.mxu1 %v173_v18  ;;  %v167_v27 = vpack.c.bf16 %v127_v25, %v123_v24  ;;  %v129_v29 = vld [vmem:[#allocation4 + $0x178] sm:$0xff]  ;;  %v126_v32 = vld [vmem:[#allocation4 + $0x160] sm:$0xff]  ;;  %v124_v33 = vld [vmem:[#allocation4 + $0x150] sm:$0xff] }
  0x38   :  { %v169_v31 = vpack.c.bf16 %v129_v29, %v125_v28  ;;  %v128_v34 = vld [vmem:[#allocation4 + $0x170] sm:$0xff]  ;;  %v166_v35 = vpack.c.bf16 %v126_v32, %v122_v30  ;;  %v115_v36 = vld [vmem:[#allocation4 + $0x108] sm:$0xff]  ;;  %v117_v38 = vld [vmem:[#allocation4 + $0x118] sm:$0xff] }
  0x39   :  { %506 = vmatpush1.bf16.msra.mxu0 %v170_v22  ;;  %v119_v37 = vld [vmem:[#allocation4 + $0x128] sm:$0xff]  ;;  %v168_v39 = vpack.c.bf16 %v128_v34, %v124_v33  ;;  %v121_v41 = vld [vmem:[#allocation4 + $0x138] sm:$0xff]  ;;  %v114_v42 = vld [vmem:[#allocation4 + $0x100] sm:$0xff] }
  0x3a   :  { %579 = vmatpush1.bf16.msra.mxu1 %v172_v26  ;;  %507 = vmatprep.subr.bf16.mxu0 %v167_v27  ;;  %v163_v40 = vpack.c.bf16 %v119_v37, %v115_v36  ;;  %v118_v43 = vld [vmem:[#allocation4 + $0x120] sm:$0xff]  ;;  %v165_v44 = vpack.c.bf16 %v121_v41, %v117_v38  ;;  %v116_v45 = vld [vmem:[#allocation4 + $0x110] sm:$0xff]  ;;  %v107_v47 = vld [vmem:[#allocation4 + $0xc8] sm:$0xff] }
  0x3b   :  { %580 = vmatprep.subr.bf16.mxu1 %v169_v31  ;;  %v120_v46 = vld [vmem:[#allocation4 + $0x130] sm:$0xff]  ;;  %v111_v48 = vld [vmem:[#allocation4 + $0xe8] sm:$0xff]  ;;  %v109_v49 = vld [vmem:[#allocation4 + $0xd8] sm:$0xff]  ;;  %v162_v51 = vpack.c.bf16 %v118_v43, %v114_v42 }
  0x3c   :  { %v113_v50 = vld [vmem:[#allocation4 + $0xf8] sm:$0xff]  ;;  %v164_v52 = vpack.c.bf16 %v120_v46, %v116_v45  ;;  %v159_v53 = vpack.c.bf16 %v111_v48, %v107_v47  ;;  %v106_v54 = vld [vmem:[#allocation4 + $0xc0] sm:$0xff]  ;;  %v108_v56 = vld [vmem:[#allocation4 + $0xd0] sm:$0xff] }
  0x3d   :  { %508 = vmatpush1.bf16.msra.mxu0 %v166_v35  ;;  %v110_v55 = vld [vmem:[#allocation4 + $0xe0] sm:$0xff]  ;;  %v161_v57 = vpack.c.bf16 %v113_v50, %v109_v49  ;;  %v112_v58 = vld [vmem:[#allocation4 + $0xf0] sm:$0xff]  ;;  %v99_v59 = vld [vmem:[#allocation4 + $0x88] sm:$0xff] }
  0x3e   :  { %581 = vmatpush1.bf16.msra.mxu1 %v168_v39  ;;  %509 = vmatprep.subr.bf16.mxu0 %v163_v40  ;;  %v103_v60 = vld [vmem:[#allocation4 + $0xa8] sm:$0xff]  ;;  %v101_v61 = vld [vmem:[#allocation4 + $0x98] sm:$0xff]  ;;  %v158_v63 = vpack.c.bf16 %v110_v55, %v106_v54  ;;  %v160_v1 = vpack.c.bf16 %v112_v58, %v108_v56  ;;  %v98_v3 = vld [vmem:[#allocation4 + $0x80] sm:$0xff] }
  0x3f   :  { %582 = vmatprep.subr.bf16.mxu1 %v165_v44  ;;  %v105_v62 = vld [vmem:[#allocation4 + $0xb8] sm:$0xff]  ;;  %v155_v2 = vpack.c.bf16 %v103_v60, %v99_v59  ;;  %v102_v4 = vld [vmem:[#allocation4 + $0xa0] sm:$0xff]  ;;  %v100_v5 = vld [vmem:[#allocation4 + $0x90] sm:$0xff] }
  0x40   :  { %v157_v6 = vpack.c.bf16 %v105_v62, %v101_v61  ;;  %v104_v7 = vld [vmem:[#allocation4 + $0xb0] sm:$0xff]  ;;  %v91_v8 = vld [vmem:[#allocation4 + $0x48] sm:$0xff]  ;;  %v93_v10 = vld [vmem:[#allocation4 + $0x58] sm:$0xff]  ;;  %v154_v12 = vpack.c.bf16 %v102_v4, %v98_v3 }
  0x41   :  { %510 = vmatpush1.bf16.msra.mxu0 %v162_v51  ;;  %v95_v9 = vld [vmem:[#allocation4 + $0x68] sm:$0xff]  ;;  %v97_v11 = vld [vmem:[#allocation4 + $0x78] sm:$0xff]  ;;  %v156_v13 = vpack.c.bf16 %v104_v7, %v100_v5  ;;  %v90_v15 = vld [vmem:[#allocation4 + $0x40] sm:$0xff] }
  0x42   :  { %583 = vmatpush1.bf16.msra.mxu1 %v164_v52  ;;  %511 = vmatprep.subr.bf16.mxu0 %v159_v53  ;;  %v151_v14 = vpack.c.bf16 %v95_v9, %v91_v8  ;;  %v94_v16 = vld [vmem:[#allocation4 + $0x60] sm:$0xff]  ;;  %v92_v17 = vld [vmem:[#allocation4 + $0x50] sm:$0xff]  ;;  %v153_v18 = vpack.c.bf16 %v97_v11, %v93_v10  ;;  %v83_v20 = vld [vmem:[#allocation4 + $0x8] sm:$0xff] }
  0x43   :  { %584 = vmatprep.subr.bf16.mxu1 %v161_v57  ;;  %v96_v19 = vld [vmem:[#allocation4 + $0x70] sm:$0xff]  ;;  %v87_v21 = vld [vmem:[#allocation4 + $0x28] sm:$0xff]  ;;  %v85_v22 = vld [vmem:[#allocation4 + $0x18] sm:$0xff]  ;;  %v150_v24 = vpack.c.bf16 %v94_v16, %v90_v15 }
  0x44   :  { %v89_v23 = vld [vmem:[#allocation4 + $0x38] sm:$0xff]  ;;  %v152_v25 = vpack.c.bf16 %v96_v19, %v92_v17  ;;  %v147_v26 = vpack.c.bf16 %v87_v21, %v83_v20  ;;  %v82_v27 = vld [vmem:[#allocation4] sm:$0xff]  ;;  %v84_v29 = vld [vmem:[#allocation4 + $0x10] sm:$0xff] }
  0x45   :  { %512 = vmatpush1.bf16.msra.mxu0 %v158_v63  ;;  %v86_v28 = vld [vmem:[#allocation4 + $0x20] sm:$0xff]  ;;  %v149_v30 = vpack.c.bf16 %v89_v23, %v85_v22  ;;  %v88_v31 = vld [vmem:[#allocation4 + $0x30] sm:$0xff]  ;;  %v235_v32 = vld [vmem:[#allocation8 + $0x1c8] sm:$0xff] }
  0x46   :  { %585 = vmatpush1.bf16.msra.mxu1 %v160_v1  ;;  %513 = vmatprep.subr.bf16.mxu0 %v155_v2  ;;  %v239_v33 = vld [vmem:[#allocation8 + $0x1e8] sm:$0xff]  ;;  %v237_v34 = vld [vmem:[#allocation8 + $0x1d8] sm:$0xff]  ;;  %v146_v36 = vpack.c.bf16 %v86_v28, %v82_v27  ;;  %v470_v37 = vld [vmem:[%s4407_s0] sm:$0xff]  ;;  %v148_v39 = vpack.c.bf16 %v88_v31, %v84_v29 }
  0x47   :  { %586 = vmatprep.subr.bf16.mxu1 %v157_v6  ;;  %v241_v35 = vld [vmem:[#allocation8 + $0x1f8] sm:$0xff]  ;;  %v471_v38 = vld [vmem:[%s4407_s0 + $0x8] sm:$0xff]  ;;  %v271_v40 = vpack.c.bf16 %v239_v33, %v235_v32  ;;  %v234_v41 = vld [vmem:[#allocation8 + $0x1c0] sm:$0xff] }
  0x48   :  { %v238_v42 = vld [vmem:[#allocation8 + $0x1e0] sm:$0xff]  ;;  %v236_v43 = vld [vmem:[#allocation8 + $0x1d0] sm:$0xff]  ;;  %v273_v44 = vpack.c.bf16 %v241_v35, %v237_v34  ;;  %v227_v46 = vld [vmem:[#allocation8 + $0x188] sm:$0xff]  ;;  %v3283_v48 = vpack.c.bf16 %v471_v38, %v470_v37 }
  0x49   :  { %514 = vmatpush1.bf16.msra.mxu0 %v154_v12  ;;  %v240_v45 = vld [vmem:[#allocation8 + $0x1f0] sm:$0xff]  ;;  %v231_v47 = vld [vmem:[#allocation8 + $0x1a8] sm:$0xff]  ;;  %v229_v49 = vld [vmem:[#allocation8 + $0x198] sm:$0xff]  ;;  %v270_v51 = vpack.c.bf16 %v238_v42, %v234_v41 }
  0x4a   :  { %587 = vmatpush1.bf16.msra.mxu1 %v156_v13  ;;  %515 = vmatprep.subr.bf16.mxu0 %v151_v14  ;;  %v233_v50 = vld [vmem:[#allocation8 + $0x1b8] sm:$0xff]  ;;  %v272_v52 = vpack.c.bf16 %v240_v45, %v236_v43  ;;  %v267_v53 = vpack.c.bf16 %v231_v47, %v227_v46  ;;  %v226_v54 = vld [vmem:[#allocation8 + $0x180] sm:$0xff]  ;;  %v228_v56 = vld [vmem:[#allocation8 + $0x190] sm:$0xff] }
  0x4b   :  { %588 = vmatprep.subr.bf16.mxu1 %v153_v18  ;;  %v230_v55 = vld [vmem:[#allocation8 + $0x1a0] sm:$0xff]  ;;  %v269_v57 = vpack.c.bf16 %v233_v50, %v229_v49  ;;  %v232_v58 = vld [vmem:[#allocation8 + $0x1b0] sm:$0xff]  ;;  %v219_v59 = vld [vmem:[#allocation8 + $0x148] sm:$0xff] }
  0x4c   :  { %v223_v60 = vld [vmem:[#allocation8 + $0x168] sm:$0xff]  ;;  %v221_v61 = vld [vmem:[#allocation8 + $0x158] sm:$0xff]  ;;  %v266_v63 = vpack.c.bf16 %v230_v55, %v226_v54  ;;  %v472_v1 = vld [vmem:[%s4407_s0 + $0x10] sm:$0xff]  ;;  %v268_v3 = vpack.c.bf16 %v232_v58, %v228_v56 }
  0x4d   :  { %516 = vmatpush1.bf16.msra.mxu0 %v150_v24  ;;  %v225_v62 = vld [vmem:[#allocation8 + $0x178] sm:$0xff]  ;;  %v263_v4 = vpack.c.bf16 %v223_v60, %v219_v59  ;;  %v218_v5 = vld [vmem:[#allocation8 + $0x140] sm:$0xff]  ;;  %v220_v7 = vld [vmem:[#allocation8 + $0x150] sm:$0xff] }
  0x4e   :  { %589 = vmatpush1.bf16.msra.mxu1 %v152_v25  ;;  %517 = vmatprep.subr.bf16.mxu0 %v147_v26  ;;  %v473_v2 = vld [vmem:[%s4407_s0 + $0x18] sm:$0xff]  ;;  %v222_v6 = vld [vmem:[#allocation8 + $0x160] sm:$0xff]  ;;  %v265_v8 = vpack.c.bf16 %v225_v62, %v221_v61  ;;  %v224_v9 = vld [vmem:[#allocation8 + $0x170] sm:$0xff] }
  0x4f   :  { %590 = vmatprep.subr.bf16.mxu1 %v149_v30  ;;  %v211_v10 = vld [vmem:[#allocation8 + $0x108] sm:$0xff]  ;;  %v3295_v12 = vpack.c.bf16 %v473_v2, %v472_v1  ;;  %v213_v13 = vld [vmem:[#allocation8 + $0x118] sm:$0xff]  ;;  %v262_v15 = vpack.c.bf16 %v222_v6, %v218_v5  ;;  %v264_v16 = vpack.c.bf16 %v224_v9, %v220_v7  ;;  %v210_v18 = vld [vmem:[#allocation8 + $0x100] sm:$0xff] }
  0x50   :  { %v215_v11 = vld [vmem:[#allocation8 + $0x128] sm:$0xff]  ;;  %v217_v14 = vld [vmem:[#allocation8 + $0x138] sm:$0xff]  ;;  %v214_v19 = vld [vmem:[#allocation8 + $0x120] sm:$0xff] }
  0x51   :  { %518 = vmatpush1.bf16.msra.mxu0 %v146_v36  ;;  %v259_v17 = vpack.c.bf16 %v215_v11, %v211_v10  ;;  %v212_v20 = vld [vmem:[#allocation8 + $0x110] sm:$0xff]  ;;  %v261_v21 = vpack.c.bf16 %v217_v14, %v213_v13  ;;  %v203_v23 = vld [vmem:[#allocation8 + $0xc8] sm:$0xff]  ;;  %v205_v25 = vld [vmem:[#allocation8 + $0xd8] sm:$0xff]  ;;  %v258_v27 = vpack.c.bf16 %v214_v19, %v210_v18 }
  0x52   :  { %591 = vmatpush1.bf16.msra.mxu1 %v148_v39  ;;  %702 = vmatprep.subr.bf16.mxu0 %v271_v40  ;;  %v216_v22 = vld [vmem:[#allocation8 + $0x130] sm:$0xff]  ;;  %v207_v24 = vld [vmem:[#allocation8 + $0xe8] sm:$0xff]  ;;  %v209_v26 = vld [vmem:[#allocation8 + $0xf8] sm:$0xff] }
  0x53   :  { %775 = vmatprep.subr.bf16.mxu1 %v273_v44  ;;  %v474_v28 = vld [vmem:[%s4407_s0 + $0x20] sm:$0xff]  ;;  %v475_v29 = vld [vmem:[%s4407_s0 + $0x28] sm:$0xff]  ;;  %v260_v30 = vpack.c.bf16 %v216_v22, %v212_v20  ;;  %v255_v31 = vpack.c.bf16 %v207_v24, %v203_v23  ;;  %v204_v34 = vld [vmem:[#allocation8 + $0xd0] sm:$0xff]  ;;  %v257_v35 = vpack.c.bf16 %v209_v26, %v205_v25 }
  0x54   :  { %536 = vmatmul.mubr.bf16.vlgmr.msra.gmra.mxu0 %v3283_v48  ;;  %v202_v32 = vld [vmem:[#allocation8 + $0xc0] sm:$0xff]  ;;  %v208_v36 = vld [vmem:[#allocation8 + $0xf0] sm:$0xff]  ;;  %v195_v37 = vld [vmem:[#allocation8 + $0x88] sm:$0xff]  ;;  %v3307_v39 = vpack.c.bf16 %v475_v29, %v474_v28 }
  0x55   :  { %609 = vmatmul.mubr.bf16.vlgmr.msra.gmra.mxu1 %v3283_v48  ;;  %703 = vmatpush1.bf16.msra.mxu0 %v270_v51  ;;  %v206_v33 = vld [vmem:[#allocation8 + $0xe0] sm:$0xff]  ;;  %v199_v38 = vld [vmem:[#allocation8 + $0xa8] sm:$0xff]  ;;  %v197_v40 = vld [vmem:[#allocation8 + $0x98] sm:$0xff]  ;;  %v256_v43 = vpack.c.bf16 %v208_v36, %v204_v34 }
  0x56   :  { %776 = vmatpush1.bf16.msra.mxu1 %v272_v52  ;;  %704 = vmatprep.subr.bf16.mxu0 %v267_v53  ;;  %v201_v41 = vld [vmem:[#allocation8 + $0xb8] sm:$0xff]  ;;  %v254_v42 = vpack.c.bf16 %v206_v33, %v202_v32  ;;  %v251_v44 = vpack.c.bf16 %v199_v38, %v195_v37  ;;  %v194_v45 = vld [vmem:[#allocation8 + $0x80] sm:$0xff]  ;;  %v196_v47 = vld [vmem:[#allocation8 + $0x90] sm:$0xff] }
  0x57   :  { %777 = vmatprep.subr.bf16.mxu1 %v269_v57  ;;  %545 = vmatprep.mubr.bf16.mxu0 %v4415_v0  ;;  %v198_v46 = vld [vmem:[#allocation8 + $0xa0] sm:$0xff]  ;;  %v253_v49 = vpack.c.bf16 %v201_v41, %v197_v40  ;;  %v200_v50 = vld [vmem:[#allocation8 + $0xb0] sm:$0xff]  ;;  %v187_v51 = vld [vmem:[#allocation8 + $0x48] sm:$0xff] }
  0x58   :  { %618 = vmatprep.mubr.bf16.mxu1 %v4415_v0  ;;  %v191_v52 = vld [vmem:[#allocation8 + $0x68] sm:$0xff]  ;;  %v189_v53 = vld [vmem:[#allocation8 + $0x58] sm:$0xff]  ;;  %v250_v55 = vpack.c.bf16 %v198_v46, %v194_v45  ;;  %v476_v56 = vld [vmem:[%s4407_s0 + $0x30] sm:$0xff]  ;;  %v252_v58 = vpack.c.bf16 %v200_v50, %v196_v47 }
  0x59   :  { %705 = vmatpush1.bf16.msra.mxu0 %v266_v63  ;;  %v193_v54 = vld [vmem:[#allocation8 + $0x78] sm:$0xff]  ;;  %v247_v59 = vpack.c.bf16 %v191_v52, %v187_v51  ;;  %v186_v60 = vld [vmem:[#allocation8 + $0x40] sm:$0xff]  ;;  %v188_v62 = vld [vmem:[#allocation8 + $0x50] sm:$0xff] }
  0x5a   :  { %778 = vmatpush1.bf16.msra.mxu1 %v268_v3  ;;  %706 = vmatprep.subr.bf16.mxu0 %v263_v4  ;;  %v477_v57 = vld [vmem:[%s4407_s0 + $0x38] sm:$0xff]  ;;  %v190_v61 = vld [vmem:[#allocation8 + $0x60] sm:$0xff]  ;;  %v249_v63 = vpack.c.bf16 %v193_v54, %v189_v53  ;;  %v192_v1 = vld [vmem:[#allocation8 + $0x70] sm:$0xff] }
  0x5b   :  { %779 = vmatprep.subr.bf16.mxu1 %v265_v8  ;;  %v179_v2 = vld [vmem:[#allocation8 + $0x8] sm:$0xff]  ;;  %v3319_v4 = vpack.c.bf16 %v477_v57, %v476_v56  ;;  %v181_v5 = vld [vmem:[#allocation8 + $0x18] sm:$0xff]  ;;  %v246_v7 = vpack.c.bf16 %v190_v61, %v186_v60  ;;  %v248_v8 = vpack.c.bf16 %v192_v1, %v188_v62  ;;  %v178_v10 = vld [vmem:[#allocation8] sm:$0xff] }
  0x5c   :  { %546 = vmatmul.mubr.bf16.gmra.mxu0 %v3295_v12  ;;  %v183_v3 = vld [vmem:[#allocation8 + $0x28] sm:$0xff]  ;;  %v185_v6 = vld [vmem:[#allocation8 + $0x38] sm:$0xff]  ;;  %v182_v11 = vld [vmem:[#allocation8 + $0x20] sm:$0xff] }
  0x5d   :  { %619 = vmatmul.mubr.bf16.gmra.mxu1 %v3295_v12  ;;  %707 = vmatpush1.bf16.msra.mxu0 %v262_v15  ;;  %v243_v9 = vpack.c.bf16 %v183_v3, %v179_v2  ;;  %v180_v13 = vld [vmem:[#allocation8 + $0x10] sm:$0xff]  ;;  %v245_v14 = vpack.c.bf16 %v185_v6, %v181_v5  ;;  %v333_v18 = vld [vmem:[#allocation6 + $0x1d8] sm:$0xff]  ;;  %v242_v20 = vpack.c.bf16 %v182_v11, %v178_v10  ;;  %v330_v23 = vld [vmem:[#allocation6 + $0x1c0] sm:$0xff] }
  0x5e   :  { %780 = vmatpush1.bf16.msra.mxu1 %v264_v16  ;;  %708 = vmatprep.subr.bf16.mxu0 %v259_v17  ;;  %v184_v15 = vld [vmem:[#allocation8 + $0x30] sm:$0xff]  ;;  %v331_v16 = vld [vmem:[#allocation6 + $0x1c8] sm:$0xff]  ;;  %v337_v19 = vld [vmem:[#allocation6 + $0x1f8] sm:$0xff] }
  0x5f   :  { %781 = vmatprep.subr.bf16.mxu1 %v261_v21  ;;  %555 = vmatprep.mubr.bf16.mxu0 %v4415_v0  ;;  %v335_v17 = vld [vmem:[#allocation6 + $0x1e8] sm:$0xff]  ;;  %v244_v21 = vpack.c.bf16 %v184_v15, %v180_v13  ;;  %v334_v24 = vld [vmem:[#allocation6 + $0x1e0] sm:$0xff]  ;;  %v332_v25 = vld [vmem:[#allocation6 + $0x1d0] sm:$0xff]  ;;  %v3326_v26 = vpack.c.bf16 %v337_v19, %v333_v18 }
  0x60   :  { %628 = vmatprep.mubr.bf16.mxu1 %v4415_v0  ;;  %v3323_v22 = vpack.c.bf16 %v335_v17, %v331_v16  ;;  %v323_v28 = vld [vmem:[#allocation6 + $0x188] sm:$0xff]  ;;  %v3329_v32 = vpack.c.bf16 %v334_v24, %v330_v23  ;;  %v326_v36 = vld [vmem:[#allocation6 + $0x1a0] sm:$0xff]  ;;  %v324_v37 = vld [vmem:[#allocation6 + $0x190] sm:$0xff] }
  0x61   :  { %709 = vmatpush1.bf16.msra.mxu0 %v258_v27  ;;  %v336_v27 = vld [vmem:[#allocation6 + $0x1f0] sm:$0xff]  ;;  %v327_v29 = vld [vmem:[#allocation6 + $0x1a8] sm:$0xff]  ;;  %v318_v50 = vld [vmem:[#allocation6 + $0x160] sm:$0xff] }
  0x62   :  { %782 = vmatpush1.bf16.msra.mxu1 %v260_v30  ;;  %710 = vmatprep.subr.bf16.mxu0 %v255_v31  ;;  %v325_v30 = vld [vmem:[#allocation6 + $0x198] sm:$0xff]  ;;  %v3332_v33 = vpack.c.bf16 %v336_v27, %v332_v25  ;;  %v3334_v34 = vpack.c.bf16 %v327_v29, %v323_v28  ;;  %v328_v40 = vld [vmem:[#allocation6 + $0x1b0] sm:$0xff]  ;;  %v315_v41 = vld [vmem:[#allocation6 + $0x148] sm:$0xff] }
  0x63   :  { %783 = vmatprep.subr.bf16.mxu1 %v257_v35  ;;  %v329_v31 = vld [vmem:[#allocation6 + $0x1b8] sm:$0xff]  ;;  %v322_v35 = vld [vmem:[#allocation6 + $0x180] sm:$0xff]  ;;  %v3346_v46 = vpack.c.bf16 %v328_v40, %v324_v37  ;;  %v316_v51 = vld [vmem:[#allocation6 + $0x150] sm:$0xff] }
  0x64   :  { %556 = vmatmul.mubr.bf16.gmra.mxu0 %v3307_v39  ;;  %v3337_v38 = vpack.c.bf16 %v329_v31, %v325_v30  ;;  %v3342_v45 = vpack.c.bf16 %v326_v36, %v322_v35  ;;  %v320_v52 = vld [vmem:[#allocation6 + $0x170] sm:$0xff]  ;;  %v307_v53 = vld [vmem:[#allocation6 + $0x108] sm:$0xff]  ;;  %v313_v56 = vld [vmem:[#allocation6 + $0x138] sm:$0xff] }
  0x65   :  { %629 = vmatmul.mubr.bf16.gmra.mxu1 %v3307_v39  ;;  %711 = vmatpush1.bf16.msra.mxu0 %v254_v42  ;;  %v319_v42 = vld [vmem:[#allocation6 + $0x168] sm:$0xff]  ;;  %v306_v60 = vld [vmem:[#allocation6 + $0x100] sm:$0xff]  ;;  %v308_v62 = vld [vmem:[#allocation6 + $0x110] sm:$0xff] }
  0x66   :  { %784 = vmatpush1.bf16.msra.mxu1 %v256_v43  ;;  %712 = vmatprep.subr.bf16.mxu0 %v251_v44  ;;  %v317_v43 = vld [vmem:[#allocation6 + $0x158] sm:$0xff]  ;;  %v3348_v47 = vpack.c.bf16 %v319_v42, %v315_v41  ;;  %v311_v54 = vld [vmem:[#allocation6 + $0x128] sm:$0xff]  ;;  %v310_v61 = vld [vmem:[#allocation6 + $0x120] sm:$0xff] }
  0x67   :  { %785 = vmatprep.subr.bf16.mxu1 %v253_v49  ;;  %565 = vmatprep.mubr.bf16.mxu0 %v4415_v0  ;;  %v321_v44 = vld [vmem:[#allocation6 + $0x178] sm:$0xff]  ;;  %v314_v49 = vld [vmem:[#allocation6 + $0x140] sm:$0xff]  ;;  %v312_v1 = vld [vmem:[#allocation6 + $0x130] sm:$0xff] }
  0x68   :  { %638 = vmatprep.mubr.bf16.mxu1 %v4415_v0  ;;  %v3356_v57 = vpack.c.bf16 %v318_v50, %v314_v49  ;;  %v299_v2 = vld [vmem:[#allocation6 + $0xc8] sm:$0xff]  ;;  %v301_v5 = vld [vmem:[#allocation6 + $0xd8] sm:$0xff]  ;;  %v298_v10 = vld [vmem:[#allocation6 + $0xc0] sm:$0xff] }
  0x69   :  { %713 = vmatpush1.bf16.msra.mxu0 %v250_v55  ;;  %v309_v55 = vld [vmem:[#allocation6 + $0x118] sm:$0xff]  ;;  %v303_v3 = vld [vmem:[#allocation6 + $0xe8] sm:$0xff]  ;;  %v302_v11 = vld [vmem:[#allocation6 + $0xe0] sm:$0xff] }
  0x6a   :  { %786 = vmatpush1.bf16.msra.mxu1 %v252_v58  ;;  %714 = vmatprep.subr.bf16.mxu0 %v247_v59  ;;  %4492 = vst [vmem:[#allocation15_spill] sm:$0xff] %v3356_v57  ;;  %v3360_v58 = vpack.c.bf16 %v320_v52, %v316_v51  ;;  %v3362_v59 = vpack.c.bf16 %v311_v54, %v307_v53  ;;  %v305_v6 = vld [vmem:[#allocation6 + $0xf8] sm:$0xff]  ;;  %v300_v13 = vld [vmem:[#allocation6 + $0xd0] sm:$0xff]  ;;  %v291_v15 = vld [vmem:[#allocation6 + $0x88] sm:$0xff] }
  0x6b   :  { %787 = vmatprep.subr.bf16.mxu1 %v249_v63  ;;  %v3365_v63 = vpack.c.bf16 %v313_v56, %v309_v55  ;;  %v295_v16 = vld [vmem:[#allocation6 + $0xa8] sm:$0xff]  ;;  %v293_v17 = vld [vmem:[#allocation6 + $0x98] sm:$0xff]  ;;  %v3384_v19 = vpack.c.bf16 %v302_v11, %v298_v10  ;;  %v290_v23 = vld [vmem:[#allocation6 + $0x80] sm:$0xff] }
  0x6c   :  { %566 = vmatmul.mubr.bf16.gmra.mxu0 %v3319_v4  ;;  %4493 = vst [vmem:[#allocation16_spill] sm:$0xff] %v3360_v58  ;;  %4494 = vst [vmem:[#allocation17_spill] sm:$0xff] %v3362_v59  ;;  %v297_v18 = vld [vmem:[#allocation6 + $0xb8] sm:$0xff]  ;;  %v294_v24 = vld [vmem:[#allocation6 + $0xa0] sm:$0xff] }
  0x6d   :  { %639 = vmatmul.mubr.bf16.gmra.mxu1 %v3319_v4  ;;  %715 = vmatpush1.bf16.msra.mxu0 %v246_v7  ;;  %4495 = vst [vmem:[#allocation18_spill] sm:$0xff] %v3365_v63  ;;  %v3370_v7 = vpack.c.bf16 %v310_v61, %v306_v60  ;;  %4500 = vst [vmem:[#allocation23_spill] sm:$0xff] %v3384_v19  ;;  %v292_v25 = vld [vmem:[#allocation6 + $0x90] sm:$0xff]  ;;  %v3393_v27 = vpack.c.bf16 %v297_v18, %v293_v17  ;;  %v283_v29 = vld [vmem:[#allocation6 + $0x48] sm:$0xff] }
  0x6e   :  { %788 = vmatpush1.bf16.msra.mxu1 %v248_v8  ;;  %716 = vmatprep.subr.bf16.mxu0 %v243_v9  ;;  %v3374_v8 = vpack.c.bf16 %v312_v1, %v308_v62  ;;  %v3376_v9 = vpack.c.bf16 %v303_v3, %v299_v2  ;;  %v296_v28 = vld [vmem:[#allocation6 + $0xb0] sm:$0xff]  ;;  %v287_v30 = vld [vmem:[#allocation6 + $0x68] sm:$0xff]  ;;  %v285_v31 = vld [vmem:[#allocation6 + $0x58] sm:$0xff]  ;;  %v3398_v36 = vpack.c.bf16 %v294_v24, %v290_v23 }
  0x6f   :  { %789 = vmatprep.subr.bf16.mxu1 %v245_v14  ;;  %734 = vmatprep.mubr.bf16.mxu0 %v4415_v0  ;;  %4496 = vst [vmem:[#allocation19_spill] sm:$0xff] %v3370_v7  ;;  %v304_v14 = vld [vmem:[#allocation6 + $0xf0] sm:$0xff]  ;;  %4503 = vst [vmem:[#allocation26_spill] sm:$0xff] %v3393_v27  ;;  %v289_v35 = vld [vmem:[#allocation6 + $0x78] sm:$0xff]  ;;  %v3402_v37 = vpack.c.bf16 %v296_v28, %v292_v25  ;;  %v3404_v40 = vpack.c.bf16 %v287_v30, %v283_v29 }
  0x70   :  { %807 = vmatprep.mubr.bf16.mxu1 %v4415_v0  ;;  %4497 = vst [vmem:[#allocation20_spill] sm:$0xff] %v3374_v8  ;;  %4498 = vst [vmem:[#allocation21_spill] sm:$0xff] %v3376_v9  ;;  %v282_v41 = vld [vmem:[#allocation6 + $0x40] sm:$0xff]  ;;  %v275_v49 = vld [vmem:[#allocation6 + $0x8] sm:$0xff] }
  0x71   :  { %717 = vmatpush1.bf16.msra.mxu0 %v242_v20  ;;  %v3388_v20 = vpack.c.bf16 %v304_v14, %v300_v13  ;;  %4504 = vst [vmem:[#allocation27_spill] sm:$0xff] %v3398_v36  ;;  %4505 = vst [vmem:[#allocation28_spill] sm:$0xff] %v3402_v37  ;;  %v286_v42 = vld [vmem:[#allocation6 + $0x60] sm:$0xff]  ;;  %v279_v50 = vld [vmem:[#allocation6 + $0x28] sm:$0xff] }
  0x72   :  { %790 = vmatpush1.bf16.msra.mxu1 %v244_v21  ;;  %884 = vmatprep.subr.bf16.mxu0 %v3323_v22  ;;  %v3390_v21 = vpack.c.bf16 %v295_v16, %v291_v15  ;;  %4506 = vst [vmem:[#allocation29_spill] sm:$0xff] %v3404_v40  ;;  %v277_v51 = vld [vmem:[#allocation6 + $0x18] sm:$0xff]  ;;  %v3412_v53 = vpack.c.bf16 %v286_v42, %v282_v41  ;;  %v274_v56 = vld [vmem:[#allocation6] sm:$0xff]  ;;  %v276_v61 = vld [vmem:[#allocation6 + $0x10] sm:$0xff] }
  0x73   :  { %925 = vmatprep.subr.bf16.mxu1 %v3326_v26  ;;  %4501 = vst [vmem:[#allocation24_spill] sm:$0xff] %v3388_v20  ;;  %v281_v52 = vld [vmem:[#allocation6 + $0x38] sm:$0xff]  ;;  %v3418_v55 = vpack.c.bf16 %v279_v50, %v275_v49  ;;  %v278_v60 = vld [vmem:[#allocation6 + $0x20] sm:$0xff]  ;;  %v280_v1 = vld [vmem:[#allocation6 + $0x30] sm:$0xff] }
  0x74   :  { %735 = vmatmul.mubr.bf16.vlgmr.msra.gmra.mxu0 %v3283_v48  ;;  %4502 = vst [vmem:[#allocation25_spill] sm:$0xff] %v3390_v21  ;;  %4508 = vst [vmem:[#allocation31_spill] sm:$0xff] %v3412_v53  ;;  %v3421_v62 = vpack.c.bf16 %v281_v52, %v277_v51  ;;  %v427_v2 = vld [vmem:[#allocation9 + $0x1c8] sm:$0xff]  ;;  %v3426_v10 = vpack.c.bf16 %v278_v60, %v274_v56  ;;  %v3430_v11 = vpack.c.bf16 %v280_v1, %v276_v61  ;;  %v426_v14 = vld [vmem:[#allocation9 + $0x1c0] sm:$0xff] }
  0x75   :  { %808 = vmatmul.mubr.bf16.vlgmr.msra.gmra.mxu1 %v3283_v48  ;;  %885 = vmatpush1.bf16.msra.mxu0 %v3329_v32  ;;  %v3352_v48 = vpack.c.bf16 %v321_v44, %v317_v43  ;;  %v284_v43 = vld [vmem:[#allocation6 + $0x50] sm:$0xff]  ;;  %4510 = vst [vmem:[#allocation33_spill] sm:$0xff] %v3418_v55  ;;  %v431_v3 = vld [vmem:[#allocation9 + $0x1e8] sm:$0xff]  ;;  %v430_v15 = vld [vmem:[#allocation9 + $0x1e0] sm:$0xff] }
  0x76   :  { %926 = vmatpush1.bf16.msra.mxu1 %v3332_v33  ;;  %886 = vmatprep.subr.bf16.mxu0 %v3334_v34  ;;  %v288_v44 = vld [vmem:[#allocation6 + $0x70] sm:$0xff]  ;;  %4511 = vst [vmem:[#allocation34_spill] sm:$0xff] %v3421_v62  ;;  %4512 = vst [vmem:[#allocation35_spill] sm:$0xff] %v3426_v10  ;;  %v3432_v13 = vpack.c.bf16 %v431_v3, %v427_v2  ;;  %v419_v18 = vld [vmem:[#allocation9 + $0x188] sm:$0xff]  ;;  %v3440_v28 = vpack.c.bf16 %v430_v15, %v426_v14 }
  0x77   :  { %927 = vmatprep.subr.bf16.mxu1 %v3337_v38  ;;  %744 = vmatprep.mubr.bf16.mxu0 %v4415_v0  ;;  %4491 = vst [vmem:[#allocation14_spill] sm:$0xff] %v3352_v48  ;;  %v3416_v54 = vpack.c.bf16 %v288_v44, %v284_v43  ;;  %4513 = vst [vmem:[#allocation36_spill] sm:$0xff] %v3430_v11  ;;  %v428_v16 = vld [vmem:[#allocation9 + $0x1d0] sm:$0xff]  ;;  %v423_v23 = vld [vmem:[#allocation9 + $0x1a8] sm:$0xff] }
  0x78   :  { %817 = vmatprep.mubr.bf16.mxu1 %v4415_v0  ;;  %4514 = vst [vmem:[#allocation37_spill] sm:$0xff] %v3432_v13  ;;  %v432_v17 = vld [vmem:[#allocation9 + $0x1f0] sm:$0xff]  ;;  %v421_v24 = vld [vmem:[#allocation9 + $0x198] sm:$0xff]  ;;  %v3446_v30 = vpack.c.bf16 %v423_v23, %v419_v18  ;;  %v411_v44 = vld [vmem:[#allocation9 + $0x148] sm:$0xff] }
  0x79   :  { %887 = vmatpush1.bf16.msra.mxu0 %v3342_v45  ;;  %4509 = vst [vmem:[#allocation32_spill] sm:$0xff] %v3416_v54  ;;  %v425_v25 = vld [vmem:[#allocation9 + $0x1b8] sm:$0xff]  ;;  %v3444_v29 = vpack.c.bf16 %v432_v17, %v428_v16  ;;  %v420_v41 = vld [vmem:[#allocation9 + $0x190] sm:$0xff]  ;;  %v415_v49 = vld [vmem:[#allocation9 + $0x168] sm:$0xff] }
  0x7a   :  { %928 = vmatpush1.bf16.msra.mxu1 %v3346_v46  ;;  %888 = vmatprep.subr.bf16.mxu0 %v3348_v47  ;;  %v3449_v42 = vpack.c.bf16 %v425_v25, %v421_v24  ;;  %v424_v43 = vld [vmem:[#allocation9 + $0x1b0] sm:$0xff]  ;;  %v413_v50 = vld [vmem:[#allocation9 + $0x158] sm:$0xff]  ;;  %v3460_v60 = vpack.c.bf16 %v415_v49, %v411_v44  ;;  %v410_v61 = vld [vmem:[#allocation9 + $0x140] sm:$0xff] }
  0x7b   :  { %929 = vmatprep.subr.bf16.mxu1 %v3352_v48  ;;  %v417_v51 = vld [vmem:[#allocation9 + $0x178] sm:$0xff]  ;;  %v3458_v56 = vpack.c.bf16 %v424_v43, %v420_v41  ;;  %v414_v1 = vld [vmem:[#allocation9 + $0x160] sm:$0xff]  ;;  %v412_v2 = vld [vmem:[#allocation9 + $0x150] sm:$0xff] }
  0x7c   :  { %745 = vmatmul.mubr.bf16.gmra.mxu0 %v3295_v12  ;;  %v3463_v3 = vpack.c.bf16 %v417_v51, %v413_v50  ;;  %v407_v14 = vld [vmem:[#allocation9 + $0x128] sm:$0xff]  ;;  %v405_v15 = vld [vmem:[#allocation9 + $0x118] sm:$0xff]  ;;  %v3468_v17 = vpack.c.bf16 %v414_v1, %v410_v61  ;;  %v402_v24 = vld [vmem:[#allocation9 + $0x100] sm:$0xff] }
  0x7d   :  { %818 = vmatmul.mubr.bf16.gmra.mxu1 %v3295_v12  ;;  %889 = vmatpush1.bf16.msra.mxu0 %v3356_v57  ;;  %v3380_v12 = vpack.c.bf16 %v305_v6, %v301_v5  ;;  %v429_v5 = vld [vmem:[#allocation9 + $0x1d8] sm:$0xff]  ;;  %v406_v25 = vld [vmem:[#allocation9 + $0x120] sm:$0xff]  ;;  %v408_v41 = vld [vmem:[#allocation9 + $0x130] sm:$0xff] }
  0x7e   :  { %930 = vmatpush1.bf16.msra.mxu1 %v3360_v58  ;;  %890 = vmatprep.subr.bf16.mxu0 %v3362_v59  ;;  %v433_v6 = vld [vmem:[#allocation9 + $0x1f8] sm:$0xff]  ;;  %v395_v43 = vld [vmem:[#allocation9 + $0xc8] sm:$0xff]  ;;  %v3480_v51 = vpack.c.bf16 %v406_v25, %v402_v24 }
  0x7f   :  { %931 = vmatprep.subr.bf16.mxu1 %v3365_v63  ;;  %754 = vmatprep.mubr.bf16.mxu0 %v4415_v0  ;;  %4499 = vst [vmem:[#allocation22_spill] sm:$0xff] %v3380_v12  ;;  %v409_v16 = vld [vmem:[#allocation9 + $0x138] sm:$0xff]  ;;  %v399_v44 = vld [vmem:[#allocation9 + $0xe8] sm:$0xff] }
  0x80   :  { %827 = vmatprep.mubr.bf16.mxu1 %v4415_v0  ;;  %v397_v49 = vld [vmem:[#allocation9 + $0xd8] sm:$0xff]  ;;  %4519 = vst [vmem:[#allocation42_spill] sm:$0xff] %v3480_v51  ;;  %v3486_v1 = vpack.c.bf16 %v399_v44, %v395_v43  ;;  %v386_v43 = vld [vmem:[#allocation9 + $0x80] sm:$0xff] }
  0x81   :  { %891 = vmatpush1.bf16.msra.mxu0 %v3370_v7  ;;  %v401_v50 = vld [vmem:[#allocation9 + $0xf8] sm:$0xff]  ;;  %v390_v44 = vld [vmem:[#allocation9 + $0xa0] sm:$0xff] }
  0x82   :  { %932 = vmatpush1.bf16.msra.mxu1 %v3374_v8  ;;  %892 = vmatprep.subr.bf16.mxu0 %v3376_v9  ;;  %4521 = vst [vmem:[#allocation44_spill] sm:$0xff] %v3486_v1  ;;  %v389_v24 = vld [vmem:[#allocation9 + $0x98] sm:$0xff] }
  0x83   :  { %933 = vmatprep.subr.bf16.mxu1 %v3380_v12  ;;  %v393_v25 = vld [vmem:[#allocation9 + $0xb8] sm:$0xff] }
  0x84   :  { %755 = vmatmul.mubr.bf16.gmra.mxu0 %v3307_v39 }
  0x85   :  { %828 = vmatmul.mubr.bf16.gmra.mxu1 %v3307_v39  ;;  %893 = vmatpush1.bf16.msra.mxu0 %v3384_v19  ;;  %v3408_v39 = vpack.c.bf16 %v289_v35, %v285_v31  ;;  %v418_v31 = vld [vmem:[#allocation9 + $0x180] sm:$0xff] }
  0x86   :  { %934 = vmatpush1.bf16.msra.mxu1 %v3388_v20  ;;  %894 = vmatprep.subr.bf16.mxu0 %v3390_v21  ;;  %v422_v35 = vld [vmem:[#allocation9 + $0x1a0] sm:$0xff] }
  0x87   :  { %935 = vmatprep.subr.bf16.mxu1 %v3393_v27  ;;  %764 = vmatprep.mubr.bf16.mxu0 %v4415_v0  ;;  %4507 = vst [vmem:[#allocation30_spill] sm:$0xff] %v3408_v39  ;;  %v3454_v52 = vpack.c.bf16 %v422_v35, %v418_v31  ;;  %v404_v31 = vld [vmem:[#allocation9 + $0x110] sm:$0xff]  ;;  %v3477_v35 = vpack.c.bf16 %v409_v16, %v405_v15  ;;  %v387_v16 = vld [vmem:[#allocation9 + $0x88] sm:$0xff] }
  0x88   :  { %837 = vmatprep.mubr.bf16.mxu1 %v4415_v0  ;;  %v3484_v61 = vpack.c.bf16 %v408_v41, %v404_v31  ;;  %v400_v15 = vld [vmem:[#allocation9 + $0xf0] sm:$0xff] }
  0x89   :  { %895 = vmatpush1.bf16.msra.mxu0 %v3398_v36  ;;  %4518 = vst [vmem:[#allocation41_spill] sm:$0xff] %v3477_v35 }
  0x8a   :  { %936 = vmatpush1.bf16.msra.mxu1 %v3402_v37  ;;  %896 = vmatprep.subr.bf16.mxu0 %v3404_v40  ;;  %4520 = vst [vmem:[#allocation43_spill] sm:$0xff] %v3484_v61 }
  0x8b   :  { %937 = vmatprep.subr.bf16.mxu1 %v3408_v39 }
  0x8c   :  { %765 = vmatmul.mubr.bf16.gmra.mxu0 %v3319_v4 }
  0x8d   :  { %838 = vmatmul.mubr.bf16.gmra.mxu1 %v3319_v4  ;;  %897 = vmatpush1.bf16.msra.mxu0 %v3412_v53  ;;  %v3436_v4 = vpack.c.bf16 %v433_v6, %v429_v5  ;;  %v416_v5 = vld [vmem:[#allocation9 + $0x170] sm:$0xff]  ;;  %v403_v6 = vld [vmem:[#allocation9 + $0x108] sm:$0xff] }
  0x8e   :  { %938 = vmatpush1.bf16.msra.mxu1 %v3416_v54  ;;  %898 = vmatprep.subr.bf16.mxu0 %v3418_v55  ;;  %v3472_v18 = vpack.c.bf16 %v416_v5, %v412_v2  ;;  %v3474_v23 = vpack.c.bf16 %v407_v14, %v403_v6  ;;  %v394_v2 = vld [vmem:[#allocation9 + $0xc0] sm:$0xff]  ;;  %v396_v6 = vld [vmem:[#allocation9 + $0xd0] sm:$0xff]  ;;  %v3489_v14 = vpack.c.bf16 %v401_v50, %v397_v49 }
  0x8f   :  { %939 = vmatprep.subr.bf16.mxu1 %v3421_v62  ;;  %916 = vmatprep.mubr.bf16.mxu0 %v4415_v0  ;;  %4515 = vst [vmem:[#allocation38_spill] sm:$0xff] %v3436_v4  ;;  %v398_v5 = vld [vmem:[#allocation9 + $0xe0] sm:$0xff]  ;;  %v3496_v31 = vpack.c.bf16 %v400_v15, %v396_v6  ;;  %v388_v49 = vld [vmem:[#allocation9 + $0x90] sm:$0xff]  ;;  %v3501_v50 = vpack.c.bf16 %v393_v25, %v389_v24 }
  0x90   :  { %957 = vmatprep.mubr.bf16.mxu1 %v4415_v0  ;;  %4516 = vst [vmem:[#allocation39_spill] sm:$0xff] %v3472_v18  ;;  %4517 = vst [vmem:[#allocation40_spill] sm:$0xff] %v3474_v23  ;;  %v378_v15 = vld [vmem:[#allocation9 + $0x40] sm:$0xff]  ;;  %v380_v24 = vld [vmem:[#allocation9 + $0x50] sm:$0xff] }
  0x91   :  { %899 = vmatpush1.bf16.msra.mxu0 %v3426_v10  ;;  %4522 = vst [vmem:[#allocation45_spill] sm:$0xff] %v3489_v14  ;;  %4524 = vst [vmem:[#allocation47_spill] sm:$0xff] %v3496_v31 }
  0x92   :  { %940 = vmatpush1.bf16.msra.mxu1 %v3430_v11  ;;  %1003 = vmatprep.subr.bf16.mxu0 %v3432_v13  ;;  %4525 = vst [vmem:[#allocation48_spill] sm:$0xff] %v3501_v50 }
  0x93   :  { %1044 = vmatprep.subr.bf16.mxu1 %v3436_v4 }
  0x94   :  { %917 = vmatmul.mubr.bf16.vlgmr.msra.gmra.mxu0 %v4415_v0 }
  0x95   :  { %958 = vmatmul.mubr.bf16.vlgmr.msra.gmra.mxu1 %v4415_v0  ;;  %1004 = vmatpush1.bf16.msra.mxu0 %v3440_v28 }
  0x96   :  { %1045 = vmatpush1.bf16.msra.mxu1 %v3444_v29  ;;  %1005 = vmatprep.subr.bf16.mxu0 %v3446_v30 }
  0x97   :  { %1046 = vmatprep.subr.bf16.mxu1 %v3449_v42  ;;  %1035 = vmatprep.mubr.bf16.mxu0 %v4415_v0 }
  0x98   :  { %1076 = vmatprep.mubr.bf16.mxu1 %v4415_v0  ;;  %v391_v0 = vld [vmem:[#allocation9 + $0xa8] sm:$0xff] }
  0x99   :  { %1006 = vmatpush1.bf16.msra.mxu0 %v3454_v52  ;;  %v3498_v41 = vpack.c.bf16 %v391_v0, %v387_v16  ;;  %v382_v16 = vld [vmem:[#allocation9 + $0x60] sm:$0xff] }
  0x9a   :  { %1047 = vmatpush1.bf16.msra.mxu1 %v3458_v56  ;;  %1007 = vmatprep.subr.bf16.mxu0 %v3460_v60 }
  0x9b   :  { %1048 = vmatprep.subr.bf16.mxu1 %v3463_v3 }
  0x9d   :  { %1008 = vmatpush1.bf16.msra.mxu0 %v3468_v17 }
  0x9e   :  { %1049 = vmatpush1.bf16.msra.mxu1 %v3472_v18  ;;  %1009 = vmatprep.subr.bf16.mxu0 %v3474_v23  ;;  %v3492_v18 = vpack.c.bf16 %v398_v5, %v394_v2  ;;  %v379_v23 = vld [vmem:[#allocation9 + $0x48] sm:$0xff]  ;;  %v381_v2 = vld [vmem:[#allocation9 + $0x58] sm:$0xff] }
  0x9f   :  { %1050 = vmatprep.subr.bf16.mxu1 %v3477_v35  ;;  %v392_v35 = vld [vmem:[#allocation9 + $0xb0] sm:$0xff]  ;;  %v385_v5 = vld [vmem:[#allocation9 + $0x78] sm:$0xff] }
  0xa0   :  { %4523 = vst [vmem:[#allocation46_spill] sm:$0xff] %v3492_v18  ;;  %v3508_v0 = vpack.c.bf16 %v392_v35, %v388_v49  ;;  %v3513_v25 = vpack.c.bf16 %v385_v5, %v381_v2  ;;  %v374_v49 = vld [vmem:[#allocation9 + $0x20] sm:$0xff]  ;;  %v372_v5 = vld [vmem:[#allocation9 + $0x10] sm:$0xff] }
  0xa1   :  { %1010 = vmatpush1.bf16.msra.mxu0 %v3480_v51  ;;  %v383_v51 = vld [vmem:[#allocation9 + $0x68] sm:$0xff] }
  0xa2   :  { %1051 = vmatpush1.bf16.msra.mxu1 %v3484_v61  ;;  %1011 = vmatprep.subr.bf16.mxu0 %v3486_v1  ;;  %v3504_v61 = vpack.c.bf16 %v390_v44, %v386_v43  ;;  %v3510_v6 = vpack.c.bf16 %v383_v51, %v379_v23  ;;  %v371_v1 = vld [vmem:[#allocation9 + $0x8] sm:$0xff]  ;;  %v373_v43 = vld [vmem:[#allocation9 + $0x18] sm:$0xff]  ;;  %v370_v51 = vld [vmem:[#allocation9] sm:$0xff] }
  0xa3   :  { %1052 = vmatprep.subr.bf16.mxu1 %v3489_v14  ;;  %v384_v14 = vld [vmem:[#allocation9 + $0x70] sm:$0xff]  ;;  %v377_v44 = vld [vmem:[#allocation9 + $0x38] sm:$0xff] }
  0xa4   :  { %v3520_v23 = vpack.c.bf16 %v384_v14, %v380_v24  ;;  %v3525_v2 = vpack.c.bf16 %v377_v44, %v373_v43  ;;  %v466_v43 = vld [vmem:[%s4410_s3] sm:$0xf] }
  0xa5   :  { %1012 = vmatpush1.bf16.msra.mxu0 %v3492_v18  ;;  %v375_v18 = vld [vmem:[#allocation9 + $0x28] sm:$0xff] }
  0xa6   :  { %1053 = vmatpush1.bf16.msra.mxu1 %v3496_v31  ;;  %1013 = vmatprep.subr.bf16.mxu0 %v3498_v41  ;;  %v3516_v31 = vpack.c.bf16 %v382_v16, %v378_v15  ;;  %v3522_v35 = vpack.c.bf16 %v375_v18, %v371_v1  ;;  %v3528_v15 = vpack.c.bf16 %v374_v49, %v370_v51  ;;  %v4526_v18 = vmov 0  }
  0xa7   :  { %1054 = vmatprep.subr.bf16.mxu1 %v3501_v50  ;;  %v376_v50 = vld [vmem:[#allocation9 + $0x30] sm:$0xff]  ;;  %v483_v1 = vlaneseq }
  0xa8   :  { %v3532_v14 = vpack.c.bf16 %v376_v50, %v372_v5 }
  0xa9   :  { %1014 = vmatpush1.bf16.msra.mxu0 %v3504_v61  ;;  %v3575_v50 = vshrl.u32 %v483_v1, 7 }
  0xaa   :  { %1055 = vmatpush1.bf16.msra.mxu1 %v3508_v0  ;;  %1015 = vmatprep.subr.bf16.mxu0 %v3510_v6 }
  0xab   :  { %1056 = vmatprep.subr.bf16.mxu1 %v3513_v25  ;;  %v4449_v16 = vsub.s32 2, %v3575_v50  ;;  %v4454_v24 = vsub.s32 0, %v3575_v50  ;;  %v4459_v51 = vsub.s32 3, %v3575_v50  ;;  %v4464_v5 = vsub.s32 1, %v3575_v50 }
  0xad   :  { %1016 = vmatpush1.bf16.msra.mxu0 %v3516_v31  ;;  %v3590_v1 = vrot.slane %v466_v43, %v4449_v16 }
  0xae   :  { %1057 = vmatpush1.bf16.msra.mxu1 %v3520_v23  ;;  %1017 = vmatprep.subr.bf16.mxu0 %v3522_v35 }
  0xaf   :  { %1058 = vmatprep.subr.bf16.mxu1 %v3525_v2 }
  0xb1   :  { %1018 = vmatpush1.bf16.msra.mxu0 %v3528_v15 }
  0xb2   :  { %1059 = vmatpush1.bf16.msra.mxu1 %v3532_v14  ;;  %1124 = vmatprep.subr.bf16.mxu0 %v3323_v22 }
  0xb3   :  { %1165 = vmatprep.subr.bf16.mxu1 %v3326_v26 }
  0xb4   :  { %1036 = vmatmul.mubr.bf16.vlgmr.msra.gmra.mxu0 %v4526_v18 }
  0xb5   :  { %1077 = vmatmul.mubr.bf16.vlgmr.msra.gmra.mxu1 %v4526_v18  ;;  %1125 = vmatpush1.bf16.msra.mxu0 %v3329_v32 }
  0xb6   :  { %1166 = vmatpush1.bf16.msra.mxu1 %v3332_v33  ;;  %1126 = vmatprep.subr.bf16.mxu0 %v3334_v34 }
  0xb7   :  { %1167 = vmatprep.subr.bf16.mxu1 %v3337_v38  ;;  %1156 = vmatprep.mubr.bf16.mxu0 %v4526_v18 }
  0xb8   :  { %1197 = vmatprep.mubr.bf16.mxu1 %v4526_v18 }
  0xb9   :  { %1127 = vmatpush1.bf16.msra.mxu0 %v3342_v45 }
  0xba   :  { %1168 = vmatpush1.bf16.msra.mxu1 %v3346_v46  ;;  %1128 = vmatprep.subr.bf16.mxu0 %v3348_v47 }
  0xbb   :  { %1169 = vmatprep.subr.bf16.mxu1 %v3352_v48 }
  0xbd   :  { %1129 = vmatpush1.bf16.msra.mxu0 %v3356_v57 }
  0xbe   :  { %1170 = vmatpush1.bf16.msra.mxu1 %v3360_v58  ;;  %1130 = vmatprep.subr.bf16.mxu0 %v3362_v59 }
  0xbf   :  { %1171 = vmatprep.subr.bf16.mxu1 %v3365_v63 }
  0xc1   :  { %1131 = vmatpush1.bf16.msra.mxu0 %v3370_v7 }
  0xc2   :  { %1172 = vmatpush1.bf16.msra.mxu1 %v3374_v8  ;;  %1132 = vmatprep.subr.bf16.mxu0 %v3376_v9 }
  0xc3   :  { %1173 = vmatprep.subr.bf16.mxu1 %v3380_v12 }
  0xc5   :  { %1133 = vmatpush1.bf16.msra.mxu0 %v3384_v19 }
  0xc6   :  { %1174 = vmatpush1.bf16.msra.mxu1 %v3388_v20  ;;  %1134 = vmatprep.subr.bf16.mxu0 %v3390_v21 }
  0xc7   :  { %1175 = vmatprep.subr.bf16.mxu1 %v3393_v27 }
  0xc9   :  { %1135 = vmatpush1.bf16.msra.mxu0 %v3398_v36 }
  0xca   :  { %1176 = vmatpush1.bf16.msra.mxu1 %v3402_v37  ;;  %1136 = vmatprep.subr.bf16.mxu0 %v3404_v40 }
  0xcb   :  { %1177 = vmatprep.subr.bf16.mxu1 %v3408_v39 }
  0xcd   :  { %1137 = vmatpush1.bf16.msra.mxu0 %v3412_v53 }
  0xce   :  { %1178 = vmatpush1.bf16.msra.mxu1 %v3416_v54  ;;  %1138 = vmatprep.subr.bf16.mxu0 %v3418_v55  ;;  %v3606_v55 = vrot.slane %v466_v43, %v4464_v5 }
  0xcf   :  { %1179 = vmatprep.subr.bf16.mxu1 %v3421_v62 }
  0xd1   :  { %1139 = vmatpush1.bf16.msra.mxu0 %v3426_v10  ;;  %v3602_v10 = vrot.slane %v466_v43, %v4459_v51 }
  0xd2   :  { %1180 = vmatpush1.bf16.msra.mxu1 %v3430_v11  ;;  %1245 = vmatprep.subr.bf16.mxu0 %v3432_v13  ;;  %v3596_v13 = vrot.slane %v466_v43, %v4454_v24 }
  0xd3   :  { %1286 = vmatprep.subr.bf16.mxu1 %v3436_v4 }
 0x114   :  { %v3582_v44 = vpop.f32.mrf.mxu0 }
 0x115   :  { %v3585_v49 = vpop.f32.mrf.mxu1 }
 0x116   :  { %v3592_v4 = vpop.f32.mrf.mxu0 }
 0x117   :  { %v3598_v11 = vpop.f32.mrf.mxu1 }
 0x118   :  { %v541_v62 = vpop.f32.mrf.mxu0 }
 0x119   :  { %v3609_v16 = vadd.f32 %v541_v62, %v3596_v13  ;;  %v614_v54 = vpop.f32.mrf.mxu1 }
 0x11a   :  { %v3612_v53 = vadd.f32 %v614_v54, %v3590_v1  ;;  %v543_v24 = vpop.f32.mrf.mxu0 }
 0x11b   :  { %4527 = vst [vmem:[#allocation49_spill] sm:$0xff] %v3609_v16  ;;  %v3615_v39 = vadd.f32 %v543_v24, %v3606_v55  ;;  %v616_v40 = vpop.f32.mrf.mxu1 }
 0x11c   :  { %4528 = vst [vmem:[#allocation50_spill] sm:$0xff] %v3612_v53  ;;  %v3618_v51 = vadd.f32 %v616_v40, %v3602_v10  ;;  %v547_v37 = vpop.f32.mrf.mxu0 }
 0x11d   :  { %4529 = vst [vmem:[#allocation51_spill] sm:$0xff] %v3615_v39  ;;  %v3621_v36 = vadd.f32 %v547_v37, %v3596_v13  ;;  %v620_v43 = vpop.f32.mrf.mxu1 }
 0x11e   :  { %4530 = vst [vmem:[#allocation52_spill] sm:$0xff] %v3618_v51  ;;  %v3624_v62 = vadd.f32 %v620_v43, %v3590_v1  ;;  %v549_v5 = vpop.f32.mrf.mxu0 }
 0x11f   :  { %4531 = vst [vmem:[#allocation53_spill] sm:$0xff] %v3621_v36  ;;  %v3627_v54 = vadd.f32 %v549_v5, %v3606_v55  ;;  %v622_v53 = vpop.f32.mrf.mxu1 }
 0x120   :  { %4532 = vst [vmem:[#allocation54_spill] sm:$0xff] %v3624_v62  ;;  %v3630_v24 = vadd.f32 %v622_v53, %v3602_v10  ;;  %v551_v39 = vpop.f32.mrf.mxu0 }
 0x121   :  { %4533 = vst [vmem:[#allocation55_spill] sm:$0xff] %v3627_v54  ;;  %v3633_v40 = vadd.f32 %v551_v39, %v3596_v13  ;;  %v624_v51 = vpop.f32.mrf.mxu1 }
 0x122   :  { %4534 = vst [vmem:[#allocation56_spill] sm:$0xff] %v3630_v24  ;;  %v3636_v37 = vadd.f32 %v624_v51, %v3590_v1  ;;  %v553_v36 = vpop.f32.mrf.mxu0 }
 0x123   :  { %4535 = vst [vmem:[#allocation57_spill] sm:$0xff] %v3633_v40  ;;  %v3639_v43 = vadd.f32 %v553_v36, %v3606_v55  ;;  %v626_v62 = vpop.f32.mrf.mxu1 }
 0x124   :  { %4536 = vst [vmem:[#allocation58_spill] sm:$0xff] %v3636_v37  ;;  %v3642_v5 = vadd.f32 %v626_v62, %v3602_v10  ;;  %v557_v54 = vpop.f32.mrf.mxu0 }
 0x125   :  { %4537 = vst [vmem:[#allocation59_spill] sm:$0xff] %v3639_v43  ;;  %v3645_v53 = vadd.f32 %v557_v54, %v3596_v13  ;;  %v630_v24 = vpop.f32.mrf.mxu1 }
 0x126   :  { %4538 = vst [vmem:[#allocation60_spill] sm:$0xff] %v3642_v5  ;;  %v3648_v39 = vadd.f32 %v630_v24, %v3590_v1  ;;  %v559_v40 = vpop.f32.mrf.mxu0 }
 0x127   :  { %4539 = vst [vmem:[#allocation61_spill] sm:$0xff] %v3645_v53  ;;  %v3651_v51 = vadd.f32 %v559_v40, %v3606_v55  ;;  %v632_v37 = vpop.f32.mrf.mxu1 }
 0x128   :  { %4540 = vst [vmem:[#allocation62_spill] sm:$0xff] %v3648_v39  ;;  %v3654_v36 = vadd.f32 %v632_v37, %v3602_v10  ;;  %v561_v43 = vpop.f32.mrf.mxu0 }
 0x129   :  { %4541 = vst [vmem:[#allocation63_spill] sm:$0xff] %v3651_v51  ;;  %v3657_v62 = vadd.f32 %v561_v43, %v3596_v13  ;;  %v634_v5 = vpop.f32.mrf.mxu1 }
 0x12a   :  { %4542 = vst [vmem:[#allocation64_spill] sm:$0xff] %v3654_v36  ;;  %v3660_v54 = vadd.f32 %v634_v5, %v3590_v1  ;;  %v563_v53 = vpop.f32.mrf.mxu0  ;;  %v467_v5 = vld [vmem:[%s4413_s6] sm:$0xf] }
 0x12b   :  { %4543 = vst [vmem:[#allocation65_spill] sm:$0xff] %v3657_v62  ;;  %v3663_v24 = vadd.f32 %v563_v53, %v3606_v55  ;;  %v636_v39 = vpop.f32.mrf.mxu1 }
 0x12c   :  { %4544 = vst [vmem:[#allocation66_spill] sm:$0xff] %v3660_v54  ;;  %v3666_v40 = vadd.f32 %v636_v39, %v3602_v10  ;;  %v567_v51 = vpop.f32.mrf.mxu0 }
 0x12d   :  { %4545 = vst [vmem:[#allocation67_spill] sm:$0xff] %v3663_v24  ;;  %v3669_v37 = vadd.f32 %v567_v51, %v3596_v13  ;;  %v640_v36 = vpop.f32.mrf.mxu1 }
 0x12e   :  { %4546 = vst [vmem:[#allocation68_spill] sm:$0xff] %v3666_v40  ;;  %v3672_v43 = vadd.f32 %v640_v36, %v3590_v1  ;;  %v569_v62 = vpop.f32.mrf.mxu0  ;;  %v4552_v36 = vsub.s32 0, %v3575_v50 }
 0x12f   :  { %4547 = vst [vmem:[#allocation69_spill] sm:$0xff] %v3669_v37  ;;  %v3678_v53 = vadd.f32 %v569_v62, %v3606_v55  ;;  %v642_v54 = vpop.f32.mrf.mxu1  ;;  %v4554_v62 = vsub.s32 2, %v3575_v50 }
 0x130   :  { %4548 = vst [vmem:[#allocation70_spill] sm:$0xff] %v3672_v43  ;;  %v3681_v39 = vadd.f32 %v642_v54, %v3602_v10  ;;  %v571_v40 = vpop.f32.mrf.mxu0  ;;  %v3688_v43 = vrot.slane %v467_v5, %v4552_v36 }
 0x131   :  { %4549 = vst [vmem:[#allocation71_spill] sm:$0xff] %v3678_v53  ;;  %v3684_v51 = vadd.f32 %v571_v40, %v3596_v13  ;;  %v644_v37 = vpop.f32.mrf.mxu1  ;;  %v3695_v53 = vrot.slane %v467_v5, %v4554_v62  ;;  %v4556_v40 = vsub.s32 1, %v3575_v50 }
 0x132   :  { %4550 = vst [vmem:[#allocation72_spill] sm:$0xff] %v3681_v39  ;;  %v3691_v24 = vadd.f32 %v644_v37, %v3590_v1  ;;  %v573_v16 = vpop.f32.mrf.mxu0  ;;  %v4558_v37 = vsub.s32 3, %v3575_v50 }
 0x133   :  { %4551 = vst [vmem:[#allocation73_spill] sm:$0xff] %v3684_v51  ;;  %v3698_v54 = vadd.f32 %v573_v16, %v3606_v55  ;;  %v646_v39 = vpop.f32.mrf.mxu1  ;;  %v3702_v51 = vrot.slane %v467_v5, %v4556_v40 }
 0x134   :  { %4553 = vst [vmem:[#allocation74_spill] sm:$0xff] %v3691_v24  ;;  %v3705_v27 = vadd.f32 %v646_v39, %v3602_v10  ;;  %v736_v36 = vpop.f32.mrf.mxu0  ;;  %v3709_v24 = vrot.slane %v467_v5, %v4558_v37 }
 0x135   :  { %4555 = vst [vmem:[#allocation75_spill] sm:$0xff] %v3698_v54  ;;  %v3712_v21 = vadd.f32 %v736_v36, %v3688_v43  ;;  %v809_v62 = vpop.f32.mrf.mxu1 }
 0x136   :  { %4557 = vst [vmem:[#allocation76_spill] sm:$0xff] %v3705_v27  ;;  %v3715_v16 = vadd.f32 %v809_v62, %v3695_v53  ;;  %v738_v54 = vpop.f32.mrf.mxu0 }
 0x137   :  { %4559 = vst [vmem:[#allocation77_spill] sm:$0xff] %v3712_v21  ;;  %v3718_v20 = vadd.f32 %v738_v54, %v3702_v51  ;;  %v811_v40 = vpop.f32.mrf.mxu1 }
 0x138   :  { %4560 = vst [vmem:[#allocation78_spill] sm:$0xff] %v3715_v16  ;;  %v3721_v39 = vadd.f32 %v811_v40, %v3709_v24  ;;  %v740_v27 = vpop.f32.mrf.mxu0 }
 0x139   :  { %4561 = vst [vmem:[#allocation79_spill] sm:$0xff] %v3718_v20  ;;  %v3724_v50 = vadd.f32 %v740_v27, %v3688_v43  ;;  %v813_v5 = vpop.f32.mrf.mxu1 }
 0x13a   :  { %4562 = vst [vmem:[#allocation80_spill] sm:$0xff] %v3721_v39  ;;  %v3727_v36 = vadd.f32 %v813_v5, %v3695_v53  ;;  %v742_v37 = vpop.f32.mrf.mxu0 }
 0x13b   :  { %4563 = vst [vmem:[#allocation81_spill] sm:$0xff] %v3724_v50  ;;  %v3730_v62 = vadd.f32 %v742_v37, %v3702_v51  ;;  %v815_v16 = vpop.f32.mrf.mxu1 }
 0x13c   :  { %4564 = vst [vmem:[#allocation82_spill] sm:$0xff] %v3727_v36  ;;  %v3733_v54 = vadd.f32 %v815_v16, %v3709_v24  ;;  %v746_v20 = vpop.f32.mrf.mxu0 }
 0x13d   :  { %4565 = vst [vmem:[#allocation83_spill] sm:$0xff] %v3730_v62  ;;  %v3736_v40 = vadd.f32 %v746_v20, %v3688_v43  ;;  %v819_v39 = vpop.f32.mrf.mxu1 }
 0x13e   :  { %4566 = vst [vmem:[#allocation84_spill] sm:$0xff] %v3733_v54  ;;  %v3739_v27 = vadd.f32 %v819_v39, %v3695_v53  ;;  %v748_v21 = vpop.f32.mrf.mxu0 }
 0x13f   :  { %4567 = vst [vmem:[#allocation85_spill] sm:$0xff] %v3736_v40  ;;  %v3742_v5 = vadd.f32 %v748_v21, %v3702_v51  ;;  %v821_v36 = vpop.f32.mrf.mxu1 }
 0x140   :  { %4568 = vst [vmem:[#allocation86_spill] sm:$0xff] %v3739_v27  ;;  %v3745_v37 = vadd.f32 %v821_v36, %v3709_v24  ;;  %v750_v62 = vpop.f32.mrf.mxu0 }
 0x141   :  { %4569 = vst [vmem:[#allocation87_spill] sm:$0xff] %v3742_v5  ;;  %v3748_v16 = vadd.f32 %v750_v62, %v3688_v43  ;;  %v823_v54 = vpop.f32.mrf.mxu1 }
 0x142   :  { %4570 = vst [vmem:[#allocation88_spill] sm:$0xff] %v3745_v37  ;;  %v3751_v20 = vadd.f32 %v823_v54, %v3695_v53  ;;  %v752_v50 = vpop.f32.mrf.mxu0 }
 0x143   :  { %4571 = vst [vmem:[#allocation89_spill] sm:$0xff] %v3748_v16  ;;  %v3754_v39 = vadd.f32 %v752_v50, %v3702_v51  ;;  %v825_v27 = vpop.f32.mrf.mxu1 }
 0x144   :  { %4572 = vst [vmem:[#allocation90_spill] sm:$0xff] %v3751_v20  ;;  %v3757_v21 = vadd.f32 %v825_v27, %v3709_v24  ;;  %v756_v5 = vpop.f32.mrf.mxu0 }
 0x145   :  { %4573 = vst [vmem:[#allocation91_spill] sm:$0xff] %v3754_v39  ;;  %v3760_v36 = vadd.f32 %v756_v5, %v3688_v43  ;;  %v829_v37 = vpop.f32.mrf.mxu1 }
 0x146   :  { %4574 = vst [vmem:[#allocation92_spill] sm:$0xff] %v3757_v21  ;;  %v3763_v62 = vadd.f32 %v829_v37, %v3695_v53  ;;  %v758_v40 = vpop.f32.mrf.mxu0 }
 0x147   :  { %4575 = vst [vmem:[#allocation93_spill] sm:$0xff] %v3760_v36  ;;  %v3766_v54 = vadd.f32 %v758_v40, %v3702_v51  ;;  %v831_v20 = vpop.f32.mrf.mxu1 }
 0x148   :  { %4576 = vst [vmem:[#allocation94_spill] sm:$0xff] %v3763_v62  ;;  %v3769_v50 = vadd.f32 %v831_v20, %v3709_v24  ;;  %v760_v39 = vpop.f32.mrf.mxu0 }
 0x149   :  { %4577 = vst [vmem:[#allocation95_spill] sm:$0xff] %v3766_v54  ;;  %v3772_v27 = vadd.f32 %v760_v39, %v3688_v43  ;;  %v833_v21 = vpop.f32.mrf.mxu1 }
 0x14a   :  { %4578 = vst [vmem:[#allocation96_spill] sm:$0xff] %v3769_v50  ;;  %v3775_v5 = vadd.f32 %v833_v21, %v3695_v53  ;;  %v762_v16 = vpop.f32.mrf.mxu0 }
 0x14b   :  { %4579 = vst [vmem:[#allocation97_spill] sm:$0xff] %v3772_v27  ;;  %v3778_v37 = vadd.f32 %v762_v16, %v3702_v51  ;;  %v835_v62 = vpop.f32.mrf.mxu1 }
 0x14c   :  { %4580 = vst [vmem:[#allocation98_spill] sm:$0xff] %v3775_v5  ;;  %v3781_v40 = vadd.f32 %v835_v62, %v3709_v24  ;;  %v766_v54 = vpop.f32.mrf.mxu0 }
 0x14d   :  { %4581 = vst [vmem:[#allocation99_spill] sm:$0xff] %v3778_v37  ;;  %v3784_v20 = vadd.f32 %v766_v54, %v3688_v43  ;;  %v839_v50 = vpop.f32.mrf.mxu1 }
 0x14e   :  { %4582 = vst [vmem:[#allocation100_spill] sm:$0xff] %v3781_v40  ;;  %v3787_v39 = vadd.f32 %v839_v50, %v3695_v53  ;;  %v768_v36 = vpop.f32.mrf.mxu0  ;;  %v538_v40 = vadd.f32 %v3582_v44, %v3596_v13  ;;  %v540_v50 = vadd.f32 %v3592_v4, %v3606_v55  ;;  %v611_v13 = vadd.f32 %v3585_v49, %v3590_v1 }
 0x14f   :  { %4583 = vst [vmem:[#allocation101_spill] sm:$0xff] %v3784_v20  ;;  %v3790_v21 = vadd.f32 %v768_v36, %v3702_v51  ;;  %v841_v5 = vpop.f32.mrf.mxu1  ;;  %v613_v55 = vadd.f32 %v3598_v11, %v3602_v10 }
 0x150   :  { %4584 = vst [vmem:[#allocation102_spill] sm:$0xff] %v3787_v39  ;;  %v3793_v16 = vadd.f32 %v841_v5, %v3709_v24  ;;  %v770_v37 = vpop.f32.mrf.mxu0 }
 0x151   :  { %4585 = vst [vmem:[#allocation103_spill] sm:$0xff] %v3790_v21  ;;  %v843_v27 = vpop.f32.mrf.mxu1 }
 0x152   :  { %4586 = vst [vmem:[#allocation104_spill] sm:$0xff] %v3793_v16  ;;  %v772_v62 = vpop.f32.mrf.mxu0 }
 0x153   :  { %v845_v54 = vpop.f32.mrf.mxu1 }
 0x154   :  { %v918_v20 = vpop.f32.mrf.mxu0 }
 0x155   :  { %v966_v39 = vadd.f32 %v918_v20, %v538_v40  ;;  %v959_v19 = vpop.f32.mrf.mxu1 }
 0x156   :  { %v920_v12 = vpop.f32.mrf.mxu0  ;;  %v968_v44 = vadd.f32 %v959_v19, %v611_v13  ;;  %v773_v19 = vadd.f32 %v772_v62, %v3702_v51  ;;  %v844_v62 = vadd.f32 %v843_v27, %v3695_v53 }
 0x157   :  { %v2793_v36 = vmul.f32 -1.442695, %v966_v39  ;;  %v967_v21 = vadd.f32 %v920_v12, %v540_v50  ;;  %v961_v9 = vpop.f32.mrf.mxu1 }
 0x158   :  { %v922_v8 = vpop.f32.mrf.mxu0  ;;  %v2795_v4 = vmul.f32 -1.442695, %v968_v44  ;;  %v969_v40 = vadd.f32 %v961_v9, %v613_v55 }
 0x159   :  { %2862 = vpow2.f32 %v2793_v36  ;;  %v2794_v5 = vmul.f32 -1.442695, %v967_v21  ;;  %v963_v16 = vpop.f32.mrf.mxu1 }
 0x15a   :  { %v923_v7 = vpop.f32.mrf.mxu0 }
 0x15b   :  { %2864 = vpow2.f32 %v2794_v5  ;;  %v964_v63 = vpop.f32.mrf.mxu1  ;;  %v771_v7 = vadd.f32 %v770_v37, %v3688_v43 }
 0x15c   :  { %2866 = vpow2.f32 %v2795_v4 }
 0x15d   :  { %2868 = vtanh.f32 %v969_v40 }
 0x166   :  { %v2863_v20 = vpop.eup %2862 }
 0x167   :  { %v979_v39 = vadd.f32 1.0, %v2863_v20 }
 0x168   :  { %v2865_v12 = vpop.eup %2864 }
 0x169   :  { %2870 = vrcp.f32 %v979_v39  ;;  %v980_v8 = vadd.f32 1.0, %v2865_v12  ;;  %v2867_v63 = vpop.eup %2866  ;;  %v846_v12 = vadd.f32 %v845_v54, %v3709_v24 }
 0x16a   :  { %v2869_v16 = vpop.eup %2868  ;;  %v981_v44 = vadd.f32 1.0, %v2867_v63 }
 0x16b   :  { %2872 = vrcp.f32 %v980_v8 }
 0x174   :  { %v1037_v21 = vpop.f32.mrf.mxu0 }
 0x175   :  { %v1085_v49 = vadd.f32 %v1037_v21, %v771_v7  ;;  %v1078_v1 = vpop.f32.mrf.mxu1 }
 0x176   :  { %v2871_v10 = vpop.eup %2870  ;;  %v1039_v11 = vpop.f32.mrf.mxu0  ;;  %v1087_v39 = vadd.f32 %v1078_v1, %v844_v62  ;;  %v4595_v62 = vld [vmem:[#allocation47_spill] sm:$0xff] }
 0x177   :  { %v990_v9 = vmul.f32 %v2871_v10, %v2869_v16  ;;  %v2796_v50 = vmul.f32 -1.442695, %v1085_v49  ;;  %v1086_v36 = vadd.f32 %v1039_v11, %v773_v19  ;;  %v1080_v5 = vpop.f32.mrf.mxu1 }
 0x178   :  { %v2873_v13 = vpop.eup %2872  ;;  %v1041_v55 = vpop.f32.mrf.mxu0  ;;  %v2798_v8 = vmul.f32 -1.442695, %v1087_v39  ;;  %v1088_v63 = vadd.f32 %v1080_v5, %v846_v12  ;;  %v4596_v39 = vld [vmem:[#allocation48_spill] sm:$0xff] }
 0x179   :  { %v989_v4 = vmul.f32 0.0, %v2873_v13  ;;  %2874 = vpow2.f32 %v2796_v50  ;;  %v2797_v40 = vmul.f32 -1.442695, %v1086_v36  ;;  %v1082_v43 = vpop.f32.mrf.mxu1  ;;  %v4587_v50 = vld [vmem:[#allocation39_spill] sm:$0xff]  ;;  %v4588_v13 = vld [vmem:[#allocation40_spill] sm:$0xff] }
 0x17a   :  { %v1042_v37 = vpop.f32.mrf.mxu0  ;;  %v4592_v43 = vld [vmem:[#allocation44_spill] sm:$0xff] }
 0x17b   :  { %v3805_v20 = vadd.f32 %v990_v9, %v989_v4  ;;  %2876 = vpow2.f32 %v2797_v40  ;;  %v1083_v51 = vpop.f32.mrf.mxu1  ;;  %v4590_v4 = vld [vmem:[#allocation42_spill] sm:$0xff]  ;;  %v4591_v40 = vld [vmem:[#allocation43_spill] sm:$0xff]  ;;  %v4593_v37 = vld [vmem:[#allocation45_spill] sm:$0xff] }
 0x17c   :  { %2878 = vrcp.f32 %v981_v44  ;;  %v4589_v44 = vld [vmem:[#allocation41_spill] sm:$0xff]  ;;  %v4594_v51 = vld [vmem:[#allocation46_spill] sm:$0xff] }
 0x17d   :  { %2880 = vtanh.f32 %v3805_v20 }
 0x17e   :  { %2882 = vpow2.f32 %v2798_v8 }
 0x186   :  { %v2875_v7 = vpop.eup %2874 }
 0x187   :  { %v1098_v21 = vadd.f32 1.0, %v2875_v7 }
 0x188   :  { %v2877_v16 = vpop.eup %2876 }
 0x189   :  { %v2879_v19 = vpop.eup %2878  ;;  %2884 = vrcp.f32 %v1098_v21  ;;  %v1099_v49 = vadd.f32 1.0, %v2877_v16  ;;  %v4597_v21 = vld [vmem:[#allocation18_spill] sm:$0xff]  ;;  %v4598_v16 = vld [vmem:[#allocation19_spill] sm:$0xff] }
 0x18a   :  { %v2881_v10 = vpop.eup %2880  ;;  %2886 = vtanh.f32 %v1088_v63 }
 0x18b   :  { %2888 = vrcp.f32 %v1099_v49  ;;  %v993_v11 = vmul.f32 %v2881_v10, %v2879_v19  ;;  %v2883_v24 = vpop.eup %2882  ;;  %v4599_v19 = vld [vmem:[#allocation20_spill] sm:$0xff]  ;;  %v4600_v49 = vld [vmem:[#allocation21_spill] sm:$0xff]  ;;  %v4601_v10 = vld [vmem:[#allocation22_spill] sm:$0xff] }
 0x18c   :  { %v1100_v9 = vadd.f32 1.0, %v2883_v24  ;;  %v4604_v24 = vld [vmem:[#allocation25_spill] sm:$0xff] }
 0x18d   :  { %997 = vst [vmem:[%s4414_s7] sm:$0xff] %v993_v11  ;;  %v1123_v53 = vpack.c.bf16 %v993_v11, %v993_v11  ;;  %v4602_v11 = vld [vmem:[#allocation23_spill] sm:$0xff] }
 0x18e   :  { %2890 = vrcp.f32 %v1100_v9  ;;  %v4608_v9 = vld [vmem:[#allocation29_spill] sm:$0xff] }
 0x18f   :  { %1157 = vmatmul.mubr.bf16.vlgmr.msra.gmra.mxu0 %v1123_v53  ;;  %1198 = vmatmul.mubr.bf16.vlgmr.msra.gmra.mxu1 %v1123_v53  ;;  %v4603_v53 = vld [vmem:[#allocation24_spill] sm:$0xff] }
 0x190   :  { %1246 = vmatpush1.bf16.msra.mxu0 %v3440_v28  ;;  %1287 = vmatpush1.bf16.msra.mxu1 %v3444_v29 }
 0x191   :  { %1247 = vmatprep.subr.bf16.mxu0 %v3446_v30  ;;  %1288 = vmatprep.subr.bf16.mxu1 %v3449_v42 }
 0x192   :  { %1277 = vmatprep.mubr.bf16.mxu0 %v4526_v18  ;;  %1318 = vmatprep.mubr.bf16.mxu1 %v4526_v18 }
 0x194   :  { %1248 = vmatpush1.bf16.msra.mxu0 %v3454_v52  ;;  %1289 = vmatpush1.bf16.msra.mxu1 %v3458_v56 }
 0x195   :  { %1249 = vmatprep.subr.bf16.mxu0 %v3460_v60  ;;  %1290 = vmatprep.subr.bf16.mxu1 %v3463_v3 }
 0x196   :  { %v2885_v27 = vpop.eup %2884 }
 0x197   :  { %v2887_v54 = vpop.eup %2886 }
 0x198   :  { %v2889_v1 = vpop.eup %2888  ;;  %1250 = vmatpush1.bf16.msra.mxu0 %v3468_v17  ;;  %1291 = vmatpush1.bf16.msra.mxu1 %v4587_v50  ;;  %v1109_v5 = vmul.f32 %v2887_v54, %v2885_v27  ;;  %v4605_v27 = vld [vmem:[#allocation26_spill] sm:$0xff]  ;;  %v4606_v54 = vld [vmem:[#allocation27_spill] sm:$0xff] }
 0x199   :  { %v1108_v36 = vmul.f32 0.0, %v2889_v1  ;;  %1251 = vmatprep.subr.bf16.mxu0 %v4588_v13  ;;  %1292 = vmatprep.subr.bf16.mxu1 %v4589_v44  ;;  %v4607_v1 = vld [vmem:[#allocation28_spill] sm:$0xff] }
 0x19b   :  { %v3827_v55 = vadd.f32 %v1109_v5, %v1108_v36  ;;  %v2891_v12 = vpop.eup %2890  ;;  %v4609_v36 = vld [vmem:[#allocation30_spill] sm:$0xff]  ;;  %v4610_v5 = vld [vmem:[#allocation31_spill] sm:$0xff] }
 0x19c   :  { %1252 = vmatpush1.bf16.msra.mxu0 %v4590_v4  ;;  %1293 = vmatpush1.bf16.msra.mxu1 %v4591_v40 }
 0x19d   :  { %2892 = vtanh.f32 %v3827_v55  ;;  %1253 = vmatprep.subr.bf16.mxu0 %v4592_v43  ;;  %1294 = vmatprep.subr.bf16.mxu1 %v4593_v37 }
 0x1a0   :  { %1254 = vmatpush1.bf16.msra.mxu0 %v4594_v51  ;;  %1295 = vmatpush1.bf16.msra.mxu1 %v4595_v62 }
 0x1a1   :  { %1255 = vmatprep.subr.bf16.mxu0 %v3498_v41  ;;  %1296 = vmatprep.subr.bf16.mxu1 %v4596_v39 }
 0x1a4   :  { %1256 = vmatpush1.bf16.msra.mxu0 %v3504_v61  ;;  %1297 = vmatpush1.bf16.msra.mxu1 %v3508_v0 }
 0x1a5   :  { %1257 = vmatprep.subr.bf16.mxu0 %v3510_v6  ;;  %1298 = vmatprep.subr.bf16.mxu1 %v3513_v25 }
 0x1a8   :  { %1258 = vmatpush1.bf16.msra.mxu0 %v3516_v31  ;;  %1299 = vmatpush1.bf16.msra.mxu1 %v3520_v23 }
 0x1a9   :  { %1259 = vmatprep.subr.bf16.mxu0 %v3522_v35  ;;  %1300 = vmatprep.subr.bf16.mxu1 %v3525_v2 }
 0x1aa   :  { %v2893_v8 = vpop.eup %2892 }
 0x1ab   :  { %v1112_v7 = vmul.f32 %v2893_v8, %v2891_v12  ;;  %v4611_v12 = vld [vmem:[#allocation32_spill] sm:$0xff]  ;;  %v4612_v8 = vld [vmem:[#allocation33_spill] sm:$0xff] }
 0x1ac   :  { %1260 = vmatpush1.bf16.msra.mxu0 %v3528_v15  ;;  %1301 = vmatpush1.bf16.msra.mxu1 %v3532_v14 }
 0x1ad   :  { %2799 = vst [vmem:[%s4414_s7 + $0x78] sm:$0xff] %v1112_v7  ;;  %v1244_v63 = vpack.c.bf16 %v1112_v7, %v1112_v7  ;;  %1366 = vmatprep.subr.bf16.mxu0 %v3323_v22  ;;  %1407 = vmatprep.subr.bf16.mxu1 %v3326_v26  ;;  %v4613_v7 = vld [vmem:[#allocation34_spill] sm:$0xff] }
 0x1af   :  { %1278 = vmatmul.mubr.bf16.vlgmr.msra.gmra.mxu0 %v1244_v63  ;;  %1319 = vmatmul.mubr.bf16.vlgmr.msra.gmra.mxu1 %v1244_v63  ;;  %v4614_v63 = vld [vmem:[#allocation35_spill] sm:$0xff] }
 0x1b0   :  { %1367 = vmatpush1.bf16.msra.mxu0 %v3329_v32  ;;  %1408 = vmatpush1.bf16.msra.mxu1 %v3332_v33 }
 0x1b1   :  { %1368 = vmatprep.subr.bf16.mxu0 %v3334_v34  ;;  %1409 = vmatprep.subr.bf16.mxu1 %v3337_v38 }
 0x1b2   :  { %1398 = vmatprep.mubr.bf16.mxu0 %v4526_v18  ;;  %1439 = vmatprep.mubr.bf16.mxu1 %v4526_v18 }
 0x1b4   :  { %1369 = vmatpush1.bf16.msra.mxu0 %v3342_v45  ;;  %1410 = vmatpush1.bf16.msra.mxu1 %v3346_v46 }
 0x1b5   :  { %1370 = vmatprep.subr.bf16.mxu0 %v3348_v47  ;;  %1411 = vmatprep.subr.bf16.mxu1 %v3352_v48 }
 0x1b8   :  { %1371 = vmatpush1.bf16.msra.mxu0 %v3356_v57  ;;  %1412 = vmatpush1.bf16.msra.mxu1 %v3360_v58 }
 0x1b9   :  { %1372 = vmatprep.subr.bf16.mxu0 %v3362_v59  ;;  %1413 = vmatprep.subr.bf16.mxu1 %v4597_v21 }
 0x1bc   :  { %1373 = vmatpush1.bf16.msra.mxu0 %v4598_v16  ;;  %1414 = vmatpush1.bf16.msra.mxu1 %v4599_v19 }
 0x1bd   :  { %1374 = vmatprep.subr.bf16.mxu0 %v4600_v49  ;;  %1415 = vmatprep.subr.bf16.mxu1 %v4601_v10 }
 0x1c0   :  { %1375 = vmatpush1.bf16.msra.mxu0 %v4602_v11  ;;  %1416 = vmatpush1.bf16.msra.mxu1 %v4603_v53  ;;  %v4618_v53 = vld [vmem:[#allocation49_spill] sm:$0xff] }
 0x1c1   :  { %1376 = vmatprep.subr.bf16.mxu0 %v4604_v24  ;;  %1417 = vmatprep.subr.bf16.mxu1 %v4605_v27  ;;  %v4615_v24 = vld [vmem:[#allocation36_spill] sm:$0xff]  ;;  %v4616_v27 = vld [vmem:[#allocation37_spill] sm:$0xff] }
 0x1c4   :  { %1377 = vmatpush1.bf16.msra.mxu0 %v4606_v54  ;;  %1418 = vmatpush1.bf16.msra.mxu1 %v4607_v1  ;;  %v4617_v54 = vld [vmem:[#allocation38_spill] sm:$0xff] }
 0x1c5   :  { %1378 = vmatprep.subr.bf16.mxu0 %v4608_v9  ;;  %1419 = vmatprep.subr.bf16.mxu1 %v4609_v36 }
 0x1c8   :  { %1379 = vmatpush1.bf16.msra.mxu0 %v4610_v5  ;;  %1420 = vmatpush1.bf16.msra.mxu1 %v4611_v12  ;;  %v4619_v12 = vld [vmem:[#allocation51_spill] sm:$0xff] }
 0x1c9   :  { %1380 = vmatprep.subr.bf16.mxu0 %v4612_v8  ;;  %1421 = vmatprep.subr.bf16.mxu1 %v4613_v7 }
 0x1cc   :  { %1381 = vmatpush1.bf16.msra.mxu0 %v4614_v63  ;;  %1422 = vmatpush1.bf16.msra.mxu1 %v4615_v24  ;;  %v4620_v24 = vld [vmem:[#allocation50_spill] sm:$0xff] }
 0x1cd   :  { %1487 = vmatprep.subr.bf16.mxu0 %v4616_v27  ;;  %1528 = vmatprep.subr.bf16.mxu1 %v4617_v54  ;;  %v4621_v54 = vld [vmem:[#allocation52_spill] sm:$0xff] }
 0x24f   :  { %v1158_v1 = vpop.f32.mrf.mxu0  ;;  %v1199_v9 = vpop.f32.mrf.mxu1 }
 0x250   :  { %v1206_v36 = vadd.f32 %v1158_v1, %v4618_v53  ;;  %v1208_v27 = vadd.f32 %v1199_v9, %v4620_v24 }
 0x251   :  { %v1160_v11 = vpop.f32.mrf.mxu0  ;;  %v1201_v5 = vpop.f32.mrf.mxu1 }
 0x252   :  { %v2800_v10 = vmul.f32 -1.442695, %v1206_v36  ;;  %v1207_v49 = vadd.f32 %v1160_v11, %v4619_v12  ;;  %v2802_v21 = vmul.f32 -1.442695, %v1208_v27  ;;  %v1209_v59 = vadd.f32 %v1201_v5, %v4621_v54  ;;  %v4622_v36 = vld [vmem:[#allocation101_spill] sm:$0xff]  ;;  %v4623_v54 = vld [vmem:[#allocation103_spill] sm:$0xff] }
 0x253   :  { %v1162_v8 = vpop.f32.mrf.mxu0  ;;  %v1203_v19 = vpop.f32.mrf.mxu1 }
 0x254   :  { %2894 = vpow2.f32 %v2800_v10  ;;  %v2801_v7 = vmul.f32 -1.442695, %v1207_v49 }
 0x255   :  { %v1163_v63 = vpop.f32.mrf.mxu0  ;;  %v1204_v16 = vpop.f32.mrf.mxu1 }
 0x256   :  { %2896 = vpow2.f32 %v2801_v7 }
 0x257   :  { %2898 = vpow2.f32 %v2802_v21 }
 0x258   :  { %2900 = vtanh.f32 %v1209_v59 }
 0x261   :  { %v2895_v58 = vpop.eup %2894 }
 0x262   :  { %v1219_v57 = vadd.f32 1.0, %v2895_v58 }
 0x263   :  { %v2897_v53 = vpop.eup %2896 }
 0x264   :  { %2902 = vrcp.f32 %v1219_v57  ;;  %v1220_v1 = vadd.f32 1.0, %v2897_v53  ;;  %v2899_v11 = vpop.eup %2898 }
 0x265   :  { %v2901_v49 = vpop.eup %2900  ;;  %v1221_v21 = vadd.f32 1.0, %v2899_v11 }
 0x266   :  { %2904 = vrcp.f32 %v1220_v1 }
 0x26f   :  { %v1279_v19 = vpop.f32.mrf.mxu0  ;;  %v1320_v10 = vpop.f32.mrf.mxu1 }
 0x270   :  { %v1327_v16 = vadd.f32 %v1279_v19, %v4622_v36  ;;  %v4624_v19 = vld [vmem:[#allocation102_spill] sm:$0xff] }
 0x271   :  { %v2903_v12 = vpop.eup %2902  ;;  %v1281_v8 = vpop.f32.mrf.mxu0 }
 0x272   :  { %v1322_v24 = vpop.f32.mrf.mxu1  ;;  %v1230_v27 = vmul.f32 %v2903_v12, %v2901_v49  ;;  %v2804_v9 = vmul.f32 -1.442695, %v1327_v16  ;;  %v1328_v5 = vadd.f32 %v1281_v8, %v4623_v54  ;;  %v1329_v49 = vadd.f32 %v1320_v10, %v4624_v19  ;;  %v4625_v16 = vld [vmem:[#allocation104_spill] sm:$0xff] }
 0x273   :  { %v2905_v58 = vpop.eup %2904  ;;  %v1283_v7 = vpop.f32.mrf.mxu0  ;;  %v1330_v12 = vadd.f32 %v1322_v24, %v4625_v16  ;;  %v4627_v16 = vld [vmem:[#allocation15_spill] sm:$0xff] }
 0x274   :  { %v1324_v59 = vpop.f32.mrf.mxu1  ;;  %v1229_v57 = vmul.f32 %v2905_v58, %v3805_v20  ;;  %2906 = vpow2.f32 %v2804_v9  ;;  %v2805_v63 = vmul.f32 -1.442695, %v1328_v5  ;;  %v2806_v36 = vmul.f32 -1.442695, %v1329_v49 }
 0x275   :  { %v1284_v53 = vpop.f32.mrf.mxu0 }
 0x276   :  { %v1325_v1 = vpop.f32.mrf.mxu1  ;;  %v3894_v48 = vadd.f32 %v1230_v27, %v1229_v57  ;;  %2908 = vpow2.f32 %v2805_v63 }
 0x277   :  { %2910 = vrcp.f32 %v1221_v21 }
 0x278   :  { %2912 = vtanh.f32 %v3894_v48 }
 0x279   :  { %2914 = vpow2.f32 %v2806_v36  ;;  %v4626_v36 = vld [vmem:[#allocation14_spill] sm:$0xff] }
 0x27a   :  { %2916 = vtanh.f32 %v1330_v12  ;;  %v4628_v12 = vld [vmem:[#allocation16_spill] sm:$0xff] }
 0x281   :  { %v2907_v11 = vpop.eup %2906 }
 0x282   :  { %v1340_v8 = vadd.f32 1.0, %v2907_v11  ;;  %v4629_v11 = vld [vmem:[#allocation17_spill] sm:$0xff] }
 0x283   :  { %v2909_v54 = vpop.eup %2908 }
 0x284   :  { %v2911_v20 = vpop.eup %2910  ;;  %2918 = vrcp.f32 %v1340_v8  ;;  %v1341_v9 = vadd.f32 1.0, %v2909_v54  ;;  %v4630_v8 = vld [vmem:[#allocation18_spill] sm:$0xff]  ;;  %v4631_v54 = vld [vmem:[#allocation19_spill] sm:$0xff] }
 0x285   :  { %v2913_v5 = vpop.eup %2912 }
 0x286   :  { %2920 = vrcp.f32 %v1341_v9  ;;  %v1233_v27 = vmul.f32 %v2913_v5, %v2911_v20  ;;  %v2915_v10 = vpop.eup %2914  ;;  %v4632_v20 = vld [vmem:[#allocation20_spill] sm:$0xff]  ;;  %v4633_v9 = vld [vmem:[#allocation21_spill] sm:$0xff]  ;;  %v4634_v5 = vld [vmem:[#allocation22_spill] sm:$0xff] }
 0x287   :  { %v2917_v24 = vpop.eup %2916  ;;  %v1342_v57 = vadd.f32 1.0, %v2915_v10  ;;  %v4637_v10 = vld [vmem:[#allocation25_spill] sm:$0xff] }
 0x288   :  { %2803 = vst [vmem:[%s4414_s7 + $0x10] sm:$0xff] %v1233_v27  ;;  %v1365_v58 = vpack.c.bf16 %v1233_v27, %v1233_v27  ;;  %v4635_v27 = vld [vmem:[#allocation23_spill] sm:$0xff] }
 0x289   :  { %2922 = vrcp.f32 %v1342_v57  ;;  %v4642_v57 = vld [vmem:[#allocation30_spill] sm:$0xff] }
 0x28a   :  { %1399 = vmatmul.mubr.bf16.vlgmr.msra.gmra.mxu0 %v1365_v58  ;;  %1440 = vmatmul.mubr.bf16.vlgmr.msra.gmra.mxu1 %v1365_v58  ;;  %v4636_v58 = vld [vmem:[#allocation24_spill] sm:$0xff] }
 0x28b   :  { %1488 = vmatpush1.bf16.msra.mxu0 %v3440_v28  ;;  %1529 = vmatpush1.bf16.msra.mxu1 %v3444_v29 }
 0x28c   :  { %1489 = vmatprep.subr.bf16.mxu0 %v3446_v30  ;;  %1530 = vmatprep.subr.bf16.mxu1 %v3449_v42 }
 0x28d   :  { %1519 = vmatprep.mubr.bf16.mxu0 %v4526_v18  ;;  %1560 = vmatprep.mubr.bf16.mxu1 %v4526_v18 }
 0x28f   :  { %1490 = vmatpush1.bf16.msra.mxu0 %v3454_v52  ;;  %1531 = vmatpush1.bf16.msra.mxu1 %v3458_v56 }
 0x290   :  { %1491 = vmatprep.subr.bf16.mxu0 %v3460_v60  ;;  %1532 = vmatprep.subr.bf16.mxu1 %v3463_v3 }
 0x291   :  { %v2919_v21 = vpop.eup %2918 }
 0x292   :  { %v1351_v7 = vmul.f32 %v2919_v21, %v2917_v24  ;;  %v4638_v24 = vld [vmem:[#allocation26_spill] sm:$0xff]  ;;  %v4639_v21 = vld [vmem:[#allocation27_spill] sm:$0xff] }
 0x293   :  { %v2921_v59 = vpop.eup %2920  ;;  %1492 = vmatpush1.bf16.msra.mxu0 %v3468_v17  ;;  %1533 = vmatpush1.bf16.msra.mxu1 %v4587_v50 }
 0x294   :  { %v1350_v63 = vmul.f32 %v2921_v59, %v3827_v55  ;;  %1493 = vmatprep.subr.bf16.mxu0 %v4588_v13  ;;  %1534 = vmatprep.subr.bf16.mxu1 %v4589_v44  ;;  %v4641_v59 = vld [vmem:[#allocation29_spill] sm:$0xff] }
 0x296   :  { %v3917_v53 = vadd.f32 %v1351_v7, %v1350_v63  ;;  %v2923_v55 = vpop.eup %2922  ;;  %v4640_v7 = vld [vmem:[#allocation28_spill] sm:$0xff]  ;;  %v4643_v63 = vld [vmem:[#allocation31_spill] sm:$0xff] }
 0x297   :  { %1494 = vmatpush1.bf16.msra.mxu0 %v4590_v4  ;;  %1535 = vmatpush1.bf16.msra.mxu1 %v4591_v40 }
 0x298   :  { %2924 = vtanh.f32 %v3917_v53  ;;  %1495 = vmatprep.subr.bf16.mxu0 %v4592_v43  ;;  %1536 = vmatprep.subr.bf16.mxu1 %v4593_v37 }
 0x29b   :  { %1496 = vmatpush1.bf16.msra.mxu0 %v4594_v51  ;;  %1537 = vmatpush1.bf16.msra.mxu1 %v4595_v62 }
 0x29c   :  { %1497 = vmatprep.subr.bf16.mxu0 %v3498_v41  ;;  %1538 = vmatprep.subr.bf16.mxu1 %v4596_v39 }
 0x29f   :  { %1498 = vmatpush1.bf16.msra.mxu0 %v3504_v61  ;;  %1539 = vmatpush1.bf16.msra.mxu1 %v3508_v0 }
 0x2a0   :  { %1499 = vmatprep.subr.bf16.mxu0 %v3510_v6  ;;  %1540 = vmatprep.subr.bf16.mxu1 %v3513_v25 }
 0x2a3   :  { %1500 = vmatpush1.bf16.msra.mxu0 %v3516_v31  ;;  %1541 = vmatpush1.bf16.msra.mxu1 %v3520_v23 }
 0x2a4   :  { %1501 = vmatprep.subr.bf16.mxu0 %v3522_v35  ;;  %1542 = vmatprep.subr.bf16.mxu1 %v3525_v2 }
 0x2a5   :  { %v2925_v1 = vpop.eup %2924 }
 0x2a6   :  { %v1354_v19 = vmul.f32 %v2925_v1, %v2923_v55  ;;  %v4644_v55 = vld [vmem:[#allocation32_spill] sm:$0xff]  ;;  %v4645_v1 = vld [vmem:[#allocation33_spill] sm:$0xff] }
 0x2a7   :  { %1502 = vmatpush1.bf16.msra.mxu0 %v3528_v15  ;;  %1543 = vmatpush1.bf16.msra.mxu1 %v3532_v14 }
 0x2a8   :  { %2807 = vst [vmem:[%s4414_s7 + $0x68] sm:$0xff] %v1354_v19  ;;  %v1486_v49 = vpack.c.bf16 %v1354_v19, %v1354_v19  ;;  %1608 = vmatprep.subr.bf16.mxu0 %v3323_v22  ;;  %1649 = vmatprep.subr.bf16.mxu1 %v3326_v26  ;;  %v4646_v19 = vld [vmem:[#allocation34_spill] sm:$0xff] }
 0x2aa   :  { %1520 = vmatmul.mubr.bf16.vlgmr.msra.gmra.mxu0 %v1486_v49  ;;  %1561 = vmatmul.mubr.bf16.vlgmr.msra.gmra.mxu1 %v1486_v49  ;;  %v4647_v49 = vld [vmem:[#allocation35_spill] sm:$0xff] }
 0x2ab   :  { %1609 = vmatpush1.bf16.msra.mxu0 %v3329_v32  ;;  %1650 = vmatpush1.bf16.msra.mxu1 %v3332_v33 }
 0x2ac   :  { %1610 = vmatprep.subr.bf16.mxu0 %v3334_v34  ;;  %1651 = vmatprep.subr.bf16.mxu1 %v3337_v38 }
 0x2ad   :  { %1640 = vmatprep.mubr.bf16.mxu0 %v4526_v18  ;;  %1681 = vmatprep.mubr.bf16.mxu1 %v4526_v18 }
 0x2af   :  { %1611 = vmatpush1.bf16.msra.mxu0 %v3342_v45  ;;  %1652 = vmatpush1.bf16.msra.mxu1 %v3346_v46 }
 0x2b0   :  { %1612 = vmatprep.subr.bf16.mxu0 %v3348_v47  ;;  %1653 = vmatprep.subr.bf16.mxu1 %v4626_v36 }
 0x2b3   :  { %1613 = vmatpush1.bf16.msra.mxu0 %v4627_v16  ;;  %1654 = vmatpush1.bf16.msra.mxu1 %v4628_v12 }
 0x2b4   :  { %1614 = vmatprep.subr.bf16.mxu0 %v4629_v11  ;;  %1655 = vmatprep.subr.bf16.mxu1 %v4630_v8 }
 0x2b7   :  { %1615 = vmatpush1.bf16.msra.mxu0 %v4631_v54  ;;  %1656 = vmatpush1.bf16.msra.mxu1 %v4632_v20 }
 0x2b8   :  { %1616 = vmatprep.subr.bf16.mxu0 %v4633_v9  ;;  %1657 = vmatprep.subr.bf16.mxu1 %v4634_v5 }
 0x2bb   :  { %1617 = vmatpush1.bf16.msra.mxu0 %v4635_v27  ;;  %1658 = vmatpush1.bf16.msra.mxu1 %v4636_v58  ;;  %v4651_v58 = vld [vmem:[#allocation53_spill] sm:$0xff] }
 0x2bc   :  { %1618 = vmatprep.subr.bf16.mxu0 %v4637_v10  ;;  %1659 = vmatprep.subr.bf16.mxu1 %v4638_v24  ;;  %v4648_v10 = vld [vmem:[#allocation36_spill] sm:$0xff]  ;;  %v4649_v24 = vld [vmem:[#allocation37_spill] sm:$0xff] }
 0x2bf   :  { %1619 = vmatpush1.bf16.msra.mxu0 %v4639_v21  ;;  %1660 = vmatpush1.bf16.msra.mxu1 %v4640_v7  ;;  %v4650_v21 = vld [vmem:[#allocation38_spill] sm:$0xff] }
 0x2c0   :  { %1620 = vmatprep.subr.bf16.mxu0 %v4641_v59  ;;  %1661 = vmatprep.subr.bf16.mxu1 %v4642_v57 }
 0x2c3   :  { %1621 = vmatpush1.bf16.msra.mxu0 %v4643_v63  ;;  %1662 = vmatpush1.bf16.msra.mxu1 %v4644_v55  ;;  %v4652_v55 = vld [vmem:[#allocation55_spill] sm:$0xff] }
 0x2c4   :  { %1622 = vmatprep.subr.bf16.mxu0 %v4645_v1  ;;  %1663 = vmatprep.subr.bf16.mxu1 %v4646_v19 }
 0x2c7   :  { %1623 = vmatpush1.bf16.msra.mxu0 %v4647_v49  ;;  %1664 = vmatpush1.bf16.msra.mxu1 %v4648_v10  ;;  %v4653_v10 = vld [vmem:[#allocation54_spill] sm:$0xff] }
 0x2c8   :  { %1729 = vmatprep.subr.bf16.mxu0 %v4649_v24  ;;  %1770 = vmatprep.subr.bf16.mxu1 %v4650_v21  ;;  %v4654_v21 = vld [vmem:[#allocation56_spill] sm:$0xff] }
 0x34a   :  { %v1400_v7 = vpop.f32.mrf.mxu0  ;;  %v1441_v59 = vpop.f32.mrf.mxu1 }
 0x34b   :  { %v1448_v57 = vadd.f32 %v1400_v7, %v4651_v58  ;;  %v1450_v24 = vadd.f32 %v1441_v59, %v4653_v10 }
 0x34c   :  { %v1402_v27 = vpop.f32.mrf.mxu0  ;;  %v1443_v63 = vpop.f32.mrf.mxu1 }
 0x34d   :  { %v2808_v5 = vmul.f32 -1.442695, %v1448_v57  ;;  %v1449_v9 = vadd.f32 %v1402_v27, %v4652_v55  ;;  %v2810_v8 = vmul.f32 -1.442695, %v1450_v24  ;;  %v1451_v11 = vadd.f32 %v1443_v63, %v4654_v21  ;;  %v4655_v57 = vld [vmem:[#allocation97_spill] sm:$0xff]  ;;  %v4656_v21 = vld [vmem:[#allocation99_spill] sm:$0xff] }
 0x34e   :  { %v1404_v1 = vpop.f32.mrf.mxu0  ;;  %v1445_v20 = vpop.f32.mrf.mxu1 }
 0x34f   :  { %2926 = vpow2.f32 %v2808_v5  ;;  %v2809_v19 = vmul.f32 -1.442695, %v1449_v9 }
 0x350   :  { %v1405_v49 = vpop.f32.mrf.mxu0  ;;  %v1446_v54 = vpop.f32.mrf.mxu1 }
 0x351   :  { %2928 = vpow2.f32 %v2809_v19 }
 0x352   :  { %2930 = vpow2.f32 %v2810_v8 }
 0x353   :  { %2932 = vtanh.f32 %v1451_v11 }
 0x35c   :  { %v2927_v12 = vpop.eup %2926 }
 0x35d   :  { %v1461_v16 = vadd.f32 1.0, %v2927_v12 }
 0x35e   :  { %v2929_v58 = vpop.eup %2928 }
 0x35f   :  { %2934 = vrcp.f32 %v1461_v16  ;;  %v1462_v7 = vadd.f32 1.0, %v2929_v58  ;;  %v2931_v27 = vpop.eup %2930 }
 0x360   :  { %v2933_v9 = vpop.eup %2932  ;;  %v1463_v8 = vadd.f32 1.0, %v2931_v27 }
 0x361   :  { %2936 = vrcp.f32 %v1462_v7 }
 0x36a   :  { %v1521_v20 = vpop.f32.mrf.mxu0  ;;  %v1562_v5 = vpop.f32.mrf.mxu1 }
 0x36b   :  { %v1569_v54 = vadd.f32 %v1521_v20, %v4655_v57  ;;  %v4657_v20 = vld [vmem:[#allocation98_spill] sm:$0xff] }
 0x36c   :  { %v2935_v55 = vpop.eup %2934  ;;  %v1523_v1 = vpop.f32.mrf.mxu0 }
 0x36d   :  { %v1564_v10 = vpop.f32.mrf.mxu1  ;;  %v1472_v24 = vmul.f32 %v2935_v55, %v2933_v9  ;;  %v2812_v59 = vmul.f32 -1.442695, %v1569_v54  ;;  %v1570_v63 = vadd.f32 %v1523_v1, %v4656_v21  ;;  %v1571_v9 = vadd.f32 %v1562_v5, %v4657_v20  ;;  %v4658_v54 = vld [vmem:[#allocation100_spill] sm:$0xff] }
 0x36e   :  { %v2937_v12 = vpop.eup %2936  ;;  %v1525_v19 = vpop.f32.mrf.mxu0  ;;  %v1572_v55 = vadd.f32 %v1564_v10, %v4658_v54  ;;  %v4660_v54 = vld [vmem:[#allocation15_spill] sm:$0xff] }
 0x36f   :  { %v1566_v11 = vpop.f32.mrf.mxu1  ;;  %v1471_v16 = vmul.f32 %v2937_v12, %v3894_v48  ;;  %2938 = vpow2.f32 %v2812_v59  ;;  %v2813_v49 = vmul.f32 -1.442695, %v1570_v63  ;;  %v2814_v57 = vmul.f32 -1.442695, %v1571_v9 }
 0x370   :  { %v1526_v58 = vpop.f32.mrf.mxu0 }
 0x371   :  { %v1567_v7 = vpop.f32.mrf.mxu1  ;;  %v3984_v36 = vadd.f32 %v1472_v24, %v1471_v16  ;;  %2940 = vpow2.f32 %v2813_v49 }
 0x372   :  { %2942 = vrcp.f32 %v1463_v8 }
 0x373   :  { %2944 = vtanh.f32 %v3984_v36 }
 0x374   :  { %2946 = vpow2.f32 %v2814_v57  ;;  %v4659_v57 = vld [vmem:[#allocation14_spill] sm:$0xff] }
 0x375   :  { %2948 = vtanh.f32 %v1572_v55  ;;  %v4661_v55 = vld [vmem:[#allocation16_spill] sm:$0xff] }
 0x37c   :  { %v2939_v27 = vpop.eup %2938 }
 0x37d   :  { %v1582_v1 = vadd.f32 1.0, %v2939_v27  ;;  %v4662_v27 = vld [vmem:[#allocation17_spill] sm:$0xff] }
 0x37e   :  { %v2941_v21 = vpop.eup %2940 }
 0x37f   :  { %v2943_v48 = vpop.eup %2942  ;;  %2950 = vrcp.f32 %v1582_v1  ;;  %v1583_v59 = vadd.f32 1.0, %v2941_v21  ;;  %v4663_v1 = vld [vmem:[#allocation18_spill] sm:$0xff]  ;;  %v4664_v21 = vld [vmem:[#allocation19_spill] sm:$0xff] }
 0x380   :  { %v2945_v63 = vpop.eup %2944 }
 0x381   :  { %2952 = vrcp.f32 %v1583_v59  ;;  %v1475_v24 = vmul.f32 %v2945_v63, %v2943_v48  ;;  %v2947_v5 = vpop.eup %2946  ;;  %v4665_v48 = vld [vmem:[#allocation20_spill] sm:$0xff]  ;;  %v4666_v59 = vld [vmem:[#allocation21_spill] sm:$0xff]  ;;  %v4667_v63 = vld [vmem:[#allocation22_spill] sm:$0xff] }
 0x382   :  { %v2949_v10 = vpop.eup %2948  ;;  %v1584_v16 = vadd.f32 1.0, %v2947_v5  ;;  %v4670_v5 = vld [vmem:[#allocation25_spill] sm:$0xff] }
 0x383   :  { %2811 = vst [vmem:[%s4414_s7 + $0x20] sm:$0xff] %v1475_v24  ;;  %v1607_v12 = vpack.c.bf16 %v1475_v24, %v1475_v24  ;;  %v4668_v24 = vld [vmem:[#allocation23_spill] sm:$0xff] }
 0x384   :  { %2954 = vrcp.f32 %v1584_v16  ;;  %v4675_v16 = vld [vmem:[#allocation30_spill] sm:$0xff] }
 0x385   :  { %1641 = vmatmul.mubr.bf16.vlgmr.msra.gmra.mxu0 %v1607_v12  ;;  %1682 = vmatmul.mubr.bf16.vlgmr.msra.gmra.mxu1 %v1607_v12  ;;  %v4669_v12 = vld [vmem:[#allocation24_spill] sm:$0xff] }
 0x386   :  { %1730 = vmatpush1.bf16.msra.mxu0 %v3440_v28  ;;  %1771 = vmatpush1.bf16.msra.mxu1 %v3444_v29 }
 0x387   :  { %1731 = vmatprep.subr.bf16.mxu0 %v3446_v30  ;;  %1772 = vmatprep.subr.bf16.mxu1 %v3449_v42 }
 0x388   :  { %1761 = vmatprep.mubr.bf16.mxu0 %v4526_v18  ;;  %1802 = vmatprep.mubr.bf16.mxu1 %v4526_v18 }
 0x38a   :  { %1732 = vmatpush1.bf16.msra.mxu0 %v3454_v52  ;;  %1773 = vmatpush1.bf16.msra.mxu1 %v3458_v56 }
 0x38b   :  { %1733 = vmatprep.subr.bf16.mxu0 %v3460_v60  ;;  %1774 = vmatprep.subr.bf16.mxu1 %v3463_v3 }
 0x38c   :  { %v2951_v8 = vpop.eup %2950 }
 0x38d   :  { %v1593_v19 = vmul.f32 %v2951_v8, %v2949_v10  ;;  %v4671_v10 = vld [vmem:[#allocation26_spill] sm:$0xff]  ;;  %v4672_v8 = vld [vmem:[#allocation27_spill] sm:$0xff] }
 0x38e   :  { %v2953_v11 = vpop.eup %2952  ;;  %1734 = vmatpush1.bf16.msra.mxu0 %v3468_v17  ;;  %1775 = vmatpush1.bf16.msra.mxu1 %v4587_v50 }
 0x38f   :  { %v1592_v49 = vmul.f32 %v2953_v11, %v3917_v53  ;;  %1735 = vmatprep.subr.bf16.mxu0 %v4588_v13  ;;  %1776 = vmatprep.subr.bf16.mxu1 %v4589_v44  ;;  %v4674_v11 = vld [vmem:[#allocation29_spill] sm:$0xff] }
 0x391   :  { %v4007_v58 = vadd.f32 %v1593_v19, %v1592_v49  ;;  %v2955_v53 = vpop.eup %2954  ;;  %v4673_v19 = vld [vmem:[#allocation28_spill] sm:$0xff]  ;;  %v4676_v49 = vld [vmem:[#allocation31_spill] sm:$0xff] }
 0x392   :  { %1736 = vmatpush1.bf16.msra.mxu0 %v4590_v4  ;;  %1777 = vmatpush1.bf16.msra.mxu1 %v4591_v40 }
 0x393   :  { %2956 = vtanh.f32 %v4007_v58  ;;  %1737 = vmatprep.subr.bf16.mxu0 %v4592_v43  ;;  %1778 = vmatprep.subr.bf16.mxu1 %v4593_v37 }
 0x396   :  { %1738 = vmatpush1.bf16.msra.mxu0 %v4594_v51  ;;  %1779 = vmatpush1.bf16.msra.mxu1 %v4595_v62 }
 0x397   :  { %1739 = vmatprep.subr.bf16.mxu0 %v3498_v41  ;;  %1780 = vmatprep.subr.bf16.mxu1 %v4596_v39 }
 0x39a   :  { %1740 = vmatpush1.bf16.msra.mxu0 %v3504_v61  ;;  %1781 = vmatpush1.bf16.msra.mxu1 %v3508_v0 }
 0x39b   :  { %1741 = vmatprep.subr.bf16.mxu0 %v3510_v6  ;;  %1782 = vmatprep.subr.bf16.mxu1 %v3513_v25 }
 0x39e   :  { %1742 = vmatpush1.bf16.msra.mxu0 %v3516_v31  ;;  %1783 = vmatpush1.bf16.msra.mxu1 %v3520_v23 }
 0x39f   :  { %1743 = vmatprep.subr.bf16.mxu0 %v3522_v35  ;;  %1784 = vmatprep.subr.bf16.mxu1 %v3525_v2 }
 0x3a0   :  { %v2957_v7 = vpop.eup %2956 }
 0x3a1   :  { %v1596_v20 = vmul.f32 %v2957_v7, %v2955_v53  ;;  %v4677_v53 = vld [vmem:[#allocation32_spill] sm:$0xff]  ;;  %v4678_v7 = vld [vmem:[#allocation33_spill] sm:$0xff] }
 0x3a2   :  { %1744 = vmatpush1.bf16.msra.mxu0 %v3528_v15  ;;  %1785 = vmatpush1.bf16.msra.mxu1 %v3532_v14 }
 0x3a3   :  { %2815 = vst [vmem:[%s4414_s7 + $0x58] sm:$0xff] %v1596_v20  ;;  %v1728_v9 = vpack.c.bf16 %v1596_v20, %v1596_v20  ;;  %1850 = vmatprep.subr.bf16.mxu0 %v3323_v22  ;;  %1891 = vmatprep.subr.bf16.mxu1 %v3326_v26  ;;  %v4679_v20 = vld [vmem:[#allocation34_spill] sm:$0xff] }
 0x3a5   :  { %1762 = vmatmul.mubr.bf16.vlgmr.msra.gmra.mxu0 %v1728_v9  ;;  %1803 = vmatmul.mubr.bf16.vlgmr.msra.gmra.mxu1 %v1728_v9  ;;  %v4680_v9 = vld [vmem:[#allocation35_spill] sm:$0xff] }
 0x3a6   :  { %1851 = vmatpush1.bf16.msra.mxu0 %v3329_v32  ;;  %1892 = vmatpush1.bf16.msra.mxu1 %v3332_v33 }
 0x3a7   :  { %1852 = vmatprep.subr.bf16.mxu0 %v3334_v34  ;;  %1893 = vmatprep.subr.bf16.mxu1 %v3337_v38 }
 0x3a8   :  { %1882 = vmatprep.mubr.bf16.mxu0 %v4526_v18  ;;  %1923 = vmatprep.mubr.bf16.mxu1 %v4526_v18 }
 0x3aa   :  { %1853 = vmatpush1.bf16.msra.mxu0 %v3342_v45  ;;  %1894 = vmatpush1.bf16.msra.mxu1 %v3346_v46 }
 0x3ab   :  { %1854 = vmatprep.subr.bf16.mxu0 %v3348_v47  ;;  %1895 = vmatprep.subr.bf16.mxu1 %v4659_v57 }
 0x3ae   :  { %1855 = vmatpush1.bf16.msra.mxu0 %v4660_v54  ;;  %1896 = vmatpush1.bf16.msra.mxu1 %v4661_v55 }
 0x3af   :  { %1856 = vmatprep.subr.bf16.mxu0 %v4662_v27  ;;  %1897 = vmatprep.subr.bf16.mxu1 %v4663_v1 }
 0x3b2   :  { %1857 = vmatpush1.bf16.msra.mxu0 %v4664_v21  ;;  %1898 = vmatpush1.bf16.msra.mxu1 %v4665_v48 }
 0x3b3   :  { %1858 = vmatprep.subr.bf16.mxu0 %v4666_v59  ;;  %1899 = vmatprep.subr.bf16.mxu1 %v4667_v63 }
 0x3b6   :  { %1859 = vmatpush1.bf16.msra.mxu0 %v4668_v24  ;;  %1900 = vmatpush1.bf16.msra.mxu1 %v4669_v12  ;;  %v4684_v12 = vld [vmem:[#allocation57_spill] sm:$0xff] }
 0x3b7   :  { %1860 = vmatprep.subr.bf16.mxu0 %v4670_v5  ;;  %1901 = vmatprep.subr.bf16.mxu1 %v4671_v10  ;;  %v4681_v5 = vld [vmem:[#allocation36_spill] sm:$0xff]  ;;  %v4682_v10 = vld [vmem:[#allocation37_spill] sm:$0xff] }
 0x3ba   :  { %1861 = vmatpush1.bf16.msra.mxu0 %v4672_v8  ;;  %1902 = vmatpush1.bf16.msra.mxu1 %v4673_v19  ;;  %v4683_v8 = vld [vmem:[#allocation38_spill] sm:$0xff] }
 0x3bb   :  { %1862 = vmatprep.subr.bf16.mxu0 %v4674_v11  ;;  %1903 = vmatprep.subr.bf16.mxu1 %v4675_v16 }
 0x3be   :  { %1863 = vmatpush1.bf16.msra.mxu0 %v4676_v49  ;;  %1904 = vmatpush1.bf16.msra.mxu1 %v4677_v53  ;;  %v4685_v53 = vld [vmem:[#allocation59_spill] sm:$0xff] }
 0x3bf   :  { %1864 = vmatprep.subr.bf16.mxu0 %v4678_v7  ;;  %1905 = vmatprep.subr.bf16.mxu1 %v4679_v20 }
 0x3c2   :  { %1865 = vmatpush1.bf16.msra.mxu0 %v4680_v9  ;;  %1906 = vmatpush1.bf16.msra.mxu1 %v4681_v5  ;;  %v4686_v5 = vld [vmem:[#allocation58_spill] sm:$0xff] }
 0x3c3   :  { %1967 = vmatprep.subr.bf16.mxu0 %v4682_v10  ;;  %2008 = vmatprep.subr.bf16.mxu1 %v4683_v8  ;;  %v4687_v8 = vld [vmem:[#allocation60_spill] sm:$0xff] }
 0x445   :  { %v1642_v19 = vpop.f32.mrf.mxu0  ;;  %v1683_v11 = vpop.f32.mrf.mxu1 }
 0x446   :  { %v1690_v16 = vadd.f32 %v1642_v19, %v4684_v12  ;;  %v1692_v10 = vadd.f32 %v1683_v11, %v4686_v5 }
 0x447   :  { %v1644_v24 = vpop.f32.mrf.mxu0  ;;  %v1685_v49 = vpop.f32.mrf.mxu1 }
 0x448   :  { %v2816_v63 = vmul.f32 -1.442695, %v1690_v16  ;;  %v1691_v59 = vadd.f32 %v1644_v24, %v4685_v53  ;;  %v2818_v1 = vmul.f32 -1.442695, %v1692_v10  ;;  %v1693_v27 = vadd.f32 %v1685_v49, %v4687_v8  ;;  %v4688_v16 = vld [vmem:[#allocation93_spill] sm:$0xff]  ;;  %v4689_v8 = vld [vmem:[#allocation95_spill] sm:$0xff] }
 0x449   :  { %v1646_v7 = vpop.f32.mrf.mxu0  ;;  %v1687_v48 = vpop.f32.mrf.mxu1 }
 0x44a   :  { %2958 = vpow2.f32 %v2816_v63  ;;  %v2817_v20 = vmul.f32 -1.442695, %v1691_v59 }
 0x44b   :  { %v1647_v9 = vpop.f32.mrf.mxu0  ;;  %v1688_v21 = vpop.f32.mrf.mxu1 }
 0x44c   :  { %2960 = vpow2.f32 %v2817_v20 }
 0x44d   :  { %2962 = vpow2.f32 %v2818_v1 }
 0x44e   :  { %2964 = vtanh.f32 %v1693_v27 }
 0x457   :  { %v2959_v55 = vpop.eup %2958 }
 0x458   :  { %v1703_v54 = vadd.f32 1.0, %v2959_v55 }
 0x459   :  { %v2961_v12 = vpop.eup %2960 }
 0x45a   :  { %2966 = vrcp.f32 %v1703_v54  ;;  %v1704_v19 = vadd.f32 1.0, %v2961_v12  ;;  %v2963_v24 = vpop.eup %2962 }
 0x45b   :  { %v2965_v59 = vpop.eup %2964  ;;  %v1705_v1 = vadd.f32 1.0, %v2963_v24 }
 0x45c   :  { %2968 = vrcp.f32 %v1704_v19 }
 0x465   :  { %v1763_v48 = vpop.f32.mrf.mxu0  ;;  %v1804_v63 = vpop.f32.mrf.mxu1 }
 0x466   :  { %v1811_v21 = vadd.f32 %v1763_v48, %v4688_v16  ;;  %v4690_v48 = vld [vmem:[#allocation94_spill] sm:$0xff] }
 0x467   :  { %v2967_v53 = vpop.eup %2966  ;;  %v1765_v7 = vpop.f32.mrf.mxu0 }
 0x468   :  { %v1806_v5 = vpop.f32.mrf.mxu1  ;;  %v1714_v10 = vmul.f32 %v2967_v53, %v2965_v59  ;;  %v2820_v11 = vmul.f32 -1.442695, %v1811_v21  ;;  %v1812_v49 = vadd.f32 %v1765_v7, %v4689_v8  ;;  %v1813_v59 = vadd.f32 %v1804_v63, %v4690_v48  ;;  %v4691_v21 = vld [vmem:[#allocation96_spill] sm:$0xff] }
 0x469   :  { %v2969_v55 = vpop.eup %2968  ;;  %v1767_v20 = vpop.f32.mrf.mxu0  ;;  %v1814_v53 = vadd.f32 %v1806_v5, %v4691_v21  ;;  %v4693_v21 = vld [vmem:[#allocation15_spill] sm:$0xff] }
 0x46a   :  { %v1808_v27 = vpop.f32.mrf.mxu1  ;;  %v1713_v54 = vmul.f32 %v2969_v55, %v3984_v36  ;;  %2970 = vpow2.f32 %v2820_v11  ;;  %v2821_v9 = vmul.f32 -1.442695, %v1812_v49  ;;  %v2822_v16 = vmul.f32 -1.442695, %v1813_v59 }
 0x46b   :  { %v1768_v12 = vpop.f32.mrf.mxu0 }
 0x46c   :  { %v1809_v19 = vpop.f32.mrf.mxu1  ;;  %v4074_v57 = vadd.f32 %v1714_v10, %v1713_v54  ;;  %2972 = vpow2.f32 %v2821_v9 }
 0x46d   :  { %2974 = vrcp.f32 %v1705_v1 }
 0x46e   :  { %2976 = vtanh.f32 %v4074_v57 }
 0x46f   :  { %2978 = vpow2.f32 %v2822_v16  ;;  %v4692_v16 = vld [vmem:[#allocation14_spill] sm:$0xff] }
 0x470   :  { %2980 = vtanh.f32 %v1814_v53  ;;  %v4694_v53 = vld [vmem:[#allocation16_spill] sm:$0xff] }
 0x477   :  { %v2971_v24 = vpop.eup %2970 }
 0x478   :  { %v1824_v7 = vadd.f32 1.0, %v2971_v24  ;;  %v4695_v24 = vld [vmem:[#allocation17_spill] sm:$0xff] }
 0x479   :  { %v2973_v8 = vpop.eup %2972 }
 0x47a   :  { %v2975_v36 = vpop.eup %2974  ;;  %2982 = vrcp.f32 %v1824_v7  ;;  %v1825_v11 = vadd.f32 1.0, %v2973_v8  ;;  %v4696_v7 = vld [vmem:[#allocation18_spill] sm:$0xff]  ;;  %v4697_v8 = vld [vmem:[#allocation19_spill] sm:$0xff] }
 0x47b   :  { %v2977_v49 = vpop.eup %2976 }
 0x47c   :  { %2984 = vrcp.f32 %v1825_v11  ;;  %v1717_v10 = vmul.f32 %v2977_v49, %v2975_v36  ;;  %v2979_v63 = vpop.eup %2978  ;;  %v4698_v36 = vld [vmem:[#allocation20_spill] sm:$0xff]  ;;  %v4699_v11 = vld [vmem:[#allocation21_spill] sm:$0xff]  ;;  %v4700_v49 = vld [vmem:[#allocation22_spill] sm:$0xff] }
 0x47d   :  { %v2981_v5 = vpop.eup %2980  ;;  %v1826_v54 = vadd.f32 1.0, %v2979_v63  ;;  %v4703_v63 = vld [vmem:[#allocation25_spill] sm:$0xff] }
 0x47e   :  { %2819 = vst [vmem:[%s4414_s7 + $0x30] sm:$0xff] %v1717_v10  ;;  %v1849_v55 = vpack.c.bf16 %v1717_v10, %v1717_v10  ;;  %v4701_v10 = vld [vmem:[#allocation23_spill] sm:$0xff] }
 0x47f   :  { %2986 = vrcp.f32 %v1826_v54  ;;  %v4708_v54 = vld [vmem:[#allocation30_spill] sm:$0xff] }
 0x480   :  { %1883 = vmatmul.mubr.bf16.vlgmr.msra.gmra.mxu0 %v1849_v55  ;;  %1924 = vmatmul.mubr.bf16.vlgmr.msra.gmra.mxu1 %v1849_v55  ;;  %v4702_v55 = vld [vmem:[#allocation24_spill] sm:$0xff] }
 0x481   :  { %1968 = vmatpush1.bf16.msra.mxu0 %v3440_v28  ;;  %2009 = vmatpush1.bf16.msra.mxu1 %v3444_v29 }
 0x482   :  { %1969 = vmatprep.subr.bf16.mxu0 %v3446_v30  ;;  %2010 = vmatprep.subr.bf16.mxu1 %v3449_v42 }
 0x483   :  { %1999 = vmatprep.mubr.bf16.mxu0 %v4526_v18  ;;  %2040 = vmatprep.mubr.bf16.mxu1 %v4526_v18 }
 0x485   :  { %1970 = vmatpush1.bf16.msra.mxu0 %v3454_v52  ;;  %2011 = vmatpush1.bf16.msra.mxu1 %v3458_v56 }
 0x486   :  { %1971 = vmatprep.subr.bf16.mxu0 %v3460_v60  ;;  %2012 = vmatprep.subr.bf16.mxu1 %v3463_v3 }
 0x487   :  { %v2983_v1 = vpop.eup %2982 }
 0x488   :  { %v1835_v20 = vmul.f32 %v2983_v1, %v2981_v5  ;;  %v4704_v5 = vld [vmem:[#allocation26_spill] sm:$0xff]  ;;  %v4705_v1 = vld [vmem:[#allocation27_spill] sm:$0xff] }
 0x489   :  { %v2985_v27 = vpop.eup %2984  ;;  %1972 = vmatpush1.bf16.msra.mxu0 %v3468_v17  ;;  %2013 = vmatpush1.bf16.msra.mxu1 %v4587_v50 }
 0x48a   :  { %v1834_v9 = vmul.f32 %v2985_v27, %v4007_v58  ;;  %1973 = vmatprep.subr.bf16.mxu0 %v4588_v13  ;;  %2014 = vmatprep.subr.bf16.mxu1 %v4589_v44  ;;  %v4707_v27 = vld [vmem:[#allocation29_spill] sm:$0xff] }
 0x48c   :  { %v4097_v12 = vadd.f32 %v1835_v20, %v1834_v9  ;;  %v2987_v58 = vpop.eup %2986  ;;  %v4706_v20 = vld [vmem:[#allocation28_spill] sm:$0xff]  ;;  %v4709_v9 = vld [vmem:[#allocation31_spill] sm:$0xff] }
 0x48d   :  { %1974 = vmatpush1.bf16.msra.mxu0 %v4590_v4  ;;  %2015 = vmatpush1.bf16.msra.mxu1 %v4591_v40 }
 0x48e   :  { %2988 = vtanh.f32 %v4097_v12  ;;  %1975 = vmatprep.subr.bf16.mxu0 %v4592_v43  ;;  %2016 = vmatprep.subr.bf16.mxu1 %v4593_v37 }
 0x491   :  { %1976 = vmatpush1.bf16.msra.mxu0 %v4594_v51  ;;  %2017 = vmatpush1.bf16.msra.mxu1 %v4595_v62 }
 0x492   :  { %1977 = vmatprep.subr.bf16.mxu0 %v3498_v41  ;;  %2018 = vmatprep.subr.bf16.mxu1 %v4596_v39 }
 0x495   :  { %1978 = vmatpush1.bf16.msra.mxu0 %v3504_v61  ;;  %2019 = vmatpush1.bf16.msra.mxu1 %v3508_v0 }
 0x496   :  { %1979 = vmatprep.subr.bf16.mxu0 %v3510_v6  ;;  %2020 = vmatprep.subr.bf16.mxu1 %v3513_v25 }
 0x499   :  { %1980 = vmatpush1.bf16.msra.mxu0 %v3516_v31  ;;  %2021 = vmatpush1.bf16.msra.mxu1 %v3520_v23 }
 0x49a   :  { %1981 = vmatprep.subr.bf16.mxu0 %v3522_v35  ;;  %2022 = vmatprep.subr.bf16.mxu1 %v3525_v2 }
 0x49b   :  { %v2989_v19 = vpop.eup %2988 }
 0x49c   :  { %v1838_v48 = vmul.f32 %v2989_v19, %v2987_v58  ;;  %v4710_v58 = vld [vmem:[#allocation32_spill] sm:$0xff]  ;;  %v4711_v19 = vld [vmem:[#allocation33_spill] sm:$0xff] }
 0x49d   :  { %1982 = vmatpush1.bf16.msra.mxu0 %v3528_v15  ;;  %2023 = vmatpush1.bf16.msra.mxu1 %v3532_v14 }
 0x49e   :  { %2823 = vst [vmem:[%s4414_s7 + $0x48] sm:$0xff] %v1838_v48  ;;  %v1966_v59 = vpack.c.bf16 %v1838_v48, %v1838_v48  ;;  %2084 = vmatprep.subr.bf16.mxu0 %v3323_v22  ;;  %2125 = vmatprep.subr.bf16.mxu1 %v3326_v26  ;;  %v4712_v48 = vld [vmem:[#allocation34_spill] sm:$0xff] }
 0x4a0   :  { %2000 = vmatmul.mubr.bf16.vlgmr.msra.gmra.mxu0 %v1966_v59  ;;  %2041 = vmatmul.mubr.bf16.vlgmr.msra.gmra.mxu1 %v1966_v59  ;;  %v4713_v59 = vld [vmem:[#allocation35_spill] sm:$0xff] }
 0x4a1   :  { %2085 = vmatpush1.bf16.msra.mxu0 %v3329_v32  ;;  %2126 = vmatpush1.bf16.msra.mxu1 %v3332_v33 }
 0x4a2   :  { %2086 = vmatprep.subr.bf16.mxu0 %v3334_v34  ;;  %2127 = vmatprep.subr.bf16.mxu1 %v3337_v38 }
 0x4a3   :  { %2116 = vmatprep.mubr.bf16.mxu0 %v4526_v18  ;;  %2157 = vmatprep.mubr.bf16.mxu1 %v4526_v18 }
 0x4a5   :  { %2087 = vmatpush1.bf16.msra.mxu0 %v3342_v45  ;;  %2128 = vmatpush1.bf16.msra.mxu1 %v3346_v46 }
 0x4a6   :  { %2088 = vmatprep.subr.bf16.mxu0 %v3348_v47  ;;  %2129 = vmatprep.subr.bf16.mxu1 %v4692_v16 }
 0x4a9   :  { %2089 = vmatpush1.bf16.msra.mxu0 %v4693_v21  ;;  %2130 = vmatpush1.bf16.msra.mxu1 %v4694_v53 }
 0x4aa   :  { %2090 = vmatprep.subr.bf16.mxu0 %v4695_v24  ;;  %2131 = vmatprep.subr.bf16.mxu1 %v4696_v7 }
 0x4ad   :  { %2091 = vmatpush1.bf16.msra.mxu0 %v4697_v8  ;;  %2132 = vmatpush1.bf16.msra.mxu1 %v4698_v36 }
 0x4ae   :  { %2092 = vmatprep.subr.bf16.mxu0 %v4699_v11  ;;  %2133 = vmatprep.subr.bf16.mxu1 %v4700_v49 }
 0x4b1   :  { %2093 = vmatpush1.bf16.msra.mxu0 %v4701_v10  ;;  %2134 = vmatpush1.bf16.msra.mxu1 %v4702_v55  ;;  %v4717_v55 = vld [vmem:[#allocation61_spill] sm:$0xff] }
 0x4b2   :  { %2094 = vmatprep.subr.bf16.mxu0 %v4703_v63  ;;  %2135 = vmatprep.subr.bf16.mxu1 %v4704_v5  ;;  %v4714_v63 = vld [vmem:[#allocation36_spill] sm:$0xff]  ;;  %v4715_v5 = vld [vmem:[#allocation37_spill] sm:$0xff] }
 0x4b5   :  { %2095 = vmatpush1.bf16.msra.mxu0 %v4705_v1  ;;  %2136 = vmatpush1.bf16.msra.mxu1 %v4706_v20  ;;  %v4716_v1 = vld [vmem:[#allocation38_spill] sm:$0xff] }
 0x4b6   :  { %2096 = vmatprep.subr.bf16.mxu0 %v4707_v27  ;;  %2137 = vmatprep.subr.bf16.mxu1 %v4708_v54 }
 0x4b9   :  { %2097 = vmatpush1.bf16.msra.mxu0 %v4709_v9  ;;  %2138 = vmatpush1.bf16.msra.mxu1 %v4710_v58  ;;  %v4718_v58 = vld [vmem:[#allocation63_spill] sm:$0xff] }
 0x4ba   :  { %2098 = vmatprep.subr.bf16.mxu0 %v4711_v19  ;;  %2139 = vmatprep.subr.bf16.mxu1 %v4712_v48 }
 0x4bd   :  { %2099 = vmatpush1.bf16.msra.mxu0 %v4713_v59  ;;  %2140 = vmatpush1.bf16.msra.mxu1 %v4714_v63  ;;  %v4719_v63 = vld [vmem:[#allocation62_spill] sm:$0xff] }
 0x4be   :  { %2201 = vmatprep.subr.bf16.mxu0 %v4715_v5  ;;  %2242 = vmatprep.subr.bf16.mxu1 %v4716_v1  ;;  %v4720_v1 = vld [vmem:[#allocation64_spill] sm:$0xff] }
 0x540   :  { %v1884_v20 = vpop.f32.mrf.mxu0  ;;  %v1925_v27 = vpop.f32.mrf.mxu1 }
 0x541   :  { %v1932_v54 = vadd.f32 %v1884_v20, %v4717_v55  ;;  %v1934_v5 = vadd.f32 %v1925_v27, %v4719_v63 }
 0x542   :  { %v1886_v10 = vpop.f32.mrf.mxu0  ;;  %v1927_v9 = vpop.f32.mrf.mxu1 }
 0x543   :  { %v2824_v49 = vmul.f32 -1.442695, %v1932_v54  ;;  %v1933_v11 = vadd.f32 %v1886_v10, %v4718_v58  ;;  %v2826_v7 = vmul.f32 -1.442695, %v1934_v5  ;;  %v1935_v24 = vadd.f32 %v1927_v9, %v4720_v1  ;;  %v4721_v54 = vld [vmem:[#allocation89_spill] sm:$0xff]  ;;  %v4722_v1 = vld [vmem:[#allocation91_spill] sm:$0xff] }
 0x544   :  { %v1888_v19 = vpop.f32.mrf.mxu0  ;;  %v1929_v36 = vpop.f32.mrf.mxu1 }
 0x545   :  { %2990 = vpow2.f32 %v2824_v49  ;;  %v2825_v48 = vmul.f32 -1.442695, %v1933_v11 }
 0x546   :  { %v1889_v59 = vpop.f32.mrf.mxu0  ;;  %v1930_v8 = vpop.f32.mrf.mxu1 }
 0x547   :  { %2992 = vpow2.f32 %v2825_v48 }
 0x548   :  { %2994 = vpow2.f32 %v2826_v7 }
 0x549   :  { %2996 = vtanh.f32 %v1935_v24 }
 0x552   :  { %v2991_v53 = vpop.eup %2990 }
 0x553   :  { %v1945_v21 = vadd.f32 1.0, %v2991_v53 }
 0x554   :  { %v2993_v55 = vpop.eup %2992 }
 0x555   :  { %2998 = vrcp.f32 %v1945_v21  ;;  %v1946_v20 = vadd.f32 1.0, %v2993_v55  ;;  %v2995_v10 = vpop.eup %2994 }
 0x556   :  { %v2997_v11 = vpop.eup %2996  ;;  %v1947_v7 = vadd.f32 1.0, %v2995_v10 }
 0x557   :  { %3000 = vrcp.f32 %v1946_v20 }
 0x560   :  { %v2001_v36 = vpop.f32.mrf.mxu0  ;;  %v2042_v49 = vpop.f32.mrf.mxu1 }
 0x561   :  { %v2049_v8 = vadd.f32 %v2001_v36, %v4721_v54  ;;  %v4723_v36 = vld [vmem:[#allocation90_spill] sm:$0xff] }
 0x562   :  { %v2999_v58 = vpop.eup %2998  ;;  %v2003_v19 = vpop.f32.mrf.mxu0 }
 0x563   :  { %v2044_v63 = vpop.f32.mrf.mxu1  ;;  %v1956_v5 = vmul.f32 %v2999_v58, %v2997_v11  ;;  %v2828_v27 = vmul.f32 -1.442695, %v2049_v8  ;;  %v2050_v9 = vadd.f32 %v2003_v19, %v4722_v1  ;;  %v2051_v11 = vadd.f32 %v2042_v49, %v4723_v36  ;;  %v4724_v8 = vld [vmem:[#allocation92_spill] sm:$0xff] }
 0x564   :  { %v3001_v53 = vpop.eup %3000  ;;  %v2005_v48 = vpop.f32.mrf.mxu0  ;;  %v2052_v58 = vadd.f32 %v2044_v63, %v4724_v8  ;;  %v4726_v8 = vld [vmem:[#allocation15_spill] sm:$0xff] }
 0x565   :  { %v2046_v24 = vpop.f32.mrf.mxu1  ;;  %v1955_v21 = vmul.f32 %v3001_v53, %v4074_v57  ;;  %3002 = vpow2.f32 %v2828_v27  ;;  %v2829_v59 = vmul.f32 -1.442695, %v2050_v9  ;;  %v2830_v54 = vmul.f32 -1.442695, %v2051_v11 }
 0x566   :  { %v2006_v55 = vpop.f32.mrf.mxu0 }
 0x567   :  { %v2047_v20 = vpop.f32.mrf.mxu1  ;;  %v4164_v16 = vadd.f32 %v1956_v5, %v1955_v21  ;;  %3004 = vpow2.f32 %v2829_v59 }
 0x568   :  { %3006 = vrcp.f32 %v1947_v7 }
 0x569   :  { %3008 = vtanh.f32 %v4164_v16 }
 0x56a   :  { %3010 = vpow2.f32 %v2830_v54  ;;  %v4725_v54 = vld [vmem:[#allocation14_spill] sm:$0xff] }
 0x56b   :  { %3012 = vtanh.f32 %v2052_v58  ;;  %v4727_v58 = vld [vmem:[#allocation16_spill] sm:$0xff] }
 0x572   :  { %v3003_v10 = vpop.eup %3002 }
 0x573   :  { %v2062_v19 = vadd.f32 1.0, %v3003_v10  ;;  %v4728_v10 = vld [vmem:[#allocation17_spill] sm:$0xff] }
 0x574   :  { %v3005_v1 = vpop.eup %3004 }
 0x575   :  { %v3007_v57 = vpop.eup %3006  ;;  %3014 = vrcp.f32 %v2062_v19  ;;  %v2063_v27 = vadd.f32 1.0, %v3005_v1  ;;  %v4729_v19 = vld [vmem:[#allocation18_spill] sm:$0xff]  ;;  %v4730_v1 = vld [vmem:[#allocation19_spill] sm:$0xff] }
 0x576   :  { %v3009_v9 = vpop.eup %3008 }
 0x577   :  { %3016 = vrcp.f32 %v2063_v27  ;;  %v1959_v5 = vmul.f32 %v3009_v9, %v3007_v57  ;;  %v3011_v49 = vpop.eup %3010  ;;  %v4731_v57 = vld [vmem:[#allocation20_spill] sm:$0xff]  ;;  %v4732_v27 = vld [vmem:[#allocation21_spill] sm:$0xff]  ;;  %v4733_v9 = vld [vmem:[#allocation22_spill] sm:$0xff] }
 0x578   :  { %v3013_v63 = vpop.eup %3012  ;;  %v2064_v21 = vadd.f32 1.0, %v3011_v49  ;;  %v4736_v49 = vld [vmem:[#allocation25_spill] sm:$0xff] }
 0x579   :  { %2827 = vst [vmem:[%s4414_s7 + $0x40] sm:$0xff] %v1959_v5  ;;  %v2083_v53 = vpack.c.bf16 %v1959_v5, %v1959_v5  ;;  %v4734_v5 = vld [vmem:[#allocation23_spill] sm:$0xff] }
 0x57a   :  { %3018 = vrcp.f32 %v2064_v21  ;;  %v4741_v21 = vld [vmem:[#allocation30_spill] sm:$0xff] }
 0x57b   :  { %2117 = vmatmul.mubr.bf16.vlgmr.msra.gmra.mxu0 %v2083_v53  ;;  %2158 = vmatmul.mubr.bf16.vlgmr.msra.gmra.mxu1 %v2083_v53  ;;  %v4735_v53 = vld [vmem:[#allocation24_spill] sm:$0xff] }
 0x57c   :  { %2202 = vmatpush1.bf16.msra.mxu0 %v3440_v28  ;;  %2243 = vmatpush1.bf16.msra.mxu1 %v3444_v29 }
 0x57d   :  { %2203 = vmatprep.subr.bf16.mxu0 %v3446_v30  ;;  %2244 = vmatprep.subr.bf16.mxu1 %v3449_v42 }
 0x57e   :  { %2233 = vmatprep.mubr.bf16.mxu0 %v4526_v18  ;;  %2274 = vmatprep.mubr.bf16.mxu1 %v4526_v18 }
 0x580   :  { %2204 = vmatpush1.bf16.msra.mxu0 %v3454_v52  ;;  %2245 = vmatpush1.bf16.msra.mxu1 %v3458_v56 }
 0x581   :  { %2205 = vmatprep.subr.bf16.mxu0 %v3460_v60  ;;  %2246 = vmatprep.subr.bf16.mxu1 %v3463_v3 }
 0x582   :  { %v3015_v7 = vpop.eup %3014 }
 0x583   :  { %v2073_v48 = vmul.f32 %v3015_v7, %v3013_v63  ;;  %v4737_v63 = vld [vmem:[#allocation26_spill] sm:$0xff]  ;;  %v4738_v7 = vld [vmem:[#allocation27_spill] sm:$0xff] }
 0x584   :  { %v3017_v24 = vpop.eup %3016  ;;  %2206 = vmatpush1.bf16.msra.mxu0 %v3468_v17  ;;  %2247 = vmatpush1.bf16.msra.mxu1 %v4587_v50 }
 0x585   :  { %v2072_v59 = vmul.f32 %v3017_v24, %v4097_v12  ;;  %2207 = vmatprep.subr.bf16.mxu0 %v4588_v13  ;;  %2248 = vmatprep.subr.bf16.mxu1 %v4589_v44  ;;  %v4740_v24 = vld [vmem:[#allocation29_spill] sm:$0xff] }
 0x587   :  { %v4187_v55 = vadd.f32 %v2073_v48, %v2072_v59  ;;  %v3019_v12 = vpop.eup %3018  ;;  %v4739_v48 = vld [vmem:[#allocation28_spill] sm:$0xff]  ;;  %v4742_v59 = vld [vmem:[#allocation31_spill] sm:$0xff] }
 0x588   :  { %2208 = vmatpush1.bf16.msra.mxu0 %v4590_v4  ;;  %2249 = vmatpush1.bf16.msra.mxu1 %v4591_v40 }
 0x589   :  { %3020 = vtanh.f32 %v4187_v55  ;;  %2209 = vmatprep.subr.bf16.mxu0 %v4592_v43  ;;  %2250 = vmatprep.subr.bf16.mxu1 %v4593_v37 }
 0x58c   :  { %2210 = vmatpush1.bf16.msra.mxu0 %v4594_v51  ;;  %2251 = vmatpush1.bf16.msra.mxu1 %v4595_v62 }
 0x58d   :  { %2211 = vmatprep.subr.bf16.mxu0 %v3498_v41  ;;  %2252 = vmatprep.subr.bf16.mxu1 %v4596_v39 }
 0x590   :  { %2212 = vmatpush1.bf16.msra.mxu0 %v3504_v61  ;;  %2253 = vmatpush1.bf16.msra.mxu1 %v3508_v0 }
 0x591   :  { %2213 = vmatprep.subr.bf16.mxu0 %v3510_v6  ;;  %2254 = vmatprep.subr.bf16.mxu1 %v3513_v25 }
 0x594   :  { %2214 = vmatpush1.bf16.msra.mxu0 %v3516_v31  ;;  %2255 = vmatpush1.bf16.msra.mxu1 %v3520_v23 }
 0x595   :  { %2215 = vmatprep.subr.bf16.mxu0 %v3522_v35  ;;  %2256 = vmatprep.subr.bf16.mxu1 %v3525_v2 }
 0x596   :  { %v3021_v20 = vpop.eup %3020 }
 0x597   :  { %v2076_v36 = vmul.f32 %v3021_v20, %v3019_v12  ;;  %v4743_v12 = vld [vmem:[#allocation32_spill] sm:$0xff]  ;;  %v4744_v20 = vld [vmem:[#allocation33_spill] sm:$0xff] }
 0x598   :  { %2216 = vmatpush1.bf16.msra.mxu0 %v3528_v15  ;;  %2257 = vmatpush1.bf16.msra.mxu1 %v3532_v14 }
 0x599   :  { %2831 = vst [vmem:[%s4414_s7 + $0x38] sm:$0xff] %v2076_v36  ;;  %v2200_v11 = vpack.c.bf16 %v2076_v36, %v2076_v36  ;;  %2318 = vmatprep.subr.bf16.mxu0 %v3323_v22  ;;  %2359 = vmatprep.subr.bf16.mxu1 %v3326_v26  ;;  %v4745_v36 = vld [vmem:[#allocation34_spill] sm:$0xff] }
 0x59b   :  { %2234 = vmatmul.mubr.bf16.vlgmr.msra.gmra.mxu0 %v2200_v11  ;;  %2275 = vmatmul.mubr.bf16.vlgmr.msra.gmra.mxu1 %v2200_v11  ;;  %v4746_v11 = vld [vmem:[#allocation35_spill] sm:$0xff] }
 0x59c   :  { %2319 = vmatpush1.bf16.msra.mxu0 %v3329_v32  ;;  %2360 = vmatpush1.bf16.msra.mxu1 %v3332_v33 }
 0x59d   :  { %2320 = vmatprep.subr.bf16.mxu0 %v3334_v34  ;;  %2361 = vmatprep.subr.bf16.mxu1 %v3337_v38 }
 0x59e   :  { %2350 = vmatprep.mubr.bf16.mxu0 %v4526_v18  ;;  %2391 = vmatprep.mubr.bf16.mxu1 %v4526_v18 }
 0x5a0   :  { %2321 = vmatpush1.bf16.msra.mxu0 %v3342_v45  ;;  %2362 = vmatpush1.bf16.msra.mxu1 %v3346_v46 }
 0x5a1   :  { %2322 = vmatprep.subr.bf16.mxu0 %v3348_v47  ;;  %2363 = vmatprep.subr.bf16.mxu1 %v4725_v54 }
 0x5a4   :  { %2323 = vmatpush1.bf16.msra.mxu0 %v4726_v8  ;;  %2364 = vmatpush1.bf16.msra.mxu1 %v4727_v58 }
 0x5a5   :  { %2324 = vmatprep.subr.bf16.mxu0 %v4728_v10  ;;  %2365 = vmatprep.subr.bf16.mxu1 %v4729_v19 }
 0x5a8   :  { %2325 = vmatpush1.bf16.msra.mxu0 %v4730_v1  ;;  %2366 = vmatpush1.bf16.msra.mxu1 %v4731_v57 }
 0x5a9   :  { %2326 = vmatprep.subr.bf16.mxu0 %v4732_v27  ;;  %2367 = vmatprep.subr.bf16.mxu1 %v4733_v9 }
 0x5ac   :  { %2327 = vmatpush1.bf16.msra.mxu0 %v4734_v5  ;;  %2368 = vmatpush1.bf16.msra.mxu1 %v4735_v53  ;;  %v4750_v53 = vld [vmem:[#allocation65_spill] sm:$0xff] }
 0x5ad   :  { %2328 = vmatprep.subr.bf16.mxu0 %v4736_v49  ;;  %2369 = vmatprep.subr.bf16.mxu1 %v4737_v63  ;;  %v4747_v49 = vld [vmem:[#allocation36_spill] sm:$0xff]  ;;  %v4748_v63 = vld [vmem:[#allocation37_spill] sm:$0xff] }
 0x5b0   :  { %2329 = vmatpush1.bf16.msra.mxu0 %v4738_v7  ;;  %2370 = vmatpush1.bf16.msra.mxu1 %v4739_v48  ;;  %v4749_v7 = vld [vmem:[#allocation38_spill] sm:$0xff] }
 0x5b1   :  { %2330 = vmatprep.subr.bf16.mxu0 %v4740_v24  ;;  %2371 = vmatprep.subr.bf16.mxu1 %v4741_v21 }
 0x5b4   :  { %2331 = vmatpush1.bf16.msra.mxu0 %v4742_v59  ;;  %2372 = vmatpush1.bf16.msra.mxu1 %v4743_v12  ;;  %v4751_v12 = vld [vmem:[#allocation67_spill] sm:$0xff] }
 0x5b5   :  { %2332 = vmatprep.subr.bf16.mxu0 %v4744_v20  ;;  %2373 = vmatprep.subr.bf16.mxu1 %v4745_v36 }
 0x5b8   :  { %2333 = vmatpush1.bf16.msra.mxu0 %v4746_v11  ;;  %2374 = vmatpush1.bf16.msra.mxu1 %v4747_v49  ;;  %v4752_v49 = vld [vmem:[#allocation66_spill] sm:$0xff] }
 0x5b9   :  { %2435 = vmatprep.subr.bf16.mxu0 %v4748_v63  ;;  %2476 = vmatprep.subr.bf16.mxu1 %v4749_v7  ;;  %v4753_v7 = vld [vmem:[#allocation68_spill] sm:$0xff] }
 0x63b   :  { %v2118_v48 = vpop.f32.mrf.mxu0  ;;  %v2159_v24 = vpop.f32.mrf.mxu1 }
 0x63c   :  { %v2166_v21 = vadd.f32 %v2118_v48, %v4750_v53  ;;  %v2168_v63 = vadd.f32 %v2159_v24, %v4752_v49 }
 0x63d   :  { %v2120_v5 = vpop.f32.mrf.mxu0  ;;  %v2161_v59 = vpop.f32.mrf.mxu1 }
 0x63e   :  { %v2832_v9 = vmul.f32 -1.442695, %v2166_v21  ;;  %v2167_v27 = vadd.f32 %v2120_v5, %v4751_v12  ;;  %v2834_v19 = vmul.f32 -1.442695, %v2168_v63  ;;  %v2169_v10 = vadd.f32 %v2161_v59, %v4753_v7  ;;  %v4754_v21 = vld [vmem:[#allocation85_spill] sm:$0xff]  ;;  %v4755_v7 = vld [vmem:[#allocation87_spill] sm:$0xff] }
 0x63f   :  { %v2122_v20 = vpop.f32.mrf.mxu0  ;;  %v2163_v57 = vpop.f32.mrf.mxu1 }
 0x640   :  { %3022 = vpow2.f32 %v2832_v9  ;;  %v2833_v36 = vmul.f32 -1.442695, %v2167_v27 }
 0x641   :  { %v2123_v11 = vpop.f32.mrf.mxu0  ;;  %v2164_v1 = vpop.f32.mrf.mxu1 }
 0x642   :  { %3024 = vpow2.f32 %v2833_v36 }
 0x643   :  { %3026 = vpow2.f32 %v2834_v19 }
 0x644   :  { %3028 = vtanh.f32 %v2169_v10 }
 0x64d   :  { %v3023_v58 = vpop.eup %3022 }
 0x64e   :  { %v2179_v8 = vadd.f32 1.0, %v3023_v58 }
 0x64f   :  { %v3025_v53 = vpop.eup %3024 }
 0x650   :  { %3030 = vrcp.f32 %v2179_v8  ;;  %v2180_v48 = vadd.f32 1.0, %v3025_v53  ;;  %v3027_v5 = vpop.eup %3026 }
 0x651   :  { %v3029_v27 = vpop.eup %3028  ;;  %v2181_v19 = vadd.f32 1.0, %v3027_v5 }
 0x652   :  { %3032 = vrcp.f32 %v2180_v48 }
 0x65b   :  { %v2235_v57 = vpop.f32.mrf.mxu0  ;;  %v2276_v9 = vpop.f32.mrf.mxu1 }
 0x65c   :  { %v2283_v1 = vadd.f32 %v2235_v57, %v4754_v21  ;;  %v4756_v57 = vld [vmem:[#allocation86_spill] sm:$0xff] }
 0x65d   :  { %v3031_v12 = vpop.eup %3030  ;;  %v2237_v20 = vpop.f32.mrf.mxu0 }
 0x65e   :  { %v2278_v49 = vpop.f32.mrf.mxu1  ;;  %v2190_v63 = vmul.f32 %v3031_v12, %v3029_v27  ;;  %v2836_v24 = vmul.f32 -1.442695, %v2283_v1  ;;  %v2284_v59 = vadd.f32 %v2237_v20, %v4755_v7  ;;  %v2285_v27 = vadd.f32 %v2276_v9, %v4756_v57  ;;  %v4757_v1 = vld [vmem:[#allocation88_spill] sm:$0xff] }
 0x65f   :  { %v3033_v58 = vpop.eup %3032  ;;  %v2239_v36 = vpop.f32.mrf.mxu0  ;;  %v2286_v12 = vadd.f32 %v2278_v49, %v4757_v1  ;;  %v4765_v1 = vld [vmem:[#allocation21_spill] sm:$0xff] }
 0x660   :  { %v2280_v10 = vpop.f32.mrf.mxu1  ;;  %v2189_v8 = vmul.f32 %v3033_v58, %v4164_v16  ;;  %3034 = vpow2.f32 %v2836_v24  ;;  %v2837_v11 = vmul.f32 -1.442695, %v2284_v59  ;;  %v2838_v21 = vmul.f32 -1.442695, %v2285_v27 }
 0x661   :  { %v2240_v53 = vpop.f32.mrf.mxu0 }
 0x662   :  { %v2281_v48 = vpop.f32.mrf.mxu1  ;;  %v4254_v54 = vadd.f32 %v2190_v63, %v2189_v8  ;;  %3036 = vpow2.f32 %v2837_v11 }
 0x663   :  { %3038 = vrcp.f32 %v2181_v19 }
 0x664   :  { %3040 = vtanh.f32 %v4254_v54 }
 0x665   :  { %3042 = vpow2.f32 %v2838_v21  ;;  %v4764_v21 = vld [vmem:[#allocation20_spill] sm:$0xff] }
 0x666   :  { %3044 = vtanh.f32 %v2286_v12  ;;  %v4769_v12 = vld [vmem:[#allocation25_spill] sm:$0xff] }
 0x66d   :  { %v3035_v5 = vpop.eup %3034 }
 0x66e   :  { %v2296_v20 = vadd.f32 1.0, %v3035_v5  ;;  %v4770_v5 = vld [vmem:[#allocation26_spill] sm:$0xff] }
 0x66f   :  { %v3037_v7 = vpop.eup %3036 }
 0x670   :  { %v3039_v16 = vpop.eup %3038  ;;  %3046 = vrcp.f32 %v2296_v20  ;;  %v2297_v24 = vadd.f32 1.0, %v3037_v7  ;;  %v4771_v20 = vld [vmem:[#allocation27_spill] sm:$0xff]  ;;  %v4772_v7 = vld [vmem:[#allocation28_spill] sm:$0xff] }
 0x671   :  { %v3041_v59 = vpop.eup %3040 }
 0x672   :  { %3048 = vrcp.f32 %v2297_v24  ;;  %v2193_v63 = vmul.f32 %v3041_v59, %v3039_v16  ;;  %v3043_v9 = vpop.eup %3042  ;;  %v4773_v16 = vld [vmem:[#allocation29_spill] sm:$0xff]  ;;  %v4774_v24 = vld [vmem:[#allocation30_spill] sm:$0xff]  ;;  %v4775_v59 = vld [vmem:[#allocation31_spill] sm:$0xff] }
 0x673   :  { %v3045_v49 = vpop.eup %3044  ;;  %v2298_v8 = vadd.f32 1.0, %v3043_v9  ;;  %v4778_v9 = vld [vmem:[#allocation34_spill] sm:$0xff] }
 0x674   :  { %2835 = vst [vmem:[%s4414_s7 + $0x50] sm:$0xff] %v2193_v63  ;;  %v2317_v58 = vpack.c.bf16 %v2193_v63, %v2193_v63  ;;  %v4776_v63 = vld [vmem:[#allocation32_spill] sm:$0xff] }
 0x675   :  { %3050 = vrcp.f32 %v2298_v8 }
 0x676   :  { %2351 = vmatmul.mubr.bf16.vlgmr.msra.gmra.mxu0 %v2317_v58  ;;  %2392 = vmatmul.mubr.bf16.vlgmr.msra.gmra.mxu1 %v2317_v58  ;;  %v4777_v58 = vld [vmem:[#allocation33_spill] sm:$0xff] }
 0x677   :  { %2436 = vmatpush1.bf16.msra.mxu0 %v3440_v28  ;;  %2477 = vmatpush1.bf16.msra.mxu1 %v3444_v29 }
 0x678   :  { %2437 = vmatprep.subr.bf16.mxu0 %v3446_v30  ;;  %2478 = vmatprep.subr.bf16.mxu1 %v3449_v42 }
 0x679   :  { %2467 = vmatprep.mubr.bf16.mxu0 %v4526_v18  ;;  %2508 = vmatprep.mubr.bf16.mxu1 %v4526_v18 }
 0x67b   :  { %2438 = vmatpush1.bf16.msra.mxu0 %v3454_v52  ;;  %2479 = vmatpush1.bf16.msra.mxu1 %v3458_v56 }
 0x67c   :  { %2439 = vmatprep.subr.bf16.mxu0 %v3460_v60  ;;  %2480 = vmatprep.subr.bf16.mxu1 %v3463_v3 }
 0x67d   :  { %v3047_v19 = vpop.eup %3046 }
 0x67e   :  { %v2307_v36 = vmul.f32 %v3047_v19, %v3045_v49  ;;  %v4779_v49 = vld [vmem:[#allocation35_spill] sm:$0xff]  ;;  %v4780_v19 = vld [vmem:[#allocation36_spill] sm:$0xff] }
 0x67f   :  { %v3049_v10 = vpop.eup %3048  ;;  %2440 = vmatpush1.bf16.msra.mxu0 %v3468_v17  ;;  %2481 = vmatpush1.bf16.msra.mxu1 %v4587_v50 }
 0x680   :  { %v2306_v11 = vmul.f32 %v3049_v10, %v4187_v55  ;;  %2441 = vmatprep.subr.bf16.mxu0 %v4588_v13  ;;  %2482 = vmatprep.subr.bf16.mxu1 %v4589_v44  ;;  %v4782_v10 = vld [vmem:[#allocation38_spill] sm:$0xff] }
 0x682   :  { %v4277_v53 = vadd.f32 %v2307_v36, %v2306_v11  ;;  %v3051_v55 = vpop.eup %3050  ;;  %v4781_v36 = vld [vmem:[#allocation37_spill] sm:$0xff] }
 0x683   :  { %2442 = vmatpush1.bf16.msra.mxu0 %v4590_v4  ;;  %2483 = vmatpush1.bf16.msra.mxu1 %v4591_v40 }
 0x684   :  { %3052 = vtanh.f32 %v4277_v53  ;;  %2443 = vmatprep.subr.bf16.mxu0 %v4592_v43  ;;  %2484 = vmatprep.subr.bf16.mxu1 %v4593_v37 }
 0x687   :  { %2444 = vmatpush1.bf16.msra.mxu0 %v4594_v51  ;;  %2485 = vmatpush1.bf16.msra.mxu1 %v4595_v62 }
 0x688   :  { %2445 = vmatprep.subr.bf16.mxu0 %v3498_v41  ;;  %2486 = vmatprep.subr.bf16.mxu1 %v4596_v39 }
 0x68b   :  { %2446 = vmatpush1.bf16.msra.mxu0 %v3504_v61  ;;  %2487 = vmatpush1.bf16.msra.mxu1 %v3508_v0 }
 0x68c   :  { %2447 = vmatprep.subr.bf16.mxu0 %v3510_v6  ;;  %2488 = vmatprep.subr.bf16.mxu1 %v3513_v25 }
 0x68f   :  { %2448 = vmatpush1.bf16.msra.mxu0 %v3516_v31  ;;  %2489 = vmatpush1.bf16.msra.mxu1 %v3520_v23 }
 0x690   :  { %2449 = vmatprep.subr.bf16.mxu0 %v3522_v35  ;;  %2490 = vmatprep.subr.bf16.mxu1 %v3525_v2 }
 0x691   :  { %v3053_v48 = vpop.eup %3052 }
 0x692   :  { %v2310_v57 = vmul.f32 %v3053_v48, %v3051_v55  ;;  %v4783_v55 = vld [vmem:[#allocation69_spill] sm:$0xff] }
 0x693   :  { %2450 = vmatpush1.bf16.msra.mxu0 %v3528_v15  ;;  %2491 = vmatpush1.bf16.msra.mxu1 %v3532_v14 }
 0x694   :  { %2839 = vst [vmem:[%s4414_s7 + $0x28] sm:$0xff] %v2310_v57  ;;  %v2434_v27 = vpack.c.bf16 %v2310_v57, %v2310_v57  ;;  %2552 = vmatprep.subr.bf16.mxu0 %v3323_v22  ;;  %2593 = vmatprep.subr.bf16.mxu1 %v3326_v26  ;;  %v4758_v22 = vld [vmem:[#allocation14_spill] sm:$0xff]  ;;  %v4759_v26 = vld [vmem:[#allocation15_spill] sm:$0xff] }
 0x696   :  { %2468 = vmatmul.mubr.bf16.vlgmr.msra.gmra.mxu0 %v2434_v27  ;;  %2509 = vmatmul.mubr.bf16.vlgmr.msra.gmra.mxu1 %v2434_v27 }
 0x697   :  { %2553 = vmatpush1.bf16.msra.mxu0 %v3329_v32  ;;  %2594 = vmatpush1.bf16.msra.mxu1 %v3332_v33  ;;  %v4760_v32 = vld [vmem:[#allocation16_spill] sm:$0xff]  ;;  %v4761_v33 = vld [vmem:[#allocation17_spill] sm:$0xff] }
 0x698   :  { %2554 = vmatprep.subr.bf16.mxu0 %v3334_v34  ;;  %2595 = vmatprep.subr.bf16.mxu1 %v3337_v38  ;;  %v4762_v34 = vld [vmem:[#allocation18_spill] sm:$0xff]  ;;  %v4763_v38 = vld [vmem:[#allocation19_spill] sm:$0xff] }
 0x699   :  { %2584 = vmatprep.mubr.bf16.mxu0 %v4526_v18  ;;  %2625 = vmatprep.mubr.bf16.mxu1 %v4526_v18 }
 0x69b   :  { %2555 = vmatpush1.bf16.msra.mxu0 %v3342_v45  ;;  %2596 = vmatpush1.bf16.msra.mxu1 %v3346_v46  ;;  %v4766_v45 = vld [vmem:[#allocation22_spill] sm:$0xff]  ;;  %v4767_v46 = vld [vmem:[#allocation23_spill] sm:$0xff] }
 0x69c   :  { %2556 = vmatprep.subr.bf16.mxu0 %v3348_v47  ;;  %2597 = vmatprep.subr.bf16.mxu1 %v4758_v22  ;;  %v4768_v47 = vld [vmem:[#allocation24_spill] sm:$0xff] }
 0x69f   :  { %2557 = vmatpush1.bf16.msra.mxu0 %v4759_v26  ;;  %2598 = vmatpush1.bf16.msra.mxu1 %v4760_v32  ;;  %v4784_v26 = vld [vmem:[#allocation71_spill] sm:$0xff] }
 0x6a0   :  { %2558 = vmatprep.subr.bf16.mxu0 %v4761_v33  ;;  %2599 = vmatprep.subr.bf16.mxu1 %v4762_v34 }
 0x6a3   :  { %2559 = vmatpush1.bf16.msra.mxu0 %v4763_v38  ;;  %2600 = vmatpush1.bf16.msra.mxu1 %v4764_v21 }
 0x6a4   :  { %2560 = vmatprep.subr.bf16.mxu0 %v4765_v1  ;;  %2601 = vmatprep.subr.bf16.mxu1 %v4766_v45  ;;  %v4785_v45 = vld [vmem:[#allocation70_spill] sm:$0xff] }
 0x6a7   :  { %2561 = vmatpush1.bf16.msra.mxu0 %v4767_v46  ;;  %2602 = vmatpush1.bf16.msra.mxu1 %v4768_v47 }
 0x6a8   :  { %2562 = vmatprep.subr.bf16.mxu0 %v4769_v12  ;;  %2603 = vmatprep.subr.bf16.mxu1 %v4770_v5  ;;  %v4786_v12 = vld [vmem:[#allocation72_spill] sm:$0xff] }
 0x6ab   :  { %2563 = vmatpush1.bf16.msra.mxu0 %v4771_v20  ;;  %2604 = vmatpush1.bf16.msra.mxu1 %v4772_v7 }
 0x6ac   :  { %2564 = vmatprep.subr.bf16.mxu0 %v4773_v16  ;;  %2605 = vmatprep.subr.bf16.mxu1 %v4774_v24 }
 0x6af   :  { %2565 = vmatpush1.bf16.msra.mxu0 %v4775_v59  ;;  %2606 = vmatpush1.bf16.msra.mxu1 %v4776_v63 }
 0x6b0   :  { %2566 = vmatprep.subr.bf16.mxu0 %v4777_v58  ;;  %2607 = vmatprep.subr.bf16.mxu1 %v4778_v9 }
 0x6b3   :  { %2567 = vmatpush1.bf16.msra.mxu0 %v4779_v49  ;;  %2608 = vmatpush1.bf16.msra.mxu1 %v4780_v19  ;;  %v4787_v49 = vld [vmem:[#allocation81_spill] sm:$0xff] }
 0x6b4   :  { %2668 = vmatprep.subr.bf16.mxu0 %v4781_v36  ;;  %2709 = vmatprep.subr.bf16.mxu1 %v4782_v10 }
 0x736   :  { %v2352_v8 = vpop.f32.mrf.mxu0  ;;  %v2393_v11 = vpop.f32.mrf.mxu1 }
 0x737   :  { %v2400_v48 = vadd.f32 %v2352_v8, %v4783_v55  ;;  %v2402_v46 = vadd.f32 %v2393_v11, %v4785_v45  ;;  %v4789_v45 = vld [vmem:[#allocation82_spill] sm:$0xff] }
 0x738   :  { %v2354_v57 = vpop.f32.mrf.mxu0  ;;  %v2395_v27 = vpop.f32.mrf.mxu1 }
 0x739   :  { %v2840_v22 = vmul.f32 -1.442695, %v2400_v48  ;;  %v2401_v32 = vadd.f32 %v2354_v57, %v4784_v26  ;;  %v2842_v47 = vmul.f32 -1.442695, %v2402_v46  ;;  %v2403_v5 = vadd.f32 %v2395_v27, %v4786_v12  ;;  %v4788_v48 = vld [vmem:[#allocation83_spill] sm:$0xff]  ;;  %v4790_v12 = vld [vmem:[#allocation84_spill] sm:$0xff] }
 0x73a   :  { %v2356_v33 = vpop.f32.mrf.mxu0  ;;  %v2397_v34 = vpop.f32.mrf.mxu1 }
 0x73b   :  { %3054 = vpow2.f32 %v2840_v22  ;;  %v2841_v38 = vmul.f32 -1.442695, %v2401_v32 }
 0x73c   :  { %v2357_v21 = vpop.f32.mrf.mxu0  ;;  %v2398_v1 = vpop.f32.mrf.mxu1 }
 0x73d   :  { %3056 = vpow2.f32 %v2841_v38 }
 0x73e   :  { %3058 = vpow2.f32 %v2842_v47 }
 0x73f   :  { %3060 = vtanh.f32 %v2403_v5 }
 0x748   :  { %v3055_v20 = vpop.eup %3054 }
 0x749   :  { %v2413_v7 = vadd.f32 1.0, %v3055_v20 }
 0x74a   :  { %v3057_v16 = vpop.eup %3056 }
 0x74b   :  { %3062 = vrcp.f32 %v2413_v7  ;;  %v2414_v24 = vadd.f32 1.0, %v3057_v16  ;;  %v3059_v59 = vpop.eup %3058 }
 0x74c   :  { %v3061_v9 = vpop.eup %3060  ;;  %v2415_v22 = vadd.f32 1.0, %v3059_v59 }
 0x74d   :  { %3064 = vrcp.f32 %v2414_v24 }
 0x756   :  { %v2469_v63 = vpop.f32.mrf.mxu0  ;;  %v2510_v58 = vpop.f32.mrf.mxu1 }
 0x757   :  { %v2517_v19 = vadd.f32 %v2469_v63, %v4787_v49  ;;  %v2519_v46 = vadd.f32 %v2510_v58, %v4789_v45 }
 0x758   :  { %v3063_v36 = vpop.eup %3062  ;;  %v2471_v10 = vpop.f32.mrf.mxu0 }
 0x759   :  { %v2512_v8 = vpop.f32.mrf.mxu1  ;;  %v2424_v11 = vmul.f32 %v3063_v36, %v3061_v9  ;;  %v2844_v55 = vmul.f32 -1.442695, %v2517_v19  ;;  %v2518_v57 = vadd.f32 %v2471_v10, %v4788_v48  ;;  %v2846_v47 = vmul.f32 -1.442695, %v2519_v46 }
 0x75a   :  { %v3065_v27 = vpop.eup %3064  ;;  %v2473_v26 = vpop.f32.mrf.mxu0  ;;  %v2520_v5 = vadd.f32 %v2512_v8, %v4790_v12 }
 0x75b   :  { %v2514_v32 = vpop.f32.mrf.mxu1  ;;  %v2423_v33 = vmul.f32 %v3065_v27, %v4254_v54  ;;  %3066 = vpow2.f32 %v2844_v55  ;;  %v2845_v34 = vmul.f32 -1.442695, %v2518_v57  ;;  %v4795_v55 = vld [vmem:[#allocation77_spill] sm:$0xff] }
 0x75c   :  { %v2474_v38 = vpop.f32.mrf.mxu0 }
 0x75d   :  { %v2515_v21 = vpop.f32.mrf.mxu1  ;;  %v4344_v1 = vadd.f32 %v2424_v11, %v2423_v33  ;;  %3068 = vpow2.f32 %v2845_v34  ;;  %v4796_v33 = vld [vmem:[#allocation79_spill] sm:$0xff] }
 0x75e   :  { %3070 = vrcp.f32 %v2415_v22 }
 0x75f   :  { %3072 = vtanh.f32 %v4344_v1 }
 0x760   :  { %3074 = vpow2.f32 %v2846_v47 }
 0x761   :  { %3076 = vtanh.f32 %v2520_v5 }
 0x768   :  { %v3067_v20 = vpop.eup %3066 }
 0x769   :  { %v2530_v7 = vadd.f32 1.0, %v3067_v20 }
 0x76a   :  { %v3069_v16 = vpop.eup %3068 }
 0x76b   :  { %v3071_v54 = vpop.eup %3070  ;;  %3078 = vrcp.f32 %v2530_v7  ;;  %v2531_v24 = vadd.f32 1.0, %v3069_v16  ;;  %v4797_v16 = vld [vmem:[#allocation78_spill] sm:$0xff] }
 0x76c   :  { %v3073_v59 = vpop.eup %3072 }
 0x76d   :  { %3080 = vrcp.f32 %v2531_v24  ;;  %v2427_v63 = vmul.f32 %v3073_v59, %v3071_v54  ;;  %v3075_v58 = vpop.eup %3074  ;;  %v4798_v59 = vld [vmem:[#allocation80_spill] sm:$0xff] }
 0x76e   :  { %v3077_v49 = vpop.eup %3076 }
 0x76f   :  { %2843 = vst [vmem:[%s4414_s7 + $0x60] sm:$0xff] %v2427_v63  ;;  %v2551_v9 = vpack.c.bf16 %v2427_v63, %v2427_v63 }
 0x771   :  { %2585 = vmatmul.mubr.bf16.vlgmr.msra.gmra.mxu0 %v2551_v9  ;;  %2626 = vmatmul.mubr.bf16.vlgmr.msra.gmra.mxu1 %v2551_v9 }
 0x772   :  { %2669 = vmatpush1.bf16.msra.mxu0 %v3440_v28  ;;  %2710 = vmatpush1.bf16.msra.mxu1 %v3444_v29 }
 0x773   :  { %2670 = vmatprep.subr.bf16.mxu0 %v3446_v30  ;;  %2711 = vmatprep.subr.bf16.mxu1 %v3449_v42  ;;  %v2532_v30 = vadd.f32 1.0, %v3075_v58 }
 0x774   :  { %2700 = vmatprep.mubr.bf16.mxu0 %v4526_v18  ;;  %2741 = vmatprep.mubr.bf16.mxu1 %v4526_v18 }
 0x775   :  { %3082 = vrcp.f32 %v2532_v30 }
 0x776   :  { %2671 = vmatpush1.bf16.msra.mxu0 %v3454_v52  ;;  %2712 = vmatpush1.bf16.msra.mxu1 %v3458_v56 }
 0x777   :  { %2672 = vmatprep.subr.bf16.mxu0 %v3460_v60  ;;  %2713 = vmatprep.subr.bf16.mxu1 %v3463_v3 }
 0x778   :  { %v3079_v28 = vpop.eup %3078 }
 0x779   :  { %v2541_v29 = vmul.f32 %v3079_v28, %v3077_v49 }
 0x77a   :  { %v3081_v19 = vpop.eup %3080  ;;  %2673 = vmatpush1.bf16.msra.mxu0 %v3468_v17  ;;  %2714 = vmatpush1.bf16.msra.mxu1 %v4587_v50 }
 0x77b   :  { %v2540_v42 = vmul.f32 %v3081_v19, %v4277_v53  ;;  %2674 = vmatprep.subr.bf16.mxu0 %v4588_v13  ;;  %2715 = vmatprep.subr.bf16.mxu1 %v4589_v44  ;;  %v4793_v44 = vld [vmem:[#allocation74_spill] sm:$0xff] }
 0x77d   :  { %v4367_v52 = vadd.f32 %v2541_v29, %v2540_v42 }
 0x77e   :  { %2675 = vmatpush1.bf16.msra.mxu0 %v4590_v4  ;;  %2716 = vmatpush1.bf16.msra.mxu1 %v4591_v40 }
 0x77f   :  { %3084 = vtanh.f32 %v4367_v52  ;;  %2676 = vmatprep.subr.bf16.mxu0 %v4592_v43  ;;  %2717 = vmatprep.subr.bf16.mxu1 %v4593_v37  ;;  %v4794_v43 = vld [vmem:[#allocation76_spill] sm:$0xff] }
 0x782   :  { %2677 = vmatpush1.bf16.msra.mxu0 %v4594_v51  ;;  %2718 = vmatpush1.bf16.msra.mxu1 %v4595_v62  ;;  %v3083_v56 = vpop.eup %3082 }
 0x783   :  { %2678 = vmatprep.subr.bf16.mxu0 %v3498_v41  ;;  %2719 = vmatprep.subr.bf16.mxu1 %v4596_v39  ;;  %v4791_v41 = vld [vmem:[#allocation73_spill] sm:$0xff] }
 0x786   :  { %2679 = vmatpush1.bf16.msra.mxu0 %v3504_v61  ;;  %2720 = vmatpush1.bf16.msra.mxu1 %v3508_v0 }
 0x787   :  { %2680 = vmatprep.subr.bf16.mxu0 %v3510_v6  ;;  %2721 = vmatprep.subr.bf16.mxu1 %v3513_v25 }
 0x78a   :  { %2681 = vmatpush1.bf16.msra.mxu0 %v3516_v31  ;;  %2722 = vmatpush1.bf16.msra.mxu1 %v3520_v23 }
 0x78b   :  { %2682 = vmatprep.subr.bf16.mxu0 %v3522_v35  ;;  %2723 = vmatprep.subr.bf16.mxu1 %v3525_v2  ;;  %v4792_v35 = vld [vmem:[#allocation75_spill] sm:$0xff] }
 0x78c   :  { %v3085_v60 = vpop.eup %3084 }
 0x78d   :  { %v2544_v3 = vmul.f32 %v3085_v60, %v3083_v56 }
 0x78e   :  { %2683 = vmatpush1.bf16.msra.mxu0 %v3528_v15  ;;  %2724 = vmatpush1.bf16.msra.mxu1 %v3532_v14 }
 0x78f   :  { %2847 = vst [vmem:[%s4414_s7 + $0x18] sm:$0xff] %v2544_v3  ;;  %v2667_v17 = vpack.c.bf16 %v2544_v3, %v2544_v3 }
 0x791   :  { %2701 = vmatmul.mubr.bf16.vlgmr.msra.gmra.mxu0 %v2667_v17  ;;  %2742 = vmatmul.mubr.bf16.vlgmr.msra.gmra.mxu1 %v2667_v17 }
 0x831   :  { %v2586_v61 = vpop.f32.mrf.mxu0  ;;  %v2627_v31 = vpop.f32.mrf.mxu1 }
 0x832   :  { %v2634_v0 = vadd.f32 %v2586_v61, %v4791_v41  ;;  %v2636_v4 = vadd.f32 %v2627_v31, %v4793_v44 }
 0x833   :  { %v2588_v6 = vpop.f32.mrf.mxu0  ;;  %v2629_v25 = vpop.f32.mrf.mxu1 }
 0x834   :  { %v2848_v23 = vmul.f32 -1.442695, %v2634_v0  ;;  %v2635_v2 = vadd.f32 %v2588_v6, %v4792_v35  ;;  %v2850_v40 = vmul.f32 -1.442695, %v2636_v4  ;;  %v2637_v37 = vadd.f32 %v2629_v25, %v4794_v43 }
 0x835   :  { %v2590_v18 = vpop.f32.mrf.mxu0  ;;  %v2631_v15 = vpop.f32.mrf.mxu1 }
 0x836   :  { %3086 = vpow2.f32 %v2848_v23  ;;  %v2849_v14 = vmul.f32 -1.442695, %v2635_v2 }
 0x837   :  { %v2591_v50 = vpop.f32.mrf.mxu0  ;;  %v2632_v13 = vpop.f32.mrf.mxu1 }
 0x838   :  { %3088 = vpow2.f32 %v2849_v14 }
 0x839   :  { %3090 = vpow2.f32 %v2850_v40 }
 0x83a   :  { %3092 = vtanh.f32 %v2637_v37 }
 0x843   :  { %v3087_v51 = vpop.eup %3086 }
 0x844   :  { %v2647_v62 = vadd.f32 1.0, %v3087_v51 }
 0x845   :  { %v3089_v39 = vpop.eup %3088 }
 0x846   :  { %3094 = vrcp.f32 %v2647_v62  ;;  %v2648_v53 = vadd.f32 1.0, %v3089_v39  ;;  %v3091_v36 = vpop.eup %3090 }
 0x847   :  { %v3093_v11 = vpop.eup %3092  ;;  %v2649_v21 = vadd.f32 1.0, %v3091_v36 }
 0x848   :  { %3096 = vrcp.f32 %v2648_v53 }
 0x851   :  { %v2702_v10 = vpop.f32.mrf.mxu0  ;;  %v2743_v8 = vpop.f32.mrf.mxu1 }
 0x852   :  { %v2750_v48 = vadd.f32 %v2702_v10, %v4795_v55  ;;  %v2752_v54 = vadd.f32 %v2743_v8, %v4797_v16 }
 0x853   :  { %v3095_v57 = vpop.eup %3094  ;;  %v2704_v27 = vpop.f32.mrf.mxu0 }
 0x854   :  { %v2745_v22 = vpop.f32.mrf.mxu1  ;;  %v2658_v26 = vmul.f32 %v3095_v57, %v3093_v11  ;;  %v2852_v32 = vmul.f32 -1.442695, %v2750_v48  ;;  %v2751_v34 = vadd.f32 %v2704_v27, %v4796_v33  ;;  %v2854_v24 = vmul.f32 -1.442695, %v2752_v54 }
 0x855   :  { %v3097_v38 = vpop.eup %3096  ;;  %v2706_v45 = vpop.f32.mrf.mxu0  ;;  %v2753_v63 = vadd.f32 %v2745_v22, %v4798_v59 }
 0x856   :  { %v2747_v46 = vpop.f32.mrf.mxu1  ;;  %v2657_v47 = vmul.f32 %v3097_v38, %v4344_v1  ;;  %3098 = vpow2.f32 %v2852_v32  ;;  %v2853_v12 = vmul.f32 -1.442695, %v2751_v34 }
 0x857   :  { %v2707_v5 = vpop.f32.mrf.mxu0 }
 0x858   :  { %v2748_v20 = vpop.f32.mrf.mxu1  ;;  %v2659_v7 = vadd.f32 %v2658_v26, %v2657_v47  ;;  %3100 = vpow2.f32 %v2853_v12 }
 0x859   :  { %3102 = vrcp.f32 %v2649_v21 }
 0x85a   :  { %3104 = vtanh.f32 %v2659_v7 }
 0x85b   :  { %3106 = vpow2.f32 %v2854_v24 }
 0x85c   :  { %3108 = vtanh.f32 %v2753_v63 }
 0x863   :  { %v3099_v9 = vpop.eup %3098 }
 0x864   :  { %v2763_v58 = vadd.f32 1.0, %v3099_v9 }
 0x865   :  { %v3101_v49 = vpop.eup %3100 }
 0x866   :  { %v3103_v28 = vpop.eup %3102  ;;  %3110 = vrcp.f32 %v2763_v58  ;;  %v2764_v1 = vadd.f32 1.0, %v3101_v49 }
 0x867   :  { %v3105_v29 = vpop.eup %3104 }
 0x868   :  { %v2661_v19 = vmul.f32 %v3105_v29, %v3103_v28  ;;  %3112 = vrcp.f32 %v2764_v1  ;;  %v3107_v30 = vpop.eup %3106 }
 0x869   :  { %v3109_v42 = vpop.eup %3108  ;;  %v2765_v17 = vadd.f32 1.0, %v3107_v30 }
 0x86a   :  { %2851 = vst [vmem:[%s4414_s7 + $0x70] sm:$0xff] %v2661_v19 }
 0x86b   :  { %3114 = vrcp.f32 %v2765_v17 }
 0x873   :  { %v3111_v56 = vpop.eup %3110 }
 0x874   :  { %v2774_v60 = vmul.f32 %v3111_v56, %v3109_v42 }
 0x875   :  { %v3113_v3 = vpop.eup %3112 }
 0x876   :  { %v2773_v61 = vmul.f32 %v3113_v3, %v4367_v52 }
 0x878   :  { %v2775_v31 = vadd.f32 %v2774_v60, %v2773_v61  ;;  %v3115_v41 = vpop.eup %3114 }
 0x87a   :  { %3116 = vtanh.f32 %v2775_v31 }
 0x887   :  { %v3117_v0 = vpop.eup %3116 }
 0x888   :  { %v2777_v6 = vmul.f32 %v3117_v0, %v3115_v41 }
 0x88a   :  { %2778 = vst [vmem:[%s4414_s7 + $0x8] sm:$0xff] %v2777_v6 }
 0x88b   :  { %2783 = vsyncpa [#allocation5], 1 }
 0x88c   :  { %2784 = vsyncpa [#allocation7], 1 }
 0x88d   :  { %2785 = vsyncpa [#allocation10], 1 }

// kernel: _lambda_.4
= control target key start
LH: loop header
LB: loop body
LE: loop exit
PB: predicated region body
PF: predicated region fallthrough
CT: control target
= control target key end

     0   :  { %12 = vsyncpa [#allocation5], 0  ;;  %s3298_s24 = smov [#allocation4]   ;;  %s5469_s0 = inlined_call_operand.vmem [shape: f32[8,8,256], index: 0, kind: input, shape index: {}]   ;;  %s5470_s1 = inlined_call_operand.vmem [shape: f32[256,512], index: 1, kind: input, shape index: {}]   ;;  %s5471_s2 = inlined_call_operand.hbm [shape: f32[128,512], index: 2, kind: input, shape index: {}]   ;;  %s5472_s3 = inlined_call_operand.vmem [shape: f32[1,512], index: 3, kind: input, shape index: {}]   ;;  %s5473_s4 = inlined_call_operand.vmem [shape: f32[256,512], index: 4, kind: input, shape index: {}]   ;;  %s5474_s5 = inlined_call_operand.vmem [shape: f32[128,512], index: 5, kind: input, shape index: {}]   ;;  %s5475_s6 = inlined_call_operand.vmem [shape: f32[1,512], index: 6, kind: input, shape index: {}]   ;;  %s5476_s7 = inlined_call_operand.vmem [shape: f32[8,8,256], index: 7, kind: output, shape index: {}]  }
   0x1   :  { %s22_s25 = sshll.u32 %s3298_s24, 4  ;;  %s23_s25 = int_to_ptr.vmem [resolvable:$true] %s22_s25 }
   0x2   :  { %s3284_s26 = scalar_lea.vmem %s23_s25, 8192  ;;  %p3289_p1 = scmp.lt.s32.totalorder %s23_s25, %s23_s25 }
   0x3   :  { %p3285_p0 = scmp.ne.s32.totalorder %s23_s25, %s3284_s26  ;;  %p3290_p2 = scmp.lt.s32.totalorder %s3284_s26, %s3284_s26 }
   0x5   :  { %p3291_p3 = por %p3290_p2, %p3289_p1 }
   0x7   :  { %p3292_p4 = pnand %p3291_p3, %p3285_p0 }
   0x9   :  { %3295 = shalt.err (!%p3292_p4)
}
   0xa   :  { %s3299_s27 = smov 512   ;;  %s3300_s28 = smov 32  }
   0xb   :  { %28 = dma.hbm_to_vmem [thread:$0]  %s5471_s2, 8192, %s23_s25, [#allocation5], %s3299_s27, %s3299_s27, %s3300_s28  }
   0xc   :  { %3296 = dma.done.wait [#allocation5], 8192  }
   0xd   :  { %3297 = vsyncadd [#allocation5], 4294959104  ;;  %v98_v0 = vld [vmem:[%s5470_s1 + $0x1c8] sm:$0xff]  ;;  %v100_v2 = vld [vmem:[%s5470_s1 + $0x1d8] sm:$0xff] }
   0xe   :  { %v102_v1 = vld [vmem:[%s5470_s1 + $0x1e8] sm:$0xff]  ;;  %v104_v4 = vld [vmem:[%s5470_s1 + $0x1f8] sm:$0xff]  ;;  %v97_v5 = vld [vmem:[%s5470_s1 + $0x1c0] sm:$0xff] }
   0xf   :  { %v198_v3 = vpack.c.bf16 %v102_v1, %v98_v0  ;;  %v101_v6 = vld [vmem:[%s5470_s1 + $0x1e0] sm:$0xff]  ;;  %v200_v7 = vpack.c.bf16 %v104_v4, %v100_v2  ;;  %v99_v9 = vld [vmem:[%s5470_s1 + $0x1d0] sm:$0xff]  ;;  %v90_v11 = vld [vmem:[%s5470_s1 + $0x188] sm:$0xff] }
  0x10   :  { %v197_v8 = vpack.c.bf16 %v101_v6, %v97_v5  ;;  %v103_v10 = vld [vmem:[%s5470_s1 + $0x1f0] sm:$0xff]  ;;  %v94_v13 = vld [vmem:[%s5470_s1 + $0x1a8] sm:$0xff]  ;;  %v92_v14 = vld [vmem:[%s5470_s1 + $0x198] sm:$0xff] }
  0x11   :  { %667 = vmatprep.subr.bf16.mxu0 %v198_v3  ;;  %v199_v12 = vpack.c.bf16 %v103_v10, %v99_v9  ;;  %v96_v15 = vld [vmem:[%s5470_s1 + $0x1b8] sm:$0xff]  ;;  %740 = vmatprep.subr.bf16.mxu1 %v200_v7  ;;  %v194_v16 = vpack.c.bf16 %v94_v13, %v90_v11  ;;  %v89_v18 = vld [vmem:[%s5470_s1 + $0x180] sm:$0xff]  ;;  %v91_v20 = vld [vmem:[%s5470_s1 + $0x190] sm:$0xff] }
  0x12   :  { %668 = vmatpush1.bf16.msra.mxu0 %v197_v8  ;;  %v196_v17 = vpack.c.bf16 %v96_v15, %v92_v14  ;;  %v93_v19 = vld [vmem:[%s5470_s1 + $0x1a0] sm:$0xff]  ;;  %v95_v22 = vld [vmem:[%s5470_s1 + $0x1b0] sm:$0xff]  ;;  %v82_v23 = vld [vmem:[%s5470_s1 + $0x148] sm:$0xff] }
  0x13   :  { %741 = vmatpush1.bf16.msra.mxu1 %v199_v12  ;;  %v193_v21 = vpack.c.bf16 %v93_v19, %v89_v18  ;;  %v86_v24 = vld [vmem:[%s5470_s1 + $0x168] sm:$0xff]  ;;  %669 = vmatprep.subr.bf16.mxu0 %v194_v16  ;;  %v195_v25 = vpack.c.bf16 %v95_v22, %v91_v20  ;;  %v84_v27 = vld [vmem:[%s5470_s1 + $0x158] sm:$0xff]  ;;  %v81_v29 = vld [vmem:[%s5470_s1 + $0x140] sm:$0xff] }
  0x14   :  { %742 = vmatprep.subr.bf16.mxu1 %v196_v17  ;;  %v190_v26 = vpack.c.bf16 %v86_v24, %v82_v23  ;;  %v88_v28 = vld [vmem:[%s5470_s1 + $0x178] sm:$0xff]  ;;  %v85_v31 = vld [vmem:[%s5470_s1 + $0x160] sm:$0xff]  ;;  %v83_v32 = vld [vmem:[%s5470_s1 + $0x150] sm:$0xff] }
  0x15   :  { %v192_v30 = vpack.c.bf16 %v88_v28, %v84_v27  ;;  %v87_v33 = vld [vmem:[%s5470_s1 + $0x170] sm:$0xff]  ;;  %v189_v34 = vpack.c.bf16 %v85_v31, %v81_v29  ;;  %v74_v35 = vld [vmem:[%s5470_s1 + $0x108] sm:$0xff]  ;;  %v76_v37 = vld [vmem:[%s5470_s1 + $0x118] sm:$0xff] }
  0x16   :  { %670 = vmatpush1.bf16.msra.mxu0 %v193_v21  ;;  %v78_v36 = vld [vmem:[%s5470_s1 + $0x128] sm:$0xff]  ;;  %v191_v38 = vpack.c.bf16 %v87_v33, %v83_v32  ;;  %v80_v40 = vld [vmem:[%s5470_s1 + $0x138] sm:$0xff]  ;;  %v73_v41 = vld [vmem:[%s5470_s1 + $0x100] sm:$0xff] }
  0x17   :  { %743 = vmatpush1.bf16.msra.mxu1 %v195_v25  ;;  %671 = vmatprep.subr.bf16.mxu0 %v190_v26  ;;  %v186_v39 = vpack.c.bf16 %v78_v36, %v74_v35  ;;  %v77_v42 = vld [vmem:[%s5470_s1 + $0x120] sm:$0xff]  ;;  %v188_v43 = vpack.c.bf16 %v80_v40, %v76_v37  ;;  %v75_v44 = vld [vmem:[%s5470_s1 + $0x110] sm:$0xff]  ;;  %v66_v46 = vld [vmem:[%s5470_s1 + $0xc8] sm:$0xff] }
  0x18   :  { %744 = vmatprep.subr.bf16.mxu1 %v192_v30  ;;  %v79_v45 = vld [vmem:[%s5470_s1 + $0x130] sm:$0xff]  ;;  %v70_v47 = vld [vmem:[%s5470_s1 + $0xe8] sm:$0xff]  ;;  %v68_v48 = vld [vmem:[%s5470_s1 + $0xd8] sm:$0xff]  ;;  %v185_v50 = vpack.c.bf16 %v77_v42, %v73_v41 }
  0x19   :  { %v72_v49 = vld [vmem:[%s5470_s1 + $0xf8] sm:$0xff]  ;;  %v187_v51 = vpack.c.bf16 %v79_v45, %v75_v44  ;;  %v182_v52 = vpack.c.bf16 %v70_v47, %v66_v46  ;;  %v65_v53 = vld [vmem:[%s5470_s1 + $0xc0] sm:$0xff]  ;;  %v67_v55 = vld [vmem:[%s5470_s1 + $0xd0] sm:$0xff] }
  0x1a   :  { %672 = vmatpush1.bf16.msra.mxu0 %v189_v34  ;;  %v69_v54 = vld [vmem:[%s5470_s1 + $0xe0] sm:$0xff]  ;;  %v184_v56 = vpack.c.bf16 %v72_v49, %v68_v48  ;;  %v71_v57 = vld [vmem:[%s5470_s1 + $0xf0] sm:$0xff]  ;;  %v58_v58 = vld [vmem:[%s5470_s1 + $0x88] sm:$0xff] }
  0x1b   :  { %745 = vmatpush1.bf16.msra.mxu1 %v191_v38  ;;  %673 = vmatprep.subr.bf16.mxu0 %v186_v39  ;;  %v62_v59 = vld [vmem:[%s5470_s1 + $0xa8] sm:$0xff]  ;;  %v60_v60 = vld [vmem:[%s5470_s1 + $0x98] sm:$0xff]  ;;  %v181_v62 = vpack.c.bf16 %v69_v54, %v65_v53  ;;  %v183_v63 = vpack.c.bf16 %v71_v57, %v67_v55  ;;  %v57_v1 = vld [vmem:[%s5470_s1 + $0x80] sm:$0xff] }
  0x1c   :  { %746 = vmatprep.subr.bf16.mxu1 %v188_v43  ;;  %v64_v61 = vld [vmem:[%s5470_s1 + $0xb8] sm:$0xff]  ;;  %v178_v0 = vpack.c.bf16 %v62_v59, %v58_v58  ;;  %v61_v2 = vld [vmem:[%s5470_s1 + $0xa0] sm:$0xff]  ;;  %v59_v3 = vld [vmem:[%s5470_s1 + $0x90] sm:$0xff] }
  0x1d   :  { %v180_v4 = vpack.c.bf16 %v64_v61, %v60_v60  ;;  %v63_v5 = vld [vmem:[%s5470_s1 + $0xb0] sm:$0xff]  ;;  %v50_v6 = vld [vmem:[%s5470_s1 + $0x48] sm:$0xff]  ;;  %v52_v8 = vld [vmem:[%s5470_s1 + $0x58] sm:$0xff]  ;;  %v177_v10 = vpack.c.bf16 %v61_v2, %v57_v1 }
  0x1e   :  { %674 = vmatpush1.bf16.msra.mxu0 %v185_v50  ;;  %v54_v7 = vld [vmem:[%s5470_s1 + $0x68] sm:$0xff]  ;;  %v56_v9 = vld [vmem:[%s5470_s1 + $0x78] sm:$0xff]  ;;  %v179_v11 = vpack.c.bf16 %v63_v5, %v59_v3  ;;  %v49_v13 = vld [vmem:[%s5470_s1 + $0x40] sm:$0xff] }
  0x1f   :  { %747 = vmatpush1.bf16.msra.mxu1 %v187_v51  ;;  %675 = vmatprep.subr.bf16.mxu0 %v182_v52  ;;  %v174_v12 = vpack.c.bf16 %v54_v7, %v50_v6  ;;  %v53_v14 = vld [vmem:[%s5470_s1 + $0x60] sm:$0xff]  ;;  %v51_v15 = vld [vmem:[%s5470_s1 + $0x50] sm:$0xff]  ;;  %v176_v16 = vpack.c.bf16 %v56_v9, %v52_v8  ;;  %v42_v18 = vld [vmem:[%s5470_s1 + $0x8] sm:$0xff] }
  0x20   :  { %748 = vmatprep.subr.bf16.mxu1 %v184_v56  ;;  %v55_v17 = vld [vmem:[%s5470_s1 + $0x70] sm:$0xff]  ;;  %v46_v19 = vld [vmem:[%s5470_s1 + $0x28] sm:$0xff]  ;;  %v44_v20 = vld [vmem:[%s5470_s1 + $0x18] sm:$0xff]  ;;  %v173_v22 = vpack.c.bf16 %v53_v14, %v49_v13 }
  0x21   :  { %v48_v21 = vld [vmem:[%s5470_s1 + $0x38] sm:$0xff]  ;;  %v175_v23 = vpack.c.bf16 %v55_v17, %v51_v15  ;;  %v170_v24 = vpack.c.bf16 %v46_v19, %v42_v18  ;;  %v41_v25 = vld [vmem:[%s5470_s1] sm:$0xff]  ;;  %v43_v27 = vld [vmem:[%s5470_s1 + $0x10] sm:$0xff] }
  0x22   :  { %676 = vmatpush1.bf16.msra.mxu0 %v181_v62  ;;  %v45_v26 = vld [vmem:[%s5470_s1 + $0x20] sm:$0xff]  ;;  %v172_v28 = vpack.c.bf16 %v48_v21, %v44_v20  ;;  %v47_v29 = vld [vmem:[%s5470_s1 + $0x30] sm:$0xff]  ;;  %v162_v30 = vld [vmem:[%s5470_s1 + $0x3c8] sm:$0xff] }
  0x23   :  { %749 = vmatpush1.bf16.msra.mxu1 %v183_v63  ;;  %677 = vmatprep.subr.bf16.mxu0 %v178_v0  ;;  %v166_v31 = vld [vmem:[%s5470_s1 + $0x3e8] sm:$0xff]  ;;  %v164_v32 = vld [vmem:[%s5470_s1 + $0x3d8] sm:$0xff]  ;;  %v169_v34 = vpack.c.bf16 %v45_v26, %v41_v25  ;;  %v171_v35 = vpack.c.bf16 %v47_v29, %v43_v27  ;;  %v161_v37 = vld [vmem:[%s5470_s1 + $0x3c0] sm:$0xff] }
  0x24   :  { %750 = vmatprep.subr.bf16.mxu1 %v180_v4  ;;  %v168_v33 = vld [vmem:[%s5470_s1 + $0x3f8] sm:$0xff]  ;;  %v230_v36 = vpack.c.bf16 %v166_v31, %v162_v30  ;;  %v165_v38 = vld [vmem:[%s5470_s1 + $0x3e0] sm:$0xff]  ;;  %v163_v39 = vld [vmem:[%s5470_s1 + $0x3d0] sm:$0xff] }
  0x25   :  { %v232_v40 = vpack.c.bf16 %v168_v33, %v164_v32  ;;  %v167_v41 = vld [vmem:[%s5470_s1 + $0x3f0] sm:$0xff]  ;;  %v154_v42 = vld [vmem:[%s5470_s1 + $0x388] sm:$0xff]  ;;  %v156_v44 = vld [vmem:[%s5470_s1 + $0x398] sm:$0xff]  ;;  %v229_v46 = vpack.c.bf16 %v165_v38, %v161_v37 }
  0x26   :  { %678 = vmatpush1.bf16.msra.mxu0 %v177_v10  ;;  %v158_v43 = vld [vmem:[%s5470_s1 + $0x3a8] sm:$0xff]  ;;  %v160_v45 = vld [vmem:[%s5470_s1 + $0x3b8] sm:$0xff]  ;;  %v231_v47 = vpack.c.bf16 %v167_v41, %v163_v39  ;;  %v153_v49 = vld [vmem:[%s5470_s1 + $0x380] sm:$0xff] }
  0x27   :  { %751 = vmatpush1.bf16.msra.mxu1 %v179_v11  ;;  %679 = vmatprep.subr.bf16.mxu0 %v174_v12  ;;  %v226_v48 = vpack.c.bf16 %v158_v43, %v154_v42  ;;  %v157_v50 = vld [vmem:[%s5470_s1 + $0x3a0] sm:$0xff]  ;;  %v155_v51 = vld [vmem:[%s5470_s1 + $0x390] sm:$0xff]  ;;  %v228_v52 = vpack.c.bf16 %v160_v45, %v156_v44  ;;  %v146_v54 = vld [vmem:[%s5470_s1 + $0x348] sm:$0xff] }
  0x28   :  { %752 = vmatprep.subr.bf16.mxu1 %v176_v16  ;;  %v159_v53 = vld [vmem:[%s5470_s1 + $0x3b0] sm:$0xff]  ;;  %v150_v55 = vld [vmem:[%s5470_s1 + $0x368] sm:$0xff]  ;;  %v148_v56 = vld [vmem:[%s5470_s1 + $0x358] sm:$0xff]  ;;  %v225_v58 = vpack.c.bf16 %v157_v50, %v153_v49 }
  0x29   :  { %v152_v57 = vld [vmem:[%s5470_s1 + $0x378] sm:$0xff]  ;;  %v227_v59 = vpack.c.bf16 %v159_v53, %v155_v51  ;;  %v222_v60 = vpack.c.bf16 %v150_v55, %v146_v54  ;;  %v145_v61 = vld [vmem:[%s5470_s1 + $0x340] sm:$0xff]  ;;  %v147_v63 = vld [vmem:[%s5470_s1 + $0x350] sm:$0xff] }
  0x2a   :  { %680 = vmatpush1.bf16.msra.mxu0 %v173_v22  ;;  %v149_v62 = vld [vmem:[%s5470_s1 + $0x360] sm:$0xff]  ;;  %v224_v0 = vpack.c.bf16 %v152_v57, %v148_v56  ;;  %v151_v1 = vld [vmem:[%s5470_s1 + $0x370] sm:$0xff]  ;;  %v138_v2 = vld [vmem:[%s5470_s1 + $0x308] sm:$0xff] }
  0x2b   :  { %753 = vmatpush1.bf16.msra.mxu1 %v175_v23  ;;  %681 = vmatprep.subr.bf16.mxu0 %v170_v24  ;;  %v142_v3 = vld [vmem:[%s5470_s1 + $0x328] sm:$0xff]  ;;  %v140_v4 = vld [vmem:[%s5470_s1 + $0x318] sm:$0xff]  ;;  %v221_v6 = vpack.c.bf16 %v149_v62, %v145_v61  ;;  %v137_v7 = vld [vmem:[%s5470_s1 + $0x300] sm:$0xff]  ;;  %v223_v8 = vpack.c.bf16 %v151_v1, %v147_v63 }
  0x2c   :  { %754 = vmatprep.subr.bf16.mxu1 %v172_v28  ;;  %v144_v5 = vld [vmem:[%s5470_s1 + $0x338] sm:$0xff]  ;;  %v218_v9 = vpack.c.bf16 %v142_v3, %v138_v2  ;;  %v141_v10 = vld [vmem:[%s5470_s1 + $0x320] sm:$0xff]  ;;  %v139_v11 = vld [vmem:[%s5470_s1 + $0x310] sm:$0xff] }
  0x2d   :  { %v143_v12 = vld [vmem:[%s5470_s1 + $0x330] sm:$0xff]  ;;  %v220_v13 = vpack.c.bf16 %v144_v5, %v140_v4  ;;  %v130_v14 = vld [vmem:[%s5470_s1 + $0x2c8] sm:$0xff]  ;;  %v132_v17 = vld [vmem:[%s5470_s1 + $0x2d8] sm:$0xff]  ;;  %v217_v20 = vpack.c.bf16 %v141_v10, %v137_v7 }
  0x2e   :  { %682 = vmatpush1.bf16.msra.mxu0 %v169_v34  ;;  %v134_v15 = vld [vmem:[%s5470_s1 + $0x2e8] sm:$0xff]  ;;  %v136_v18 = vld [vmem:[%s5470_s1 + $0x2f8] sm:$0xff]  ;;  %v219_v22 = vpack.c.bf16 %v143_v12, %v139_v11  ;;  %v129_v24 = vld [vmem:[%s5470_s1 + $0x2c0] sm:$0xff] }
  0x2f   :  { %755 = vmatpush1.bf16.msra.mxu1 %v171_v35  ;;  %683 = vmatprep.subr.bf16.mxu0 %v230_v36  ;;  %v623_v16 = vld [vmem:[%s5469_s0 + $0x8] sm:$0xff]  ;;  %v625_v19 = vld [vmem:[%s5469_s0 + $0x18] sm:$0xff]  ;;  %v214_v23 = vpack.c.bf16 %v134_v15, %v130_v14  ;;  %v133_v25 = vld [vmem:[%s5470_s1 + $0x2e0] sm:$0xff]  ;;  %v216_v27 = vpack.c.bf16 %v136_v18, %v132_v17 }
  0x30   :  { %756 = vmatprep.subr.bf16.mxu1 %v232_v40  ;;  %v3651_v21 = vpack.c.bf16 %v625_v19, %v623_v16  ;;  %v131_v26 = vld [vmem:[%s5470_s1 + $0x2d0] sm:$0xff]  ;;  %v122_v29 = vld [vmem:[%s5470_s1 + $0x288] sm:$0xff]  ;;  %v124_v31 = vld [vmem:[%s5470_s1 + $0x298] sm:$0xff]  ;;  %v213_v33 = vpack.c.bf16 %v133_v25, %v129_v24 }
  0x31   :  { %v135_v28 = vld [vmem:[%s5470_s1 + $0x2f0] sm:$0xff]  ;;  %v126_v30 = vld [vmem:[%s5470_s1 + $0x2a8] sm:$0xff]  ;;  %v128_v32 = vld [vmem:[%s5470_s1 + $0x2b8] sm:$0xff] }
  0x32   :  { %684 = vmatpush2.bf16.msra.mxu0 %v229_v46  ;;  %699 = vmatprep.mubr.bf16.mxu0 %v3651_v21  ;;  %v215_v34 = vpack.c.bf16 %v135_v28, %v131_v26  ;;  %v210_v35 = vpack.c.bf16 %v126_v30, %v122_v29  ;;  %v121_v36 = vld [vmem:[%s5470_s1 + $0x280] sm:$0xff]  ;;  %v123_v38 = vld [vmem:[%s5470_s1 + $0x290] sm:$0xff]  ;;  %v212_v39 = vpack.c.bf16 %v128_v32, %v124_v31  ;;  %v114_v41 = vld [vmem:[%s5470_s1 + $0x248] sm:$0xff] }
  0x33   :  { %757 = vmatpush2.bf16.msra.mxu1 %v231_v47  ;;  %685 = vmatprep.subr.bf16.mxu0 %v226_v48  ;;  %v125_v37 = vld [vmem:[%s5470_s1 + $0x2a0] sm:$0xff]  ;;  %v127_v40 = vld [vmem:[%s5470_s1 + $0x2b0] sm:$0xff]  ;;  %v118_v42 = vld [vmem:[%s5470_s1 + $0x268] sm:$0xff] }
  0x34   :  { %758 = vmatprep.subr.bf16.mxu1 %v228_v52  ;;  %772 = vmatprep.mubr.bf16.mxu1 %v3651_v21  ;;  %v116_v43 = vld [vmem:[%s5470_s1 + $0x258] sm:$0xff]  ;;  %v209_v45 = vpack.c.bf16 %v125_v37, %v121_v36  ;;  %v211_v46 = vpack.c.bf16 %v127_v40, %v123_v38  ;;  %v206_v47 = vpack.c.bf16 %v118_v42, %v114_v41  ;;  %v113_v48 = vld [vmem:[%s5470_s1 + $0x240] sm:$0xff]  ;;  %v115_v50 = vld [vmem:[%s5470_s1 + $0x250] sm:$0xff] }
  0x35   :  { %v120_v44 = vld [vmem:[%s5470_s1 + $0x278] sm:$0xff]  ;;  %v117_v49 = vld [vmem:[%s5470_s1 + $0x260] sm:$0xff]  ;;  %v119_v52 = vld [vmem:[%s5470_s1 + $0x270] sm:$0xff] }
  0x36   :  { %686 = vmatpush2.bf16.msra.mxu0 %v225_v58  ;;  %v208_v51 = vpack.c.bf16 %v120_v44, %v116_v43  ;;  %v106_v53 = vld [vmem:[%s5470_s1 + $0x208] sm:$0xff]  ;;  %v108_v55 = vld [vmem:[%s5470_s1 + $0x218] sm:$0xff]  ;;  %v205_v57 = vpack.c.bf16 %v117_v49, %v113_v48  ;;  %v207_v58 = vpack.c.bf16 %v119_v52, %v115_v50  ;;  %v109_v61 = vld [vmem:[%s5470_s1 + $0x220] sm:$0xff] }
  0x37   :  { %759 = vmatpush2.bf16.msra.mxu1 %v227_v59  ;;  %687 = vmatprep.subr.bf16.mxu0 %v222_v60  ;;  %v110_v54 = vld [vmem:[%s5470_s1 + $0x228] sm:$0xff]  ;;  %v112_v56 = vld [vmem:[%s5470_s1 + $0x238] sm:$0xff]  ;;  %v105_v60 = vld [vmem:[%s5470_s1 + $0x200] sm:$0xff] }
  0x38   :  { %760 = vmatprep.subr.bf16.mxu1 %v224_v0  ;;  %v202_v59 = vpack.c.bf16 %v110_v54, %v106_v53  ;;  %v107_v62 = vld [vmem:[%s5470_s1 + $0x210] sm:$0xff]  ;;  %v204_v63 = vpack.c.bf16 %v112_v56, %v108_v55  ;;  %v290_v1 = vld [vmem:[%s5473_s4 + $0x1c8] sm:$0xff]  ;;  %v292_v3 = vld [vmem:[%s5473_s4 + $0x1d8] sm:$0xff]  ;;  %v201_v5 = vpack.c.bf16 %v109_v61, %v105_v60 }
  0x39   :  { %v111_v0 = vld [vmem:[%s5470_s1 + $0x230] sm:$0xff]  ;;  %v294_v2 = vld [vmem:[%s5473_s4 + $0x1e8] sm:$0xff]  ;;  %v296_v4 = vld [vmem:[%s5473_s4 + $0x1f8] sm:$0xff] }
  0x3a   :  { %688 = vmatpush2.bf16.msra.mxu0 %v221_v6  ;;  %v622_v6 = vld [vmem:[%s5469_s0] sm:$0xff]  ;;  %v624_v7 = vld [vmem:[%s5469_s0 + $0x10] sm:$0xff]  ;;  %v282_v15 = vld [vmem:[%s5473_s4 + $0x188] sm:$0xff] }
  0x3b   :  { %761 = vmatpush2.bf16.msra.mxu1 %v223_v8  ;;  %689 = vmatprep.subr.bf16.mxu0 %v218_v9  ;;  %v203_v8 = vpack.c.bf16 %v111_v0, %v107_v62  ;;  %v390_v9 = vpack.c.bf16 %v294_v2, %v290_v1  ;;  %v289_v10 = vld [vmem:[%s5473_s4 + $0x1c0] sm:$0xff]  ;;  %v291_v12 = vld [vmem:[%s5473_s4 + $0x1d0] sm:$0xff]  ;;  %v286_v16 = vld [vmem:[%s5473_s4 + $0x1a8] sm:$0xff]  ;;  %v3775_v17 = vpack.c.bf16 %v624_v7, %v622_v6 }
  0x3c   :  { %762 = vmatprep.subr.bf16.mxu1 %v220_v13  ;;  %v293_v11 = vld [vmem:[%s5473_s4 + $0x1e0] sm:$0xff]  ;;  %v392_v13 = vpack.c.bf16 %v296_v4, %v292_v3  ;;  %v295_v14 = vld [vmem:[%s5473_s4 + $0x1f0] sm:$0xff]  ;;  %v284_v18 = vld [vmem:[%s5473_s4 + $0x198] sm:$0xff] }
  0x3d   :  { %v288_v19 = vld [vmem:[%s5473_s4 + $0x1b8] sm:$0xff]  ;;  %v281_v24 = vld [vmem:[%s5473_s4 + $0x180] sm:$0xff]  ;;  %v283_v26 = vld [vmem:[%s5473_s4 + $0x190] sm:$0xff] }
  0x3e   :  { %690 = vmatpush2.bf16.msra.mxu0 %v217_v20  ;;  %v389_v20 = vpack.c.bf16 %v293_v11, %v289_v10  ;;  %v285_v25 = vld [vmem:[%s5473_s4 + $0x1a0] sm:$0xff]  ;;  %v287_v28 = vld [vmem:[%s5473_s4 + $0x1b0] sm:$0xff]  ;;  %v274_v29 = vld [vmem:[%s5473_s4 + $0x148] sm:$0xff] }
  0x3f   :  { %763 = vmatpush2.bf16.msra.mxu1 %v219_v22  ;;  %691 = vmatprep.subr.bf16.mxu0 %v214_v23  ;;  %v391_v22 = vpack.c.bf16 %v295_v14, %v291_v12  ;;  %v386_v23 = vpack.c.bf16 %v286_v16, %v282_v15  ;;  %v278_v30 = vld [vmem:[%s5473_s4 + $0x168] sm:$0xff]  ;;  %v276_v31 = vld [vmem:[%s5473_s4 + $0x158] sm:$0xff]  ;;  %v626_v37 = vld [vmem:[%s5469_s0 + $0x20] sm:$0xff]  ;;  %v387_v38 = vpack.c.bf16 %v287_v28, %v283_v26 }
  0x40   :  { %764 = vmatprep.subr.bf16.mxu1 %v216_v27  ;;  %v388_v27 = vpack.c.bf16 %v288_v19, %v284_v18  ;;  %v280_v32 = vld [vmem:[%s5473_s4 + $0x178] sm:$0xff]  ;;  %v277_v40 = vld [vmem:[%s5473_s4 + $0x160] sm:$0xff]  ;;  %v275_v41 = vld [vmem:[%s5473_s4 + $0x150] sm:$0xff] }
  0x41   :  { %v629_v36 = vld [vmem:[%s5469_s0 + $0x38] sm:$0xff]  ;;  %v628_v43 = vld [vmem:[%s5469_s0 + $0x30] sm:$0xff]  ;;  %v384_v44 = vpack.c.bf16 %v280_v32, %v276_v31  ;;  %v265_v52 = vld [vmem:[%s5473_s4 + $0x100] sm:$0xff] }
  0x42   :  { %692 = vmatpush2.bf16.msra.mxu0 %v213_v33  ;;  %v273_v33 = vld [vmem:[%s5473_s4 + $0x140] sm:$0xff]  ;;  %v268_v48 = vld [vmem:[%s5473_s4 + $0x118] sm:$0xff]  ;;  %v3848_v50 = vpack.c.bf16 %v628_v43, %v626_v37  ;;  %v267_v56 = vld [vmem:[%s5473_s4 + $0x110] sm:$0xff] }
  0x43   :  { %765 = vmatpush2.bf16.msra.mxu1 %v215_v34  ;;  %693 = vmatprep.subr.bf16.mxu0 %v210_v35  ;;  %v385_v34 = vpack.c.bf16 %v285_v25, %v281_v24  ;;  %v627_v35 = vld [vmem:[%s5469_s0 + $0x28] sm:$0xff]  ;;  %v272_v49 = vld [vmem:[%s5473_s4 + $0x138] sm:$0xff]  ;;  %v269_v55 = vld [vmem:[%s5473_s4 + $0x120] sm:$0xff] }
  0x44   :  { %766 = vmatprep.subr.bf16.mxu1 %v212_v39  ;;  %v382_v39 = vpack.c.bf16 %v278_v30, %v274_v29  ;;  %v3827_v42 = vpack.c.bf16 %v629_v36, %v627_v35  ;;  %v262_v60 = vld [vmem:[%s5473_s4 + $0xe8] sm:$0xff]  ;;  %v260_v62 = vld [vmem:[%s5473_s4 + $0xd8] sm:$0xff]  ;;  %v377_v1 = vpack.c.bf16 %v269_v55, %v265_v52  ;;  %v630_v3 = vld [vmem:[%s5469_s0 + $0x40] sm:$0xff] }
  0x45   :  { %v631_v61 = vld [vmem:[%s5469_s0 + $0x48] sm:$0xff]  ;;  %v633_v0 = vld [vmem:[%s5469_s0 + $0x58] sm:$0xff]  ;;  %v632_v4 = vld [vmem:[%s5469_s0 + $0x50] sm:$0xff] }
  0x46   :  { %694 = vmatpush2.bf16.msra.mxu0 %v209_v45  ;;  %v279_v45 = vld [vmem:[%s5473_s4 + $0x170] sm:$0xff]  ;;  %v3883_v2 = vpack.c.bf16 %v633_v0, %v631_v61  ;;  %v257_v7 = vld [vmem:[%s5473_s4 + $0xc0] sm:$0xff]  ;;  %v250_v12 = vld [vmem:[%s5473_s4 + $0x88] sm:$0xff]  ;;  %v3916_v16 = vpack.c.bf16 %v632_v4, %v630_v3 }
  0x47   :  { %767 = vmatpush2.bf16.msra.mxu1 %v211_v46  ;;  %695 = vmatprep.subr.bf16.mxu0 %v206_v47  ;;  %v266_v46 = vld [vmem:[%s5473_s4 + $0x108] sm:$0xff]  ;;  %v383_v53 = vpack.c.bf16 %v279_v45, %v275_v41  ;;  %v263_v11 = vld [vmem:[%s5473_s4 + $0xf0] sm:$0xff]  ;;  %v252_v14 = vld [vmem:[%s5473_s4 + $0x98] sm:$0xff] }
  0x48   :  { %768 = vmatprep.subr.bf16.mxu1 %v208_v51  ;;  %v270_v47 = vld [vmem:[%s5473_s4 + $0x128] sm:$0xff]  ;;  %v381_v51 = vpack.c.bf16 %v277_v40, %v273_v33  ;;  %v256_v15 = vld [vmem:[%s5473_s4 + $0xb8] sm:$0xff]  ;;  %v249_v19 = vld [vmem:[%s5473_s4 + $0x80] sm:$0xff] }
  0x49   :  { %v378_v54 = vpack.c.bf16 %v270_v47, %v266_v46  ;;  %v251_v24 = vld [vmem:[%s5473_s4 + $0x90] sm:$0xff]  ;;  %v635_v25 = vld [vmem:[%s5469_s0 + $0x68] sm:$0xff]  ;;  %v637_v26 = vld [vmem:[%s5469_s0 + $0x78] sm:$0xff] }
  0x4a   :  { %696 = vmatpush2.bf16.msra.mxu0 %v205_v57  ;;  %v271_v57 = vld [vmem:[%s5473_s4 + $0x130] sm:$0xff]  ;;  %v242_v29 = vld [vmem:[%s5473_s4 + $0x48] sm:$0xff]  ;;  %v3943_v31 = vpack.c.bf16 %v637_v26, %v635_v25  ;;  %v244_v32 = vld [vmem:[%s5473_s4 + $0x58] sm:$0xff] }
  0x4b   :  { %769 = vmatpush2.bf16.msra.mxu1 %v207_v58  ;;  %697 = vmatprep.subr.bf16.mxu0 %v202_v59  ;;  %v380_v58 = vpack.c.bf16 %v272_v49, %v268_v48  ;;  %v258_v59 = vld [vmem:[%s5473_s4 + $0xc8] sm:$0xff]  ;;  %v255_v28 = vld [vmem:[%s5473_s4 + $0xb0] sm:$0xff]  ;;  %v248_v33 = vld [vmem:[%s5473_s4 + $0x78] sm:$0xff] }
  0x4c   :  { %770 = vmatprep.subr.bf16.mxu1 %v204_v63  ;;  %v264_v63 = vld [vmem:[%s5473_s4 + $0xf8] sm:$0xff]  ;;  %v374_v6 = vpack.c.bf16 %v262_v60, %v258_v59  ;;  %v246_v30 = vld [vmem:[%s5473_s4 + $0x68] sm:$0xff]  ;;  %v634_v35 = vld [vmem:[%s5469_s0 + $0x60] sm:$0xff]  ;;  %v371_v37 = vpack.c.bf16 %v255_v28, %v251_v24  ;;  %v368_v43 = vpack.c.bf16 %v248_v33, %v244_v32 }
  0x4d   :  { %v376_v10 = vpack.c.bf16 %v264_v63, %v260_v62  ;;  %v636_v36 = vld [vmem:[%s5469_s0 + $0x70] sm:$0xff]  ;;  %v245_v40 = vld [vmem:[%s5473_s4 + $0x60] sm:$0xff]  ;;  %v234_v45 = vld [vmem:[%s5473_s4 + $0x8] sm:$0xff] }
  0x4e   :  { %698 = vmatpush2.bf16.msra.mxu0 %v201_v5  ;;  %v379_v5 = vpack.c.bf16 %v271_v57, %v267_v56  ;;  %v243_v41 = vld [vmem:[%s5473_s4 + $0x50] sm:$0xff]  ;;  %v238_v46 = vld [vmem:[%s5473_s4 + $0x28] sm:$0xff]  ;;  %v236_v47 = vld [vmem:[%s5473_s4 + $0x18] sm:$0xff]  ;;  %v3984_v49 = vpack.c.bf16 %v636_v36, %v634_v35 }
  0x4f   :  { %771 = vmatpush2.bf16.msra.mxu1 %v203_v8  ;;  %866 = vmatprep.subr.bf16.mxu0 %v390_v9  ;;  %v261_v8 = vld [vmem:[%s5473_s4 + $0xe0] sm:$0xff]  ;;  %v259_v9 = vld [vmem:[%s5473_s4 + $0xd0] sm:$0xff]  ;;  %v240_v48 = vld [vmem:[%s5473_s4 + $0x38] sm:$0xff] }
  0x50   :  { %939 = vmatprep.subr.bf16.mxu1 %v392_v13  ;;  %v254_v13 = vld [vmem:[%s5473_s4 + $0xa8] sm:$0xff]  ;;  %v373_v18 = vpack.c.bf16 %v261_v8, %v257_v7  ;;  %v237_v55 = vld [vmem:[%s5473_s4 + $0x20] sm:$0xff]  ;;  %v235_v56 = vld [vmem:[%s5473_s4 + $0x10] sm:$0xff]  ;;  %v364_v57 = vpack.c.bf16 %v240_v48, %v236_v47 }
  0x51   :  { %700 = vmatmul.mubr.bf16.vlgmr.msra.gmra.mxu0 %v3775_v17  ;;  %v354_v59 = vld [vmem:[%s5473_s4 + $0x3c8] sm:$0xff]  ;;  %v356_v61 = vld [vmem:[%s5473_s4 + $0x3d8] sm:$0xff]  ;;  %v353_v3 = vld [vmem:[%s5473_s4 + $0x3c0] sm:$0xff] }
  0x52   :  { %773 = vmatmul.mubr.bf16.vlgmr.msra.gmra.mxu1 %v3775_v17  ;;  %867 = vmatpush1.bf16.msra.mxu0 %v389_v20  ;;  %v253_v20 = vld [vmem:[%s5473_s4 + $0xa0] sm:$0xff]  ;;  %v358_v60 = vld [vmem:[%s5473_s4 + $0x3e8] sm:$0xff]  ;;  %v360_v62 = vld [vmem:[%s5473_s4 + $0x3f8] sm:$0xff] }
  0x53   :  { %940 = vmatpush1.bf16.msra.mxu1 %v391_v22  ;;  %868 = vmatprep.subr.bf16.mxu0 %v386_v23  ;;  %v375_v22 = vpack.c.bf16 %v263_v11, %v259_v9  ;;  %v370_v23 = vpack.c.bf16 %v254_v13, %v250_v12  ;;  %v357_v4 = vld [vmem:[%s5473_s4 + $0x3e0] sm:$0xff]  ;;  %v359_v7 = vld [vmem:[%s5473_s4 + $0x3f0] sm:$0xff]  ;;  %v346_v8 = vld [vmem:[%s5473_s4 + $0x388] sm:$0xff] }
  0x54   :  { %941 = vmatprep.subr.bf16.mxu1 %v388_v27  ;;  %709 = vmatprep.mubr.bf16.mxu0 %v3827_v42  ;;  %v372_v27 = vpack.c.bf16 %v256_v15, %v252_v14  ;;  %v350_v9 = vld [vmem:[%s5473_s4 + $0x3a8] sm:$0xff]  ;;  %v352_v11 = vld [vmem:[%s5473_s4 + $0x3b8] sm:$0xff]  ;;  %v421_v12 = vpack.c.bf16 %v357_v4, %v353_v3  ;;  %v345_v15 = vld [vmem:[%s5473_s4 + $0x380] sm:$0xff] }
  0x55   :  { %782 = vmatprep.mubr.bf16.mxu1 %v3827_v42  ;;  %v418_v14 = vpack.c.bf16 %v350_v9, %v346_v8  ;;  %v340_v24 = vld [vmem:[%s5473_s4 + $0x358] sm:$0xff]  ;;  %v339_v32 = vld [vmem:[%s5473_s4 + $0x350] sm:$0xff]  ;;  %v330_v35 = vld [vmem:[%s5473_s4 + $0x308] sm:$0xff] }
  0x56   :  { %869 = vmatpush1.bf16.msra.mxu0 %v385_v34  ;;  %v369_v34 = vpack.c.bf16 %v253_v20, %v249_v19  ;;  %v347_v19 = vld [vmem:[%s5473_s4 + $0x390] sm:$0xff]  ;;  %v344_v25 = vld [vmem:[%s5473_s4 + $0x378] sm:$0xff]  ;;  %v334_v36 = vld [vmem:[%s5473_s4 + $0x328] sm:$0xff] }
  0x57   :  { %942 = vmatpush1.bf16.msra.mxu1 %v387_v38  ;;  %870 = vmatprep.subr.bf16.mxu0 %v382_v39  ;;  %v366_v38 = vpack.c.bf16 %v246_v30, %v242_v29  ;;  %v241_v39 = vld [vmem:[%s5473_s4 + $0x40] sm:$0xff]  ;;  %v351_v20 = vld [vmem:[%s5473_s4 + $0x3b0] sm:$0xff]  ;;  %v416_v33 = vpack.c.bf16 %v344_v25, %v340_v24  ;;  %v322_v48 = vld [vmem:[%s5473_s4 + $0x2c8] sm:$0xff] }
  0x58   :  { %943 = vmatprep.subr.bf16.mxu1 %v384_v44  ;;  %v247_v44 = vld [vmem:[%s5473_s4 + $0x70] sm:$0xff]  ;;  %v337_v29 = vld [vmem:[%s5473_s4 + $0x340] sm:$0xff]  ;;  %v298_v25 = vld [vmem:[%s5473_s4 + $0x208] sm:$0xff] }
  0x59   :  { %710 = vmatmul.mubr.bf16.gmra.mxu0 %v3848_v50  ;;  %v367_v52 = vpack.c.bf16 %v247_v44, %v243_v41  ;;  %v341_v30 = vld [vmem:[%s5473_s4 + $0x360] sm:$0xff]  ;;  %v410_v41 = vpack.c.bf16 %v334_v36, %v330_v35  ;;  %v335_v47 = vld [vmem:[%s5473_s4 + $0x330] sm:$0xff] }
  0x5a   :  { %871 = vmatpush1.bf16.msra.mxu0 %v381_v51  ;;  %783 = vmatmul.mubr.bf16.gmra.mxu1 %v3848_v50  ;;  %v365_v51 = vpack.c.bf16 %v245_v40, %v241_v39  ;;  %v413_v39 = vpack.c.bf16 %v341_v30, %v337_v29  ;;  %v333_v44 = vld [vmem:[%s5473_s4 + $0x320] sm:$0xff]  ;;  %v315_v8 = vld [vmem:[%s5473_s4 + $0x290] sm:$0xff] }
  0x5b   :  { %944 = vmatpush1.bf16.msra.mxu1 %v383_v53  ;;  %872 = vmatprep.subr.bf16.mxu0 %v378_v54  ;;  %v362_v53 = vpack.c.bf16 %v238_v46, %v234_v45  ;;  %v233_v54 = vld [vmem:[%s5473_s4] sm:$0xff]  ;;  %v331_v45 = vld [vmem:[%s5473_s4 + $0x310] sm:$0xff] }
  0x5c   :  { %945 = vmatprep.subr.bf16.mxu1 %v380_v58  ;;  %719 = vmatprep.mubr.bf16.mxu0 %v3883_v2  ;;  %v239_v58 = vld [vmem:[%s5473_s4 + $0x30] sm:$0xff]  ;;  %v361_v63 = vpack.c.bf16 %v237_v55, %v233_v54  ;;  %v411_v55 = vpack.c.bf16 %v335_v47, %v331_v45  ;;  %v485_v47 = vld [vmem:[#allocation4 + $0x1e0] sm:$0xff] }
  0x5d   :  { %792 = vmatprep.mubr.bf16.mxu1 %v3883_v2  ;;  %v363_v0 = vpack.c.bf16 %v239_v58, %v235_v56  ;;  %v325_v58 = vld [vmem:[%s5473_s4 + $0x2e0] sm:$0xff]  ;;  %v311_v24 = vld [vmem:[%s5473_s4 + $0x270] sm:$0xff] }
  0x5e   :  { %873 = vmatpush1.bf16.msra.mxu0 %v377_v1  ;;  %v422_v1 = vpack.c.bf16 %v358_v60, %v354_v59  ;;  %v323_v59 = vld [vmem:[%s5473_s4 + $0x2d0] sm:$0xff] }
  0x5f   :  { %946 = vmatpush1.bf16.msra.mxu1 %v379_v5  ;;  %874 = vmatprep.subr.bf16.mxu0 %v374_v6  ;;  %v355_v5 = vld [vmem:[%s5473_s4 + $0x3d0] sm:$0xff]  ;;  %v424_v6 = vpack.c.bf16 %v360_v62, %v356_v61  ;;  %v314_v62 = vld [vmem:[%s5473_s4 + $0x288] sm:$0xff] }
  0x60   :  { %947 = vmatprep.subr.bf16.mxu1 %v376_v10  ;;  %v348_v10 = vld [vmem:[%s5473_s4 + $0x398] sm:$0xff]  ;;  %v423_v13 = vpack.c.bf16 %v359_v7, %v355_v5  ;;  %v327_v61 = vld [vmem:[%s5473_s4 + $0x2f0] sm:$0xff]  ;;  %v317_v7 = vld [vmem:[%s5473_s4 + $0x2a0] sm:$0xff] }
  0x61   :  { %720 = vmatmul.mubr.bf16.gmra.mxu0 %v3916_v16  ;;  %v407_v4 = vpack.c.bf16 %v327_v61, %v323_v59  ;;  %v299_v35 = vld [vmem:[%s5473_s4 + $0x210] sm:$0xff]  ;;  %v477_v61 = vld [vmem:[#allocation4 + $0x1a0] sm:$0xff] }
  0x62   :  { %875 = vmatpush1.bf16.msra.mxu0 %v373_v18  ;;  %793 = vmatmul.mubr.bf16.gmra.mxu1 %v3916_v16  ;;  %v349_v18 = vld [vmem:[%s5473_s4 + $0x3a0] sm:$0xff] }
  0x63   :  { %948 = vmatpush1.bf16.msra.mxu1 %v375_v22  ;;  %876 = vmatprep.subr.bf16.mxu0 %v370_v23  ;;  %v338_v22 = vld [vmem:[%s5473_s4 + $0x348] sm:$0xff]  ;;  %v417_v26 = vpack.c.bf16 %v349_v18, %v345_v15 }
  0x64   :  { %949 = vmatprep.subr.bf16.mxu1 %v372_v27  ;;  %729 = vmatprep.mubr.bf16.mxu0 %v3943_v31  ;;  %v342_v23 = vld [vmem:[%s5473_s4 + $0x368] sm:$0xff]  ;;  %v419_v27 = vpack.c.bf16 %v351_v20, %v347_v19  ;;  %v309_v20 = vld [vmem:[%s5473_s4 + $0x260] sm:$0xff] }
  0x65   :  { %802 = vmatprep.mubr.bf16.mxu1 %v3943_v31  ;;  %v414_v28 = vpack.c.bf16 %v342_v23, %v338_v22  ;;  %v307_v22 = vld [vmem:[%s5473_s4 + $0x250] sm:$0xff] }
  0x66   :  { %877 = vmatpush1.bf16.msra.mxu0 %v369_v34  ;;  %v343_v34 = vld [vmem:[%s5473_s4 + $0x370] sm:$0xff]  ;;  %v399_v30 = vpack.c.bf16 %v311_v24, %v307_v22  ;;  %v457_v22 = vld [vmem:[#allocation4 + $0x100] sm:$0xff] }
  0x67   :  { %950 = vmatpush1.bf16.msra.mxu1 %v371_v37  ;;  %878 = vmatprep.subr.bf16.mxu0 %v366_v38  ;;  %v332_v37 = vld [vmem:[%s5473_s4 + $0x318] sm:$0xff]  ;;  %v415_v40 = vpack.c.bf16 %v343_v34, %v339_v32  ;;  %v301_v34 = vld [vmem:[%s5473_s4 + $0x220] sm:$0xff]  ;;  %v459_v24 = vld [vmem:[#allocation4 + $0x110] sm:$0xff] }
  0x68   :  { %951 = vmatprep.subr.bf16.mxu1 %v368_v43  ;;  %v336_v38 = vld [vmem:[%s5473_s4 + $0x338] sm:$0xff]  ;;  %v329_v43 = vld [vmem:[%s5473_s4 + $0x300] sm:$0xff] }
  0x69   :  { %730 = vmatmul.mubr.bf16.gmra.mxu0 %v3984_v49  ;;  %v412_v46 = vpack.c.bf16 %v336_v38, %v332_v37  ;;  %v409_v54 = vpack.c.bf16 %v333_v44, %v329_v43  ;;  %v303_v37 = vld [vmem:[%s5473_s4 + $0x230] sm:$0xff]  ;;  %v482_v38 = vld [vmem:[#allocation4 + $0x1c8] sm:$0xff] }
  0x6a   :  { %879 = vmatpush1.bf16.msra.mxu0 %v365_v51  ;;  %803 = vmatmul.mubr.bf16.gmra.mxu1 %v3984_v49  ;;  %v326_v51 = vld [vmem:[%s5473_s4 + $0x2e8] sm:$0xff]  ;;  %v395_v44 = vpack.c.bf16 %v303_v37, %v299_v35  ;;  %v453_v35 = vld [vmem:[#allocation4 + $0xe0] sm:$0xff]  ;;  %v455_v37 = vld [vmem:[#allocation4 + $0xf0] sm:$0xff] }
  0x6b   :  { %952 = vmatpush1.bf16.msra.mxu1 %v367_v52  ;;  %880 = vmatprep.subr.bf16.mxu0 %v362_v53  ;;  %v324_v52 = vld [vmem:[%s5473_s4 + $0x2d8] sm:$0xff]  ;;  %v406_v56 = vpack.c.bf16 %v326_v51, %v322_v48  ;;  %v483_v48 = vld [vmem:[#allocation4 + $0x1d0] sm:$0xff] }
  0x6c   :  { %953 = vmatprep.subr.bf16.mxu1 %v364_v57  ;;  %898 = vmatprep.mubr.bf16.mxu0 %v3651_v21  ;;  %v328_v53 = vld [vmem:[%s5473_s4 + $0x2f8] sm:$0xff]  ;;  %v321_v57 = vld [vmem:[%s5473_s4 + $0x2c0] sm:$0xff] }
  0x6d   :  { %971 = vmatprep.mubr.bf16.mxu1 %v3651_v21  ;;  %v420_v21 = vpack.c.bf16 %v352_v11, %v348_v10  ;;  %v408_v60 = vpack.c.bf16 %v328_v53, %v324_v52  ;;  %v405_v3 = vpack.c.bf16 %v325_v58, %v321_v57  ;;  %v319_v10 = vld [vmem:[%s5473_s4 + $0x2b0] sm:$0xff]  ;;  %v306_v11 = vld [vmem:[%s5473_s4 + $0x248] sm:$0xff] }
  0x6e   :  { %881 = vmatpush1.bf16.msra.mxu0 %v361_v63  ;;  %v318_v63 = vld [vmem:[%s5473_s4 + $0x2a8] sm:$0xff]  ;;  %v403_v18 = vpack.c.bf16 %v319_v10, %v315_v8  ;;  %v487_v52 = vld [vmem:[#allocation4 + $0x1f0] sm:$0xff]  ;;  %v469_v10 = vld [vmem:[#allocation4 + $0x160] sm:$0xff] }
  0x6f   :  { %954 = vmatpush1.bf16.msra.mxu1 %v363_v0  ;;  %882 = vmatprep.subr.bf16.mxu0 %v422_v1  ;;  %v316_v0 = vld [vmem:[%s5473_s4 + $0x298] sm:$0xff]  ;;  %v402_v5 = vpack.c.bf16 %v318_v63, %v314_v62  ;;  %v474_v53 = vld [vmem:[#allocation4 + $0x188] sm:$0xff]  ;;  %v4202_v58 = vpack.c.bf16 %v487_v52, %v483_v48  ;;  %v475_v62 = vld [vmem:[#allocation4 + $0x190] sm:$0xff] }
  0x70   :  { %955 = vmatprep.subr.bf16.mxu1 %v424_v6  ;;  %v320_v1 = vld [vmem:[%s5473_s4 + $0x2b8] sm:$0xff]  ;;  %v313_v6 = vld [vmem:[%s5473_s4 + $0x280] sm:$0xff]  ;;  %v443_v52 = vld [vmem:[#allocation4 + $0x90] sm:$0xff] }
  0x71   :  { %v404_v9 = vpack.c.bf16 %v320_v1, %v316_v0  ;;  %v401_v15 = vpack.c.bf16 %v317_v7, %v313_v6  ;;  %v479_v0 = vld [vmem:[#allocation4 + $0x1b0] sm:$0xff]  ;;  %v466_v1 = vld [vmem:[#allocation4 + $0x148] sm:$0xff]  ;;  %v445_v48 = vld [vmem:[#allocation4 + $0xa0] sm:$0xff] }
  0x72   :  { %883 = vmatpush2.bf16.msra.mxu0 %v421_v12  ;;  %v310_v12 = vld [vmem:[%s5473_s4 + $0x268] sm:$0xff]  ;;  %v4216_v7 = vpack.c.bf16 %v479_v0, %v475_v62 }
  0x73   :  { %956 = vmatpush2.bf16.msra.mxu1 %v423_v13  ;;  %884 = vmatprep.subr.bf16.mxu0 %v418_v14  ;;  %v308_v13 = vld [vmem:[%s5473_s4 + $0x258] sm:$0xff]  ;;  %v398_v19 = vpack.c.bf16 %v310_v12, %v306_v11  ;;  %v467_v11 = vld [vmem:[#allocation4 + $0x150] sm:$0xff] }
  0x74   :  { %957 = vmatprep.subr.bf16.mxu1 %v420_v21  ;;  %v312_v14 = vld [vmem:[%s5473_s4 + $0x278] sm:$0xff]  ;;  %v305_v21 = vld [vmem:[%s5473_s4 + $0x240] sm:$0xff]  ;;  %v471_v12 = vld [vmem:[#allocation4 + $0x170] sm:$0xff] }
  0x75   :  { %v400_v23 = vpack.c.bf16 %v312_v14, %v308_v13  ;;  %v397_v29 = vpack.c.bf16 %v309_v20, %v305_v21  ;;  %v458_v13 = vld [vmem:[#allocation4 + $0x108] sm:$0xff]  ;;  %v4230_v21 = vpack.c.bf16 %v471_v12, %v467_v11  ;;  %v428_v11 = vld [vmem:[#allocation4 + $0x18] sm:$0xff] }
  0x76   :  { %885 = vmatpush2.bf16.msra.mxu0 %v417_v26  ;;  %v302_v26 = vld [vmem:[%s5473_s4 + $0x228] sm:$0xff]  ;;  %v432_v12 = vld [vmem:[#allocation4 + $0x38] sm:$0xff] }
  0x77   :  { %958 = vmatpush2.bf16.msra.mxu1 %v419_v27  ;;  %886 = vmatprep.subr.bf16.mxu0 %v414_v28  ;;  %v300_v27 = vld [vmem:[%s5473_s4 + $0x218] sm:$0xff]  ;;  %v394_v32 = vpack.c.bf16 %v302_v26, %v298_v25  ;;  %v462_v14 = vld [vmem:[#allocation4 + $0x128] sm:$0xff]  ;;  %5549 = vst [vmem:[#allocation9_spill] sm:$0xff] %v4230_v21  ;;  %v463_v25 = vld [vmem:[#allocation4 + $0x130] sm:$0xff] }
  0x78   :  { %959 = vmatprep.subr.bf16.mxu1 %v416_v33  ;;  %v304_v28 = vld [vmem:[%s5473_s4 + $0x238] sm:$0xff]  ;;  %v297_v33 = vld [vmem:[%s5473_s4 + $0x200] sm:$0xff]  ;;  %v4232_v20 = vpack.c.bf16 %v462_v14, %v458_v13  ;;  %v450_v26 = vld [vmem:[#allocation4 + $0xc8] sm:$0xff] }
  0x79   :  { %v396_v36 = vpack.c.bf16 %v304_v28, %v300_v27  ;;  %v393_v43 = vpack.c.bf16 %v301_v34, %v297_v33  ;;  %v454_v27 = vld [vmem:[#allocation4 + $0xe8] sm:$0xff]  ;;  %v452_v28 = vld [vmem:[#allocation4 + $0xd8] sm:$0xff]  ;;  %v449_v34 = vld [vmem:[#allocation4 + $0xc0] sm:$0xff] }
  0x7a   :  { %887 = vmatpush2.bf16.msra.mxu0 %v413_v39  ;;  %v486_v39 = vld [vmem:[#allocation4 + $0x1e8] sm:$0xff]  ;;  %5550 = vst [vmem:[#allocation10_spill] sm:$0xff] %v4232_v20  ;;  %v4246_v33 = vpack.c.bf16 %v454_v27, %v450_v26  ;;  %v580_v27 = vld [vmem:[%s5474_s5 + $0x1d8] sm:$0xff] }
  0x7b   :  { %960 = vmatpush2.bf16.msra.mxu1 %v415_v40  ;;  %888 = vmatprep.subr.bf16.mxu0 %v410_v41  ;;  %v484_v40 = vld [vmem:[#allocation4 + $0x1d8] sm:$0xff]  ;;  %v4195_v45 = vpack.c.bf16 %v486_v39, %v482_v38  ;;  %v442_v38 = vld [vmem:[#allocation4 + $0x88] sm:$0xff] }
  0x7c   :  { %961 = vmatprep.subr.bf16.mxu1 %v412_v46  ;;  %v488_v41 = vld [vmem:[#allocation4 + $0x1f8] sm:$0xff]  ;;  %v481_v46 = vld [vmem:[#allocation4 + $0x1c0] sm:$0xff]  ;;  %5554 = vst [vmem:[#allocation14_spill] sm:$0xff] %v4246_v33  ;;  %v446_v39 = vld [vmem:[#allocation4 + $0xa8] sm:$0xff] }
  0x7d   :  { %v4197_v51 = vpack.c.bf16 %v488_v41, %v484_v40  ;;  %v4199_v57 = vpack.c.bf16 %v485_v47, %v481_v46  ;;  %v444_v40 = vld [vmem:[#allocation4 + $0x98] sm:$0xff]  ;;  %v4260_v46 = vpack.c.bf16 %v446_v39, %v442_v38  ;;  %v441_v47 = vld [vmem:[#allocation4 + $0x80] sm:$0xff]  ;;  %v582_v26 = vld [vmem:[%s5474_s5 + $0x1e8] sm:$0xff]  ;;  %v5477_v38 = vmov 0  }
  0x7e   :  { %889 = vmatpush2.bf16.msra.mxu0 %v409_v54  ;;  %v478_v54 = vld [vmem:[#allocation4 + $0x1a8] sm:$0xff]  ;;  %v448_v41 = vld [vmem:[#allocation4 + $0xb8] sm:$0xff] }
  0x7f   :  { %962 = vmatpush2.bf16.msra.mxu1 %v411_v55  ;;  %890 = vmatprep.subr.bf16.mxu0 %v406_v56  ;;  %v476_v55 = vld [vmem:[#allocation4 + $0x198] sm:$0xff]  ;;  %v4204_v59 = vpack.c.bf16 %v478_v54, %v474_v53  ;;  %5558 = vst [vmem:[#allocation18_spill] sm:$0xff] %v4260_v46  ;;  %v447_v53 = vld [vmem:[#allocation4 + $0xb0] sm:$0xff]  ;;  %v434_v54 = vld [vmem:[#allocation4 + $0x48] sm:$0xff] }
  0x80   :  { %963 = vmatprep.subr.bf16.mxu1 %v408_v60  ;;  %v480_v56 = vld [vmem:[#allocation4 + $0x1b8] sm:$0xff]  ;;  %v473_v60 = vld [vmem:[#allocation4 + $0x180] sm:$0xff]  ;;  %v4272_v62 = vpack.c.bf16 %v447_v53, %v443_v52 }
  0x81   :  { %v4207_v63 = vpack.c.bf16 %v480_v56, %v476_v55  ;;  %v4212_v6 = vpack.c.bf16 %v477_v61, %v473_v60  ;;  %v438_v55 = vld [vmem:[#allocation4 + $0x68] sm:$0xff]  ;;  %v436_v56 = vld [vmem:[#allocation4 + $0x58] sm:$0xff]  ;;  %v4268_v61 = vpack.c.bf16 %v445_v48, %v441_v47 }
  0x82   :  { %891 = vmatpush2.bf16.msra.mxu0 %v405_v3  ;;  %v470_v3 = vld [vmem:[#allocation4 + $0x168] sm:$0xff]  ;;  %v440_v60 = vld [vmem:[#allocation4 + $0x78] sm:$0xff]  ;;  %5561 = vst [vmem:[#allocation21_spill] sm:$0xff] %v4272_v62  ;;  %v4274_v0 = vpack.c.bf16 %v438_v55, %v434_v54 }
  0x83   :  { %964 = vmatpush2.bf16.msra.mxu1 %v407_v4  ;;  %892 = vmatprep.subr.bf16.mxu0 %v402_v5  ;;  %v468_v4 = vld [vmem:[#allocation4 + $0x158] sm:$0xff]  ;;  %v4218_v8 = vpack.c.bf16 %v470_v3, %v466_v1  ;;  %5560 = vst [vmem:[#allocation20_spill] sm:$0xff] %v4268_v61  ;;  %v433_v1 = vld [vmem:[#allocation4 + $0x40] sm:$0xff]  ;;  %v574_v47 = vld [vmem:[%s5474_s5 + $0x1a8] sm:$0xff] }
  0x84   :  { %965 = vmatprep.subr.bf16.mxu1 %v404_v9  ;;  %v472_v5 = vld [vmem:[#allocation4 + $0x178] sm:$0xff]  ;;  %v465_v9 = vld [vmem:[#allocation4 + $0x140] sm:$0xff]  ;;  %5562 = vst [vmem:[#allocation22_spill] sm:$0xff] %v4274_v0 }
  0x85   :  { %v437_v3 = vld [vmem:[#allocation4 + $0x60] sm:$0xff]  ;;  %v572_v48 = vld [vmem:[%s5474_s5 + $0x198] sm:$0xff] }
  0x86   :  { %893 = vmatpush2.bf16.msra.mxu0 %v401_v15  ;;  %v460_v15 = vld [vmem:[#allocation4 + $0x118] sm:$0xff]  ;;  %v4282_v13 = vpack.c.bf16 %v437_v3, %v433_v1  ;;  %v571_v1 = vld [vmem:[%s5474_s5 + $0x190] sm:$0xff] }
  0x87   :  { %966 = vmatpush2.bf16.msra.mxu1 %v403_v18  ;;  %894 = vmatprep.subr.bf16.mxu0 %v398_v19  ;;  %v464_v18 = vld [vmem:[#allocation4 + $0x138] sm:$0xff]  ;;  %v4226_v19 = vpack.c.bf16 %v469_v10, %v465_v9  ;;  %v426_v9 = vld [vmem:[#allocation4 + $0x8] sm:$0xff] }
  0x88   :  { %967 = vmatprep.subr.bf16.mxu1 %v400_v23  ;;  %v461_v23 = vld [vmem:[#allocation4 + $0x120] sm:$0xff]  ;;  %v430_v10 = vld [vmem:[#allocation4 + $0x28] sm:$0xff]  ;;  %5564 = vst [vmem:[#allocation24_spill] sm:$0xff] %v4282_v13  ;;  %v576_v52 = vld [vmem:[%s5474_s5 + $0x1b8] sm:$0xff] }
  0x89   :  { %5548 = vst [vmem:[#allocation8_spill] sm:$0xff] %v4226_v19  ;;  %v4364_v3 = vpack.c.bf16 %v576_v52, %v572_v48  ;;  %v553_v48 = vld [vmem:[%s5474_s5 + $0x100] sm:$0xff] }
  0x8a   :  { %895 = vmatpush2.bf16.msra.mxu0 %v397_v29  ;;  %v456_v29 = vld [vmem:[#allocation4 + $0xf8] sm:$0xff]  ;;  %v557_v52 = vld [vmem:[%s5474_s5 + $0x120] sm:$0xff] }
  0x8b   :  { %968 = vmatpush2.bf16.msra.mxu1 %v399_v30  ;;  %896 = vmatprep.subr.bf16.mxu0 %v394_v32  ;;  %v4240_v30 = vpack.c.bf16 %v461_v23, %v457_v22  ;;  %v4244_v32 = vpack.c.bf16 %v463_v25, %v459_v24  ;;  %v429_v22 = vld [vmem:[#allocation4 + $0x20] sm:$0xff]  ;;  %v427_v23 = vld [vmem:[#allocation4 + $0x10] sm:$0xff]  ;;  %v578_v25 = vld [vmem:[%s5474_s5 + $0x1c8] sm:$0xff] }
  0x8c   :  { %969 = vmatprep.subr.bf16.mxu1 %v396_v36  ;;  %v451_v36 = vld [vmem:[#allocation4 + $0xd0] sm:$0xff] }
  0x8d   :  { %5552 = vst [vmem:[#allocation12_spill] sm:$0xff] %v4240_v30  ;;  %5553 = vst [vmem:[#allocation13_spill] sm:$0xff] %v4244_v32  ;;  %v431_v24 = vld [vmem:[#allocation4 + $0x30] sm:$0xff] }
  0x8e   :  { %897 = vmatpush2.bf16.msra.mxu0 %v393_v43  ;;  %v4254_v43 = vpack.c.bf16 %v453_v35, %v449_v34  ;;  %v4312_v34 = vpack.c.bf16 %v431_v24, %v427_v23  ;;  %v4314_v35 = vpack.c.bf16 %v582_v26, %v578_v25  ;;  %v561_v23 = vld [vmem:[%s5474_s5 + $0x140] sm:$0xff]  ;;  %v563_v25 = vld [vmem:[%s5474_s5 + $0x150] sm:$0xff] }
  0x8f   :  { %970 = vmatpush2.bf16.msra.mxu1 %v395_v44  ;;  %1048 = vmatprep.subr.bf16.mxu0 %v4195_v45  ;;  %v4258_v44 = vpack.c.bf16 %v455_v37, %v451_v36  ;;  %v577_v36 = vld [vmem:[%s5474_s5 + $0x1c0] sm:$0xff]  ;;  %v579_v37 = vld [vmem:[%s5474_s5 + $0x1d0] sm:$0xff] }
  0x90   :  { %1089 = vmatprep.subr.bf16.mxu1 %v4197_v51  ;;  %5556 = vst [vmem:[#allocation16_spill] sm:$0xff] %v4254_v43  ;;  %5569 = vst [vmem:[#allocation29_spill] sm:$0xff] %v4312_v34  ;;  %v565_v24 = vld [vmem:[%s5474_s5 + $0x160] sm:$0xff] }
  0x91   :  { %899 = vmatmul.mubr.bf16.vlgmr.msra.gmra.mxu0 %v3775_v17  ;;  %5557 = vst [vmem:[#allocation17_spill] sm:$0xff] %v4258_v44  ;;  %5570 = vst [vmem:[#allocation30_spill] sm:$0xff] %v4314_v35 }
  0x92   :  { %972 = vmatmul.mubr.bf16.vlgmr.msra.gmra.mxu1 %v3775_v17  ;;  %1049 = vmatpush1.bf16.msra.mxu0 %v4199_v57  ;;  %v4222_v17 = vpack.c.bf16 %v472_v5, %v468_v4  ;;  %v435_v4 = vld [vmem:[#allocation4 + $0x50] sm:$0xff] }
  0x93   :  { %1090 = vmatpush1.bf16.msra.mxu1 %v4202_v58  ;;  %1050 = vmatprep.subr.bf16.mxu0 %v4204_v59  ;;  %v439_v5 = vld [vmem:[#allocation4 + $0x70] sm:$0xff] }
  0x94   :  { %1091 = vmatprep.subr.bf16.mxu1 %v4207_v63  ;;  %908 = vmatprep.mubr.bf16.mxu0 %v3827_v42  ;;  %5547 = vst [vmem:[#allocation7_spill] sm:$0xff] %v4222_v17  ;;  %v4286_v14 = vpack.c.bf16 %v439_v5, %v435_v4  ;;  %v575_v4 = vld [vmem:[%s5474_s5 + $0x1b0] sm:$0xff]  ;;  %v562_v5 = vld [vmem:[%s5474_s5 + $0x148] sm:$0xff] }
  0x95   :  { %981 = vmatprep.mubr.bf16.mxu1 %v3827_v42  ;;  %v4235_v42 = vpack.c.bf16 %v464_v18, %v460_v15  ;;  %v4288_v15 = vpack.c.bf16 %v430_v10, %v426_v9  ;;  %v425_v18 = vld [vmem:[#allocation4] sm:$0xff]  ;;  %v566_v9 = vld [vmem:[%s5474_s5 + $0x168] sm:$0xff]  ;;  %v564_v10 = vld [vmem:[%s5474_s5 + $0x158] sm:$0xff] }
  0x96   :  { %1051 = vmatpush1.bf16.msra.mxu0 %v4212_v6  ;;  %5565 = vst [vmem:[#allocation25_spill] sm:$0xff] %v4286_v14 }
  0x97   :  { %1092 = vmatpush1.bf16.msra.mxu1 %v4216_v7  ;;  %1052 = vmatprep.subr.bf16.mxu0 %v4218_v8  ;;  %5551 = vst [vmem:[#allocation11_spill] sm:$0xff] %v4235_v42  ;;  %5566 = vst [vmem:[#allocation26_spill] sm:$0xff] %v4288_v15 }
  0x98   :  { %1093 = vmatprep.subr.bf16.mxu1 %v4222_v17 }
  0x99   :  { %909 = vmatmul.mubr.bf16.gmra.mxu0 %v3848_v50 }
  0x9a   :  { %982 = vmatmul.mubr.bf16.gmra.mxu1 %v3848_v50  ;;  %1053 = vmatpush1.bf16.msra.mxu0 %v4226_v19  ;;  %v4250_v50 = vpack.c.bf16 %v456_v29, %v452_v28  ;;  %v584_v28 = vld [vmem:[%s5474_s5 + $0x1f8] sm:$0xff]  ;;  %v4308_v29 = vpack.c.bf16 %v429_v22, %v425_v18  ;;  %v4388_v18 = vpack.c.bf16 %v575_v4, %v571_v1  ;;  %v559_v1 = vld [vmem:[%s5474_s5 + $0x130] sm:$0xff]  ;;  %v546_v4 = vld [vmem:[%s5474_s5 + $0xc8] sm:$0xff] }
  0x9b   :  { %1094 = vmatpush1.bf16.msra.mxu1 %v4230_v21  ;;  %1054 = vmatprep.subr.bf16.mxu0 %v4232_v20  ;;  %v4327_v39 = vpack.c.bf16 %v584_v28, %v580_v27  ;;  %v4390_v22 = vpack.c.bf16 %v566_v9, %v562_v5  ;;  %v567_v27 = vld [vmem:[%s5474_s5 + $0x170] sm:$0xff]  ;;  %v554_v28 = vld [vmem:[%s5474_s5 + $0x108] sm:$0xff]  ;;  %v548_v9 = vld [vmem:[%s5474_s5 + $0xd8] sm:$0xff] }
  0x9c   :  { %1095 = vmatprep.subr.bf16.mxu1 %v4235_v42  ;;  %918 = vmatprep.mubr.bf16.mxu0 %v3883_v2  ;;  %5555 = vst [vmem:[#allocation15_spill] sm:$0xff] %v4250_v50  ;;  %5568 = vst [vmem:[#allocation28_spill] sm:$0xff] %v4308_v29  ;;  %v550_v5 = vld [vmem:[%s5474_s5 + $0xe8] sm:$0xff] }
  0x9d   :  { %991 = vmatprep.mubr.bf16.mxu1 %v3883_v2  ;;  %v4263_v2 = vpack.c.bf16 %v448_v41, %v444_v40  ;;  %5571 = vst [vmem:[#allocation31_spill] sm:$0xff] %v4327_v39  ;;  %v583_v40 = vld [vmem:[%s5474_s5 + $0x1f0] sm:$0xff]  ;;  %v570_v41 = vld [vmem:[%s5474_s5 + $0x188] sm:$0xff] }
  0x9e   :  { %1055 = vmatpush1.bf16.msra.mxu0 %v4240_v30  ;;  %v4350_v54 = vpack.c.bf16 %v583_v40, %v579_v37  ;;  %v4352_v55 = vpack.c.bf16 %v574_v47, %v570_v41  ;;  %v560_v37 = vld [vmem:[%s5474_s5 + $0x138] sm:$0xff]  ;;  %v4422_v40 = vpack.c.bf16 %v565_v24, %v561_v23  ;;  %v4426_v41 = vpack.c.bf16 %v567_v27, %v563_v25  ;;  %v545_v25 = vld [vmem:[%s5474_s5 + $0xc0] sm:$0xff] }
  0x9f   :  { %1096 = vmatpush1.bf16.msra.mxu1 %v4244_v32  ;;  %1056 = vmatprep.subr.bf16.mxu0 %v4246_v33  ;;  %5559 = vst [vmem:[#allocation19_spill] sm:$0xff] %v4263_v2  ;;  %v4464_v24 = vpack.c.bf16 %v550_v5, %v546_v4  ;;  %v549_v27 = vld [vmem:[%s5474_s5 + $0xe0] sm:$0xff] }
  0xa0   :  { %1097 = vmatprep.subr.bf16.mxu1 %v4250_v50 }
  0xa1   :  { %919 = vmatmul.mubr.bf16.gmra.mxu0 %v3916_v16  ;;  %5573 = vst [vmem:[#allocation33_spill] sm:$0xff] %v4464_v24 }
  0xa2   :  { %992 = vmatmul.mubr.bf16.gmra.mxu1 %v3916_v16  ;;  %1057 = vmatpush1.bf16.msra.mxu0 %v4254_v43  ;;  %v4278_v16 = vpack.c.bf16 %v440_v60, %v436_v56  ;;  %v569_v56 = vld [vmem:[%s5474_s5 + $0x180] sm:$0xff] }
  0xa3   :  { %1098 = vmatpush1.bf16.msra.mxu1 %v4258_v44  ;;  %1058 = vmatprep.subr.bf16.mxu0 %v4260_v46  ;;  %v573_v60 = vld [vmem:[%s5474_s5 + $0x1a0] sm:$0xff] }
  0xa4   :  { %1099 = vmatprep.subr.bf16.mxu1 %v4263_v2  ;;  %928 = vmatprep.mubr.bf16.mxu0 %v3943_v31  ;;  %5563 = vst [vmem:[#allocation23_spill] sm:$0xff] %v4278_v16 }
  0xa5   :  { %1001 = vmatprep.mubr.bf16.mxu1 %v3943_v31  ;;  %v4291_v31 = vpack.c.bf16 %v432_v12, %v428_v11  ;;  %v568_v11 = vld [vmem:[%s5474_s5 + $0x178] sm:$0xff]  ;;  %v4384_v12 = vpack.c.bf16 %v573_v60, %v569_v56  ;;  %v555_v56 = vld [vmem:[%s5474_s5 + $0x110] sm:$0xff] }
  0xa6   :  { %1059 = vmatpush1.bf16.msra.mxu0 %v4268_v61  ;;  %v4402_v26 = vpack.c.bf16 %v568_v11, %v564_v10  ;;  %v552_v10 = vld [vmem:[%s5474_s5 + $0xf8] sm:$0xff]  ;;  %v4458_v11 = vpack.c.bf16 %v557_v52, %v553_v48  ;;  %v4462_v23 = vpack.c.bf16 %v559_v1, %v555_v56  ;;  %v542_v48 = vld [vmem:[%s5474_s5 + $0xa8] sm:$0xff]  ;;  %v4494_v1 = vpack.c.bf16 %v549_v27, %v545_v25  ;;  %v539_v25 = vld [vmem:[%s5474_s5 + $0x90] sm:$0xff] }
  0xa7   :  { %1100 = vmatpush1.bf16.msra.mxu1 %v4272_v62  ;;  %1060 = vmatprep.subr.bf16.mxu0 %v4274_v0  ;;  %5567 = vst [vmem:[#allocation27_spill] sm:$0xff] %v4291_v31  ;;  %v540_v52 = vld [vmem:[%s5474_s5 + $0x98] sm:$0xff] }
  0xa8   :  { %1101 = vmatprep.subr.bf16.mxu1 %v4278_v16  ;;  %5572 = vst [vmem:[#allocation32_spill] sm:$0xff] %v4462_v23  ;;  %v544_v56 = vld [vmem:[%s5474_s5 + $0xb8] sm:$0xff]  ;;  %5575 = vst [vmem:[#allocation35_spill] sm:$0xff] %v4494_v1 }
  0xa9   :  { %929 = vmatmul.mubr.bf16.gmra.mxu0 %v3984_v49  ;;  %v4512_v27 = vpack.c.bf16 %v544_v56, %v540_v52  ;;  %v536_v52 = vld [vmem:[%s5474_s5 + $0x78] sm:$0xff] }
  0xaa   :  { %1002 = vmatmul.mubr.bf16.gmra.mxu1 %v3984_v49  ;;  %1061 = vmatpush1.bf16.msra.mxu0 %v4282_v13  ;;  %v581_v49 = vld [vmem:[%s5474_s5 + $0x1e0] sm:$0xff] }
  0xab   :  { %1102 = vmatpush1.bf16.msra.mxu1 %v4286_v14  ;;  %1062 = vmatprep.subr.bf16.mxu0 %v4288_v15  ;;  %v4346_v53 = vpack.c.bf16 %v581_v49, %v577_v36  ;;  %v558_v36 = vld [vmem:[%s5474_s5 + $0x128] sm:$0xff]  ;;  %v556_v49 = vld [vmem:[%s5474_s5 + $0x118] sm:$0xff]  ;;  %5578 = vst [vmem:[#allocation38_spill] sm:$0xff] %v4512_v27 }
  0xac   :  { %1103 = vmatprep.subr.bf16.mxu1 %v4291_v31  ;;  %1080 = vmatprep.mubr.bf16.mxu0 %v5477_v38  ;;  %v4428_v47 = vpack.c.bf16 %v558_v36, %v554_v28  ;;  %v4440_v60 = vpack.c.bf16 %v560_v37, %v556_v49  ;;  %v547_v28 = vld [vmem:[%s5474_s5 + $0xd0] sm:$0xff]  ;;  %v4476_v36 = vpack.c.bf16 %v552_v10, %v548_v9  ;;  %v538_v37 = vld [vmem:[%s5474_s5 + $0x88] sm:$0xff]  ;;  %v537_v9 = vld [vmem:[%s5474_s5 + $0x80] sm:$0xff] }
  0xad   :  { %1121 = vmatprep.mubr.bf16.mxu1 %v5477_v38  ;;  %v551_v49 = vld [vmem:[%s5474_s5 + $0xf0] sm:$0xff]  ;;  %v4500_v5 = vpack.c.bf16 %v542_v48, %v538_v37  ;;  %v541_v10 = vld [vmem:[%s5474_s5 + $0xa0] sm:$0xff]  ;;  %v534_v37 = vld [vmem:[%s5474_s5 + $0x68] sm:$0xff] }
  0xae   :  { %1063 = vmatpush1.bf16.msra.mxu0 %v4308_v29  ;;  %5574 = vst [vmem:[#allocation34_spill] sm:$0xff] %v4476_v36  ;;  %v4498_v4 = vpack.c.bf16 %v551_v49, %v547_v28  ;;  %v543_v28 = vld [vmem:[%s5474_s5 + $0xb0] sm:$0xff]  ;;  %v530_v49 = vld [vmem:[%s5474_s5 + $0x48] sm:$0xff]  ;;  %v532_v48 = vld [vmem:[%s5474_s5 + $0x58] sm:$0xff]  ;;  %v4530_v56 = vpack.c.bf16 %v541_v10, %v537_v9 }
  0xaf   :  { %1104 = vmatpush1.bf16.msra.mxu1 %v4312_v34  ;;  %1166 = vmatprep.subr.bf16.mxu0 %v4314_v35  ;;  %5577 = vst [vmem:[#allocation37_spill] sm:$0xff] %v4500_v5  ;;  %v531_v9 = vld [vmem:[%s5474_s5 + $0x50] sm:$0xff]  ;;  %v4548_v10 = vpack.c.bf16 %v536_v52, %v532_v48  ;;  %v528_v48 = vld [vmem:[%s5474_s5 + $0x38] sm:$0xff] }
  0xb0   :  { %1207 = vmatprep.subr.bf16.mxu1 %v4327_v39  ;;  %5576 = vst [vmem:[#allocation36_spill] sm:$0xff] %v4498_v4 }
  0xb1   :  { %1081 = vmatmul.mubr.bf16.vlgmr.msra.gmra.mxu0 %v5477_v38 }
  0xb2   :  { %1122 = vmatmul.mubr.bf16.vlgmr.msra.gmra.mxu1 %v5477_v38  ;;  %1167 = vmatpush1.bf16.msra.mxu0 %v4346_v53 }
  0xb3   :  { %1208 = vmatpush1.bf16.msra.mxu1 %v4350_v54  ;;  %1168 = vmatprep.subr.bf16.mxu0 %v4352_v55 }
  0xb4   :  { %1209 = vmatprep.subr.bf16.mxu1 %v4364_v3  ;;  %1198 = vmatprep.mubr.bf16.mxu0 %v5477_v38 }
  0xb5   :  { %1239 = vmatprep.mubr.bf16.mxu1 %v5477_v38  ;;  %v4534_v38 = vpack.c.bf16 %v543_v28, %v539_v25  ;;  %v535_v25 = vld [vmem:[%s5474_s5 + $0x70] sm:$0xff]  ;;  %v522_v28 = vld [vmem:[%s5474_s5 + $0x8] sm:$0xff] }
  0xb6   :  { %1169 = vmatpush1.bf16.msra.mxu0 %v4384_v12 }
  0xb7   :  { %1210 = vmatpush1.bf16.msra.mxu1 %v4388_v18  ;;  %1170 = vmatprep.subr.bf16.mxu0 %v4390_v22 }
  0xb8   :  { %1211 = vmatprep.subr.bf16.mxu1 %v4402_v26 }
  0xba   :  { %1171 = vmatpush1.bf16.msra.mxu0 %v4422_v40 }
  0xbb   :  { %1212 = vmatpush1.bf16.msra.mxu1 %v4426_v41  ;;  %1172 = vmatprep.subr.bf16.mxu0 %v4428_v47 }
  0xbc   :  { %1213 = vmatprep.subr.bf16.mxu1 %v4440_v60 }
  0xbe   :  { %1173 = vmatpush1.bf16.msra.mxu0 %v4458_v11 }
  0xbf   :  { %1214 = vmatpush1.bf16.msra.mxu1 %v4462_v23  ;;  %1174 = vmatprep.subr.bf16.mxu0 %v4464_v24  ;;  %v529_v24 = vld [vmem:[%s5474_s5 + $0x40] sm:$0xff] }
  0xc0   :  { %1215 = vmatprep.subr.bf16.mxu1 %v4476_v36  ;;  %v4536_v36 = vpack.c.bf16 %v534_v37, %v530_v49  ;;  %v533_v23 = vld [vmem:[%s5474_s5 + $0x60] sm:$0xff]  ;;  %v526_v49 = vld [vmem:[%s5474_s5 + $0x28] sm:$0xff]  ;;  %v524_v37 = vld [vmem:[%s5474_s5 + $0x18] sm:$0xff] }
  0xc1   :  { %v4566_v52 = vpack.c.bf16 %v533_v23, %v529_v24  ;;  %v4581_v23 = vpack.c.bf16 %v528_v48, %v524_v37  ;;  %v523_v24 = vld [vmem:[%s5474_s5 + $0x10] sm:$0xff] }
  0xc2   :  { %1175 = vmatpush1.bf16.msra.mxu0 %v4494_v1  ;;  %v525_v1 = vld [vmem:[%s5474_s5 + $0x20] sm:$0xff] }
  0xc3   :  { %1216 = vmatpush1.bf16.msra.mxu1 %v4498_v4  ;;  %1176 = vmatprep.subr.bf16.mxu0 %v4500_v5  ;;  %v4572_v5 = vpack.c.bf16 %v526_v49, %v522_v28  ;;  %v521_v4 = vld [vmem:[%s5474_s5] sm:$0xff]  ;;  %v5579_v49 = vmov 0  }
  0xc4   :  { %1217 = vmatprep.subr.bf16.mxu1 %v4512_v27  ;;  %v4570_v27 = vpack.c.bf16 %v535_v25, %v531_v9  ;;  %v527_v9 = vld [vmem:[%s5474_s5 + $0x30] sm:$0xff]  ;;  %v4590_v25 = vpack.c.bf16 %v525_v1, %v521_v4  ;;  %v647_v1 = vlaneseq }
  0xc5   :  { %v4594_v28 = vpack.c.bf16 %v527_v9, %v523_v24  ;;  %v617_v24 = vld [vmem:[%s5472_s3] sm:$0xf] }
  0xc6   :  { %1177 = vmatpush1.bf16.msra.mxu0 %v4530_v56  ;;  %v4637_v4 = vshrl.u32 %v647_v1, 7 }
  0xc7   :  { %1218 = vmatpush1.bf16.msra.mxu1 %v4534_v38  ;;  %1178 = vmatprep.subr.bf16.mxu0 %v4536_v36 }
  0xc8   :  { %1219 = vmatprep.subr.bf16.mxu1 %v4548_v10  ;;  %v5513_v37 = vsub.s32 2, %v4637_v4  ;;  %v5518_v48 = vsub.s32 0, %v4637_v4 }
  0xca   :  { %1179 = vmatpush1.bf16.msra.mxu0 %v4566_v52  ;;  %v4654_v1 = vrot.slane %v617_v24, %v5513_v37 }
  0xcb   :  { %1220 = vmatpush1.bf16.msra.mxu1 %v4570_v27  ;;  %1180 = vmatprep.subr.bf16.mxu0 %v4572_v5 }
  0xcc   :  { %1221 = vmatprep.subr.bf16.mxu1 %v4581_v23 }
  0xce   :  { %1181 = vmatpush1.bf16.msra.mxu0 %v4590_v25 }
  0xcf   :  { %1222 = vmatpush1.bf16.msra.mxu1 %v4594_v28  ;;  %1287 = vmatprep.subr.bf16.mxu0 %v4195_v45 }
  0xd0   :  { %1328 = vmatprep.subr.bf16.mxu1 %v4197_v51 }
  0xd1   :  { %1199 = vmatmul.mubr.bf16.vlgmr.msra.gmra.mxu0 %v5579_v49 }
  0xd2   :  { %1240 = vmatmul.mubr.bf16.vlgmr.msra.gmra.mxu1 %v5579_v49  ;;  %1288 = vmatpush1.bf16.msra.mxu0 %v4199_v57 }
  0xd3   :  { %1329 = vmatpush1.bf16.msra.mxu1 %v4202_v58  ;;  %1289 = vmatprep.subr.bf16.mxu0 %v4204_v59 }
  0xd4   :  { %1330 = vmatprep.subr.bf16.mxu1 %v4207_v63  ;;  %1319 = vmatprep.mubr.bf16.mxu0 %v5579_v49 }
  0xd5   :  { %1360 = vmatprep.mubr.bf16.mxu1 %v5579_v49 }
  0xd6   :  { %1290 = vmatpush1.bf16.msra.mxu0 %v4212_v6 }
  0xd7   :  { %1331 = vmatpush1.bf16.msra.mxu1 %v4216_v7  ;;  %1291 = vmatprep.subr.bf16.mxu0 %v4218_v8 }
  0xd8   :  { %1332 = vmatprep.subr.bf16.mxu1 %v4222_v17 }
  0xda   :  { %1292 = vmatpush1.bf16.msra.mxu0 %v4226_v19 }
  0xdb   :  { %1333 = vmatpush1.bf16.msra.mxu1 %v4230_v21  ;;  %1293 = vmatprep.subr.bf16.mxu0 %v4232_v20 }
  0xdc   :  { %1334 = vmatprep.subr.bf16.mxu1 %v4235_v42 }
  0xde   :  { %1294 = vmatpush1.bf16.msra.mxu0 %v4240_v30 }
  0xdf   :  { %1335 = vmatpush1.bf16.msra.mxu1 %v4244_v32  ;;  %1295 = vmatprep.subr.bf16.mxu0 %v4246_v33 }
  0xe0   :  { %1336 = vmatprep.subr.bf16.mxu1 %v4250_v50 }
  0xe2   :  { %1296 = vmatpush1.bf16.msra.mxu0 %v4254_v43 }
  0xe3   :  { %1337 = vmatpush1.bf16.msra.mxu1 %v4258_v44  ;;  %1297 = vmatprep.subr.bf16.mxu0 %v4260_v46 }
  0xe4   :  { %1338 = vmatprep.subr.bf16.mxu1 %v4263_v2 }
  0xe6   :  { %1298 = vmatpush1.bf16.msra.mxu0 %v4268_v61 }
  0xe7   :  { %1339 = vmatpush1.bf16.msra.mxu1 %v4272_v62  ;;  %1299 = vmatprep.subr.bf16.mxu0 %v4274_v0 }
  0xe8   :  { %1340 = vmatprep.subr.bf16.mxu1 %v4278_v16 }
  0xea   :  { %1300 = vmatpush1.bf16.msra.mxu0 %v4282_v13 }
  0xeb   :  { %1341 = vmatpush1.bf16.msra.mxu1 %v4286_v14  ;;  %1301 = vmatprep.subr.bf16.mxu0 %v4288_v15 }
  0xec   :  { %1342 = vmatprep.subr.bf16.mxu1 %v4291_v31  ;;  %v4658_v31 = vrot.slane %v617_v24, %v5518_v48 }
  0xee   :  { %1302 = vmatpush1.bf16.msra.mxu0 %v4308_v29  ;;  %v5523_v29 = vsub.s32 3, %v4637_v4 }
  0xef   :  { %1343 = vmatpush1.bf16.msra.mxu1 %v4312_v34  ;;  %1408 = vmatprep.subr.bf16.mxu0 %v4314_v35  ;;  %v5526_v34 = vsub.s32 1, %v4637_v4 }
  0xf0   :  { %1449 = vmatprep.subr.bf16.mxu1 %v4327_v39  ;;  %v4664_v13 = vrot.slane %v617_v24, %v5523_v29 }
  0xf1   :  { %v4668_v16 = vrot.slane %v617_v24, %v5526_v34 }
 0x111   :  { %v4644_v9 = vpop.f32.mrf.mxu0 }
 0x112   :  { %v4648_v35 = vpop.f32.mrf.mxu1 }
 0x113   :  { %v4650_v39 = vpop.f32.mrf.mxu0 }
 0x114   :  { %v4660_v15 = vpop.f32.mrf.mxu1 }
 0x115   :  { %v705_v14 = vpop.f32.mrf.mxu0 }
 0x116   :  { %v4671_v0 = vadd.f32 %v705_v14, %v4658_v31  ;;  %v778_v37 = vpop.f32.mrf.mxu1 }
 0x117   :  { %v707_v62 = vpop.f32.mrf.mxu0  ;;  %v4674_v61 = vadd.f32 %v778_v37, %v4654_v1 }
 0x118   :  { %5580 = vst [vmem:[#allocation39_spill] sm:$0xff] %v4671_v0  ;;  %v4677_v48 = vadd.f32 %v707_v62, %v4668_v16  ;;  %v780_v2 = vpop.f32.mrf.mxu1 }
 0x119   :  { %5581 = vst [vmem:[#allocation40_spill] sm:$0xff] %v4674_v61  ;;  %v4680_v46 = vadd.f32 %v780_v2, %v4664_v13  ;;  %v711_v29 = vpop.f32.mrf.mxu0 }
 0x11a   :  { %5582 = vst [vmem:[#allocation41_spill] sm:$0xff] %v4677_v48  ;;  %v4683_v44 = vadd.f32 %v711_v29, %v4658_v31  ;;  %v784_v24 = vpop.f32.mrf.mxu1 }
 0x11b   :  { %5583 = vst [vmem:[#allocation42_spill] sm:$0xff] %v4680_v46  ;;  %v713_v34 = vpop.f32.mrf.mxu0  ;;  %v4686_v14 = vadd.f32 %v784_v24, %v4654_v1 }
 0x11c   :  { %5584 = vst [vmem:[#allocation43_spill] sm:$0xff] %v4683_v44  ;;  %v4689_v0 = vadd.f32 %v713_v34, %v4668_v16  ;;  %v786_v37 = vpop.f32.mrf.mxu1 }
 0x11d   :  { %5585 = vst [vmem:[#allocation44_spill] sm:$0xff] %v4686_v14  ;;  %v715_v61 = vpop.f32.mrf.mxu0  ;;  %v4692_v62 = vadd.f32 %v786_v37, %v4664_v13 }
 0x11e   :  { %5586 = vst [vmem:[#allocation45_spill] sm:$0xff] %v4689_v0  ;;  %v4695_v2 = vadd.f32 %v715_v61, %v4658_v31  ;;  %v788_v46 = vpop.f32.mrf.mxu1 }
 0x11f   :  { %5587 = vst [vmem:[#allocation46_spill] sm:$0xff] %v4692_v62  ;;  %v717_v48 = vpop.f32.mrf.mxu0  ;;  %v4698_v29 = vadd.f32 %v788_v46, %v4654_v1 }
 0x120   :  { %5588 = vst [vmem:[#allocation47_spill] sm:$0xff] %v4695_v2  ;;  %v4701_v44 = vadd.f32 %v717_v48, %v4668_v16  ;;  %v790_v24 = vpop.f32.mrf.mxu1 }
 0x121   :  { %5589 = vst [vmem:[#allocation48_spill] sm:$0xff] %v4698_v29  ;;  %v721_v14 = vpop.f32.mrf.mxu0  ;;  %v4704_v34 = vadd.f32 %v790_v24, %v4664_v13 }
 0x122   :  { %5590 = vst [vmem:[#allocation49_spill] sm:$0xff] %v4701_v44  ;;  %v4707_v0 = vadd.f32 %v721_v14, %v4658_v31  ;;  %v794_v37 = vpop.f32.mrf.mxu1 }
 0x123   :  { %5591 = vst [vmem:[#allocation50_spill] sm:$0xff] %v4704_v34  ;;  %v723_v62 = vpop.f32.mrf.mxu0  ;;  %v4710_v61 = vadd.f32 %v794_v37, %v4654_v1 }
 0x124   :  { %5592 = vst [vmem:[#allocation51_spill] sm:$0xff] %v4707_v0  ;;  %v4713_v2 = vadd.f32 %v723_v62, %v4668_v16  ;;  %v796_v46 = vpop.f32.mrf.mxu1 }
 0x125   :  { %5593 = vst [vmem:[#allocation52_spill] sm:$0xff] %v4710_v61  ;;  %v725_v29 = vpop.f32.mrf.mxu0  ;;  %v4716_v48 = vadd.f32 %v796_v46, %v4664_v13 }
 0x126   :  { %5594 = vst [vmem:[#allocation53_spill] sm:$0xff] %v4713_v2  ;;  %v4719_v44 = vadd.f32 %v725_v29, %v4658_v31  ;;  %v798_v24 = vpop.f32.mrf.mxu1 }
 0x127   :  { %5595 = vst [vmem:[#allocation54_spill] sm:$0xff] %v4716_v48  ;;  %v727_v34 = vpop.f32.mrf.mxu0  ;;  %v4722_v14 = vadd.f32 %v798_v24, %v4654_v1 }
 0x128   :  { %5596 = vst [vmem:[#allocation55_spill] sm:$0xff] %v4719_v44  ;;  %v4725_v0 = vadd.f32 %v727_v34, %v4668_v16  ;;  %v800_v37 = vpop.f32.mrf.mxu1 }
 0x129   :  { %5597 = vst [vmem:[#allocation56_spill] sm:$0xff] %v4722_v14  ;;  %v731_v61 = vpop.f32.mrf.mxu0  ;;  %v4728_v62 = vadd.f32 %v800_v37, %v4664_v13 }
 0x12a   :  { %5598 = vst [vmem:[#allocation57_spill] sm:$0xff] %v4725_v0  ;;  %v4731_v2 = vadd.f32 %v731_v61, %v4658_v31  ;;  %v804_v46 = vpop.f32.mrf.mxu1 }
 0x12b   :  { %5599 = vst [vmem:[#allocation58_spill] sm:$0xff] %v4728_v62  ;;  %v733_v48 = vpop.f32.mrf.mxu0  ;;  %v4734_v29 = vadd.f32 %v804_v46, %v4654_v1 }
 0x12c   :  { %5600 = vst [vmem:[#allocation59_spill] sm:$0xff] %v4731_v2  ;;  %v4737_v44 = vadd.f32 %v733_v48, %v4668_v16  ;;  %v806_v24 = vpop.f32.mrf.mxu1 }
 0x12d   :  { %5601 = vst [vmem:[#allocation60_spill] sm:$0xff] %v4734_v29  ;;  %v735_v14 = vpop.f32.mrf.mxu0  ;;  %v4740_v34 = vadd.f32 %v806_v24, %v4664_v13  ;;  %v618_v24 = vld [vmem:[%s5475_s6] sm:$0xf] }
 0x12e   :  { %5602 = vst [vmem:[#allocation61_spill] sm:$0xff] %v4737_v44  ;;  %v4743_v0 = vadd.f32 %v735_v14, %v4658_v31  ;;  %v808_v37 = vpop.f32.mrf.mxu1 }
 0x12f   :  { %5603 = vst [vmem:[#allocation62_spill] sm:$0xff] %v4740_v34  ;;  %v737_v62 = vpop.f32.mrf.mxu0  ;;  %v4746_v61 = vadd.f32 %v808_v37, %v4654_v1  ;;  %v5608_v34 = vsub.s32 0, %v4637_v4  ;;  %v5610_v37 = vsub.s32 1, %v4637_v4 }
 0x130   :  { %5604 = vst [vmem:[#allocation63_spill] sm:$0xff] %v4743_v0  ;;  %v4749_v2 = vadd.f32 %v737_v62, %v4668_v16  ;;  %v810_v46 = vpop.f32.mrf.mxu1  ;;  %v5609_v0 = vsub.s32 2, %v4637_v4 }
 0x131   :  { %5605 = vst [vmem:[#allocation64_spill] sm:$0xff] %v4746_v61  ;;  %v4752_v48 = vadd.f32 %v810_v46, %v4664_v13  ;;  %v4759_v14 = vrot.slane %v618_v24, %v5608_v34  ;;  %v4767_v62 = vrot.slane %v618_v24, %v5610_v37  ;;  %v5611_v46 = vsub.s32 3, %v4637_v4 }
 0x132   :  { %5606 = vst [vmem:[#allocation65_spill] sm:$0xff] %v4749_v2  ;;  %v4763_v29 = vrot.slane %v618_v24, %v5609_v0 }
 0x133   :  { %5607 = vst [vmem:[#allocation66_spill] sm:$0xff] %v4752_v48  ;;  %v4771_v48 = vrot.slane %v618_v24, %v5611_v46 }
 0x151   :  { %v900_v61 = vpop.f32.mrf.mxu0 }
 0x152   :  { %v4774_v2 = vadd.f32 %v900_v61, %v4759_v14  ;;  %v973_v44 = vpop.f32.mrf.mxu1 }
 0x153   :  { %v4777_v34 = vadd.f32 %v973_v44, %v4763_v29  ;;  %v902_v43 = vpop.f32.mrf.mxu0 }
 0x154   :  { %5612 = vst [vmem:[#allocation67_spill] sm:$0xff] %v4774_v2  ;;  %v4780_v0 = vadd.f32 %v902_v43, %v4767_v62  ;;  %v975_v50 = vpop.f32.mrf.mxu1 }
 0x155   :  { %5613 = vst [vmem:[#allocation68_spill] sm:$0xff] %v4777_v34  ;;  %v4783_v37 = vadd.f32 %v975_v50, %v4771_v48  ;;  %v904_v33 = vpop.f32.mrf.mxu0 }
 0x156   :  { %5614 = vst [vmem:[#allocation69_spill] sm:$0xff] %v4780_v0  ;;  %v4786_v4 = vadd.f32 %v904_v33, %v4759_v14  ;;  %v977_v24 = vpop.f32.mrf.mxu1 }
 0x157   :  { %5615 = vst [vmem:[#allocation70_spill] sm:$0xff] %v4783_v37  ;;  %v4789_v61 = vadd.f32 %v977_v24, %v4763_v29  ;;  %v906_v46 = vpop.f32.mrf.mxu0 }
 0x158   :  { %5616 = vst [vmem:[#allocation71_spill] sm:$0xff] %v4786_v4  ;;  %v4792_v44 = vadd.f32 %v906_v46, %v4767_v62  ;;  %v979_v34 = vpop.f32.mrf.mxu1 }
 0x159   :  { %5617 = vst [vmem:[#allocation72_spill] sm:$0xff] %v4789_v61  ;;  %v4795_v43 = vadd.f32 %v979_v34, %v4771_v48  ;;  %v910_v0 = vpop.f32.mrf.mxu0 }
 0x15a   :  { %5618 = vst [vmem:[#allocation73_spill] sm:$0xff] %v4792_v44  ;;  %v4798_v50 = vadd.f32 %v910_v0, %v4759_v14  ;;  %v983_v37 = vpop.f32.mrf.mxu1 }
 0x15b   :  { %5619 = vst [vmem:[#allocation74_spill] sm:$0xff] %v4795_v43  ;;  %v4801_v33 = vadd.f32 %v983_v37, %v4763_v29  ;;  %v912_v2 = vpop.f32.mrf.mxu0 }
 0x15c   :  { %5620 = vst [vmem:[#allocation75_spill] sm:$0xff] %v4798_v50  ;;  %v4804_v24 = vadd.f32 %v912_v2, %v4767_v62  ;;  %v985_v61 = vpop.f32.mrf.mxu1 }
 0x15d   :  { %5621 = vst [vmem:[#allocation76_spill] sm:$0xff] %v4801_v33  ;;  %v4807_v46 = vadd.f32 %v985_v61, %v4771_v48  ;;  %v914_v44 = vpop.f32.mrf.mxu0 }
 0x15e   :  { %5622 = vst [vmem:[#allocation77_spill] sm:$0xff] %v4804_v24  ;;  %v4810_v34 = vadd.f32 %v914_v44, %v4759_v14  ;;  %v987_v43 = vpop.f32.mrf.mxu1 }
 0x15f   :  { %5623 = vst [vmem:[#allocation78_spill] sm:$0xff] %v4807_v46  ;;  %v4813_v0 = vadd.f32 %v987_v43, %v4763_v29  ;;  %v916_v4 = vpop.f32.mrf.mxu0 }
 0x160   :  { %5624 = vst [vmem:[#allocation79_spill] sm:$0xff] %v4810_v34  ;;  %v4816_v37 = vadd.f32 %v916_v4, %v4767_v62  ;;  %v989_v33 = vpop.f32.mrf.mxu1 }
 0x161   :  { %5625 = vst [vmem:[#allocation80_spill] sm:$0xff] %v4813_v0  ;;  %v4819_v2 = vadd.f32 %v989_v33, %v4771_v48  ;;  %v920_v24 = vpop.f32.mrf.mxu0 }
 0x162   :  { %5626 = vst [vmem:[#allocation81_spill] sm:$0xff] %v4816_v37  ;;  %v4822_v61 = vadd.f32 %v920_v24, %v4759_v14  ;;  %v993_v46 = vpop.f32.mrf.mxu1 }
 0x163   :  { %5627 = vst [vmem:[#allocation82_spill] sm:$0xff] %v4819_v2  ;;  %v4825_v44 = vadd.f32 %v993_v46, %v4763_v29  ;;  %v922_v50 = vpop.f32.mrf.mxu0 }
 0x164   :  { %5628 = vst [vmem:[#allocation83_spill] sm:$0xff] %v4822_v61  ;;  %v4828_v43 = vadd.f32 %v922_v50, %v4767_v62  ;;  %v995_v0 = vpop.f32.mrf.mxu1 }
 0x165   :  { %5629 = vst [vmem:[#allocation84_spill] sm:$0xff] %v4825_v44  ;;  %v4831_v4 = vadd.f32 %v995_v0, %v4771_v48  ;;  %v924_v37 = vpop.f32.mrf.mxu0 }
 0x166   :  { %5630 = vst [vmem:[#allocation85_spill] sm:$0xff] %v4828_v43  ;;  %v4834_v33 = vadd.f32 %v924_v37, %v4759_v14  ;;  %v997_v2 = vpop.f32.mrf.mxu1 }
 0x167   :  { %5631 = vst [vmem:[#allocation86_spill] sm:$0xff] %v4831_v4  ;;  %v4837_v24 = vadd.f32 %v997_v2, %v4763_v29  ;;  %v926_v34 = vpop.f32.mrf.mxu0 }
 0x168   :  { %5632 = vst [vmem:[#allocation87_spill] sm:$0xff] %v4834_v33  ;;  %v4840_v46 = vadd.f32 %v926_v34, %v4767_v62  ;;  %v999_v44 = vpop.f32.mrf.mxu1 }
 0x169   :  { %5633 = vst [vmem:[#allocation88_spill] sm:$0xff] %v4837_v24  ;;  %v4843_v50 = vadd.f32 %v999_v44, %v4771_v48  ;;  %v930_v43 = vpop.f32.mrf.mxu0 }
 0x16a   :  { %5634 = vst [vmem:[#allocation89_spill] sm:$0xff] %v4840_v46  ;;  %v4846_v0 = vadd.f32 %v930_v43, %v4759_v14  ;;  %v1003_v4 = vpop.f32.mrf.mxu1 }
 0x16b   :  { %5635 = vst [vmem:[#allocation90_spill] sm:$0xff] %v4843_v50  ;;  %v4849_v37 = vadd.f32 %v1003_v4, %v4763_v29  ;;  %v932_v61 = vpop.f32.mrf.mxu0  ;;  %v702_v50 = vadd.f32 %v4644_v9, %v4658_v31  ;;  %v704_v4 = vadd.f32 %v4650_v39, %v4668_v16  ;;  %v775_v31 = vadd.f32 %v4648_v35, %v4654_v1 }
 0x16c   :  { %5636 = vst [vmem:[#allocation91_spill] sm:$0xff] %v4846_v0  ;;  %v4852_v2 = vadd.f32 %v932_v61, %v4767_v62  ;;  %v1005_v24 = vpop.f32.mrf.mxu1  ;;  %v777_v16 = vadd.f32 %v4660_v15, %v4664_v13 }
 0x16d   :  { %5637 = vst [vmem:[#allocation92_spill] sm:$0xff] %v4849_v37  ;;  %v4855_v34 = vadd.f32 %v1005_v24, %v4771_v48  ;;  %v934_v46 = vpop.f32.mrf.mxu0 }
 0x16e   :  { %5638 = vst [vmem:[#allocation93_spill] sm:$0xff] %v4852_v2  ;;  %v1007_v33 = vpop.f32.mrf.mxu1 }
 0x16f   :  { %5639 = vst [vmem:[#allocation94_spill] sm:$0xff] %v4855_v34  ;;  %v936_v44 = vpop.f32.mrf.mxu0 }
 0x170   :  { %v1009_v43 = vpop.f32.mrf.mxu1 }
 0x171   :  { %v1082_v0 = vpop.f32.mrf.mxu0 }
 0x172   :  { %v1130_v37 = vadd.f32 %v1082_v0, %v702_v50  ;;  %v1123_v32 = vpop.f32.mrf.mxu1 }
 0x173   :  { %v1084_v30 = vpop.f32.mrf.mxu0  ;;  %v1132_v9 = vadd.f32 %v1123_v32, %v775_v31  ;;  %v937_v32 = vadd.f32 %v936_v44, %v4767_v62  ;;  %v1008_v44 = vadd.f32 %v1007_v33, %v4763_v29 }
 0x174   :  { %v2954_v61 = vmul.f32 -1.442695, %v1130_v37  ;;  %v1131_v2 = vadd.f32 %v1084_v30, %v704_v4  ;;  %v1125_v42 = vpop.f32.mrf.mxu1 }
 0x175   :  { %v1086_v20 = vpop.f32.mrf.mxu0  ;;  %v2956_v39 = vmul.f32 -1.442695, %v1132_v9  ;;  %v1133_v50 = vadd.f32 %v1125_v42, %v777_v16 }
 0x176   :  { %3020 = vpow2.f32 %v2954_v61  ;;  %v2955_v24 = vmul.f32 -1.442695, %v1131_v2  ;;  %v1127_v34 = vpop.f32.mrf.mxu1 }
 0x177   :  { %v1087_v21 = vpop.f32.mrf.mxu0 }
 0x178   :  { %3022 = vpow2.f32 %v2955_v24  ;;  %v1128_v19 = vpop.f32.mrf.mxu1  ;;  %v935_v21 = vadd.f32 %v934_v46, %v4759_v14 }
 0x179   :  { %3024 = vpow2.f32 %v2956_v39 }
 0x17a   :  { %3026 = vtanh.f32 %v1133_v50 }
 0x183   :  { %v3021_v0 = vpop.eup %3020 }
 0x184   :  { %v1143_v37 = vadd.f32 1.0, %v3021_v0 }
 0x185   :  { %v3023_v30 = vpop.eup %3022 }
 0x186   :  { %3028 = vrcp.f32 %v1143_v37  ;;  %v1144_v20 = vadd.f32 1.0, %v3023_v30  ;;  %v3025_v19 = vpop.eup %3024  ;;  %v1010_v30 = vadd.f32 %v1009_v43, %v4771_v48 }
 0x187   :  { %v3027_v34 = vpop.eup %3026  ;;  %v1145_v9 = vadd.f32 1.0, %v3025_v19 }
 0x188   :  { %3030 = vrcp.f32 %v1144_v20 }
 0x191   :  { %v1200_v2 = vpop.f32.mrf.mxu0 }
 0x192   :  { %v1248_v35 = vadd.f32 %v1200_v2, %v935_v21  ;;  %v1241_v1 = vpop.f32.mrf.mxu1 }
 0x193   :  { %v3029_v13 = vpop.eup %3028  ;;  %v1202_v15 = vpop.f32.mrf.mxu0  ;;  %v1250_v37 = vadd.f32 %v1241_v1, %v1008_v44 }
 0x194   :  { %v1154_v42 = vmul.f32 %v3029_v13, %v3027_v34  ;;  %v2957_v4 = vmul.f32 -1.442695, %v1248_v35  ;;  %v1249_v61 = vadd.f32 %v1202_v15, %v937_v32  ;;  %v1243_v24 = vpop.f32.mrf.mxu1 }
 0x195   :  { %v3031_v31 = vpop.eup %3030  ;;  %v1204_v16 = vpop.f32.mrf.mxu0  ;;  %v2959_v20 = vmul.f32 -1.442695, %v1250_v37  ;;  %v1251_v19 = vadd.f32 %v1243_v24, %v1010_v30 }
 0x196   :  { %v1153_v39 = vmul.f32 0.0, %v3031_v31  ;;  %3032 = vpow2.f32 %v2957_v4  ;;  %v2958_v50 = vmul.f32 -1.442695, %v1249_v61  ;;  %v1245_v14 = vpop.f32.mrf.mxu1  ;;  %v5640_v31 = vld [vmem:[#allocation32_spill] sm:$0xff]  ;;  %v5642_v16 = vld [vmem:[#allocation34_spill] sm:$0xff] }
 0x197   :  { %v1205_v46 = vpop.f32.mrf.mxu0  ;;  %v5645_v14 = vld [vmem:[#allocation37_spill] sm:$0xff] }
 0x198   :  { %v4867_v0 = vadd.f32 %v1154_v42, %v1153_v39  ;;  %3034 = vpow2.f32 %v2958_v50  ;;  %v1246_v62 = vpop.f32.mrf.mxu1  ;;  %v5643_v39 = vld [vmem:[#allocation35_spill] sm:$0xff]  ;;  %v5644_v50 = vld [vmem:[#allocation36_spill] sm:$0xff]  ;;  %v5646_v46 = vld [vmem:[#allocation38_spill] sm:$0xff] }
 0x199   :  { %3036 = vrcp.f32 %v1145_v9  ;;  %v5641_v9 = vld [vmem:[#allocation33_spill] sm:$0xff] }
 0x19a   :  { %3038 = vtanh.f32 %v4867_v0 }
 0x19b   :  { %3040 = vpow2.f32 %v2959_v20  ;;  %v5647_v20 = vld [vmem:[#allocation8_spill] sm:$0xff] }
 0x1a3   :  { %v3033_v21 = vpop.eup %3032 }
 0x1a4   :  { %v1261_v2 = vadd.f32 1.0, %v3033_v21  ;;  %v5648_v21 = vld [vmem:[#allocation9_spill] sm:$0xff] }
 0x1a5   :  { %v3035_v34 = vpop.eup %3034 }
 0x1a6   :  { %v3037_v32 = vpop.eup %3036  ;;  %3042 = vrcp.f32 %v1261_v2  ;;  %v1262_v35 = vadd.f32 1.0, %v3035_v34  ;;  %v5650_v2 = vld [vmem:[#allocation11_spill] sm:$0xff]  ;;  %v5651_v34 = vld [vmem:[#allocation12_spill] sm:$0xff] }
 0x1a7   :  { %v3039_v13 = vpop.eup %3038  ;;  %3044 = vtanh.f32 %v1251_v19  ;;  %v5649_v19 = vld [vmem:[#allocation10_spill] sm:$0xff] }
 0x1a8   :  { %3046 = vrcp.f32 %v1262_v35  ;;  %v1157_v15 = vmul.f32 %v3039_v13, %v3037_v32  ;;  %v3041_v48 = vpop.eup %3040  ;;  %v5652_v32 = vld [vmem:[#allocation13_spill] sm:$0xff]  ;;  %v5653_v35 = vld [vmem:[#allocation14_spill] sm:$0xff]  ;;  %v5654_v13 = vld [vmem:[#allocation15_spill] sm:$0xff] }
 0x1a9   :  { %v1263_v42 = vadd.f32 1.0, %v3041_v48  ;;  %v5657_v48 = vld [vmem:[#allocation18_spill] sm:$0xff] }
 0x1aa   :  { %1160 = vst [vmem:[%s5476_s7] sm:$0xff] %v1157_v15  ;;  %v1286_v29 = vpack.c.bf16 %v1157_v15, %v1157_v15  ;;  %v5655_v15 = vld [vmem:[#allocation16_spill] sm:$0xff] }
 0x1ab   :  { %3048 = vrcp.f32 %v1263_v42  ;;  %v5661_v42 = vld [vmem:[#allocation22_spill] sm:$0xff] }
 0x1ac   :  { %1320 = vmatmul.mubr.bf16.vlgmr.msra.gmra.mxu0 %v1286_v29  ;;  %1361 = vmatmul.mubr.bf16.vlgmr.msra.gmra.mxu1 %v1286_v29  ;;  %v5656_v29 = vld [vmem:[#allocation17_spill] sm:$0xff] }
 0x1ad   :  { %1409 = vmatpush1.bf16.msra.mxu0 %v4346_v53  ;;  %1450 = vmatpush1.bf16.msra.mxu1 %v4350_v54 }
 0x1ae   :  { %1410 = vmatprep.subr.bf16.mxu0 %v4352_v55  ;;  %1451 = vmatprep.subr.bf16.mxu1 %v4364_v3 }
 0x1af   :  { %1440 = vmatprep.mubr.bf16.mxu0 %v5579_v49  ;;  %1481 = vmatprep.mubr.bf16.mxu1 %v5579_v49 }
 0x1b1   :  { %1411 = vmatpush1.bf16.msra.mxu0 %v4384_v12  ;;  %1452 = vmatpush1.bf16.msra.mxu1 %v4388_v18 }
 0x1b2   :  { %1412 = vmatprep.subr.bf16.mxu0 %v4390_v22  ;;  %1453 = vmatprep.subr.bf16.mxu1 %v4402_v26 }
 0x1b3   :  { %v3043_v33 = vpop.eup %3042 }
 0x1b4   :  { %v3045_v43 = vpop.eup %3044 }
 0x1b5   :  { %v3047_v1 = vpop.eup %3046  ;;  %1413 = vmatpush1.bf16.msra.mxu0 %v4422_v40  ;;  %1454 = vmatpush1.bf16.msra.mxu1 %v4426_v41  ;;  %v1272_v61 = vmul.f32 %v3045_v43, %v3043_v33  ;;  %v5658_v33 = vld [vmem:[#allocation19_spill] sm:$0xff]  ;;  %v5659_v43 = vld [vmem:[#allocation20_spill] sm:$0xff] }
 0x1b6   :  { %v1271_v4 = vmul.f32 0.0, %v3047_v1  ;;  %1414 = vmatprep.subr.bf16.mxu0 %v4428_v47  ;;  %1455 = vmatprep.subr.bf16.mxu1 %v4440_v60  ;;  %v5660_v1 = vld [vmem:[#allocation21_spill] sm:$0xff] }
 0x1b8   :  { %v4889_v24 = vadd.f32 %v1272_v61, %v1271_v4  ;;  %v3049_v62 = vpop.eup %3048  ;;  %v5662_v4 = vld [vmem:[#allocation23_spill] sm:$0xff]  ;;  %v5663_v61 = vld [vmem:[#allocation24_spill] sm:$0xff] }
 0x1b9   :  { %1415 = vmatpush1.bf16.msra.mxu0 %v4458_v11  ;;  %1456 = vmatpush1.bf16.msra.mxu1 %v5640_v31 }
 0x1ba   :  { %3050 = vtanh.f32 %v4889_v24  ;;  %1416 = vmatprep.subr.bf16.mxu0 %v5641_v9  ;;  %1457 = vmatprep.subr.bf16.mxu1 %v5642_v16 }
 0x1bd   :  { %1417 = vmatpush1.bf16.msra.mxu0 %v5643_v39  ;;  %1458 = vmatpush1.bf16.msra.mxu1 %v5644_v50 }
 0x1be   :  { %1418 = vmatprep.subr.bf16.mxu0 %v5645_v14  ;;  %1459 = vmatprep.subr.bf16.mxu1 %v5646_v46 }
 0x1c1   :  { %1419 = vmatpush1.bf16.msra.mxu0 %v4530_v56  ;;  %1460 = vmatpush1.bf16.msra.mxu1 %v4534_v38 }
 0x1c2   :  { %1420 = vmatprep.subr.bf16.mxu0 %v4536_v36  ;;  %1461 = vmatprep.subr.bf16.mxu1 %v4548_v10 }
 0x1c5   :  { %1421 = vmatpush1.bf16.msra.mxu0 %v4566_v52  ;;  %1462 = vmatpush1.bf16.msra.mxu1 %v4570_v27 }
 0x1c6   :  { %1422 = vmatprep.subr.bf16.mxu0 %v4572_v5  ;;  %1463 = vmatprep.subr.bf16.mxu1 %v4581_v23 }
 0x1c7   :  { %v3051_v44 = vpop.eup %3050 }
 0x1c8   :  { %v1275_v37 = vmul.f32 %v3051_v44, %v3049_v62  ;;  %v5664_v62 = vld [vmem:[#allocation25_spill] sm:$0xff]  ;;  %v5665_v44 = vld [vmem:[#allocation26_spill] sm:$0xff] }
 0x1c9   :  { %1423 = vmatpush1.bf16.msra.mxu0 %v4590_v25  ;;  %1464 = vmatpush1.bf16.msra.mxu1 %v4594_v28 }
 0x1ca   :  { %2960 = vst [vmem:[%s5476_s7 + $0x78] sm:$0xff] %v1275_v37  ;;  %v1407_v30 = vpack.c.bf16 %v1275_v37, %v1275_v37  ;;  %1529 = vmatprep.subr.bf16.mxu0 %v4195_v45  ;;  %1570 = vmatprep.subr.bf16.mxu1 %v4197_v51  ;;  %v5666_v37 = vld [vmem:[#allocation27_spill] sm:$0xff] }
 0x1cc   :  { %1441 = vmatmul.mubr.bf16.vlgmr.msra.gmra.mxu0 %v1407_v30  ;;  %1482 = vmatmul.mubr.bf16.vlgmr.msra.gmra.mxu1 %v1407_v30  ;;  %v5667_v30 = vld [vmem:[#allocation28_spill] sm:$0xff] }
 0x1cd   :  { %1530 = vmatpush1.bf16.msra.mxu0 %v4199_v57  ;;  %1571 = vmatpush1.bf16.msra.mxu1 %v4202_v58 }
 0x1ce   :  { %1531 = vmatprep.subr.bf16.mxu0 %v4204_v59  ;;  %1572 = vmatprep.subr.bf16.mxu1 %v4207_v63 }
 0x1cf   :  { %1561 = vmatprep.mubr.bf16.mxu0 %v5579_v49  ;;  %1602 = vmatprep.mubr.bf16.mxu1 %v5579_v49 }
 0x1d1   :  { %1532 = vmatpush1.bf16.msra.mxu0 %v4212_v6  ;;  %1573 = vmatpush1.bf16.msra.mxu1 %v4216_v7 }
 0x1d2   :  { %1533 = vmatprep.subr.bf16.mxu0 %v4218_v8  ;;  %1574 = vmatprep.subr.bf16.mxu1 %v4222_v17 }
 0x1d5   :  { %1534 = vmatpush1.bf16.msra.mxu0 %v5647_v20  ;;  %1575 = vmatpush1.bf16.msra.mxu1 %v5648_v21 }
 0x1d6   :  { %1535 = vmatprep.subr.bf16.mxu0 %v5649_v19  ;;  %1576 = vmatprep.subr.bf16.mxu1 %v5650_v2 }
 0x1d9   :  { %1536 = vmatpush1.bf16.msra.mxu0 %v5651_v34  ;;  %1577 = vmatpush1.bf16.msra.mxu1 %v5652_v32 }
 0x1da   :  { %1537 = vmatprep.subr.bf16.mxu0 %v5653_v35  ;;  %1578 = vmatprep.subr.bf16.mxu1 %v5654_v13 }
 0x1dd   :  { %1538 = vmatpush1.bf16.msra.mxu0 %v5655_v15  ;;  %1579 = vmatpush1.bf16.msra.mxu1 %v5656_v29  ;;  %v5671_v29 = vld [vmem:[#allocation39_spill] sm:$0xff] }
 0x1de   :  { %1539 = vmatprep.subr.bf16.mxu0 %v5657_v48  ;;  %1580 = vmatprep.subr.bf16.mxu1 %v5658_v33  ;;  %v5668_v48 = vld [vmem:[#allocation29_spill] sm:$0xff]  ;;  %v5669_v33 = vld [vmem:[#allocation30_spill] sm:$0xff] }
 0x1e1   :  { %1540 = vmatpush1.bf16.msra.mxu0 %v5659_v43  ;;  %1581 = vmatpush1.bf16.msra.mxu1 %v5660_v1  ;;  %v5670_v43 = vld [vmem:[#allocation31_spill] sm:$0xff] }
 0x1e2   :  { %1541 = vmatprep.subr.bf16.mxu0 %v5661_v42  ;;  %1582 = vmatprep.subr.bf16.mxu1 %v5662_v4 }
 0x1e5   :  { %1542 = vmatpush1.bf16.msra.mxu0 %v5663_v61  ;;  %1583 = vmatpush1.bf16.msra.mxu1 %v5664_v62  ;;  %v5672_v62 = vld [vmem:[#allocation41_spill] sm:$0xff] }
 0x1e6   :  { %1543 = vmatprep.subr.bf16.mxu0 %v5665_v44  ;;  %1584 = vmatprep.subr.bf16.mxu1 %v5666_v37 }
 0x1e9   :  { %1544 = vmatpush1.bf16.msra.mxu0 %v5667_v30  ;;  %1585 = vmatpush1.bf16.msra.mxu1 %v5668_v48  ;;  %v5673_v48 = vld [vmem:[#allocation40_spill] sm:$0xff] }
 0x1ea   :  { %1650 = vmatprep.subr.bf16.mxu0 %v5669_v33  ;;  %1691 = vmatprep.subr.bf16.mxu1 %v5670_v43  ;;  %v5674_v43 = vld [vmem:[#allocation42_spill] sm:$0xff] }
 0x26c   :  { %v1321_v1 = vpop.f32.mrf.mxu0  ;;  %v1362_v42 = vpop.f32.mrf.mxu1 }
 0x26d   :  { %v1369_v4 = vadd.f32 %v1321_v1, %v5671_v29  ;;  %v1371_v33 = vadd.f32 %v1362_v42, %v5673_v48 }
 0x26e   :  { %v1323_v15 = vpop.f32.mrf.mxu0  ;;  %v1364_v61 = vpop.f32.mrf.mxu1 }
 0x26f   :  { %v2961_v13 = vmul.f32 -1.442695, %v1369_v4  ;;  %v1370_v35 = vadd.f32 %v1323_v15, %v5672_v62  ;;  %v2963_v2 = vmul.f32 -1.442695, %v1371_v33  ;;  %v1372_v19 = vadd.f32 %v1364_v61, %v5674_v43  ;;  %v5675_v4 = vld [vmem:[#allocation91_spill] sm:$0xff]  ;;  %v5676_v43 = vld [vmem:[#allocation93_spill] sm:$0xff] }
 0x270   :  { %v1325_v44 = vpop.f32.mrf.mxu0  ;;  %v1366_v32 = vpop.f32.mrf.mxu1 }
 0x271   :  { %3052 = vpow2.f32 %v2961_v13  ;;  %v2962_v37 = vmul.f32 -1.442695, %v1370_v35 }
 0x272   :  { %v1326_v30 = vpop.f32.mrf.mxu0  ;;  %v1367_v34 = vpop.f32.mrf.mxu1 }
 0x273   :  { %3054 = vpow2.f32 %v2962_v37 }
 0x274   :  { %3056 = vpow2.f32 %v2963_v2 }
 0x275   :  { %3058 = vtanh.f32 %v1372_v19 }
 0x27e   :  { %v3053_v21 = vpop.eup %3052 }
 0x27f   :  { %v1382_v20 = vadd.f32 1.0, %v3053_v21 }
 0x280   :  { %v3055_v29 = vpop.eup %3054 }
 0x281   :  { %3060 = vrcp.f32 %v1382_v20  ;;  %v1383_v1 = vadd.f32 1.0, %v3055_v29  ;;  %v3057_v15 = vpop.eup %3056 }
 0x282   :  { %v3059_v35 = vpop.eup %3058  ;;  %v1384_v2 = vadd.f32 1.0, %v3057_v15 }
 0x283   :  { %3062 = vrcp.f32 %v1383_v1 }
 0x28c   :  { %v1442_v32 = vpop.f32.mrf.mxu0  ;;  %v1483_v13 = vpop.f32.mrf.mxu1 }
 0x28d   :  { %v1490_v34 = vadd.f32 %v1442_v32, %v5675_v4  ;;  %v5677_v32 = vld [vmem:[#allocation92_spill] sm:$0xff] }
 0x28e   :  { %v3061_v62 = vpop.eup %3060  ;;  %v1444_v44 = vpop.f32.mrf.mxu0 }
 0x28f   :  { %v1485_v48 = vpop.f32.mrf.mxu1  ;;  %v1393_v33 = vmul.f32 %v3061_v62, %v3059_v35  ;;  %v2965_v42 = vmul.f32 -1.442695, %v1490_v34  ;;  %v1491_v61 = vadd.f32 %v1444_v44, %v5676_v43  ;;  %v1492_v35 = vadd.f32 %v1483_v13, %v5677_v32  ;;  %v5678_v34 = vld [vmem:[#allocation94_spill] sm:$0xff] }
 0x290   :  { %v3063_v21 = vpop.eup %3062  ;;  %v1446_v37 = vpop.f32.mrf.mxu0  ;;  %v1493_v62 = vadd.f32 %v1485_v48, %v5678_v34  ;;  %v5680_v34 = vld [vmem:[#allocation8_spill] sm:$0xff] }
 0x291   :  { %v1487_v19 = vpop.f32.mrf.mxu1  ;;  %v1392_v20 = vmul.f32 %v3063_v21, %v4867_v0  ;;  %3064 = vpow2.f32 %v2965_v42  ;;  %v2966_v30 = vmul.f32 -1.442695, %v1491_v61  ;;  %v2967_v4 = vmul.f32 -1.442695, %v1492_v35 }
 0x292   :  { %v1447_v29 = vpop.f32.mrf.mxu0 }
 0x293   :  { %v1488_v1 = vpop.f32.mrf.mxu1  ;;  %v4956_v17 = vadd.f32 %v1393_v33, %v1392_v20  ;;  %3066 = vpow2.f32 %v2966_v30 }
 0x294   :  { %3068 = vrcp.f32 %v1384_v2 }
 0x295   :  { %3070 = vtanh.f32 %v4956_v17 }
 0x296   :  { %3072 = vpow2.f32 %v2967_v4  ;;  %v5679_v4 = vld [vmem:[#allocation7_spill] sm:$0xff] }
 0x297   :  { %3074 = vtanh.f32 %v1493_v62  ;;  %v5681_v62 = vld [vmem:[#allocation9_spill] sm:$0xff] }
 0x29e   :  { %v3065_v15 = vpop.eup %3064 }
 0x29f   :  { %v1503_v44 = vadd.f32 1.0, %v3065_v15  ;;  %v5682_v15 = vld [vmem:[#allocation10_spill] sm:$0xff] }
 0x2a0   :  { %v3067_v43 = vpop.eup %3066 }
 0x2a1   :  { %v3069_v0 = vpop.eup %3068  ;;  %3076 = vrcp.f32 %v1503_v44  ;;  %v1504_v42 = vadd.f32 1.0, %v3067_v43  ;;  %v5683_v44 = vld [vmem:[#allocation11_spill] sm:$0xff]  ;;  %v5684_v43 = vld [vmem:[#allocation12_spill] sm:$0xff] }
 0x2a2   :  { %v3071_v61 = vpop.eup %3070 }
 0x2a3   :  { %3078 = vrcp.f32 %v1504_v42  ;;  %v1396_v33 = vmul.f32 %v3071_v61, %v3069_v0  ;;  %v3073_v13 = vpop.eup %3072  ;;  %v5685_v0 = vld [vmem:[#allocation13_spill] sm:$0xff]  ;;  %v5686_v42 = vld [vmem:[#allocation14_spill] sm:$0xff]  ;;  %v5687_v61 = vld [vmem:[#allocation15_spill] sm:$0xff] }
 0x2a4   :  { %v3075_v48 = vpop.eup %3074  ;;  %v1505_v20 = vadd.f32 1.0, %v3073_v13  ;;  %v5690_v13 = vld [vmem:[#allocation18_spill] sm:$0xff] }
 0x2a5   :  { %2964 = vst [vmem:[%s5476_s7 + $0x10] sm:$0xff] %v1396_v33  ;;  %v1528_v21 = vpack.c.bf16 %v1396_v33, %v1396_v33  ;;  %v5688_v33 = vld [vmem:[#allocation16_spill] sm:$0xff] }
 0x2a6   :  { %3080 = vrcp.f32 %v1505_v20  ;;  %v5695_v20 = vld [vmem:[#allocation23_spill] sm:$0xff] }
 0x2a7   :  { %1562 = vmatmul.mubr.bf16.vlgmr.msra.gmra.mxu0 %v1528_v21  ;;  %1603 = vmatmul.mubr.bf16.vlgmr.msra.gmra.mxu1 %v1528_v21  ;;  %v5689_v21 = vld [vmem:[#allocation17_spill] sm:$0xff] }
 0x2a8   :  { %1651 = vmatpush1.bf16.msra.mxu0 %v4346_v53  ;;  %1692 = vmatpush1.bf16.msra.mxu1 %v4350_v54 }
 0x2a9   :  { %1652 = vmatprep.subr.bf16.mxu0 %v4352_v55  ;;  %1693 = vmatprep.subr.bf16.mxu1 %v4364_v3 }
 0x2aa   :  { %1682 = vmatprep.mubr.bf16.mxu0 %v5579_v49  ;;  %1723 = vmatprep.mubr.bf16.mxu1 %v5579_v49 }
 0x2ac   :  { %1653 = vmatpush1.bf16.msra.mxu0 %v4384_v12  ;;  %1694 = vmatpush1.bf16.msra.mxu1 %v4388_v18 }
 0x2ad   :  { %1654 = vmatprep.subr.bf16.mxu0 %v4390_v22  ;;  %1695 = vmatprep.subr.bf16.mxu1 %v4402_v26 }
 0x2ae   :  { %v3077_v2 = vpop.eup %3076 }
 0x2af   :  { %v1514_v37 = vmul.f32 %v3077_v2, %v3075_v48  ;;  %v5691_v48 = vld [vmem:[#allocation19_spill] sm:$0xff]  ;;  %v5692_v2 = vld [vmem:[#allocation20_spill] sm:$0xff] }
 0x2b0   :  { %v3079_v19 = vpop.eup %3078  ;;  %1655 = vmatpush1.bf16.msra.mxu0 %v4422_v40  ;;  %1696 = vmatpush1.bf16.msra.mxu1 %v4426_v41 }
 0x2b1   :  { %v1513_v30 = vmul.f32 %v3079_v19, %v4889_v24  ;;  %1656 = vmatprep.subr.bf16.mxu0 %v4428_v47  ;;  %1697 = vmatprep.subr.bf16.mxu1 %v4440_v60  ;;  %v5694_v19 = vld [vmem:[#allocation22_spill] sm:$0xff] }
 0x2b3   :  { %v4979_v29 = vadd.f32 %v1514_v37, %v1513_v30  ;;  %v3081_v24 = vpop.eup %3080  ;;  %v5693_v37 = vld [vmem:[#allocation21_spill] sm:$0xff]  ;;  %v5696_v30 = vld [vmem:[#allocation24_spill] sm:$0xff] }
 0x2b4   :  { %1657 = vmatpush1.bf16.msra.mxu0 %v4458_v11  ;;  %1698 = vmatpush1.bf16.msra.mxu1 %v5640_v31 }
 0x2b5   :  { %3082 = vtanh.f32 %v4979_v29  ;;  %1658 = vmatprep.subr.bf16.mxu0 %v5641_v9  ;;  %1699 = vmatprep.subr.bf16.mxu1 %v5642_v16 }
 0x2b8   :  { %1659 = vmatpush1.bf16.msra.mxu0 %v5643_v39  ;;  %1700 = vmatpush1.bf16.msra.mxu1 %v5644_v50 }
 0x2b9   :  { %1660 = vmatprep.subr.bf16.mxu0 %v5645_v14  ;;  %1701 = vmatprep.subr.bf16.mxu1 %v5646_v46 }
 0x2bc   :  { %1661 = vmatpush1.bf16.msra.mxu0 %v4530_v56  ;;  %1702 = vmatpush1.bf16.msra.mxu1 %v4534_v38 }
 0x2bd   :  { %1662 = vmatprep.subr.bf16.mxu0 %v4536_v36  ;;  %1703 = vmatprep.subr.bf16.mxu1 %v4548_v10 }
 0x2c0   :  { %1663 = vmatpush1.bf16.msra.mxu0 %v4566_v52  ;;  %1704 = vmatpush1.bf16.msra.mxu1 %v4570_v27 }
 0x2c1   :  { %1664 = vmatprep.subr.bf16.mxu0 %v4572_v5  ;;  %1705 = vmatprep.subr.bf16.mxu1 %v4581_v23 }
 0x2c2   :  { %v3083_v1 = vpop.eup %3082 }
 0x2c3   :  { %v1517_v32 = vmul.f32 %v3083_v1, %v3081_v24  ;;  %v5697_v24 = vld [vmem:[#allocation25_spill] sm:$0xff]  ;;  %v5698_v1 = vld [vmem:[#allocation26_spill] sm:$0xff] }
 0x2c4   :  { %1665 = vmatpush1.bf16.msra.mxu0 %v4590_v25  ;;  %1706 = vmatpush1.bf16.msra.mxu1 %v4594_v28 }
 0x2c5   :  { %2968 = vst [vmem:[%s5476_s7 + $0x68] sm:$0xff] %v1517_v32  ;;  %v1649_v35 = vpack.c.bf16 %v1517_v32, %v1517_v32  ;;  %1771 = vmatprep.subr.bf16.mxu0 %v4195_v45  ;;  %1812 = vmatprep.subr.bf16.mxu1 %v4197_v51  ;;  %v5699_v32 = vld [vmem:[#allocation27_spill] sm:$0xff] }
 0x2c7   :  { %1683 = vmatmul.mubr.bf16.vlgmr.msra.gmra.mxu0 %v1649_v35  ;;  %1724 = vmatmul.mubr.bf16.vlgmr.msra.gmra.mxu1 %v1649_v35  ;;  %v5700_v35 = vld [vmem:[#allocation28_spill] sm:$0xff] }
 0x2c8   :  { %1772 = vmatpush1.bf16.msra.mxu0 %v4199_v57  ;;  %1813 = vmatpush1.bf16.msra.mxu1 %v4202_v58 }
 0x2c9   :  { %1773 = vmatprep.subr.bf16.mxu0 %v4204_v59  ;;  %1814 = vmatprep.subr.bf16.mxu1 %v4207_v63 }
 0x2ca   :  { %1803 = vmatprep.mubr.bf16.mxu0 %v5579_v49  ;;  %1844 = vmatprep.mubr.bf16.mxu1 %v5579_v49 }
 0x2cc   :  { %1774 = vmatpush1.bf16.msra.mxu0 %v4212_v6  ;;  %1815 = vmatpush1.bf16.msra.mxu1 %v4216_v7 }
 0x2cd   :  { %1775 = vmatprep.subr.bf16.mxu0 %v4218_v8  ;;  %1816 = vmatprep.subr.bf16.mxu1 %v5679_v4 }
 0x2d0   :  { %1776 = vmatpush1.bf16.msra.mxu0 %v5680_v34  ;;  %1817 = vmatpush1.bf16.msra.mxu1 %v5681_v62 }
 0x2d1   :  { %1777 = vmatprep.subr.bf16.mxu0 %v5682_v15  ;;  %1818 = vmatprep.subr.bf16.mxu1 %v5683_v44 }
 0x2d4   :  { %1778 = vmatpush1.bf16.msra.mxu0 %v5684_v43  ;;  %1819 = vmatpush1.bf16.msra.mxu1 %v5685_v0 }
 0x2d5   :  { %1779 = vmatprep.subr.bf16.mxu0 %v5686_v42  ;;  %1820 = vmatprep.subr.bf16.mxu1 %v5687_v61 }
 0x2d8   :  { %1780 = vmatpush1.bf16.msra.mxu0 %v5688_v33  ;;  %1821 = vmatpush1.bf16.msra.mxu1 %v5689_v21  ;;  %v5704_v21 = vld [vmem:[#allocation43_spill] sm:$0xff] }
 0x2d9   :  { %1781 = vmatprep.subr.bf16.mxu0 %v5690_v13  ;;  %1822 = vmatprep.subr.bf16.mxu1 %v5691_v48  ;;  %v5701_v13 = vld [vmem:[#allocation29_spill] sm:$0xff]  ;;  %v5702_v48 = vld [vmem:[#allocation30_spill] sm:$0xff] }
 0x2dc   :  { %1782 = vmatpush1.bf16.msra.mxu0 %v5692_v2  ;;  %1823 = vmatpush1.bf16.msra.mxu1 %v5693_v37  ;;  %v5703_v2 = vld [vmem:[#allocation31_spill] sm:$0xff] }
 0x2dd   :  { %1783 = vmatprep.subr.bf16.mxu0 %v5694_v19  ;;  %1824 = vmatprep.subr.bf16.mxu1 %v5695_v20 }
 0x2e0   :  { %1784 = vmatpush1.bf16.msra.mxu0 %v5696_v30  ;;  %1825 = vmatpush1.bf16.msra.mxu1 %v5697_v24  ;;  %v5705_v24 = vld [vmem:[#allocation45_spill] sm:$0xff] }
 0x2e1   :  { %1785 = vmatprep.subr.bf16.mxu0 %v5698_v1  ;;  %1826 = vmatprep.subr.bf16.mxu1 %v5699_v32 }
 0x2e4   :  { %1786 = vmatpush1.bf16.msra.mxu0 %v5700_v35  ;;  %1827 = vmatpush1.bf16.msra.mxu1 %v5701_v13  ;;  %v5706_v13 = vld [vmem:[#allocation44_spill] sm:$0xff] }
 0x2e5   :  { %1892 = vmatprep.subr.bf16.mxu0 %v5702_v48  ;;  %1933 = vmatprep.subr.bf16.mxu1 %v5703_v2  ;;  %v5707_v2 = vld [vmem:[#allocation46_spill] sm:$0xff] }
 0x367   :  { %v1563_v37 = vpop.f32.mrf.mxu0  ;;  %v1604_v19 = vpop.f32.mrf.mxu1 }
 0x368   :  { %v1611_v20 = vadd.f32 %v1563_v37, %v5704_v21  ;;  %v1613_v48 = vadd.f32 %v1604_v19, %v5706_v13 }
 0x369   :  { %v1565_v33 = vpop.f32.mrf.mxu0  ;;  %v1606_v30 = vpop.f32.mrf.mxu1 }
 0x36a   :  { %v2969_v61 = vmul.f32 -1.442695, %v1611_v20  ;;  %v1612_v42 = vadd.f32 %v1565_v33, %v5705_v24  ;;  %v2971_v44 = vmul.f32 -1.442695, %v1613_v48  ;;  %v1614_v15 = vadd.f32 %v1606_v30, %v5707_v2  ;;  %v5708_v20 = vld [vmem:[#allocation87_spill] sm:$0xff]  ;;  %v5709_v2 = vld [vmem:[#allocation89_spill] sm:$0xff] }
 0x36b   :  { %v1567_v1 = vpop.f32.mrf.mxu0  ;;  %v1608_v0 = vpop.f32.mrf.mxu1 }
 0x36c   :  { %3084 = vpow2.f32 %v2969_v61  ;;  %v2970_v32 = vmul.f32 -1.442695, %v1612_v42 }
 0x36d   :  { %v1568_v35 = vpop.f32.mrf.mxu0  ;;  %v1609_v43 = vpop.f32.mrf.mxu1 }
 0x36e   :  { %3086 = vpow2.f32 %v2970_v32 }
 0x36f   :  { %3088 = vpow2.f32 %v2971_v44 }
 0x370   :  { %3090 = vtanh.f32 %v1614_v15 }
 0x379   :  { %v3085_v62 = vpop.eup %3084 }
 0x37a   :  { %v1624_v34 = vadd.f32 1.0, %v3085_v62 }
 0x37b   :  { %v3087_v21 = vpop.eup %3086 }
 0x37c   :  { %3092 = vrcp.f32 %v1624_v34  ;;  %v1625_v37 = vadd.f32 1.0, %v3087_v21  ;;  %v3089_v33 = vpop.eup %3088 }
 0x37d   :  { %v3091_v42 = vpop.eup %3090  ;;  %v1626_v44 = vadd.f32 1.0, %v3089_v33 }
 0x37e   :  { %3094 = vrcp.f32 %v1625_v37 }
 0x387   :  { %v1684_v0 = vpop.f32.mrf.mxu0  ;;  %v1725_v61 = vpop.f32.mrf.mxu1 }
 0x388   :  { %v1732_v43 = vadd.f32 %v1684_v0, %v5708_v20  ;;  %v5710_v0 = vld [vmem:[#allocation88_spill] sm:$0xff] }
 0x389   :  { %v3093_v24 = vpop.eup %3092  ;;  %v1686_v1 = vpop.f32.mrf.mxu0 }
 0x38a   :  { %v1727_v13 = vpop.f32.mrf.mxu1  ;;  %v1635_v48 = vmul.f32 %v3093_v24, %v3091_v42  ;;  %v2973_v19 = vmul.f32 -1.442695, %v1732_v43  ;;  %v1733_v30 = vadd.f32 %v1686_v1, %v5709_v2  ;;  %v1734_v42 = vadd.f32 %v1725_v61, %v5710_v0  ;;  %v5711_v43 = vld [vmem:[#allocation90_spill] sm:$0xff] }
 0x38b   :  { %v3095_v62 = vpop.eup %3094  ;;  %v1688_v32 = vpop.f32.mrf.mxu0  ;;  %v1735_v24 = vadd.f32 %v1727_v13, %v5711_v43  ;;  %v5713_v43 = vld [vmem:[#allocation8_spill] sm:$0xff] }
 0x38c   :  { %v1729_v15 = vpop.f32.mrf.mxu1  ;;  %v1634_v34 = vmul.f32 %v3095_v62, %v4956_v17  ;;  %3096 = vpow2.f32 %v2973_v19  ;;  %v2974_v35 = vmul.f32 -1.442695, %v1733_v30  ;;  %v2975_v20 = vmul.f32 -1.442695, %v1734_v42 }
 0x38d   :  { %v1689_v21 = vpop.f32.mrf.mxu0 }
 0x38e   :  { %v1730_v37 = vpop.f32.mrf.mxu1  ;;  %v5046_v4 = vadd.f32 %v1635_v48, %v1634_v34  ;;  %3098 = vpow2.f32 %v2974_v35 }
 0x38f   :  { %3100 = vrcp.f32 %v1626_v44 }
 0x390   :  { %3102 = vtanh.f32 %v5046_v4 }
 0x391   :  { %3104 = vpow2.f32 %v2975_v20  ;;  %v5712_v20 = vld [vmem:[#allocation7_spill] sm:$0xff] }
 0x392   :  { %3106 = vtanh.f32 %v1735_v24  ;;  %v5714_v24 = vld [vmem:[#allocation9_spill] sm:$0xff] }
 0x399   :  { %v3097_v33 = vpop.eup %3096 }
 0x39a   :  { %v1745_v1 = vadd.f32 1.0, %v3097_v33  ;;  %v5715_v33 = vld [vmem:[#allocation10_spill] sm:$0xff] }
 0x39b   :  { %v3099_v2 = vpop.eup %3098 }
 0x39c   :  { %v3101_v17 = vpop.eup %3100  ;;  %3108 = vrcp.f32 %v1745_v1  ;;  %v1746_v19 = vadd.f32 1.0, %v3099_v2  ;;  %v5716_v1 = vld [vmem:[#allocation11_spill] sm:$0xff]  ;;  %v5717_v2 = vld [vmem:[#allocation12_spill] sm:$0xff] }
 0x39d   :  { %v3103_v30 = vpop.eup %3102 }
 0x39e   :  { %3110 = vrcp.f32 %v1746_v19  ;;  %v1638_v48 = vmul.f32 %v3103_v30, %v3101_v17  ;;  %v3105_v61 = vpop.eup %3104  ;;  %v5718_v17 = vld [vmem:[#allocation13_spill] sm:$0xff]  ;;  %v5719_v19 = vld [vmem:[#allocation14_spill] sm:$0xff]  ;;  %v5720_v30 = vld [vmem:[#allocation15_spill] sm:$0xff] }
 0x39f   :  { %v3107_v13 = vpop.eup %3106  ;;  %v1747_v34 = vadd.f32 1.0, %v3105_v61  ;;  %v5723_v61 = vld [vmem:[#allocation18_spill] sm:$0xff] }
 0x3a0   :  { %2972 = vst [vmem:[%s5476_s7 + $0x20] sm:$0xff] %v1638_v48  ;;  %v1770_v62 = vpack.c.bf16 %v1638_v48, %v1638_v48  ;;  %v5721_v48 = vld [vmem:[#allocation16_spill] sm:$0xff] }
 0x3a1   :  { %3112 = vrcp.f32 %v1747_v34  ;;  %v5728_v34 = vld [vmem:[#allocation23_spill] sm:$0xff] }
 0x3a2   :  { %1804 = vmatmul.mubr.bf16.vlgmr.msra.gmra.mxu0 %v1770_v62  ;;  %1845 = vmatmul.mubr.bf16.vlgmr.msra.gmra.mxu1 %v1770_v62  ;;  %v5722_v62 = vld [vmem:[#allocation17_spill] sm:$0xff] }
 0x3a3   :  { %1893 = vmatpush1.bf16.msra.mxu0 %v4346_v53  ;;  %1934 = vmatpush1.bf16.msra.mxu1 %v4350_v54 }
 0x3a4   :  { %1894 = vmatprep.subr.bf16.mxu0 %v4352_v55  ;;  %1935 = vmatprep.subr.bf16.mxu1 %v4364_v3 }
 0x3a5   :  { %1924 = vmatprep.mubr.bf16.mxu0 %v5579_v49  ;;  %1965 = vmatprep.mubr.bf16.mxu1 %v5579_v49 }
 0x3a7   :  { %1895 = vmatpush1.bf16.msra.mxu0 %v4384_v12  ;;  %1936 = vmatpush1.bf16.msra.mxu1 %v4388_v18 }
 0x3a8   :  { %1896 = vmatprep.subr.bf16.mxu0 %v4390_v22  ;;  %1937 = vmatprep.subr.bf16.mxu1 %v4402_v26 }
 0x3a9   :  { %v3109_v44 = vpop.eup %3108 }
 0x3aa   :  { %v1756_v32 = vmul.f32 %v3109_v44, %v3107_v13  ;;  %v5724_v13 = vld [vmem:[#allocation19_spill] sm:$0xff]  ;;  %v5725_v44 = vld [vmem:[#allocation20_spill] sm:$0xff] }
 0x3ab   :  { %v3111_v15 = vpop.eup %3110  ;;  %1897 = vmatpush1.bf16.msra.mxu0 %v4422_v40  ;;  %1938 = vmatpush1.bf16.msra.mxu1 %v4426_v41 }
 0x3ac   :  { %v1755_v35 = vmul.f32 %v3111_v15, %v4979_v29  ;;  %1898 = vmatprep.subr.bf16.mxu0 %v4428_v47  ;;  %1939 = vmatprep.subr.bf16.mxu1 %v4440_v60  ;;  %v5727_v15 = vld [vmem:[#allocation22_spill] sm:$0xff] }
 0x3ae   :  { %v5069_v21 = vadd.f32 %v1756_v32, %v1755_v35  ;;  %v3113_v29 = vpop.eup %3112  ;;  %v5726_v32 = vld [vmem:[#allocation21_spill] sm:$0xff]  ;;  %v5729_v35 = vld [vmem:[#allocation24_spill] sm:$0xff] }
 0x3af   :  { %1899 = vmatpush1.bf16.msra.mxu0 %v4458_v11  ;;  %1940 = vmatpush1.bf16.msra.mxu1 %v5640_v31 }
 0x3b0   :  { %3114 = vtanh.f32 %v5069_v21  ;;  %1900 = vmatprep.subr.bf16.mxu0 %v5641_v9  ;;  %1941 = vmatprep.subr.bf16.mxu1 %v5642_v16 }
 0x3b3   :  { %1901 = vmatpush1.bf16.msra.mxu0 %v5643_v39  ;;  %1942 = vmatpush1.bf16.msra.mxu1 %v5644_v50 }
 0x3b4   :  { %1902 = vmatprep.subr.bf16.mxu0 %v5645_v14  ;;  %1943 = vmatprep.subr.bf16.mxu1 %v5646_v46 }
 0x3b7   :  { %1903 = vmatpush1.bf16.msra.mxu0 %v4530_v56  ;;  %1944 = vmatpush1.bf16.msra.mxu1 %v4534_v38 }
 0x3b8   :  { %1904 = vmatprep.subr.bf16.mxu0 %v4536_v36  ;;  %1945 = vmatprep.subr.bf16.mxu1 %v4548_v10 }
 0x3bb   :  { %1905 = vmatpush1.bf16.msra.mxu0 %v4566_v52  ;;  %1946 = vmatpush1.bf16.msra.mxu1 %v4570_v27 }
 0x3bc   :  { %1906 = vmatprep.subr.bf16.mxu0 %v4572_v5  ;;  %1947 = vmatprep.subr.bf16.mxu1 %v4581_v23 }
 0x3bd   :  { %v3115_v37 = vpop.eup %3114 }
 0x3be   :  { %v1759_v0 = vmul.f32 %v3115_v37, %v3113_v29  ;;  %v5730_v29 = vld [vmem:[#allocation25_spill] sm:$0xff]  ;;  %v5731_v37 = vld [vmem:[#allocation26_spill] sm:$0xff] }
 0x3bf   :  { %1907 = vmatpush1.bf16.msra.mxu0 %v4590_v25  ;;  %1948 = vmatpush1.bf16.msra.mxu1 %v4594_v28 }
 0x3c0   :  { %2976 = vst [vmem:[%s5476_s7 + $0x58] sm:$0xff] %v1759_v0  ;;  %v1891_v42 = vpack.c.bf16 %v1759_v0, %v1759_v0  ;;  %2013 = vmatprep.subr.bf16.mxu0 %v4195_v45  ;;  %2054 = vmatprep.subr.bf16.mxu1 %v4197_v51  ;;  %v5732_v0 = vld [vmem:[#allocation27_spill] sm:$0xff] }
 0x3c2   :  { %1925 = vmatmul.mubr.bf16.vlgmr.msra.gmra.mxu0 %v1891_v42  ;;  %1966 = vmatmul.mubr.bf16.vlgmr.msra.gmra.mxu1 %v1891_v42  ;;  %v5733_v42 = vld [vmem:[#allocation28_spill] sm:$0xff] }
 0x3c3   :  { %2014 = vmatpush1.bf16.msra.mxu0 %v4199_v57  ;;  %2055 = vmatpush1.bf16.msra.mxu1 %v4202_v58 }
 0x3c4   :  { %2015 = vmatprep.subr.bf16.mxu0 %v4204_v59  ;;  %2056 = vmatprep.subr.bf16.mxu1 %v4207_v63 }
 0x3c5   :  { %2045 = vmatprep.mubr.bf16.mxu0 %v5579_v49  ;;  %2086 = vmatprep.mubr.bf16.mxu1 %v5579_v49 }
 0x3c7   :  { %2016 = vmatpush1.bf16.msra.mxu0 %v4212_v6  ;;  %2057 = vmatpush1.bf16.msra.mxu1 %v4216_v7 }
 0x3c8   :  { %2017 = vmatprep.subr.bf16.mxu0 %v4218_v8  ;;  %2058 = vmatprep.subr.bf16.mxu1 %v5712_v20 }
 0x3cb   :  { %2018 = vmatpush1.bf16.msra.mxu0 %v5713_v43  ;;  %2059 = vmatpush1.bf16.msra.mxu1 %v5714_v24 }
 0x3cc   :  { %2019 = vmatprep.subr.bf16.mxu0 %v5715_v33  ;;  %2060 = vmatprep.subr.bf16.mxu1 %v5716_v1 }
 0x3cf   :  { %2020 = vmatpush1.bf16.msra.mxu0 %v5717_v2  ;;  %2061 = vmatpush1.bf16.msra.mxu1 %v5718_v17 }
 0x3d0   :  { %2021 = vmatprep.subr.bf16.mxu0 %v5719_v19  ;;  %2062 = vmatprep.subr.bf16.mxu1 %v5720_v30 }
 0x3d3   :  { %2022 = vmatpush1.bf16.msra.mxu0 %v5721_v48  ;;  %2063 = vmatpush1.bf16.msra.mxu1 %v5722_v62  ;;  %v5737_v62 = vld [vmem:[#allocation47_spill] sm:$0xff] }
 0x3d4   :  { %2023 = vmatprep.subr.bf16.mxu0 %v5723_v61  ;;  %2064 = vmatprep.subr.bf16.mxu1 %v5724_v13  ;;  %v5734_v61 = vld [vmem:[#allocation29_spill] sm:$0xff]  ;;  %v5735_v13 = vld [vmem:[#allocation30_spill] sm:$0xff] }
 0x3d7   :  { %2024 = vmatpush1.bf16.msra.mxu0 %v5725_v44  ;;  %2065 = vmatpush1.bf16.msra.mxu1 %v5726_v32  ;;  %v5736_v44 = vld [vmem:[#allocation31_spill] sm:$0xff] }
 0x3d8   :  { %2025 = vmatprep.subr.bf16.mxu0 %v5727_v15  ;;  %2066 = vmatprep.subr.bf16.mxu1 %v5728_v34 }
 0x3db   :  { %2026 = vmatpush1.bf16.msra.mxu0 %v5729_v35  ;;  %2067 = vmatpush1.bf16.msra.mxu1 %v5730_v29  ;;  %v5738_v29 = vld [vmem:[#allocation49_spill] sm:$0xff] }
 0x3dc   :  { %2027 = vmatprep.subr.bf16.mxu0 %v5731_v37  ;;  %2068 = vmatprep.subr.bf16.mxu1 %v5732_v0 }
 0x3df   :  { %2028 = vmatpush1.bf16.msra.mxu0 %v5733_v42  ;;  %2069 = vmatpush1.bf16.msra.mxu1 %v5734_v61  ;;  %v5739_v61 = vld [vmem:[#allocation48_spill] sm:$0xff] }
 0x3e0   :  { %2130 = vmatprep.subr.bf16.mxu0 %v5735_v13  ;;  %2171 = vmatprep.subr.bf16.mxu1 %v5736_v44  ;;  %v5740_v44 = vld [vmem:[#allocation50_spill] sm:$0xff] }
 0x462   :  { %v1805_v32 = vpop.f32.mrf.mxu0  ;;  %v1846_v15 = vpop.f32.mrf.mxu1 }
 0x463   :  { %v1853_v34 = vadd.f32 %v1805_v32, %v5737_v62  ;;  %v1855_v13 = vadd.f32 %v1846_v15, %v5739_v61 }
 0x464   :  { %v1807_v48 = vpop.f32.mrf.mxu0  ;;  %v1848_v35 = vpop.f32.mrf.mxu1 }
 0x465   :  { %v2977_v30 = vmul.f32 -1.442695, %v1853_v34  ;;  %v1854_v19 = vadd.f32 %v1807_v48, %v5738_v29  ;;  %v2979_v1 = vmul.f32 -1.442695, %v1855_v13  ;;  %v1856_v33 = vadd.f32 %v1848_v35, %v5740_v44  ;;  %v5741_v34 = vld [vmem:[#allocation83_spill] sm:$0xff]  ;;  %v5742_v44 = vld [vmem:[#allocation85_spill] sm:$0xff] }
 0x466   :  { %v1809_v37 = vpop.f32.mrf.mxu0  ;;  %v1850_v17 = vpop.f32.mrf.mxu1 }
 0x467   :  { %3116 = vpow2.f32 %v2977_v30  ;;  %v2978_v0 = vmul.f32 -1.442695, %v1854_v19 }
 0x468   :  { %v1810_v42 = vpop.f32.mrf.mxu0  ;;  %v1851_v2 = vpop.f32.mrf.mxu1 }
 0x469   :  { %3118 = vpow2.f32 %v2978_v0 }
 0x46a   :  { %3120 = vpow2.f32 %v2979_v1 }
 0x46b   :  { %3122 = vtanh.f32 %v1856_v33 }
 0x474   :  { %v3117_v24 = vpop.eup %3116 }
 0x475   :  { %v1866_v43 = vadd.f32 1.0, %v3117_v24 }
 0x476   :  { %v3119_v62 = vpop.eup %3118 }
 0x477   :  { %3124 = vrcp.f32 %v1866_v43  ;;  %v1867_v32 = vadd.f32 1.0, %v3119_v62  ;;  %v3121_v48 = vpop.eup %3120 }
 0x478   :  { %v3123_v19 = vpop.eup %3122  ;;  %v1868_v1 = vadd.f32 1.0, %v3121_v48 }
 0x479   :  { %3126 = vrcp.f32 %v1867_v32 }
 0x482   :  { %v1926_v17 = vpop.f32.mrf.mxu0  ;;  %v1967_v30 = vpop.f32.mrf.mxu1 }
 0x483   :  { %v1974_v2 = vadd.f32 %v1926_v17, %v5741_v34  ;;  %v5743_v17 = vld [vmem:[#allocation84_spill] sm:$0xff] }
 0x484   :  { %v3125_v29 = vpop.eup %3124  ;;  %v1928_v37 = vpop.f32.mrf.mxu0 }
 0x485   :  { %v1969_v61 = vpop.f32.mrf.mxu1  ;;  %v1877_v13 = vmul.f32 %v3125_v29, %v3123_v19  ;;  %v2981_v15 = vmul.f32 -1.442695, %v1974_v2  ;;  %v1975_v35 = vadd.f32 %v1928_v37, %v5742_v44  ;;  %v1976_v19 = vadd.f32 %v1967_v30, %v5743_v17  ;;  %v5744_v2 = vld [vmem:[#allocation86_spill] sm:$0xff] }
 0x486   :  { %v3127_v24 = vpop.eup %3126  ;;  %v1930_v0 = vpop.f32.mrf.mxu0  ;;  %v1977_v29 = vadd.f32 %v1969_v61, %v5744_v2  ;;  %v5746_v2 = vld [vmem:[#allocation8_spill] sm:$0xff] }
 0x487   :  { %v1971_v33 = vpop.f32.mrf.mxu1  ;;  %v1876_v43 = vmul.f32 %v3127_v24, %v5046_v4  ;;  %3128 = vpow2.f32 %v2981_v15  ;;  %v2982_v42 = vmul.f32 -1.442695, %v1975_v35  ;;  %v2983_v34 = vmul.f32 -1.442695, %v1976_v19 }
 0x488   :  { %v1931_v62 = vpop.f32.mrf.mxu0 }
 0x489   :  { %v1972_v32 = vpop.f32.mrf.mxu1  ;;  %v5136_v20 = vadd.f32 %v1877_v13, %v1876_v43  ;;  %3130 = vpow2.f32 %v2982_v42 }
 0x48a   :  { %3132 = vrcp.f32 %v1868_v1 }
 0x48b   :  { %3134 = vtanh.f32 %v5136_v20 }
 0x48c   :  { %3136 = vpow2.f32 %v2983_v34  ;;  %v5745_v34 = vld [vmem:[#allocation7_spill] sm:$0xff] }
 0x48d   :  { %3138 = vtanh.f32 %v1977_v29  ;;  %v5747_v29 = vld [vmem:[#allocation9_spill] sm:$0xff] }
 0x494   :  { %v3129_v48 = vpop.eup %3128 }
 0x495   :  { %v1987_v37 = vadd.f32 1.0, %v3129_v48  ;;  %v5748_v48 = vld [vmem:[#allocation10_spill] sm:$0xff] }
 0x496   :  { %v3131_v44 = vpop.eup %3130 }
 0x497   :  { %v3133_v4 = vpop.eup %3132  ;;  %3140 = vrcp.f32 %v1987_v37  ;;  %v1988_v15 = vadd.f32 1.0, %v3131_v44  ;;  %v5749_v37 = vld [vmem:[#allocation11_spill] sm:$0xff]  ;;  %v5750_v44 = vld [vmem:[#allocation12_spill] sm:$0xff] }
 0x498   :  { %v3135_v35 = vpop.eup %3134 }
 0x499   :  { %3142 = vrcp.f32 %v1988_v15  ;;  %v1880_v13 = vmul.f32 %v3135_v35, %v3133_v4  ;;  %v3137_v30 = vpop.eup %3136  ;;  %v5751_v4 = vld [vmem:[#allocation13_spill] sm:$0xff]  ;;  %v5752_v15 = vld [vmem:[#allocation14_spill] sm:$0xff]  ;;  %v5753_v35 = vld [vmem:[#allocation15_spill] sm:$0xff] }
 0x49a   :  { %v3139_v61 = vpop.eup %3138  ;;  %v1989_v43 = vadd.f32 1.0, %v3137_v30  ;;  %v5756_v30 = vld [vmem:[#allocation18_spill] sm:$0xff] }
 0x49b   :  { %2980 = vst [vmem:[%s5476_s7 + $0x30] sm:$0xff] %v1880_v13  ;;  %v2012_v24 = vpack.c.bf16 %v1880_v13, %v1880_v13  ;;  %v5754_v13 = vld [vmem:[#allocation16_spill] sm:$0xff] }
 0x49c   :  { %3144 = vrcp.f32 %v1989_v43  ;;  %v5761_v43 = vld [vmem:[#allocation23_spill] sm:$0xff] }
 0x49d   :  { %2046 = vmatmul.mubr.bf16.vlgmr.msra.gmra.mxu0 %v2012_v24  ;;  %2087 = vmatmul.mubr.bf16.vlgmr.msra.gmra.mxu1 %v2012_v24  ;;  %v5755_v24 = vld [vmem:[#allocation17_spill] sm:$0xff] }
 0x49e   :  { %2131 = vmatpush1.bf16.msra.mxu0 %v4346_v53  ;;  %2172 = vmatpush1.bf16.msra.mxu1 %v4350_v54 }
 0x49f   :  { %2132 = vmatprep.subr.bf16.mxu0 %v4352_v55  ;;  %2173 = vmatprep.subr.bf16.mxu1 %v4364_v3 }
 0x4a0   :  { %2162 = vmatprep.mubr.bf16.mxu0 %v5579_v49  ;;  %2203 = vmatprep.mubr.bf16.mxu1 %v5579_v49 }
 0x4a2   :  { %2133 = vmatpush1.bf16.msra.mxu0 %v4384_v12  ;;  %2174 = vmatpush1.bf16.msra.mxu1 %v4388_v18 }
 0x4a3   :  { %2134 = vmatprep.subr.bf16.mxu0 %v4390_v22  ;;  %2175 = vmatprep.subr.bf16.mxu1 %v4402_v26 }
 0x4a4   :  { %v3141_v1 = vpop.eup %3140 }
 0x4a5   :  { %v1998_v0 = vmul.f32 %v3141_v1, %v3139_v61  ;;  %v5757_v61 = vld [vmem:[#allocation19_spill] sm:$0xff]  ;;  %v5758_v1 = vld [vmem:[#allocation20_spill] sm:$0xff] }
 0x4a6   :  { %v3143_v33 = vpop.eup %3142  ;;  %2135 = vmatpush1.bf16.msra.mxu0 %v4422_v40  ;;  %2176 = vmatpush1.bf16.msra.mxu1 %v4426_v41 }
 0x4a7   :  { %v1997_v42 = vmul.f32 %v3143_v33, %v5069_v21  ;;  %2136 = vmatprep.subr.bf16.mxu0 %v4428_v47  ;;  %2177 = vmatprep.subr.bf16.mxu1 %v4440_v60  ;;  %v5760_v33 = vld [vmem:[#allocation22_spill] sm:$0xff] }
 0x4a9   :  { %v5159_v62 = vadd.f32 %v1998_v0, %v1997_v42  ;;  %v3145_v21 = vpop.eup %3144  ;;  %v5759_v0 = vld [vmem:[#allocation21_spill] sm:$0xff]  ;;  %v5762_v42 = vld [vmem:[#allocation24_spill] sm:$0xff] }
 0x4aa   :  { %2137 = vmatpush1.bf16.msra.mxu0 %v4458_v11  ;;  %2178 = vmatpush1.bf16.msra.mxu1 %v5640_v31 }
 0x4ab   :  { %3146 = vtanh.f32 %v5159_v62  ;;  %2138 = vmatprep.subr.bf16.mxu0 %v5641_v9  ;;  %2179 = vmatprep.subr.bf16.mxu1 %v5642_v16 }
 0x4ae   :  { %2139 = vmatpush1.bf16.msra.mxu0 %v5643_v39  ;;  %2180 = vmatpush1.bf16.msra.mxu1 %v5644_v50 }
 0x4af   :  { %2140 = vmatprep.subr.bf16.mxu0 %v5645_v14  ;;  %2181 = vmatprep.subr.bf16.mxu1 %v5646_v46 }
 0x4b2   :  { %2141 = vmatpush1.bf16.msra.mxu0 %v4530_v56  ;;  %2182 = vmatpush1.bf16.msra.mxu1 %v4534_v38 }
 0x4b3   :  { %2142 = vmatprep.subr.bf16.mxu0 %v4536_v36  ;;  %2183 = vmatprep.subr.bf16.mxu1 %v4548_v10 }
 0x4b6   :  { %2143 = vmatpush1.bf16.msra.mxu0 %v4566_v52  ;;  %2184 = vmatpush1.bf16.msra.mxu1 %v4570_v27 }
 0x4b7   :  { %2144 = vmatprep.subr.bf16.mxu0 %v4572_v5  ;;  %2185 = vmatprep.subr.bf16.mxu1 %v4581_v23 }
 0x4b8   :  { %v3147_v32 = vpop.eup %3146 }
 0x4b9   :  { %v2001_v17 = vmul.f32 %v3147_v32, %v3145_v21  ;;  %v5763_v21 = vld [vmem:[#allocation25_spill] sm:$0xff]  ;;  %v5764_v32 = vld [vmem:[#allocation26_spill] sm:$0xff] }
 0x4ba   :  { %2145 = vmatpush1.bf16.msra.mxu0 %v4590_v25  ;;  %2186 = vmatpush1.bf16.msra.mxu1 %v4594_v28 }
 0x4bb   :  { %2984 = vst [vmem:[%s5476_s7 + $0x48] sm:$0xff] %v2001_v17  ;;  %v2129_v19 = vpack.c.bf16 %v2001_v17, %v2001_v17  ;;  %2247 = vmatprep.subr.bf16.mxu0 %v4195_v45  ;;  %2288 = vmatprep.subr.bf16.mxu1 %v4197_v51  ;;  %v5765_v17 = vld [vmem:[#allocation27_spill] sm:$0xff] }
 0x4bd   :  { %2163 = vmatmul.mubr.bf16.vlgmr.msra.gmra.mxu0 %v2129_v19  ;;  %2204 = vmatmul.mubr.bf16.vlgmr.msra.gmra.mxu1 %v2129_v19  ;;  %v5766_v19 = vld [vmem:[#allocation28_spill] sm:$0xff] }
 0x4be   :  { %2248 = vmatpush1.bf16.msra.mxu0 %v4199_v57  ;;  %2289 = vmatpush1.bf16.msra.mxu1 %v4202_v58 }
 0x4bf   :  { %2249 = vmatprep.subr.bf16.mxu0 %v4204_v59  ;;  %2290 = vmatprep.subr.bf16.mxu1 %v4207_v63 }
 0x4c0   :  { %2279 = vmatprep.mubr.bf16.mxu0 %v5579_v49  ;;  %2320 = vmatprep.mubr.bf16.mxu1 %v5579_v49 }
 0x4c2   :  { %2250 = vmatpush1.bf16.msra.mxu0 %v4212_v6  ;;  %2291 = vmatpush1.bf16.msra.mxu1 %v4216_v7 }
 0x4c3   :  { %2251 = vmatprep.subr.bf16.mxu0 %v4218_v8  ;;  %2292 = vmatprep.subr.bf16.mxu1 %v5745_v34 }
 0x4c6   :  { %2252 = vmatpush1.bf16.msra.mxu0 %v5746_v2  ;;  %2293 = vmatpush1.bf16.msra.mxu1 %v5747_v29 }
 0x4c7   :  { %2253 = vmatprep.subr.bf16.mxu0 %v5748_v48  ;;  %2294 = vmatprep.subr.bf16.mxu1 %v5749_v37 }
 0x4ca   :  { %2254 = vmatpush1.bf16.msra.mxu0 %v5750_v44  ;;  %2295 = vmatpush1.bf16.msra.mxu1 %v5751_v4 }
 0x4cb   :  { %2255 = vmatprep.subr.bf16.mxu0 %v5752_v15  ;;  %2296 = vmatprep.subr.bf16.mxu1 %v5753_v35 }
 0x4ce   :  { %2256 = vmatpush1.bf16.msra.mxu0 %v5754_v13  ;;  %2297 = vmatpush1.bf16.msra.mxu1 %v5755_v24  ;;  %v5770_v24 = vld [vmem:[#allocation51_spill] sm:$0xff] }
 0x4cf   :  { %2257 = vmatprep.subr.bf16.mxu0 %v5756_v30  ;;  %2298 = vmatprep.subr.bf16.mxu1 %v5757_v61  ;;  %v5767_v30 = vld [vmem:[#allocation29_spill] sm:$0xff]  ;;  %v5768_v61 = vld [vmem:[#allocation30_spill] sm:$0xff] }
 0x4d2   :  { %2258 = vmatpush1.bf16.msra.mxu0 %v5758_v1  ;;  %2299 = vmatpush1.bf16.msra.mxu1 %v5759_v0  ;;  %v5769_v1 = vld [vmem:[#allocation31_spill] sm:$0xff] }
 0x4d3   :  { %2259 = vmatprep.subr.bf16.mxu0 %v5760_v33  ;;  %2300 = vmatprep.subr.bf16.mxu1 %v5761_v43 }
 0x4d6   :  { %2260 = vmatpush1.bf16.msra.mxu0 %v5762_v42  ;;  %2301 = vmatpush1.bf16.msra.mxu1 %v5763_v21  ;;  %v5771_v21 = vld [vmem:[#allocation53_spill] sm:$0xff] }
 0x4d7   :  { %2261 = vmatprep.subr.bf16.mxu0 %v5764_v32  ;;  %2302 = vmatprep.subr.bf16.mxu1 %v5765_v17 }
 0x4da   :  { %2262 = vmatpush1.bf16.msra.mxu0 %v5766_v19  ;;  %2303 = vmatpush1.bf16.msra.mxu1 %v5767_v30  ;;  %v5772_v30 = vld [vmem:[#allocation52_spill] sm:$0xff] }
 0x4db   :  { %2364 = vmatprep.subr.bf16.mxu0 %v5768_v61  ;;  %2405 = vmatprep.subr.bf16.mxu1 %v5769_v1  ;;  %v5773_v1 = vld [vmem:[#allocation54_spill] sm:$0xff] }
 0x55d   :  { %v2047_v0 = vpop.f32.mrf.mxu0  ;;  %v2088_v33 = vpop.f32.mrf.mxu1 }
 0x55e   :  { %v2095_v43 = vadd.f32 %v2047_v0, %v5770_v24  ;;  %v2097_v61 = vadd.f32 %v2088_v33, %v5772_v30 }
 0x55f   :  { %v2049_v13 = vpop.f32.mrf.mxu0  ;;  %v2090_v42 = vpop.f32.mrf.mxu1 }
 0x560   :  { %v2985_v35 = vmul.f32 -1.442695, %v2095_v43  ;;  %v2096_v15 = vadd.f32 %v2049_v13, %v5771_v21  ;;  %v2987_v37 = vmul.f32 -1.442695, %v2097_v61  ;;  %v2098_v48 = vadd.f32 %v2090_v42, %v5773_v1  ;;  %v5774_v43 = vld [vmem:[#allocation79_spill] sm:$0xff]  ;;  %v5775_v1 = vld [vmem:[#allocation81_spill] sm:$0xff] }
 0x561   :  { %v2051_v32 = vpop.f32.mrf.mxu0  ;;  %v2092_v4 = vpop.f32.mrf.mxu1 }
 0x562   :  { %3148 = vpow2.f32 %v2985_v35  ;;  %v2986_v17 = vmul.f32 -1.442695, %v2096_v15 }
 0x563   :  { %v2052_v19 = vpop.f32.mrf.mxu0  ;;  %v2093_v44 = vpop.f32.mrf.mxu1 }
 0x564   :  { %3150 = vpow2.f32 %v2986_v17 }
 0x565   :  { %3152 = vpow2.f32 %v2987_v37 }
 0x566   :  { %3154 = vtanh.f32 %v2098_v48 }
 0x56f   :  { %v3149_v29 = vpop.eup %3148 }
 0x570   :  { %v2108_v2 = vadd.f32 1.0, %v3149_v29 }
 0x571   :  { %v3151_v24 = vpop.eup %3150 }
 0x572   :  { %3156 = vrcp.f32 %v2108_v2  ;;  %v2109_v0 = vadd.f32 1.0, %v3151_v24  ;;  %v3153_v13 = vpop.eup %3152 }
 0x573   :  { %v3155_v15 = vpop.eup %3154  ;;  %v2110_v37 = vadd.f32 1.0, %v3153_v13 }
 0x574   :  { %3158 = vrcp.f32 %v2109_v0 }
 0x57d   :  { %v2164_v4 = vpop.f32.mrf.mxu0  ;;  %v2205_v35 = vpop.f32.mrf.mxu1 }
 0x57e   :  { %v2212_v44 = vadd.f32 %v2164_v4, %v5774_v43  ;;  %v5776_v4 = vld [vmem:[#allocation80_spill] sm:$0xff] }
 0x57f   :  { %v3157_v21 = vpop.eup %3156  ;;  %v2166_v32 = vpop.f32.mrf.mxu0 }
 0x580   :  { %v2207_v30 = vpop.f32.mrf.mxu1  ;;  %v2119_v61 = vmul.f32 %v3157_v21, %v3155_v15  ;;  %v2989_v33 = vmul.f32 -1.442695, %v2212_v44  ;;  %v2213_v42 = vadd.f32 %v2166_v32, %v5775_v1  ;;  %v2214_v15 = vadd.f32 %v2205_v35, %v5776_v4  ;;  %v5777_v44 = vld [vmem:[#allocation82_spill] sm:$0xff] }
 0x581   :  { %v3159_v29 = vpop.eup %3158  ;;  %v2168_v17 = vpop.f32.mrf.mxu0  ;;  %v2215_v21 = vadd.f32 %v2207_v30, %v5777_v44  ;;  %v5779_v44 = vld [vmem:[#allocation8_spill] sm:$0xff] }
 0x582   :  { %v2209_v48 = vpop.f32.mrf.mxu1  ;;  %v2118_v2 = vmul.f32 %v3159_v29, %v5136_v20  ;;  %3160 = vpow2.f32 %v2989_v33  ;;  %v2990_v19 = vmul.f32 -1.442695, %v2213_v42  ;;  %v2991_v43 = vmul.f32 -1.442695, %v2214_v15 }
 0x583   :  { %v2169_v24 = vpop.f32.mrf.mxu0 }
 0x584   :  { %v2210_v0 = vpop.f32.mrf.mxu1  ;;  %v5226_v34 = vadd.f32 %v2119_v61, %v2118_v2  ;;  %3162 = vpow2.f32 %v2990_v19 }
 0x585   :  { %3164 = vrcp.f32 %v2110_v37 }
 0x586   :  { %3166 = vtanh.f32 %v5226_v34 }
 0x587   :  { %3168 = vpow2.f32 %v2991_v43  ;;  %v5778_v43 = vld [vmem:[#allocation7_spill] sm:$0xff] }
 0x588   :  { %3170 = vtanh.f32 %v2215_v21  ;;  %v5780_v21 = vld [vmem:[#allocation9_spill] sm:$0xff] }
 0x58f   :  { %v3161_v13 = vpop.eup %3160 }
 0x590   :  { %v2225_v32 = vadd.f32 1.0, %v3161_v13  ;;  %v5781_v13 = vld [vmem:[#allocation10_spill] sm:$0xff] }
 0x591   :  { %v3163_v1 = vpop.eup %3162 }
 0x592   :  { %v3165_v20 = vpop.eup %3164  ;;  %3172 = vrcp.f32 %v2225_v32  ;;  %v2226_v33 = vadd.f32 1.0, %v3163_v1  ;;  %v5782_v32 = vld [vmem:[#allocation11_spill] sm:$0xff]  ;;  %v5783_v1 = vld [vmem:[#allocation12_spill] sm:$0xff] }
 0x593   :  { %v3167_v42 = vpop.eup %3166 }
 0x594   :  { %3174 = vrcp.f32 %v2226_v33  ;;  %v2122_v61 = vmul.f32 %v3167_v42, %v3165_v20  ;;  %v3169_v35 = vpop.eup %3168  ;;  %v5784_v20 = vld [vmem:[#allocation13_spill] sm:$0xff]  ;;  %v5785_v33 = vld [vmem:[#allocation14_spill] sm:$0xff]  ;;  %v5786_v42 = vld [vmem:[#allocation15_spill] sm:$0xff] }
 0x595   :  { %v3171_v30 = vpop.eup %3170  ;;  %v2227_v2 = vadd.f32 1.0, %v3169_v35  ;;  %v5789_v35 = vld [vmem:[#allocation18_spill] sm:$0xff] }
 0x596   :  { %2988 = vst [vmem:[%s5476_s7 + $0x40] sm:$0xff] %v2122_v61  ;;  %v2246_v29 = vpack.c.bf16 %v2122_v61, %v2122_v61  ;;  %v5787_v61 = vld [vmem:[#allocation16_spill] sm:$0xff] }
 0x597   :  { %3176 = vrcp.f32 %v2227_v2  ;;  %v5794_v2 = vld [vmem:[#allocation23_spill] sm:$0xff] }
 0x598   :  { %2280 = vmatmul.mubr.bf16.vlgmr.msra.gmra.mxu0 %v2246_v29  ;;  %2321 = vmatmul.mubr.bf16.vlgmr.msra.gmra.mxu1 %v2246_v29  ;;  %v5788_v29 = vld [vmem:[#allocation17_spill] sm:$0xff] }
 0x599   :  { %2365 = vmatpush1.bf16.msra.mxu0 %v4346_v53  ;;  %2406 = vmatpush1.bf16.msra.mxu1 %v4350_v54 }
 0x59a   :  { %2366 = vmatprep.subr.bf16.mxu0 %v4352_v55  ;;  %2407 = vmatprep.subr.bf16.mxu1 %v4364_v3 }
 0x59b   :  { %2396 = vmatprep.mubr.bf16.mxu0 %v5579_v49  ;;  %2437 = vmatprep.mubr.bf16.mxu1 %v5579_v49 }
 0x59d   :  { %2367 = vmatpush1.bf16.msra.mxu0 %v4384_v12  ;;  %2408 = vmatpush1.bf16.msra.mxu1 %v4388_v18 }
 0x59e   :  { %2368 = vmatprep.subr.bf16.mxu0 %v4390_v22  ;;  %2409 = vmatprep.subr.bf16.mxu1 %v4402_v26 }
 0x59f   :  { %v3173_v37 = vpop.eup %3172 }
 0x5a0   :  { %v2236_v17 = vmul.f32 %v3173_v37, %v3171_v30  ;;  %v5790_v30 = vld [vmem:[#allocation19_spill] sm:$0xff]  ;;  %v5791_v37 = vld [vmem:[#allocation20_spill] sm:$0xff] }
 0x5a1   :  { %v3175_v48 = vpop.eup %3174  ;;  %2369 = vmatpush1.bf16.msra.mxu0 %v4422_v40  ;;  %2410 = vmatpush1.bf16.msra.mxu1 %v4426_v41 }
 0x5a2   :  { %v2235_v19 = vmul.f32 %v3175_v48, %v5159_v62  ;;  %2370 = vmatprep.subr.bf16.mxu0 %v4428_v47  ;;  %2411 = vmatprep.subr.bf16.mxu1 %v4440_v60  ;;  %v5793_v48 = vld [vmem:[#allocation22_spill] sm:$0xff] }
 0x5a4   :  { %v5249_v24 = vadd.f32 %v2236_v17, %v2235_v19  ;;  %v3177_v62 = vpop.eup %3176  ;;  %v5792_v17 = vld [vmem:[#allocation21_spill] sm:$0xff]  ;;  %v5795_v19 = vld [vmem:[#allocation24_spill] sm:$0xff] }
 0x5a5   :  { %2371 = vmatpush1.bf16.msra.mxu0 %v4458_v11  ;;  %2412 = vmatpush1.bf16.msra.mxu1 %v5640_v31 }
 0x5a6   :  { %3178 = vtanh.f32 %v5249_v24  ;;  %2372 = vmatprep.subr.bf16.mxu0 %v5641_v9  ;;  %2413 = vmatprep.subr.bf16.mxu1 %v5642_v16 }
 0x5a9   :  { %2373 = vmatpush1.bf16.msra.mxu0 %v5643_v39  ;;  %2414 = vmatpush1.bf16.msra.mxu1 %v5644_v50 }
 0x5aa   :  { %2374 = vmatprep.subr.bf16.mxu0 %v5645_v14  ;;  %2415 = vmatprep.subr.bf16.mxu1 %v5646_v46 }
 0x5ad   :  { %2375 = vmatpush1.bf16.msra.mxu0 %v4530_v56  ;;  %2416 = vmatpush1.bf16.msra.mxu1 %v4534_v38 }
 0x5ae   :  { %2376 = vmatprep.subr.bf16.mxu0 %v4536_v36  ;;  %2417 = vmatprep.subr.bf16.mxu1 %v4548_v10 }
 0x5b1   :  { %2377 = vmatpush1.bf16.msra.mxu0 %v4566_v52  ;;  %2418 = vmatpush1.bf16.msra.mxu1 %v4570_v27 }
 0x5b2   :  { %2378 = vmatprep.subr.bf16.mxu0 %v4572_v5  ;;  %2419 = vmatprep.subr.bf16.mxu1 %v4581_v23 }
 0x5b3   :  { %v3179_v0 = vpop.eup %3178 }
 0x5b4   :  { %v2239_v4 = vmul.f32 %v3179_v0, %v3177_v62  ;;  %v5796_v62 = vld [vmem:[#allocation25_spill] sm:$0xff]  ;;  %v5797_v0 = vld [vmem:[#allocation26_spill] sm:$0xff] }
 0x5b5   :  { %2379 = vmatpush1.bf16.msra.mxu0 %v4590_v25  ;;  %2420 = vmatpush1.bf16.msra.mxu1 %v4594_v28 }
 0x5b6   :  { %2992 = vst [vmem:[%s5476_s7 + $0x38] sm:$0xff] %v2239_v4  ;;  %v2363_v15 = vpack.c.bf16 %v2239_v4, %v2239_v4  ;;  %2481 = vmatprep.subr.bf16.mxu0 %v4195_v45  ;;  %2522 = vmatprep.subr.bf16.mxu1 %v4197_v51  ;;  %v5798_v4 = vld [vmem:[#allocation27_spill] sm:$0xff] }
 0x5b8   :  { %2397 = vmatmul.mubr.bf16.vlgmr.msra.gmra.mxu0 %v2363_v15  ;;  %2438 = vmatmul.mubr.bf16.vlgmr.msra.gmra.mxu1 %v2363_v15  ;;  %v5799_v15 = vld [vmem:[#allocation28_spill] sm:$0xff] }
 0x5b9   :  { %2482 = vmatpush1.bf16.msra.mxu0 %v4199_v57  ;;  %2523 = vmatpush1.bf16.msra.mxu1 %v4202_v58 }
 0x5ba   :  { %2483 = vmatprep.subr.bf16.mxu0 %v4204_v59  ;;  %2524 = vmatprep.subr.bf16.mxu1 %v4207_v63 }
 0x5bb   :  { %2513 = vmatprep.mubr.bf16.mxu0 %v5579_v49  ;;  %2554 = vmatprep.mubr.bf16.mxu1 %v5579_v49 }
 0x5bd   :  { %2484 = vmatpush1.bf16.msra.mxu0 %v4212_v6  ;;  %2525 = vmatpush1.bf16.msra.mxu1 %v4216_v7 }
 0x5be   :  { %2485 = vmatprep.subr.bf16.mxu0 %v4218_v8  ;;  %2526 = vmatprep.subr.bf16.mxu1 %v5778_v43 }
 0x5c1   :  { %2486 = vmatpush1.bf16.msra.mxu0 %v5779_v44  ;;  %2527 = vmatpush1.bf16.msra.mxu1 %v5780_v21 }
 0x5c2   :  { %2487 = vmatprep.subr.bf16.mxu0 %v5781_v13  ;;  %2528 = vmatprep.subr.bf16.mxu1 %v5782_v32 }
 0x5c5   :  { %2488 = vmatpush1.bf16.msra.mxu0 %v5783_v1  ;;  %2529 = vmatpush1.bf16.msra.mxu1 %v5784_v20 }
 0x5c6   :  { %2489 = vmatprep.subr.bf16.mxu0 %v5785_v33  ;;  %2530 = vmatprep.subr.bf16.mxu1 %v5786_v42 }
 0x5c9   :  { %2490 = vmatpush1.bf16.msra.mxu0 %v5787_v61  ;;  %2531 = vmatpush1.bf16.msra.mxu1 %v5788_v29  ;;  %v5803_v29 = vld [vmem:[#allocation55_spill] sm:$0xff] }
 0x5ca   :  { %2491 = vmatprep.subr.bf16.mxu0 %v5789_v35  ;;  %2532 = vmatprep.subr.bf16.mxu1 %v5790_v30  ;;  %v5800_v35 = vld [vmem:[#allocation29_spill] sm:$0xff]  ;;  %v5801_v30 = vld [vmem:[#allocation30_spill] sm:$0xff] }
 0x5cd   :  { %2492 = vmatpush1.bf16.msra.mxu0 %v5791_v37  ;;  %2533 = vmatpush1.bf16.msra.mxu1 %v5792_v17  ;;  %v5802_v37 = vld [vmem:[#allocation31_spill] sm:$0xff] }
 0x5ce   :  { %2493 = vmatprep.subr.bf16.mxu0 %v5793_v48  ;;  %2534 = vmatprep.subr.bf16.mxu1 %v5794_v2 }
 0x5d1   :  { %2494 = vmatpush1.bf16.msra.mxu0 %v5795_v19  ;;  %2535 = vmatpush1.bf16.msra.mxu1 %v5796_v62  ;;  %v5804_v62 = vld [vmem:[#allocation57_spill] sm:$0xff] }
 0x5d2   :  { %2495 = vmatprep.subr.bf16.mxu0 %v5797_v0  ;;  %2536 = vmatprep.subr.bf16.mxu1 %v5798_v4 }
 0x5d5   :  { %2496 = vmatpush1.bf16.msra.mxu0 %v5799_v15  ;;  %2537 = vmatpush1.bf16.msra.mxu1 %v5800_v35  ;;  %v5805_v35 = vld [vmem:[#allocation56_spill] sm:$0xff] }
 0x5d6   :  { %2598 = vmatprep.subr.bf16.mxu0 %v5801_v30  ;;  %2639 = vmatprep.subr.bf16.mxu1 %v5802_v37  ;;  %v5806_v37 = vld [vmem:[#allocation58_spill] sm:$0xff] }
 0x658   :  { %v2281_v17 = vpop.f32.mrf.mxu0  ;;  %v2322_v48 = vpop.f32.mrf.mxu1 }
 0x659   :  { %v2329_v2 = vadd.f32 %v2281_v17, %v5803_v29  ;;  %v2331_v30 = vadd.f32 %v2322_v48, %v5805_v35 }
 0x65a   :  { %v2283_v61 = vpop.f32.mrf.mxu0  ;;  %v2324_v19 = vpop.f32.mrf.mxu1 }
 0x65b   :  { %v2993_v42 = vmul.f32 -1.442695, %v2329_v2  ;;  %v2330_v33 = vadd.f32 %v2283_v61, %v5804_v62  ;;  %v2995_v32 = vmul.f32 -1.442695, %v2331_v30  ;;  %v2332_v13 = vadd.f32 %v2324_v19, %v5806_v37  ;;  %v5807_v2 = vld [vmem:[#allocation75_spill] sm:$0xff]  ;;  %v5808_v37 = vld [vmem:[#allocation77_spill] sm:$0xff] }
 0x65c   :  { %v2285_v0 = vpop.f32.mrf.mxu0  ;;  %v2326_v20 = vpop.f32.mrf.mxu1 }
 0x65d   :  { %3180 = vpow2.f32 %v2993_v42  ;;  %v2994_v4 = vmul.f32 -1.442695, %v2330_v33 }
 0x65e   :  { %v2286_v15 = vpop.f32.mrf.mxu0  ;;  %v2327_v1 = vpop.f32.mrf.mxu1 }
 0x65f   :  { %3182 = vpow2.f32 %v2994_v4 }
 0x660   :  { %3184 = vpow2.f32 %v2995_v32 }
 0x661   :  { %3186 = vtanh.f32 %v2332_v13 }
 0x66a   :  { %v3181_v21 = vpop.eup %3180 }
 0x66b   :  { %v2342_v44 = vadd.f32 1.0, %v3181_v21 }
 0x66c   :  { %v3183_v29 = vpop.eup %3182 }
 0x66d   :  { %3188 = vrcp.f32 %v2342_v44  ;;  %v2343_v17 = vadd.f32 1.0, %v3183_v29  ;;  %v3185_v61 = vpop.eup %3184 }
 0x66e   :  { %v3187_v33 = vpop.eup %3186  ;;  %v2344_v32 = vadd.f32 1.0, %v3185_v61 }
 0x66f   :  { %3190 = vrcp.f32 %v2343_v17 }
 0x678   :  { %v2398_v20 = vpop.f32.mrf.mxu0  ;;  %v2439_v42 = vpop.f32.mrf.mxu1 }
 0x679   :  { %v2446_v1 = vadd.f32 %v2398_v20, %v5807_v2  ;;  %v5809_v20 = vld [vmem:[#allocation76_spill] sm:$0xff] }
 0x67a   :  { %v3189_v62 = vpop.eup %3188  ;;  %v2400_v0 = vpop.f32.mrf.mxu0 }
 0x67b   :  { %v2441_v35 = vpop.f32.mrf.mxu1  ;;  %v2353_v30 = vmul.f32 %v3189_v62, %v3187_v33  ;;  %v2997_v48 = vmul.f32 -1.442695, %v2446_v1  ;;  %v2447_v19 = vadd.f32 %v2400_v0, %v5808_v37  ;;  %v2448_v33 = vadd.f32 %v2439_v42, %v5809_v20  ;;  %v5810_v1 = vld [vmem:[#allocation78_spill] sm:$0xff] }
 0x67c   :  { %v3191_v21 = vpop.eup %3190  ;;  %v2402_v4 = vpop.f32.mrf.mxu0  ;;  %v2449_v62 = vadd.f32 %v2441_v35, %v5810_v1  ;;  %v5818_v1 = vld [vmem:[#allocation14_spill] sm:$0xff] }
 0x67d   :  { %v2443_v13 = vpop.f32.mrf.mxu1  ;;  %v2352_v44 = vmul.f32 %v3191_v21, %v5226_v34  ;;  %3192 = vpow2.f32 %v2997_v48  ;;  %v2998_v15 = vmul.f32 -1.442695, %v2447_v19  ;;  %v2999_v2 = vmul.f32 -1.442695, %v2448_v33 }
 0x67e   :  { %v2403_v29 = vpop.f32.mrf.mxu0 }
 0x67f   :  { %v2444_v17 = vpop.f32.mrf.mxu1  ;;  %v5316_v43 = vadd.f32 %v2353_v30, %v2352_v44  ;;  %3194 = vpow2.f32 %v2998_v15 }
 0x680   :  { %3196 = vrcp.f32 %v2344_v32 }
 0x681   :  { %3198 = vtanh.f32 %v5316_v43 }
 0x682   :  { %3200 = vpow2.f32 %v2999_v2  ;;  %v5817_v2 = vld [vmem:[#allocation13_spill] sm:$0xff] }
 0x683   :  { %3202 = vtanh.f32 %v2449_v62  ;;  %v5822_v62 = vld [vmem:[#allocation18_spill] sm:$0xff] }
 0x68a   :  { %v3193_v61 = vpop.eup %3192 }
 0x68b   :  { %v2459_v0 = vadd.f32 1.0, %v3193_v61  ;;  %v5823_v61 = vld [vmem:[#allocation19_spill] sm:$0xff] }
 0x68c   :  { %v3195_v37 = vpop.eup %3194 }
 0x68d   :  { %v3197_v34 = vpop.eup %3196  ;;  %3204 = vrcp.f32 %v2459_v0  ;;  %v2460_v48 = vadd.f32 1.0, %v3195_v37  ;;  %v5824_v0 = vld [vmem:[#allocation20_spill] sm:$0xff]  ;;  %v5825_v37 = vld [vmem:[#allocation21_spill] sm:$0xff] }
 0x68e   :  { %v3199_v19 = vpop.eup %3198 }
 0x68f   :  { %3206 = vrcp.f32 %v2460_v48  ;;  %v2356_v30 = vmul.f32 %v3199_v19, %v3197_v34  ;;  %v3201_v42 = vpop.eup %3200  ;;  %v5826_v34 = vld [vmem:[#allocation22_spill] sm:$0xff]  ;;  %v5827_v48 = vld [vmem:[#allocation23_spill] sm:$0xff]  ;;  %v5828_v19 = vld [vmem:[#allocation24_spill] sm:$0xff] }
 0x690   :  { %v3203_v35 = vpop.eup %3202  ;;  %v2461_v44 = vadd.f32 1.0, %v3201_v42  ;;  %v5831_v42 = vld [vmem:[#allocation27_spill] sm:$0xff] }
 0x691   :  { %2996 = vst [vmem:[%s5476_s7 + $0x50] sm:$0xff] %v2356_v30  ;;  %v2480_v21 = vpack.c.bf16 %v2356_v30, %v2356_v30  ;;  %v5829_v30 = vld [vmem:[#allocation25_spill] sm:$0xff] }
 0x692   :  { %3208 = vrcp.f32 %v2461_v44 }
 0x693   :  { %2514 = vmatmul.mubr.bf16.vlgmr.msra.gmra.mxu0 %v2480_v21  ;;  %2555 = vmatmul.mubr.bf16.vlgmr.msra.gmra.mxu1 %v2480_v21  ;;  %v5830_v21 = vld [vmem:[#allocation26_spill] sm:$0xff] }
 0x694   :  { %2599 = vmatpush1.bf16.msra.mxu0 %v4346_v53  ;;  %2640 = vmatpush1.bf16.msra.mxu1 %v4350_v54 }
 0x695   :  { %2600 = vmatprep.subr.bf16.mxu0 %v4352_v55  ;;  %2641 = vmatprep.subr.bf16.mxu1 %v4364_v3 }
 0x696   :  { %2630 = vmatprep.mubr.bf16.mxu0 %v5579_v49  ;;  %2671 = vmatprep.mubr.bf16.mxu1 %v5579_v49 }
 0x698   :  { %2601 = vmatpush1.bf16.msra.mxu0 %v4384_v12  ;;  %2642 = vmatpush1.bf16.msra.mxu1 %v4388_v18 }
 0x699   :  { %2602 = vmatprep.subr.bf16.mxu0 %v4390_v22  ;;  %2643 = vmatprep.subr.bf16.mxu1 %v4402_v26 }
 0x69a   :  { %v3205_v32 = vpop.eup %3204 }
 0x69b   :  { %v2470_v4 = vmul.f32 %v3205_v32, %v3203_v35  ;;  %v5832_v35 = vld [vmem:[#allocation28_spill] sm:$0xff]  ;;  %v5833_v32 = vld [vmem:[#allocation29_spill] sm:$0xff] }
 0x69c   :  { %v3207_v13 = vpop.eup %3206  ;;  %2603 = vmatpush1.bf16.msra.mxu0 %v4422_v40  ;;  %2644 = vmatpush1.bf16.msra.mxu1 %v4426_v41 }
 0x69d   :  { %v2469_v15 = vmul.f32 %v3207_v13, %v5249_v24  ;;  %2604 = vmatprep.subr.bf16.mxu0 %v4428_v47  ;;  %2645 = vmatprep.subr.bf16.mxu1 %v4440_v60  ;;  %v5835_v13 = vld [vmem:[#allocation31_spill] sm:$0xff] }
 0x69f   :  { %v5339_v29 = vadd.f32 %v2470_v4, %v2469_v15  ;;  %v3209_v24 = vpop.eup %3208  ;;  %v5834_v4 = vld [vmem:[#allocation30_spill] sm:$0xff] }
 0x6a0   :  { %2605 = vmatpush1.bf16.msra.mxu0 %v4458_v11  ;;  %2646 = vmatpush1.bf16.msra.mxu1 %v5640_v31 }
 0x6a1   :  { %3210 = vtanh.f32 %v5339_v29  ;;  %2606 = vmatprep.subr.bf16.mxu0 %v5641_v9  ;;  %2647 = vmatprep.subr.bf16.mxu1 %v5642_v16 }
 0x6a4   :  { %2607 = vmatpush1.bf16.msra.mxu0 %v5643_v39  ;;  %2648 = vmatpush1.bf16.msra.mxu1 %v5644_v50 }
 0x6a5   :  { %2608 = vmatprep.subr.bf16.mxu0 %v5645_v14  ;;  %2649 = vmatprep.subr.bf16.mxu1 %v5646_v46 }
 0x6a8   :  { %2609 = vmatpush1.bf16.msra.mxu0 %v4530_v56  ;;  %2650 = vmatpush1.bf16.msra.mxu1 %v4534_v38 }
 0x6a9   :  { %2610 = vmatprep.subr.bf16.mxu0 %v4536_v36  ;;  %2651 = vmatprep.subr.bf16.mxu1 %v4548_v10 }
 0x6ac   :  { %2611 = vmatpush1.bf16.msra.mxu0 %v4566_v52  ;;  %2652 = vmatpush1.bf16.msra.mxu1 %v4570_v27 }
 0x6ad   :  { %2612 = vmatprep.subr.bf16.mxu0 %v4572_v5  ;;  %2653 = vmatprep.subr.bf16.mxu1 %v4581_v23 }
 0x6ae   :  { %v3211_v17 = vpop.eup %3210 }
 0x6af   :  { %v2473_v20 = vmul.f32 %v3211_v17, %v3209_v24  ;;  %v5836_v24 = vld [vmem:[#allocation59_spill] sm:$0xff] }
 0x6b0   :  { %2613 = vmatpush1.bf16.msra.mxu0 %v4590_v25  ;;  %2654 = vmatpush1.bf16.msra.mxu1 %v4594_v28 }
 0x6b1   :  { %3000 = vst [vmem:[%s5476_s7 + $0x28] sm:$0xff] %v2473_v20  ;;  %v2597_v33 = vpack.c.bf16 %v2473_v20, %v2473_v20  ;;  %2715 = vmatprep.subr.bf16.mxu0 %v4195_v45  ;;  %2756 = vmatprep.subr.bf16.mxu1 %v4197_v51  ;;  %v5811_v45 = vld [vmem:[#allocation7_spill] sm:$0xff]  ;;  %v5812_v51 = vld [vmem:[#allocation8_spill] sm:$0xff] }
 0x6b3   :  { %2631 = vmatmul.mubr.bf16.vlgmr.msra.gmra.mxu0 %v2597_v33  ;;  %2672 = vmatmul.mubr.bf16.vlgmr.msra.gmra.mxu1 %v2597_v33 }
 0x6b4   :  { %2716 = vmatpush1.bf16.msra.mxu0 %v4199_v57  ;;  %2757 = vmatpush1.bf16.msra.mxu1 %v4202_v58  ;;  %v5813_v57 = vld [vmem:[#allocation9_spill] sm:$0xff]  ;;  %v5814_v58 = vld [vmem:[#allocation10_spill] sm:$0xff] }
 0x6b5   :  { %2717 = vmatprep.subr.bf16.mxu0 %v4204_v59  ;;  %2758 = vmatprep.subr.bf16.mxu1 %v4207_v63  ;;  %v5815_v59 = vld [vmem:[#allocation11_spill] sm:$0xff]  ;;  %v5816_v63 = vld [vmem:[#allocation12_spill] sm:$0xff] }
 0x6b6   :  { %2747 = vmatprep.mubr.bf16.mxu0 %v5579_v49  ;;  %2788 = vmatprep.mubr.bf16.mxu1 %v5579_v49 }
 0x6b8   :  { %2718 = vmatpush1.bf16.msra.mxu0 %v4212_v6  ;;  %2759 = vmatpush1.bf16.msra.mxu1 %v4216_v7  ;;  %v5819_v6 = vld [vmem:[#allocation15_spill] sm:$0xff]  ;;  %v5820_v7 = vld [vmem:[#allocation16_spill] sm:$0xff] }
 0x6b9   :  { %2719 = vmatprep.subr.bf16.mxu0 %v4218_v8  ;;  %2760 = vmatprep.subr.bf16.mxu1 %v5811_v45  ;;  %v5821_v8 = vld [vmem:[#allocation17_spill] sm:$0xff] }
 0x6bc   :  { %2720 = vmatpush1.bf16.msra.mxu0 %v5812_v51  ;;  %2761 = vmatpush1.bf16.msra.mxu1 %v5813_v57  ;;  %v5837_v51 = vld [vmem:[#allocation61_spill] sm:$0xff] }
 0x6bd   :  { %2721 = vmatprep.subr.bf16.mxu0 %v5814_v58  ;;  %2762 = vmatprep.subr.bf16.mxu1 %v5815_v59 }
 0x6c0   :  { %2722 = vmatpush1.bf16.msra.mxu0 %v5816_v63  ;;  %2763 = vmatpush1.bf16.msra.mxu1 %v5817_v2 }
 0x6c1   :  { %2723 = vmatprep.subr.bf16.mxu0 %v5818_v1  ;;  %2764 = vmatprep.subr.bf16.mxu1 %v5819_v6  ;;  %v5838_v6 = vld [vmem:[#allocation60_spill] sm:$0xff] }
 0x6c4   :  { %2724 = vmatpush1.bf16.msra.mxu0 %v5820_v7  ;;  %2765 = vmatpush1.bf16.msra.mxu1 %v5821_v8 }
 0x6c5   :  { %2725 = vmatprep.subr.bf16.mxu0 %v5822_v62  ;;  %2766 = vmatprep.subr.bf16.mxu1 %v5823_v61  ;;  %v5839_v62 = vld [vmem:[#allocation62_spill] sm:$0xff] }
 0x6c8   :  { %2726 = vmatpush1.bf16.msra.mxu0 %v5824_v0  ;;  %2767 = vmatpush1.bf16.msra.mxu1 %v5825_v37 }
 0x6c9   :  { %2727 = vmatprep.subr.bf16.mxu0 %v5826_v34  ;;  %2768 = vmatprep.subr.bf16.mxu1 %v5827_v48 }
 0x6cc   :  { %2728 = vmatpush1.bf16.msra.mxu0 %v5828_v19  ;;  %2769 = vmatpush1.bf16.msra.mxu1 %v5829_v30 }
 0x6cd   :  { %2729 = vmatprep.subr.bf16.mxu0 %v5830_v21  ;;  %2770 = vmatprep.subr.bf16.mxu1 %v5831_v42 }
 0x6d0   :  { %2730 = vmatpush1.bf16.msra.mxu0 %v5832_v35  ;;  %2771 = vmatpush1.bf16.msra.mxu1 %v5833_v32  ;;  %v5840_v35 = vld [vmem:[#allocation71_spill] sm:$0xff] }
 0x6d1   :  { %2831 = vmatprep.subr.bf16.mxu0 %v5834_v4  ;;  %2872 = vmatprep.subr.bf16.mxu1 %v5835_v13 }
 0x753   :  { %v2515_v44 = vpop.f32.mrf.mxu0  ;;  %v2556_v15 = vpop.f32.mrf.mxu1 }
 0x754   :  { %v2563_v17 = vadd.f32 %v2515_v44, %v5836_v24  ;;  %v2565_v7 = vadd.f32 %v2556_v15, %v5838_v6  ;;  %v5842_v6 = vld [vmem:[#allocation72_spill] sm:$0xff] }
 0x755   :  { %v2517_v20 = vpop.f32.mrf.mxu0  ;;  %v2558_v33 = vpop.f32.mrf.mxu1 }
 0x756   :  { %v3001_v45 = vmul.f32 -1.442695, %v2563_v17  ;;  %v2564_v57 = vadd.f32 %v2517_v20, %v5837_v51  ;;  %v3003_v8 = vmul.f32 -1.442695, %v2565_v7  ;;  %v2566_v61 = vadd.f32 %v2558_v33, %v5839_v62  ;;  %v5841_v17 = vld [vmem:[#allocation73_spill] sm:$0xff]  ;;  %v5843_v62 = vld [vmem:[#allocation74_spill] sm:$0xff] }
 0x757   :  { %v2519_v58 = vpop.f32.mrf.mxu0  ;;  %v2560_v59 = vpop.f32.mrf.mxu1 }
 0x758   :  { %3212 = vpow2.f32 %v3001_v45  ;;  %v3002_v63 = vmul.f32 -1.442695, %v2564_v57 }
 0x759   :  { %v2520_v2 = vpop.f32.mrf.mxu0  ;;  %v2561_v1 = vpop.f32.mrf.mxu1 }
 0x75a   :  { %3214 = vpow2.f32 %v3002_v63 }
 0x75b   :  { %3216 = vpow2.f32 %v3003_v8 }
 0x75c   :  { %3218 = vtanh.f32 %v2566_v61 }
 0x765   :  { %v3213_v0 = vpop.eup %3212 }
 0x766   :  { %v2576_v37 = vadd.f32 1.0, %v3213_v0 }
 0x767   :  { %v3215_v34 = vpop.eup %3214 }
 0x768   :  { %3220 = vrcp.f32 %v2576_v37  ;;  %v2577_v48 = vadd.f32 1.0, %v3215_v34  ;;  %v3217_v19 = vpop.eup %3216 }
 0x769   :  { %v3219_v42 = vpop.eup %3218  ;;  %v2578_v45 = vadd.f32 1.0, %v3217_v19 }
 0x76a   :  { %3222 = vrcp.f32 %v2577_v48 }
 0x773   :  { %v2632_v30 = vpop.f32.mrf.mxu0  ;;  %v2673_v21 = vpop.f32.mrf.mxu1 }
 0x774   :  { %v2680_v32 = vadd.f32 %v2632_v30, %v5840_v35  ;;  %v2682_v7 = vadd.f32 %v2673_v21, %v5842_v6 }
 0x775   :  { %v3221_v4 = vpop.eup %3220  ;;  %v2634_v13 = vpop.f32.mrf.mxu0 }
 0x776   :  { %v2675_v44 = vpop.f32.mrf.mxu1  ;;  %v2587_v15 = vmul.f32 %v3221_v4, %v3219_v42  ;;  %v3005_v24 = vmul.f32 -1.442695, %v2680_v32  ;;  %v2681_v20 = vadd.f32 %v2634_v13, %v5841_v17  ;;  %v3007_v8 = vmul.f32 -1.442695, %v2682_v7 }
 0x777   :  { %v3223_v33 = vpop.eup %3222  ;;  %v2636_v51 = vpop.f32.mrf.mxu0  ;;  %v2683_v61 = vadd.f32 %v2675_v44, %v5843_v62 }
 0x778   :  { %v2677_v57 = vpop.f32.mrf.mxu1  ;;  %v2586_v58 = vmul.f32 %v3223_v33, %v5316_v43  ;;  %3224 = vpow2.f32 %v3005_v24  ;;  %v3006_v59 = vmul.f32 -1.442695, %v2681_v20  ;;  %v5848_v24 = vld [vmem:[#allocation67_spill] sm:$0xff] }
 0x779   :  { %v2637_v63 = vpop.f32.mrf.mxu0 }
 0x77a   :  { %v2678_v2 = vpop.f32.mrf.mxu1  ;;  %v5406_v1 = vadd.f32 %v2587_v15, %v2586_v58  ;;  %3226 = vpow2.f32 %v3006_v59  ;;  %v5849_v58 = vld [vmem:[#allocation69_spill] sm:$0xff] }
 0x77b   :  { %3228 = vrcp.f32 %v2578_v45 }
 0x77c   :  { %3230 = vtanh.f32 %v5406_v1 }
 0x77d   :  { %3232 = vpow2.f32 %v3007_v8 }
 0x77e   :  { %3234 = vtanh.f32 %v2683_v61 }
 0x785   :  { %v3225_v0 = vpop.eup %3224 }
 0x786   :  { %v2693_v37 = vadd.f32 1.0, %v3225_v0 }
 0x787   :  { %v3227_v34 = vpop.eup %3226 }
 0x788   :  { %v3229_v43 = vpop.eup %3228  ;;  %3236 = vrcp.f32 %v2693_v37  ;;  %v2694_v48 = vadd.f32 1.0, %v3227_v34  ;;  %v5850_v34 = vld [vmem:[#allocation68_spill] sm:$0xff] }
 0x789   :  { %v3231_v19 = vpop.eup %3230 }
 0x78a   :  { %3238 = vrcp.f32 %v2694_v48  ;;  %v2590_v30 = vmul.f32 %v3231_v19, %v3229_v43  ;;  %v3233_v21 = vpop.eup %3232  ;;  %v5851_v19 = vld [vmem:[#allocation70_spill] sm:$0xff] }
 0x78b   :  { %v3235_v35 = vpop.eup %3234 }
 0x78c   :  { %3004 = vst [vmem:[%s5476_s7 + $0x60] sm:$0xff] %v2590_v30  ;;  %v2714_v42 = vpack.c.bf16 %v2590_v30, %v2590_v30 }
 0x78e   :  { %2748 = vmatmul.mubr.bf16.vlgmr.msra.gmra.mxu0 %v2714_v42  ;;  %2789 = vmatmul.mubr.bf16.vlgmr.msra.gmra.mxu1 %v2714_v42 }
 0x78f   :  { %2832 = vmatpush1.bf16.msra.mxu0 %v4346_v53  ;;  %2873 = vmatpush1.bf16.msra.mxu1 %v4350_v54 }
 0x790   :  { %2833 = vmatprep.subr.bf16.mxu0 %v4352_v55  ;;  %2874 = vmatprep.subr.bf16.mxu1 %v4364_v3  ;;  %v2695_v55 = vadd.f32 1.0, %v3233_v21 }
 0x791   :  { %2863 = vmatprep.mubr.bf16.mxu0 %v5579_v49  ;;  %2904 = vmatprep.mubr.bf16.mxu1 %v5579_v49  ;;  %v5846_v49 = vld [vmem:[#allocation64_spill] sm:$0xff] }
 0x792   :  { %3240 = vrcp.f32 %v2695_v55 }
 0x793   :  { %2834 = vmatpush1.bf16.msra.mxu0 %v4384_v12  ;;  %2875 = vmatpush1.bf16.msra.mxu1 %v4388_v18 }
 0x794   :  { %2835 = vmatprep.subr.bf16.mxu0 %v4390_v22  ;;  %2876 = vmatprep.subr.bf16.mxu1 %v4402_v26 }
 0x795   :  { %v3237_v53 = vpop.eup %3236 }
 0x796   :  { %v2704_v54 = vmul.f32 %v3237_v53, %v3235_v35 }
 0x797   :  { %v3239_v32 = vpop.eup %3238  ;;  %2836 = vmatpush1.bf16.msra.mxu0 %v4422_v40  ;;  %2877 = vmatpush1.bf16.msra.mxu1 %v4426_v41 }
 0x798   :  { %v2703_v3 = vmul.f32 %v3239_v32, %v5339_v29  ;;  %2837 = vmatprep.subr.bf16.mxu0 %v4428_v47  ;;  %2878 = vmatprep.subr.bf16.mxu1 %v4440_v60  ;;  %v5844_v47 = vld [vmem:[#allocation63_spill] sm:$0xff] }
 0x79a   :  { %v5429_v12 = vadd.f32 %v2704_v54, %v2703_v3 }
 0x79b   :  { %2838 = vmatpush1.bf16.msra.mxu0 %v4458_v11  ;;  %2879 = vmatpush1.bf16.msra.mxu1 %v5640_v31 }
 0x79c   :  { %3242 = vtanh.f32 %v5429_v12  ;;  %2839 = vmatprep.subr.bf16.mxu0 %v5641_v9  ;;  %2880 = vmatprep.subr.bf16.mxu1 %v5642_v16  ;;  %v5847_v16 = vld [vmem:[#allocation66_spill] sm:$0xff] }
 0x79f   :  { %2840 = vmatpush1.bf16.msra.mxu0 %v5643_v39  ;;  %2881 = vmatpush1.bf16.msra.mxu1 %v5644_v50  ;;  %v3241_v18 = vpop.eup %3240 }
 0x7a0   :  { %2841 = vmatprep.subr.bf16.mxu0 %v5645_v14  ;;  %2882 = vmatprep.subr.bf16.mxu1 %v5646_v46 }
 0x7a3   :  { %2842 = vmatpush1.bf16.msra.mxu0 %v4530_v56  ;;  %2883 = vmatpush1.bf16.msra.mxu1 %v4534_v38 }
 0x7a4   :  { %2843 = vmatprep.subr.bf16.mxu0 %v4536_v36  ;;  %2884 = vmatprep.subr.bf16.mxu1 %v4548_v10 }
 0x7a7   :  { %2844 = vmatpush1.bf16.msra.mxu0 %v4566_v52  ;;  %2885 = vmatpush1.bf16.msra.mxu1 %v4570_v27  ;;  %v5845_v27 = vld [vmem:[#allocation65_spill] sm:$0xff] }
 0x7a8   :  { %2845 = vmatprep.subr.bf16.mxu0 %v4572_v5  ;;  %2886 = vmatprep.subr.bf16.mxu1 %v4581_v23 }
 0x7a9   :  { %v3243_v22 = vpop.eup %3242 }
 0x7aa   :  { %v2707_v26 = vmul.f32 %v3243_v22, %v3241_v18 }
 0x7ab   :  { %2846 = vmatpush1.bf16.msra.mxu0 %v4590_v25  ;;  %2887 = vmatpush1.bf16.msra.mxu1 %v4594_v28 }
 0x7ac   :  { %3008 = vst [vmem:[%s5476_s7 + $0x18] sm:$0xff] %v2707_v26  ;;  %v2830_v38 = vpack.c.bf16 %v2707_v26, %v2707_v26 }
 0x7ae   :  { %2864 = vmatmul.mubr.bf16.vlgmr.msra.gmra.mxu0 %v2830_v38  ;;  %2905 = vmatmul.mubr.bf16.vlgmr.msra.gmra.mxu1 %v2830_v38 }
 0x84e   :  { %v2749_v40 = vpop.f32.mrf.mxu0  ;;  %v2790_v41 = vpop.f32.mrf.mxu1 }
 0x84f   :  { %v2797_v60 = vadd.f32 %v2749_v40, %v5844_v47  ;;  %v2799_v31 = vadd.f32 %v2790_v41, %v5846_v49 }
 0x850   :  { %v2751_v11 = vpop.f32.mrf.mxu0  ;;  %v2792_v36 = vpop.f32.mrf.mxu1 }
 0x851   :  { %v3009_v5 = vmul.f32 -1.442695, %v2797_v60  ;;  %v2798_v56 = vadd.f32 %v2751_v11, %v5845_v27  ;;  %v3011_v9 = vmul.f32 -1.442695, %v2799_v31  ;;  %v2800_v39 = vadd.f32 %v2792_v36, %v5847_v16 }
 0x852   :  { %v2753_v10 = vpop.f32.mrf.mxu0  ;;  %v2794_v52 = vpop.f32.mrf.mxu1 }
 0x853   :  { %3244 = vpow2.f32 %v3009_v5  ;;  %v3010_v23 = vmul.f32 -1.442695, %v2798_v56 }
 0x854   :  { %v2754_v25 = vpop.f32.mrf.mxu0  ;;  %v2795_v28 = vpop.f32.mrf.mxu1 }
 0x855   :  { %3246 = vpow2.f32 %v3010_v23 }
 0x856   :  { %3248 = vpow2.f32 %v3011_v9 }
 0x857   :  { %3250 = vtanh.f32 %v2800_v39 }
 0x860   :  { %v3245_v50 = vpop.eup %3244 }
 0x861   :  { %v2810_v14 = vadd.f32 1.0, %v3245_v50 }
 0x862   :  { %v3247_v46 = vpop.eup %3246 }
 0x863   :  { %3252 = vrcp.f32 %v2810_v14  ;;  %v2811_v29 = vadd.f32 1.0, %v3247_v46  ;;  %v3249_v4 = vpop.eup %3248 }
 0x864   :  { %v3251_v15 = vpop.eup %3250  ;;  %v2812_v2 = vadd.f32 1.0, %v3249_v4 }
 0x865   :  { %3254 = vrcp.f32 %v2811_v29 }
 0x86e   :  { %v2865_v13 = vpop.f32.mrf.mxu0  ;;  %v2906_v44 = vpop.f32.mrf.mxu1 }
 0x86f   :  { %v2913_v17 = vadd.f32 %v2865_v13, %v5848_v24  ;;  %v2915_v43 = vadd.f32 %v2906_v44, %v5850_v34 }
 0x870   :  { %v3253_v20 = vpop.eup %3252  ;;  %v2867_v33 = vpop.f32.mrf.mxu0 }
 0x871   :  { %v2908_v45 = vpop.f32.mrf.mxu1  ;;  %v2821_v51 = vmul.f32 %v3253_v20, %v3251_v15  ;;  %v3013_v57 = vmul.f32 -1.442695, %v2913_v17  ;;  %v2914_v59 = vadd.f32 %v2867_v33, %v5849_v58  ;;  %v3015_v48 = vmul.f32 -1.442695, %v2915_v43 }
 0x872   :  { %v3255_v63 = vpop.eup %3254  ;;  %v2869_v6 = vpop.f32.mrf.mxu0  ;;  %v2916_v30 = vadd.f32 %v2908_v45, %v5851_v19 }
 0x873   :  { %v2910_v7 = vpop.f32.mrf.mxu1  ;;  %v2820_v8 = vmul.f32 %v3255_v63, %v5406_v1  ;;  %3256 = vpow2.f32 %v3013_v57  ;;  %v3014_v62 = vmul.f32 -1.442695, %v2914_v59 }
 0x874   :  { %v2870_v61 = vpop.f32.mrf.mxu0 }
 0x875   :  { %v2911_v0 = vpop.f32.mrf.mxu1  ;;  %v2822_v37 = vadd.f32 %v2821_v51, %v2820_v8  ;;  %3258 = vpow2.f32 %v3014_v62 }
 0x876   :  { %3260 = vrcp.f32 %v2812_v2 }
 0x877   :  { %3262 = vtanh.f32 %v2822_v37 }
 0x878   :  { %3264 = vpow2.f32 %v3015_v48 }
 0x879   :  { %3266 = vtanh.f32 %v2916_v30 }
 0x880   :  { %v3257_v42 = vpop.eup %3256 }
 0x881   :  { %v2926_v21 = vadd.f32 1.0, %v3257_v42 }
 0x882   :  { %v3259_v35 = vpop.eup %3258 }
 0x883   :  { %v3261_v53 = vpop.eup %3260  ;;  %3268 = vrcp.f32 %v2926_v21  ;;  %v2927_v1 = vadd.f32 1.0, %v3259_v35 }
 0x884   :  { %v3263_v54 = vpop.eup %3262 }
 0x885   :  { %v2824_v32 = vmul.f32 %v3263_v54, %v3261_v53  ;;  %3270 = vrcp.f32 %v2927_v1  ;;  %v3265_v55 = vpop.eup %3264 }
 0x886   :  { %v3267_v3 = vpop.eup %3266  ;;  %v2928_v38 = vadd.f32 1.0, %v3265_v55 }
 0x887   :  { %3012 = vst [vmem:[%s5476_s7 + $0x70] sm:$0xff] %v2824_v32 }
 0x888   :  { %3272 = vrcp.f32 %v2928_v38 }
 0x890   :  { %v3269_v18 = vpop.eup %3268 }
 0x891   :  { %v2937_v22 = vmul.f32 %v3269_v18, %v3267_v3 }
 0x892   :  { %v3271_v26 = vpop.eup %3270 }
 0x893   :  { %v2936_v40 = vmul.f32 %v3271_v26, %v5429_v12 }
 0x895   :  { %v2938_v41 = vadd.f32 %v2937_v22, %v2936_v40  ;;  %v3273_v47 = vpop.eup %3272 }
 0x897   :  { %3274 = vtanh.f32 %v2938_v41 }
 0x8a4   :  { %v3275_v60 = vpop.eup %3274 }
 0x8a5   :  { %v2940_v11 = vmul.f32 %v3275_v60, %v3273_v47 }
 0x8a7   :  { %2941 = vst [vmem:[%s5476_s7 + $0x8] sm:$0xff] %v2940_v11 }
 0x8a8   :  { %2946 = vsyncpa [#allocation5], 1 }

</bundles_post_ra>
